<compile_context>
chip_gen: v5e
topology: v5e:2x2
jax: 0.10.0
libtpu: 0.0.40
codegen_flags: <defaults>
</compile_context>

<pallas_src>
import functools

import jax
import jax.numpy as jnp
import numpy as np
from jax.experimental import pallas as pl
from jax.experimental.pallas import tpu as pltpu

OUT_PAD = 8   # lane padding of the layer-3 output channels (2 -> 8)


def relu6(x):
    return jnp.minimum(jnp.maximum(x, 0.0), 6.0)


def relu(x):
    return jnp.maximum(x, 0.0)


def _round_up(v, m):
    return ((v + m - 1) // m) * m


# ------------------------------ fused kernel --------------------------------
def _fused_dca_kernel(x_ref, mask_ref, w1_ref, b1_ref, w2_ref, b2_ref,
                      w3_ref, b3_ref, o_ref, h_ref, *, wc, n, k1, k2):
    """Fused 7x7 -> 3x3 -> 3x3 conv stack (+bias, act) for one image.

    Canvas layout: activations live on the zero-bordered (hc, wc) grid,
    flattened so row index = r*wc + c.  A conv tap (kh, kw) of a canvas map is
    the row-shifted slice canvas[kh*wc + kw :][:n].  The layer-1 input arrives
    with kw pre-folded into lanes (lane = kw*Cin + ci), so a single kh slice
    provides a K = k1*Cin contraction.  For layers 2/3 a full (n, k2*k2*hidden)
    im2col slab is built with one lane-concatenate of 9 shifted bf16 slices.
    Rows that are not real conv outputs are zeroed via `mask` so the canvas
    border stays a valid zero-padding ring for the next layer.
    """
    hidden = w2_ref.shape[-1]
    n_buf_h = h_ref.shape[0]

    # Zero only the never-written border rows of the h canvas (every step ->
    # megacore-safe; interior rows are fully rewritten each step).
    h_ref[0:wc + 1, :] = jnp.zeros((wc + 1, hidden), h_ref.dtype)
    h_ref[wc + 1 + n:n_buf_h, :] = jnp.zeros((n_buf_h - (wc + 1 + n), hidden),
                                             h_ref.dtype)

    # Validity mask of canvas rows, broadcast once and reused by layers 1/2.
    maskb = jnp.broadcast_to(mask_ref[...], (n, hidden))

    # ---- layer 1: 7x7 conv (Cin -> hidden) + ReLU6; kw folded into K --------
    acc = jnp.zeros((n, hidden), jnp.float32)
    for kh in range(k1):
        a = x_ref[kh * wc:kh * wc + n, :]                 # (n, k1*Cin) bf16
        acc = acc + jnp.dot(a, w1_ref[kh],
                            preferred_element_type=jnp.float32)
    h1 = (relu6(acc + b1_ref[...]) * maskb).astype(jnp.bfloat16)
    h_ref[wc + 1:wc + 1 + n, :] = h1       # place at canvas offset (+1, +1)

    def im2col_3x3():
        # (n, k2*k2*hidden) bf16 slab; lane block (kh*k2 + kw) is that tap.
        return jnp.concatenate(
            [h_ref[kh * wc + kw:kh * wc + kw + n, :]
             for kh in range(k2) for kw in range(k2)], axis=-1)

    # ---- layer 2: 3x3 conv (hidden -> hidden) + ReLU; one matmul, K=288 -----
    acc = jnp.dot(im2col_3x3(), w2_ref[...],
                  preferred_element_type=jnp.float32)
    h2 = (relu(acc + b2_ref[...]) * maskb).astype(jnp.bfloat16)
    h_ref[wc + 1:wc + 1 + n, :] = h2

    # ---- layer 3: 3x3 conv (hidden -> OUT_PAD) + ReLU; one matmul, K=288 ----
    acc = jnp.dot(im2col_3x3(), w3_ref[...],
                  preferred_element_type=jnp.float32)
    o_ref[...] = relu(acc + b3_ref[...])


# ------------------------------ parameter prep ------------------------------
def make_params(w1, b1, w2, b2, w3, b3):
    """PyTorch conv params -> kernel layout.

    w1: (hidden, Cin, 7, 7)    -> (7, 7*Cin, hidden) bf16   (per-kh, kw folded)
    w2: (hidden, hidden, 3, 3) -> (9*hidden, hidden) bf16   (fully folded)
    w3: (2, hidden, 3, 3)      -> (9*hidden, OUT_PAD) bf16  (folded, lane-padded)
    biases -> f32 (1, C) rows (b3 lane-padded to OUT_PAD).
    """
    k1, cin, hidden = w1.shape[-1], w1.shape[1], w1.shape[0]
    k2 = w2.shape[-1]

    w1m = jnp.transpose(w1, (2, 3, 1, 0)).reshape(k1, k1 * cin, hidden)
    w2m = jnp.transpose(w2, (2, 3, 1, 0)).reshape(k2 * k2 * hidden, hidden)
    w3m = jnp.transpose(w3, (2, 3, 1, 0)).reshape(k2 * k2 * hidden, w3.shape[0])
    w3m = jnp.pad(w3m, ((0, 0), (0, OUT_PAD - w3m.shape[-1])))
    b1m = b1.reshape(1, -1).astype(jnp.float32)
    b2m = b2.reshape(1, -1).astype(jnp.float32)
    b3m = jnp.pad(b3.reshape(1, -1),
                  ((0, 0), (0, OUT_PAD - b3.shape[0]))).astype(jnp.float32)
    return dict(w1=w1m.astype(jnp.bfloat16), b1=b1m,
                w2=w2m.astype(jnp.bfloat16), b2=b2m,
                w3=w3m.astype(jnp.bfloat16), b3=b3m)


# ------------------------- DepthAndContextAware forward ----------------------
@jax.jit
def depth_and_context_aware_forward(params, flow, inv_depth, context):
    """Forward of DepthAndContextAware (default input_relative_depth_context=True).

    TODO(synk): the PyTorch __init__ dereferences the undefined attribute
    `self.keep_depth_and_context`; only the default (no depth/context
    normalization) path is reachable and is what is implemented here.
    """
    B, _, H, W = flow.shape
    k1 = params["w1"].shape[0]
    cin = params["w1"].shape[1] // k1
    hidden = params["w1"].shape[2]
    k2 = 3
    nout = params["w3"].shape[1]

    hc, wc = H + 2, W + 2                    # conv-padded canvas size (pad=1)
    ho, wo = hc - k1 + 1, wc - k1 + 1        # spatial size after the 7x7/pad=1
    n = hc * wc                              # flattened canvas rows
    n_buf_x = _round_up(n + (k1 - 1) * wc, 8)
    n_buf_h = _round_up(n + 2 * wc + 2, 8)

    # NCHW -> flat bf16 canvas with explicit zero border, then fold the 7 kw
    # taps of layer1 into the lane dim (lane = kw*Cin + ci).
    x = jnp.concatenate([flow, inv_depth, context], axis=1)
    x = jnp.transpose(x, (0, 2, 3, 1))
    x = jnp.pad(x, ((0, 0), (1, 1), (1, 1), (0, 0)))
    x = x.reshape(B, n, cin)
    x = jnp.pad(x, ((0, 0), (0, n_buf_x + k1 - 1 - n), (0, 0)))
    x = jnp.concatenate([x[:, kw:kw + n_buf_x, :] for kw in range(k1)],
                        axis=-1).astype(jnp.bfloat16)

    # Mask of canvas rows that correspond to real conv-output positions
    # (tiny, constant index_map -> fetched once and VMEM-resident).
    rr = np.arange(n) // wc
    cc = np.arange(n) % wc
    mask = jnp.asarray(((rr < ho) & (cc < wo)).astype(np.float32).reshape(n, 1))

    kernel = functools.partial(_fused_dca_kernel, wc=wc, n=n, k1=k1, k2=k2)

    flops = 2 * B * n * (k1 * k1 * cin * hidden
                         + k2 * k2 * hidden * hidden
                         + k2 * k2 * hidden * nout)
    bytes_accessed = (x.size * 2 + mask.size * 4
                      + params["w1"].size * 2 + params["w2"].size * 2
                      + params["w3"].size * 2
                      + 4 * (params["b1"].size + params["b2"].size
                             + params["b3"].size)
                      + B * n * nout * 4)

    out = pl.pallas_call(
        kernel,
        grid=(B,),
        in_specs=[
            pl.BlockSpec((None, n_buf_x, k1 * cin), lambda b: (b, 0, 0)),
            pl.BlockSpec((n, 1), lambda b: (0, 0)),
            pl.BlockSpec((k1, k1 * cin, hidden), lambda b: (0, 0, 0)),
            pl.BlockSpec((1, hidden), lambda b: (0, 0)),
            pl.BlockSpec((k2 * k2 * hidden, hidden), lambda b: (0, 0)),
            pl.BlockSpec((1, hidden), lambda b: (0, 0)),
            pl.BlockSpec((k2 * k2 * hidden, nout), lambda b: (0, 0)),
            pl.BlockSpec((1, nout), lambda b: (0, 0)),
        ],
        out_specs=pl.BlockSpec((None, n, nout), lambda b: (b, 0, 0)),
        out_shape=jax.ShapeDtypeStruct((B, n, nout), jnp.float32),
        scratch_shapes=[pltpu.VMEM((n_buf_h, hidden), jnp.bfloat16)],
        compiler_params=pltpu.CompilerParams(
            dimension_semantics=("parallel",),
            # TODO(synk): re-derive per generation (<= ~48 MiB on v7x; larger
            # row tiles / higher limit are fine on v5e/v6e).
            vmem_limit_bytes=48 * 1024 * 1024),
        cost_estimate=pl.CostEstimate(flops=int(flops), transcendentals=0,
                                      bytes_accessed=int(bytes_accessed)),
    )(x, mask, params["w1"], params["b1"], params["w2"], params["b2"],
      params["w3"], params["b3"])

    # Crop the valid window, keep the 2 real flow channels, add the residual
    # here (keeps the kernel's output stream at 8 lanes instead of 128).
    out = out.reshape(B, hc, wc, nout)[:, :ho, :wo, :2]
    out_flow = jnp.transpose(out, (0, 3, 1, 2))
    # TODO(synk): the PyTorch `output_flow + flow` has mismatched spatial shapes
    # (the 7x7/pad=1 conv shrinks H/W by 4); we center-crop flow (offset 2) so
    # the residual add is well defined.
    out_flow = out_flow + flow[:, :, 2:2 + ho, 2:2 + wo]
    return out_flow, inv_depth, context


# ----------------------------- pure-JAX reference ----------------------------
def reference_forward(w1, b1, w2, b2, w3, b3, flow, inv_depth, context):
    """f32 conv reference using bf16-rounded inputs/weights (kernel runs bf16 MXU)."""
    def q(a):
        return a.astype(jnp.bfloat16).astype(jnp.float32)

    dn = ("NCHW", "OIHW", "NCHW")
    conv = functools.partial(jax.lax.conv_general_dilated,
                             window_strides=(1, 1), padding=[(1, 1), (1, 1)],
                             dimension_numbers=dn,
                             precision=jax.lax.Precision.HIGHEST)
    x = q(jnp.concatenate([flow, inv_depth, context], axis=1))
    y = relu6(conv(x, q(w1)) + b1[None, :, None, None])
    y = relu(conv(y, q(w2)) + b2[None, :, None, None])
    y = relu(conv(y, q(w3)) + b3[None, :, None, None])
    ho, wo = y.shape[2], y.shape[3]
    return y + flow[:, :, 2:2 + ho, 2:2 + wo]


# ----------------------------------- main ------------------------------------
if __name__ == "__main__":
    key = jax.random.PRNGKey(0)
    B, H, W = 2, 16, 16
    flow_ch, depth_ch, ctx_ch = 2, 1, 5
    in_chans = flow_ch + depth_ch + ctx_ch          # 8
    hidden_ch = 32

    ks = jax.random.split(key, 9)
    flow = jax.random.normal(ks[0], (B, flow_ch, H, W), jnp.float32)
    inv_depth = jax.random.normal(ks[1], (B, depth_ch, H, W), jnp.float32)
    context = jax.random.normal(ks[2], (B, ctx_ch, H, W), jnp.float32)

    # Deterministic parameter init (shapes follow the PyTorch module).
    w1 = 0.1 * jax.random.normal(ks[3], (hidden_ch, in_chans, 7, 7), jnp.float32)
    b1 = 0.1 * jax.random.normal(ks[4], (hidden_ch,), jnp.float32)
    w2 = 0.1 * jax.random.normal(ks[5], (hidden_ch, hidden_ch, 3, 3), jnp.float32)
    b2 = 0.1 * jax.random.normal(ks[6], (hidden_ch,), jnp.float32)
    w3 = 0.1 * jax.random.normal(ks[7], (2, hidden_ch, 3, 3), jnp.float32)
    b3 = 0.1 * jax.random.normal(ks[8], (2,), jnp.float32)

    params = make_params(w1, b1, w2, b2, w3, b3)

    out_flow, out_depth, out_ctx = depth_and_context_aware_forward(
        params, flow, inv_depth, context)
    out_flow = jax.block_until_ready(out_flow)

    assert out_flow.shape == (B, 2, H - 4, W - 4)
    assert out_depth.shape == inv_depth.shape and out_ctx.shape == context.shape

    ref = reference_forward(w1, b1, w2, b2, w3, b3, flow, inv_depth, context)
    # bf16 inputs/weights + bf16-quantized intermediate activations => relaxed tol.
    np.testing.assert_allclose(np.asarray(out_flow), np.asarray(ref),
                               rtol=5e-2, atol=1e-1)
    print("KERNEL_OK")
</pallas_src>

<mosaic_0001>
module attributes {stable_mosaic.version = 11 : i64} {
  func.func @_fused_dca_kernel(%arg0: i32, %arg1: memref<1x432x56xbf16, #tpu.memory_space<vmem>>, %arg2: memref<324x1xf32, #tpu.memory_space<vmem>>, %arg3: memref<7x56x32xbf16, #tpu.memory_space<vmem>>, %arg4: memref<1x32xf32, #tpu.memory_space<vmem>>, %arg5: memref<288x32xbf16, #tpu.memory_space<vmem>>, %arg6: memref<1x32xf32, #tpu.memory_space<vmem>>, %arg7: memref<288x8xbf16, #tpu.memory_space<vmem>>, %arg8: memref<1x8xf32, #tpu.memory_space<vmem>>, %arg9: memref<1x324x8xf32, #tpu.memory_space<vmem>>, %arg10: memref<368x32xbf16, #tpu.memory_space<vmem>>) attributes {dimension_semantics = [#tpu.dimension_semantics<parallel>], iteration_bounds = array<i64: 2>, scalar_prefetch = 0 : i64, scratch_operands = 1 : i64, tpu.core_type = #tpu.core_type<tc>, window_params = [{transform_indices = @transform_0, window_bounds = array<i64: 1, 432, 56>}, {pipeline_mode = #tpu.pipeline_mode<synchronous>, transform_indices = @transform_1, window_bounds = array<i64: 324, 1>}, {pipeline_mode = #tpu.pipeline_mode<synchronous>, transform_indices = @transform_2, window_bounds = array<i64: 7, 56, 32>}, {pipeline_mode = #tpu.pipeline_mode<synchronous>, transform_indices = @transform_3, window_bounds = array<i64: 1, 32>}, {pipeline_mode = #tpu.pipeline_mode<synchronous>, transform_indices = @transform_4, window_bounds = array<i64: 288, 32>}, {pipeline_mode = #tpu.pipeline_mode<synchronous>, transform_indices = @transform_5, window_bounds = array<i64: 1, 32>}, {pipeline_mode = #tpu.pipeline_mode<synchronous>, transform_indices = @transform_6, window_bounds = array<i64: 288, 8>}, {pipeline_mode = #tpu.pipeline_mode<synchronous>, transform_indices = @transform_7, window_bounds = array<i64: 1, 8>}, {transform_indices = @transform_8, window_bounds = array<i64: 1, 324, 8>}]} {
    %cst = arith.constant 0.000000e+00 : bf16
    %0 = vector.broadcast %cst : bf16 to vector<19x32xbf16>
    %c0 = arith.constant 0 : index
    %c0_0 = arith.constant 0 : index
    %1 = vector.load %arg10[%c0, %c0_0] : memref<368x32xbf16, #tpu.memory_space<vmem>>, vector<19x32xbf16>
    tpu.vector_store %arg10[%c0, %c0_0], %0 {strides = array<i32>} : memref<368x32xbf16, #tpu.memory_space<vmem>>, vector<19x32xbf16>,
    %cst_1 = arith.constant 0.000000e+00 : bf16
    %2 = vector.broadcast %cst_1 : bf16 to vector<25x32xbf16>
    %c343 = arith.constant 343 : index
    %c0_2 = arith.constant 0 : index
    %3 = vector.load %arg10[%c343, %c0_2] : memref<368x32xbf16, #tpu.memory_space<vmem>>, vector<25x32xbf16>
    tpu.vector_store %arg10[%c343, %c0_2], %2 {strides = array<i32>} : memref<368x32xbf16, #tpu.memory_space<vmem>>, vector<25x32xbf16>,
    %c0_3 = arith.constant 0 : index
    %c0_4 = arith.constant 0 : index
    %4 = vector.load %arg2[%c0_3, %c0_4] : memref<324x1xf32, #tpu.memory_space<vmem>>, vector<324x1xf32>
    %5 = vector.shape_cast %4 : vector<324x1xf32> to vector<324x1xf32>
    %6 = vector.broadcast %5 : vector<324x1xf32> to vector<324x32xf32>
    %cst_5 = arith.constant 0.000000e+00 : f32
    %7 = vector.broadcast %cst_5 : f32 to vector<324x32xf32>
    %c0_6 = arith.constant 0 : index
    %c0_7 = arith.constant 0 : index
    %c0_8 = arith.constant 0 : index
    %8 = vector.load %arg1[%c0_6, %c0_7, %c0_8] : memref<1x432x56xbf16, #tpu.memory_space<vmem>>, vector<1x324x56xbf16>
    %9 = vector.shape_cast %8 : vector<1x324x56xbf16> to vector<324x56xbf16>
    %c0_9 = arith.constant 0 : index
    %c0_10 = arith.constant 0 : index
    %c0_11 = arith.constant 0 : index
    %10 = vector.load %arg3[%c0_9, %c0_10, %c0_11] : memref<7x56x32xbf16, #tpu.memory_space<vmem>>, vector<1x56x32xbf16>
    %11 = vector.shape_cast %10 : vector<1x56x32xbf16> to vector<56x32xbf16>
    %cst_12 = arith.constant dense<0.000000e+00> : vector<324x32xf32>
    %12 = tpu.matmul %9, %11, %cst_12 {dimension_numbers = #tpu.dot_dimension_numbers<[1], [0], [0], [1], [0, 0, 1, 1], [], []>} : vector<324x56xbf16>, vector<56x32xbf16>, vector<324x32xf32> -> vector<324x32xf32>
    %13 = arith.addf %7, %12 : vector<324x32xf32>
    %c0_13 = arith.constant 0 : index
    %c18 = arith.constant 18 : index
    %c0_14 = arith.constant 0 : index
    %14 = vector.load %arg1[%c0_13, %c18, %c0_14] : memref<1x432x56xbf16, #tpu.memory_space<vmem>>, vector<1x324x56xbf16>
    %15 = vector.shape_cast %14 : vector<1x324x56xbf16> to vector<324x56xbf16>
    %c1 = arith.constant 1 : index
    %c0_15 = arith.constant 0 : index
    %c0_16 = arith.constant 0 : index
    %16 = vector.load %arg3[%c1, %c0_15, %c0_16] : memref<7x56x32xbf16, #tpu.memory_space<vmem>>, vector<1x56x32xbf16>
    %17 = vector.shape_cast %16 : vector<1x56x32xbf16> to vector<56x32xbf16>
    %cst_17 = arith.constant dense<0.000000e+00> : vector<324x32xf32>
    %18 = tpu.matmul %15, %17, %cst_17 {dimension_numbers = #tpu.dot_dimension_numbers<[1], [0], [0], [1], [0, 0, 1, 1], [], []>} : vector<324x56xbf16>, vector<56x32xbf16>, vector<324x32xf32> -> vector<324x32xf32>
    %19 = arith.addf %13, %18 : vector<324x32xf32>
    %c0_18 = arith.constant 0 : index
    %c36 = arith.constant 36 : index
    %c0_19 = arith.constant 0 : index
    %20 = vector.load %arg1[%c0_18, %c36, %c0_19] : memref<1x432x56xbf16, #tpu.memory_space<vmem>>, vector<1x324x56xbf16>
    %21 = vector.shape_cast %20 : vector<1x324x56xbf16> to vector<324x56xbf16>
    %c2 = arith.constant 2 : index
    %c0_20 = arith.constant 0 : index
    %c0_21 = arith.constant 0 : index
    %22 = vector.load %arg3[%c2, %c0_20, %c0_21] : memref<7x56x32xbf16, #tpu.memory_space<vmem>>, vector<1x56x32xbf16>
    %23 = vector.shape_cast %22 : vector<1x56x32xbf16> to vector<56x32xbf16>
    %cst_22 = arith.constant dense<0.000000e+00> : vector<324x32xf32>
    %24 = tpu.matmul %21, %23, %cst_22 {dimension_numbers = #tpu.dot_dimension_numbers<[1], [0], [0], [1], [0, 0, 1, 1], [], []>} : vector<324x56xbf16>, vector<56x32xbf16>, vector<324x32xf32> -> vector<324x32xf32>
    %25 = arith.addf %19, %24 : vector<324x32xf32>
    %c0_23 = arith.constant 0 : index
    %c54 = arith.constant 54 : index
    %c0_24 = arith.constant 0 : index
    %26 = vector.load %arg1[%c0_23, %c54, %c0_24] : memref<1x432x56xbf16, #tpu.memory_space<vmem>>, vector<1x324x56xbf16>
    %27 = vector.shape_cast %26 : vector<1x324x56xbf16> to vector<324x56xbf16>
    %c3 = arith.constant 3 : index
    %c0_25 = arith.constant 0 : index
    %c0_26 = arith.constant 0 : index
    %28 = vector.load %arg3[%c3, %c0_25, %c0_26] : memref<7x56x32xbf16, #tpu.memory_space<vmem>>, vector<1x56x32xbf16>
    %29 = vector.shape_cast %28 : vector<1x56x32xbf16> to vector<56x32xbf16>
    %cst_27 = arith.constant dense<0.000000e+00> : vector<324x32xf32>
    %30 = tpu.matmul %27, %29, %cst_27 {dimension_numbers = #tpu.dot_dimension_numbers<[1], [0], [0], [1], [0, 0, 1, 1], [], []>} : vector<324x56xbf16>, vector<56x32xbf16>, vector<324x32xf32> -> vector<324x32xf32>
    %31 = arith.addf %25, %30 : vector<324x32xf32>
    %c0_28 = arith.constant 0 : index
    %c72 = arith.constant 72 : index
    %c0_29 = arith.constant 0 : index
    %32 = vector.load %arg1[%c0_28, %c72, %c0_29] : memref<1x432x56xbf16, #tpu.memory_space<vmem>>, vector<1x324x56xbf16>
    %33 = vector.shape_cast %32 : vector<1x324x56xbf16> to vector<324x56xbf16>
    %c4 = arith.constant 4 : index
    %c0_30 = arith.constant 0 : index
    %c0_31 = arith.constant 0 : index
    %34 = vector.load %arg3[%c4, %c0_30, %c0_31] : memref<7x56x32xbf16, #tpu.memory_space<vmem>>, vector<1x56x32xbf16>
    %35 = vector.shape_cast %34 : vector<1x56x32xbf16> to vector<56x32xbf16>
    %cst_32 = arith.constant dense<0.000000e+00> : vector<324x32xf32>
    %36 = tpu.matmul %33, %35, %cst_32 {dimension_numbers = #tpu.dot_dimension_numbers<[1], [0], [0], [1], [0, 0, 1, 1], [], []>} : vector<324x56xbf16>, vector<56x32xbf16>, vector<324x32xf32> -> vector<324x32xf32>
    %37 = arith.addf %31, %36 : vector<324x32xf32>
    %c0_33 = arith.constant 0 : index
    %c90 = arith.constant 90 : index
    %c0_34 = arith.constant 0 : index
    %38 = vector.load %arg1[%c0_33, %c90, %c0_34] : memref<1x432x56xbf16, #tpu.memory_space<vmem>>, vector<1x324x56xbf16>
    %39 = vector.shape_cast %38 : vector<1x324x56xbf16> to vector<324x56xbf16>
    %c5 = arith.constant 5 : index
    %c0_35 = arith.constant 0 : index
    %c0_36 = arith.constant 0 : index
    %40 = vector.load %arg3[%c5, %c0_35, %c0_36] : memref<7x56x32xbf16, #tpu.memory_space<vmem>>, vector<1x56x32xbf16>
    %41 = vector.shape_cast %40 : vector<1x56x32xbf16> to vector<56x32xbf16>
    %cst_37 = arith.constant dense<0.000000e+00> : vector<324x32xf32>
    %42 = tpu.matmul %39, %41, %cst_37 {dimension_numbers = #tpu.dot_dimension_numbers<[1], [0], [0], [1], [0, 0, 1, 1], [], []>} : vector<324x56xbf16>, vector<56x32xbf16>, vector<324x32xf32> -> vector<324x32xf32>
    %43 = arith.addf %37, %42 : vector<324x32xf32>
    %c0_38 = arith.constant 0 : index
    %c108 = arith.constant 108 : index
    %c0_39 = arith.constant 0 : index
    %44 = vector.load %arg1[%c0_38, %c108, %c0_39] : memref<1x432x56xbf16, #tpu.memory_space<vmem>>, vector<1x324x56xbf16>
    %45 = vector.shape_cast %44 : vector<1x324x56xbf16> to vector<324x56xbf16>
    %c6 = arith.constant 6 : index
    %c0_40 = arith.constant 0 : index
    %c0_41 = arith.constant 0 : index
    %46 = vector.load %arg3[%c6, %c0_40, %c0_41] : memref<7x56x32xbf16, #tpu.memory_space<vmem>>, vector<1x56x32xbf16>
    %47 = vector.shape_cast %46 : vector<1x56x32xbf16> to vector<56x32xbf16>
    %cst_42 = arith.constant dense<0.000000e+00> : vector<324x32xf32>
    %48 = tpu.matmul %45, %47, %cst_42 {dimension_numbers = #tpu.dot_dimension_numbers<[1], [0], [0], [1], [0, 0, 1, 1], [], []>} : vector<324x56xbf16>, vector<56x32xbf16>, vector<324x32xf32> -> vector<324x32xf32>
    %49 = arith.addf %43, %48 : vector<324x32xf32>
    %c0_43 = arith.constant 0 : index
    %c0_44 = arith.constant 0 : index
    %50 = vector.load %arg4[%c0_43, %c0_44] : memref<1x32xf32, #tpu.memory_space<vmem>>, vector<1x32xf32>
    %51 = vector.broadcast %50 : vector<1x32xf32> to vector<324x32xf32>
    %52 = arith.addf %49, %51 : vector<324x32xf32>
    %cst_45 = arith.constant 0.000000e+00 : f32
    %53 = vector.broadcast %cst_45 : f32 to vector<324x32xf32>
    %54 = arith.maximumf %52, %53 : vector<324x32xf32>
    %cst_46 = arith.constant 6.000000e+00 : f32
    %55 = vector.broadcast %cst_46 : f32 to vector<324x32xf32>
    %56 = arith.minimumf %54, %55 : vector<324x32xf32>
    %57 = arith.mulf %56, %6 : vector<324x32xf32>
    %58 = arith.truncf %57 : vector<324x32xf32> to vector<324x32xbf16>
    %c19 = arith.constant 19 : index
    %c0_47 = arith.constant 0 : index
    %59 = vector.load %arg10[%c19, %c0_47] : memref<368x32xbf16, #tpu.memory_space<vmem>>, vector<324x32xbf16>
    tpu.vector_store %arg10[%c19, %c0_47], %58 {strides = array<i32>} : memref<368x32xbf16, #tpu.memory_space<vmem>>, vector<324x32xbf16>,
    %c0_48 = arith.constant 0 : index
    %c0_49 = arith.constant 0 : index
    %60 = vector.load %arg10[%c0_48, %c0_49] : memref<368x32xbf16, #tpu.memory_space<vmem>>, vector<324x32xbf16>
    %c1_50 = arith.constant 1 : index
    %c0_51 = arith.constant 0 : index
    %61 = vector.load %arg10[%c1_50, %c0_51] : memref<368x32xbf16, #tpu.memory_space<vmem>>, vector<324x32xbf16>
    %c2_52 = arith.constant 2 : index
    %c0_53 = arith.constant 0 : index
    %62 = vector.load %arg10[%c2_52, %c0_53] : memref<368x32xbf16, #tpu.memory_space<vmem>>, vector<324x32xbf16>
    %c18_54 = arith.constant 18 : index
    %c0_55 = arith.constant 0 : index
    %63 = vector.load %arg10[%c18_54, %c0_55] : memref<368x32xbf16, #tpu.memory_space<vmem>>, vector<324x32xbf16>
    %c19_56 = arith.constant 19 : index
    %c0_57 = arith.constant 0 : index
    %64 = vector.load %arg10[%c19_56, %c0_57] : memref<368x32xbf16, #tpu.memory_space<vmem>>, vector<324x32xbf16>
    %c20 = arith.constant 20 : index
    %c0_58 = arith.constant 0 : index
    %65 = vector.load %arg10[%c20, %c0_58] : memref<368x32xbf16, #tpu.memory_space<vmem>>, vector<324x32xbf16>
    %c36_59 = arith.constant 36 : index
    %c0_60 = arith.constant 0 : index
    %66 = vector.load %arg10[%c36_59, %c0_60] : memref<368x32xbf16, #tpu.memory_space<vmem>>, vector<324x32xbf16>
    %c37 = arith.constant 37 : index
    %c0_61 = arith.constant 0 : index
    %67 = vector.load %arg10[%c37, %c0_61] : memref<368x32xbf16, #tpu.memory_space<vmem>>, vector<324x32xbf16>
    %c38 = arith.constant 38 : index
    %c0_62 = arith.constant 0 : index
    %68 = vector.load %arg10[%c38, %c0_62] : memref<368x32xbf16, #tpu.memory_space<vmem>>, vector<324x32xbf16>
    %69 = tpu.concatenate %60, %61, %62, %63, %64, %65, %66, %67, %68 in 1 : vector<324x32xbf16>, vector<324x32xbf16>, vector<324x32xbf16>, vector<324x32xbf16>, vector<324x32xbf16>, vector<324x32xbf16>, vector<324x32xbf16>, vector<324x32xbf16>, vector<324x32xbf16> -> vector<324x288xbf16>
    %c0_63 = arith.constant 0 : index
    %c0_64 = arith.constant 0 : index
    %70 = vector.load %arg5[%c0_63, %c0_64] : memref<288x32xbf16, #tpu.memory_space<vmem>>, vector<288x32xbf16>
    %cst_65 = arith.constant dense<0.000000e+00> : vector<324x32xf32>
    %71 = tpu.matmul %69, %70, %cst_65 {dimension_numbers = #tpu.dot_dimension_numbers<[1], [0], [0], [1], [0, 0, 1, 1], [], []>} : vector<324x288xbf16>, vector<288x32xbf16>, vector<324x32xf32> -> vector<324x32xf32>
    %c0_66 = arith.constant 0 : index
    %c0_67 = arith.constant 0 : index
    %72 = vector.load %arg6[%c0_66, %c0_67] : memref<1x32xf32, #tpu.memory_space<vmem>>, vector<1x32xf32>
    %73 = vector.broadcast %72 : vector<1x32xf32> to vector<324x32xf32>
    %74 = arith.addf %71, %73 : vector<324x32xf32>
    %cst_68 = arith.constant 0.000000e+00 : f32
    %75 = vector.broadcast %cst_68 : f32 to vector<324x32xf32>
    %76 = arith.maximumf %74, %75 : vector<324x32xf32>
    %77 = arith.mulf %76, %6 : vector<324x32xf32>
    %78 = arith.truncf %77 : vector<324x32xf32> to vector<324x32xbf16>
    %c19_69 = arith.constant 19 : index
    %c0_70 = arith.constant 0 : index
    %79 = vector.load %arg10[%c19_69, %c0_70] : memref<368x32xbf16, #tpu.memory_space<vmem>>, vector<324x32xbf16>
    tpu.vector_store %arg10[%c19_69, %c0_70], %78 {strides = array<i32>} : memref<368x32xbf16, #tpu.memory_space<vmem>>, vector<324x32xbf16>,
    %c0_71 = arith.constant 0 : index
    %c0_72 = arith.constant 0 : index
    %80 = vector.load %arg10[%c0_71, %c0_72] : memref<368x32xbf16, #tpu.memory_space<vmem>>, vector<324x32xbf16>
    %c1_73 = arith.constant 1 : index
    %c0_74 = arith.constant 0 : index
    %81 = vector.load %arg10[%c1_73, %c0_74] : memref<368x32xbf16, #tpu.memory_space<vmem>>, vector<324x32xbf16>
    %c2_75 = arith.constant 2 : index
    %c0_76 = arith.constant 0 : index
    %82 = vector.load %arg10[%c2_75, %c0_76] : memref<368x32xbf16, #tpu.memory_space<vmem>>, vector<324x32xbf16>
    %c18_77 = arith.constant 18 : index
    %c0_78 = arith.constant 0 : index
    %83 = vector.load %arg10[%c18_77, %c0_78] : memref<368x32xbf16, #tpu.memory_space<vmem>>, vector<324x32xbf16>
    %c19_79 = arith.constant 19 : index
    %c0_80 = arith.constant 0 : index
    %84 = vector.load %arg10[%c19_79, %c0_80] : memref<368x32xbf16, #tpu.memory_space<vmem>>, vector<324x32xbf16>
    %c20_81 = arith.constant 20 : index
    %c0_82 = arith.constant 0 : index
    %85 = vector.load %arg10[%c20_81, %c0_82] : memref<368x32xbf16, #tpu.memory_space<vmem>>, vector<324x32xbf16>
    %c36_83 = arith.constant 36 : index
    %c0_84 = arith.constant 0 : index
    %86 = vector.load %arg10[%c36_83, %c0_84] : memref<368x32xbf16, #tpu.memory_space<vmem>>, vector<324x32xbf16>
    %c37_85 = arith.constant 37 : index
    %c0_86 = arith.constant 0 : index
    %87 = vector.load %arg10[%c37_85, %c0_86] : memref<368x32xbf16, #tpu.memory_space<vmem>>, vector<324x32xbf16>
    %c38_87 = arith.constant 38 : index
    %c0_88 = arith.constant 0 : index
    %88 = vector.load %arg10[%c38_87, %c0_88] : memref<368x32xbf16, #tpu.memory_space<vmem>>, vector<324x32xbf16>
    %89 = tpu.concatenate %80, %81, %82, %83, %84, %85, %86, %87, %88 in 1 : vector<324x32xbf16>, vector<324x32xbf16>, vector<324x32xbf16>, vector<324x32xbf16>, vector<324x32xbf16>, vector<324x32xbf16>, vector<324x32xbf16>, vector<324x32xbf16>, vector<324x32xbf16> -> vector<324x288xbf16>
    %c0_89 = arith.constant 0 : index
    %c0_90 = arith.constant 0 : index
    %90 = vector.load %arg7[%c0_89, %c0_90] : memref<288x8xbf16, #tpu.memory_space<vmem>>, vector<288x8xbf16>
    %cst_91 = arith.constant dense<0.000000e+00> : vector<324x8xf32>
    %91 = tpu.matmul %89, %90, %cst_91 {dimension_numbers = #tpu.dot_dimension_numbers<[1], [0], [0], [1], [0, 0, 1, 1], [], []>} : vector<324x288xbf16>, vector<288x8xbf16>, vector<324x8xf32> -> vector<324x8xf32>
    %c0_92 = arith.constant 0 : index
    %c0_93 = arith.constant 0 : index
    %92 = vector.load %arg8[%c0_92, %c0_93] : memref<1x8xf32, #tpu.memory_space<vmem>>, vector<1x8xf32>
    %93 = vector.broadcast %92 : vector<1x8xf32> to vector<324x8xf32>
    %94 = arith.addf %91, %93 : vector<324x8xf32>
    %cst_94 = arith.constant 0.000000e+00 : f32
    %95 = vector.broadcast %cst_94 : f32 to vector<324x8xf32>
    %96 = arith.maximumf %94, %95 : vector<324x8xf32>
    %c0_95 = arith.constant 0 : index
    %c0_96 = arith.constant 0 : index
    %c0_97 = arith.constant 0 : index
    %97 = vector.load %arg9[%c0_95, %c0_96, %c0_97] : memref<1x324x8xf32, #tpu.memory_space<vmem>>, vector<1x324x8xf32>
    %98 = vector.shape_cast %97 : vector<1x324x8xf32> to vector<324x8xf32>
    %99 = vector.shape_cast %96 : vector<324x8xf32> to vector<1x324x8xf32>
    tpu.vector_store %arg9[%c0_95, %c0_96, %c0_97], %99 {strides = array<i32>} : memref<1x324x8xf32, #tpu.memory_space<vmem>>, vector<1x324x8xf32>,
    return
  }
  func.func @transform_0(%arg0: i32) -> (i32, i32, i32) {
    %c0_i32 = arith.constant 0 : i32
    %c0_i32_0 = arith.constant 0 : i32
    %c0_i32_1 = arith.constant 0 : i32
    return %arg0, %c0_i32, %c0_i32_0 : i32, i32, i32
  }
  func.func @transform_1(%arg0: i32) -> (i32, i32) {
    %c0_i32 = arith.constant 0 : i32
    %c0_i32_0 = arith.constant 0 : i32
    %c0_i32_1 = arith.constant 0 : i32
    return %c0_i32, %c0_i32_0 : i32, i32
  }
  func.func @transform_2(%arg0: i32) -> (i32, i32, i32) {
    %c0_i32 = arith.constant 0 : i32
    %c0_i32_0 = arith.constant 0 : i32
    %c0_i32_1 = arith.constant 0 : i32
    %c0_i32_2 = arith.constant 0 : i32
    return %c0_i32, %c0_i32_0, %c0_i32_1 : i32, i32, i32
  }
  func.func @transform_3(%arg0: i32) -> (i32, i32) {
    %c0_i32 = arith.constant 0 : i32
    %c0_i32_0 = arith.constant 0 : i32
    %c0_i32_1 = arith.constant 0 : i32
    return %c0_i32, %c0_i32_0 : i32, i32
  }
  func.func @transform_4(%arg0: i32) -> (i32, i32) {
    %c0_i32 = arith.constant 0 : i32
    %c0_i32_0 = arith.constant 0 : i32
    %c0_i32_1 = arith.constant 0 : i32
    return %c0_i32, %c0_i32_0 : i32, i32
  }
  func.func @transform_5(%arg0: i32) -> (i32, i32) {
    %c0_i32 = arith.constant 0 : i32
    %c0_i32_0 = arith.constant 0 : i32
    %c0_i32_1 = arith.constant 0 : i32
    return %c0_i32, %c0_i32_0 : i32, i32
  }
  func.func @transform_6(%arg0: i32) -> (i32, i32) {
    %c0_i32 = arith.constant 0 : i32
    %c0_i32_0 = arith.constant 0 : i32
    %c0_i32_1 = arith.constant 0 : i32
    return %c0_i32, %c0_i32_0 : i32, i32
  }
  func.func @transform_7(%arg0: i32) -> (i32, i32) {
    %c0_i32 = arith.constant 0 : i32
    %c0_i32_0 = arith.constant 0 : i32
    %c0_i32_1 = arith.constant 0 : i32
    return %c0_i32, %c0_i32_0 : i32, i32
  }
  func.func @transform_8(%arg0: i32) -> (i32, i32, i32) {
    %c0_i32 = arith.constant 0 : i32
    %c0_i32_0 = arith.constant 0 : i32
    %c0_i32_1 = arith.constant 0 : i32
    return %arg0, %c0_i32, %c0_i32_0 : i32, i32, i32
  }
}

</mosaic_0001>

<bundles_post_ra>
// kernel: depth_and_context_aware_forward.1
= control target key start
LH: loop header
LB: loop body
LE: loop exit
PB: predicated region body
PF: predicated region fallthrough
CT: control target
= control target key end

     0   :  { %s9916_s27 = smov 0   ;;  %s15064_s0 = inlined_call_operand.vmem [shape: bf16[2,432,56], index: 0, kind: input, shape index: {}]   ;;  %s15065_s1 = inlined_call_operand.vmem [shape: f32[324,1], index: 1, kind: input, shape index: {}]   ;;  %s15066_s2 = inlined_call_operand.vmem [shape: bf16[7,56,32], index: 2, kind: input, shape index: {}]   ;;  %s15067_s3 = inlined_call_operand.vmem [shape: f32[1,32], index: 3, kind: input, shape index: {}]   ;;  %s15068_s4 = inlined_call_operand.vmem [shape: bf16[288,32], index: 4, kind: input, shape index: {}]   ;;  %s15069_s5 = inlined_call_operand.vmem [shape: f32[1,32], index: 5, kind: input, shape index: {}]   ;;  %s15070_s6 = inlined_call_operand.vmem [shape: bf16[288,8], index: 6, kind: input, shape index: {}]   ;;  %s15071_s7 = inlined_call_operand.vmem [shape: f32[1,8], index: 7, kind: input, shape index: {}]   ;;  %s15072_s8 = inlined_call_operand.vmem [shape: f32[2,324,8], index: 8, kind: output, shape index: {}]  }
   0x1 LB: > { %s8417_s28 = sadd.s32 4294967295, %s9865_s27   ;;  %p8421_p0 = scmp.ge.s32.totalorder %s9865_s27, 1  ;;  %s9865_s27 = sphi %s9916_s27, %s18_s27  }
   0x2   : > { %p262_p1 = scmp.lt.s32.totalorder %s9865_s27, 3 }
   0x4   : > { %p263_p2 = pnand %p8421_p0, %p262_p1 }
   0x6   : > { %266 = sbr.rel (%p263_p2) target bundleno = 1680 (0x690), region = 52 }
   0xb   : > { %v8430_v0 = vld [vmem:[%s15066_s2 + $0x34] sm:$0xf]  ;;  %p296_p3 = scmp.lt.s32.totalorder %s8417_s28, 1  ;;  %vm861_vm0 = vcmask 1043456   ;;  %v8583_v4 = vld [vmem:[%s15066_s2 + $0x50] sm:$0xf] }
   0xc   : > { %v789_v1 = vunpack.c.l.b16 %v8430_v0  ;;  %v618_v5 = vld [vmem:[%s15066_s2 + $0x18] sm:$0xf]  ;;  %v9538_v6 = vld [vmem:[%s15066_s2 + $0x2c] sm:$0xff]  ;;  %v9537_v7 = vld [vmem:[%s15066_s2 + $0x24] sm:$0xff]  ;;  %v1396_v8 = vunpack.c.l.b16 %v8583_v4  ;;  %vm734_vm1 = vcmask 1046528   ;;  %vm797_vm2 = vcmask 457728  }
   0xd   : > { %s15417_s28 = smov (!%p296_p3, %s8417_s28), 1  ;;  %v1002_v9 = vunpack.c.l.b16 %v618_v5  ;;  %v9536_v20 = vld [vmem:[%s15066_s2 + $0x1c] sm:$0xff]  ;;  %v9561_v31 = vld [vmem:[%s15066_s2 + $0x48] sm:$0xff]  ;;  %v9534_v33 = vld [vmem:[%s15066_s2 + $0x10] sm:$0xff]  ;;  %vm1779_vm3 = vcmask 1044480   ;;  %vm1341_vm4 = vcmask 1045504  }
   0xe   : > { %v793_v2 = vpack.c.b16 %v789_v1, %v789_v1  ;;  %s9791_s9 = smul.u32 216, %s15417_s28  ;;  %v1400_v16 = vpack.c.b16 %v1396_v8, %v1396_v8  ;;  %v9560_v47 = vld [vmem:[%s15066_s2 + $0x40] sm:$0xff]  ;;  %v9533_v48 = vld [vmem:[%s15066_s2 + $0x8] sm:$0xff]  ;;  %v9559_v63 = vld [vmem:[%s15066_s2 + $0x38] sm:$0xff]  ;;  %vm307_vm5 = vcmask 257024   ;;  %vm310_vm6 = vcmask 254976  }
   0xf   : > { %v1006_v17 = vpack.c.b16 %v1002_v9, %v1002_v9  ;;  %v9532_v1 = vld [vmem:[%s15066_s2] sm:$0xff]  ;;  %vm311_vm7 = vsmask.f32 1280  ;;  %vm3983_vm9 = vcmask 257025   ;;  %vm3984_vm10 = vsmask.f32 7942 }
  0x10   : > { %v863_v3 = vsel %vm861_vm0, %v793_v2, 0  ;;  %s9943_s18 = scalar_lea.vmem %s15064_s0, %s9791_s9  ;;  %v1468_v25 = vsel %vm861_vm0, %v1400_v16, 0  ;;  %vm312_vm8 = vmand %vm310_vm6, %vm311_vm7  ;;  %vm3532_vm12 = vsmask.f32 5392  ;;  %vm4194_vm14 = vsmask.f32 7424 }
  0x11   : > { %9779 = vmatpush.bf16.msra.mxu1 %v863_v3  ;;  %9780 = vmatpush.bf16.msra.mxu2 %v863_v3  ;;  %v9949_v10 = vld [vmem:[%s9943_s18 + $0x38] sm:$0xff]  ;;  %v9776_v11 = vld [vmem:[%s9943_s18 + $0x8] sm:$0xf0]  ;;  %v9777_v12 = vld [vmem:[%s9943_s18 + $0x8] sm:$0xe]  ;;  %v1074_v26 = vsel %vm861_vm0, %v1006_v17, 0 }
  0x12   : > { %869 = vmatpush.bf16.msra.mxu0 %v863_v3  ;;  %9781 = vmatpush.bf16.msra.mxu3 %v863_v3  ;;  %v9954_v13 = vld [vmem:[%s9943_s18 + $0x40] sm:$0xff]  ;;  %v9957_v14 = vld [vmem:[%s9943_s18 + $0x68] sm:$0xff]  ;;  %v9960_v15 = vld [vmem:[%s9943_s18 + $0x70] sm:$0xff]  ;;  %v9778_v19 = vor.u32 %v9777_v12, %v9776_v11  ;;  %v746_v21 = vrot.slane %v9949_v10, 1  ;;  %s9868_s13 = smov 64   ;;  %s9869_s14 = smov 32  }
  0x13   : > { %v9963_v18 = vld [vmem:[%s9943_s18 + $0x10] sm:$0xff]  ;;  %v748_v22 = vrot.slane %v9954_v13, 1  ;;  %v758_v23 = vrot.slane %v9957_v14, 1  ;;  %v760_v24 = vrot.slane %v9960_v15, 1  ;;  %v9992_v34 = vld [vmem:[%s9943_s18 + $0x48] sm:$0xff]  ;;  %v9995_v35 = vld [vmem:[%s9943_s18 + $0x78] sm:$0xff] }
  0x14   : > { %v735_v27 = vrot.slane %v9778_v19, 1  ;;  %v736_v28 = vrot.slane %v9963_v18, 1  ;;  %v9998_v36 = vld [vmem:[%s9943_s18 + $0x18] sm:$0xff]  ;;  %v750_v37 = vrot.slane %v9992_v34, 1  ;;  %v762_v38 = vrot.slane %v9995_v35, 1  ;;  %v9535_v43 = vld [vmem:[%s9943_s18 + $0xa0] sm:$0xff]  ;;  %vm10829_vm11 = vmand %vm3983_vm9, %vm3984_vm10 }
  0x15   : > { %9782 = vmatpush.bf16.msra.mxu1 %v9538_v6  ;;  %9783 = vmatpush.bf16.msra.mxu2 %v9538_v6  ;;  %v749_v29 = vsel %vm734_vm1, %v746_v21, %v748_v22  ;;  %v761_v30 = vsel %vm734_vm1, %v758_v23, %v760_v24  ;;  %v738_v39 = vrot.slane %v9998_v36, 1  ;;  %v10006_v42 = vld [vmem:[%s9943_s18 + $0x98] sm:$0xff]  ;;  %v772_v46 = vrot.slane %v9535_v43, 1  ;;  %v10025_v50 = vld [vmem:[%s9943_s18 + $0x50] sm:$0xff]  ;;  %v10028_v51 = vld [vmem:[%s9943_s18 + $0x80] sm:$0xff]  ;;  %s9870_s15 = smov 96  }
  0x16   : > { %870 = vmatpush.bf16.msra.mxu0 %v9538_v6  ;;  %9784 = vmatpush.bf16.msra.mxu3 %v9538_v6  ;;  %v737_v32 = vsel %vm734_vm1, %v735_v27, %v736_v28  ;;  %v751_v40 = vsel %vm734_vm1, %v748_v22, %v750_v37  ;;  %v763_v41 = vsel %vm734_vm1, %v760_v24, %v762_v38  ;;  %v770_v45 = vrot.slane %v10006_v42, 1  ;;  %v10031_v52 = vld [vmem:[%s9943_s18 + $0x20] sm:$0xff]  ;;  %v622_v55 = vld [vmem:[%s9943_s18 + $0xa8] sm:$0x7]  ;;  %v10052_v2 = vld [vmem:[%s9943_s18 + $0x58] sm:$0xff]  ;;  %s9792_s24 = smul.u32 328, %s15417_s28 }
  0x17   : > { %v739_v44 = vsel %vm734_vm1, %v736_v28, %v738_v39  ;;  %v752_v53 = vrot.slane %v10025_v50, 1  ;;  %v764_v54 = vrot.slane %v10028_v51, 1  ;;  %v740_v56 = vrot.slane %v10031_v52, 1  ;;  %v10055_v3 = vld [vmem:[%s9943_s18 + $0x88] sm:$0xff]  ;;  %v10087_v28 = vld [vmem:[%s9943_s18 + $0x30] sm:$0xff]  ;;  %vm10855_vm13 = vmor %vm311_vm7, %vm3532_vm12 }
  0x18   : > { %v773_v49 = vsel %vm734_vm1, %v770_v45, %v772_v46  ;;  %v712_v57 = vunpack.c.l.b16 %v622_v55  ;;  %v10058_v4 = vld [vmem:[%s9943_s18 + $0x28] sm:$0xff]  ;;  %v754_v5 = vrot.slane %v10052_v2, 1  ;;  %v766_v6 = vrot.slane %v10055_v3, 1  ;;  %v9583_v43 = vld [vmem:[%s15066_s2 + $0x54] sm:$0xff]  ;;  %v8947_v55 = vld [vmem:[%s15066_s2 + $0xa4] sm:$0xf]  ;;  %s14564_s26 = scalar_lea.vmem %s15072_s8, %s9792_s24 }
  0x19   : > { %9785 = vmatpush.bf16.msra.mxu1 %v9537_v7  ;;  %9786 = vmatpush.bf16.msra.mxu2 %v9537_v7  ;;  %v753_v58 = vsel %vm734_vm1, %v750_v37, %v752_v53  ;;  %v765_v59 = vsel %vm734_vm1, %v762_v38, %v764_v54  ;;  %v741_v61 = vsel %vm734_vm1, %v738_v39, %v740_v56  ;;  %v8703_v11 = vld [vmem:[%s15066_s2 + $0x6c] sm:$0xf]  ;;  %v9585_v24 = vld [vmem:[%s15066_s2 + $0x64] sm:$0xff]  ;;  %v744_v37 = vrot.slane %v10087_v28, 1  ;;  %v8706_v38 = vld [vmem:[%s9943_s18 + $0x18] sm:$0x8] }
  0x1a   : > { %871 = vmatpush.bf16.msra.mxu0 %v9537_v7  ;;  %9787 = vmatpush.bf16.msra.mxu3 %v9537_v7  ;;  %v733_v60 = vpack.c.b16 %v712_v57, %v712_v57  ;;  %v742_v7 = vrot.slane %v10058_v4, 1  ;;  %v755_v8 = vsel %vm734_vm1, %v752_v53, %v754_v5  ;;  %v767_v9 = vsel %vm734_vm1, %v764_v54, %v766_v6  ;;  %v9562_v39 = vld [vmem:[%s9943_s18 + $0x18] sm:$0xf0]  ;;  %v9067_v53 = vld [vmem:[%s15066_s2 + $0xc0] sm:$0xf] }
  0x1b   : > { %v1834_v12 = vunpack.c.l.b16 %v8703_v11  ;;  %v9607_v54 = vld [vmem:[%s15066_s2 + $0x78] sm:$0xff]  ;;  %v9539_v42 = vld [vmem:[%s9943_s18 + $0x10] sm:$0xf0]  ;;  %vm4552_vm15 = vsmask.f32 6400  ;;  %vm4982_vm6 = vcmask 261120  }
  0x1c   : > { %v774_v62 = vrot.slane %v733_v60, 1  ;;  %v743_v16 = vsel %vm734_vm1, %v740_v56, %v742_v7  ;;  %v3095_v56 = vunpack.c.l.b16 %v9067_v53  ;;  %vm5026_vm7 = vcmask 523264  }
  0x1d   : > { %9788 = vmatpush.bf16.msra.mxu1 %v9536_v20  ;;  %9789 = vmatpush.bf16.msra.mxu2 %v9536_v20  ;;  %v1838_v17 = vpack.c.b16 %v1834_v12, %v1834_v12  ;;  %v9513_v12 = vld [vmem:[%s9943_s18] sm:$0xff]  ;;  %vm317_vm9 = vsmask.f32 7950 }
  0x1e   : > { %872 = vmatpush.bf16.msra.mxu0 %v9536_v20  ;;  %9790 = vmatpush.bf16.msra.mxu3 %v9536_v20  ;;  %v775_v0 = vsel %vm734_vm1, %v772_v46, %v774_v62  ;;  %v8827_v20 = vld [vmem:[%s15066_s2 + $0x88] sm:$0xf]  ;;  %v8707_v46 = vor.u32 %v9562_v39, %v8706_v38 }
  0x1f   : > { %v1906_v19 = vsel %vm861_vm0, %v1838_v17, 0  ;;  %v2227_v22 = vunpack.c.l.b16 %v8827_v20  ;;  %v9565_v17 = vld [vmem:[%s9943_s18 + $0x30] sm:$0xff]  ;;  %v9542_v38 = vld [vmem:[%s9943_s18 + $0x28] sm:$0xff] }
  0x20   : > { %8525 = vmatmul.msk.bf16.vlgmr.msra.gmra.mxu1 %vm797_vm2, %v749_v29  ;;  %8531 = vmatmul.msk.bf16.vlgmr.msra.gmra.mxu2 %vm797_vm2, %v761_v30  ;;  %v9584_v30 = vld [vmem:[%s15066_s2 + $0x5c] sm:$0xff]  ;;  %v1785_v20 = vrot.slane %v9565_v17, 3  ;;  %v1347_v39 = vrot.slane %v9542_v38, 2 }
  0x21   : > { %1474 = vmatpush.bf16.msrb.mxu2 %v1468_v25  ;;  %1080 = vmatpush.bf16.msrb.mxu1 %v1074_v26  ;;  %v10081_v25 = vld [vmem:[%s9943_s18 + $0x60] sm:$0xff]  ;;  %v10084_v26 = vld [vmem:[%s9943_s18 + $0x90] sm:$0xff]  ;;  %v2231_v27 = vpack.c.b16 %v2227_v22, %v2227_v22 }
  0x22   : > { %8519 = vmatmul.msk.bf16.vlgmr.msra.gmra.mxu0 %vm797_vm2, %v737_v32  ;;  %8537 = vmatmul.msk.bf16.vlgmr.msra.gmra.mxu3 %vm797_vm2, %v773_v49  ;;  %v756_v32 = vrot.slane %v10081_v25, 1 }
  0x23   : > { %1912 = vmatpush.bf16.msrb.mxu3 %v1906_v19  ;;  %v2299_v29 = vsel %vm861_vm0, %v2231_v27, 0  ;;  %v9586_v19 = vld [vmem:[%s9943_s18 + $0x24] sm:$0xff] }
  0x24   : > { %2305 = vmatpush.bf16.msrb.mxu0 %v2299_v29  ;;  %v9763_v29 = vld [vmem:[%s9943_s18 + $0x8] sm:$0xff]  }
  0x25   : > { %1475 = vmatpush.bf16.msrb.mxu2 %v9561_v31  ;;  %1081 = vmatpush.bf16.msrb.mxu1 %v9534_v33  ;;  %v9608_v31 = vld [vmem:[%s15066_s2 + $0x80] sm:$0xff]  ;;  %v768_v33 = vrot.slane %v10084_v26, 1 }
  0x27   : > { %1913 = vmatpush.bf16.msrb.mxu3 %v9585_v24  ;;  %v9541_v24 = vld [vmem:[%s9943_s18 + $0x20] sm:$0xff] }
  0x28   : > { %2306 = vmatpush.bf16.msrb.mxu0 %v9608_v31  ;;  %v1345_v27 = vrot.slane %v9541_v24, 2  ;;  %v9566_v31 = vld [vmem:[%s9943_s18 + $0x38] sm:$0xff]  ;;  %v9545_v24 = vld [vmem:[%s9943_s18 + $0x40] sm:$0xff] }
  0x29   : > { %1476 = vmatpush.bf16.msrb.mxu2 %v9560_v47  ;;  %1082 = vmatpush.bf16.msrb.mxu1 %v9533_v48  ;;  %v745_v47 = vsel %vm734_vm1, %v742_v7, %v744_v37  ;;  %v1780_v48 = vrot.slane %v8707_v46, 3 }
  0x2b   : > { %1914 = vmatpush.bf16.msrb.mxu3 %v9584_v30 }
  0x2c   : > { %2307 = vmatpush.bf16.msrb.mxu0 %v9607_v54  ;;  %v9543_v54 = vld [vmem:[%s9943_s18 + $0x30] sm:$0xff] }
  0x2d   : > { %1477 = vmatpush.bf16.msrb.mxu2 %v9559_v63  ;;  %1083 = vmatpush.bf16.msrb.mxu1 %v9532_v1  ;;  %v771_v1 = vsel %vm734_vm1, %v768_v33, %v770_v45  ;;  %v9540_v45 = vld [vmem:[%s9943_s18 + $0x18] sm:$0xff] }
  0x2e   : > { %v1343_v11 = vrot.slane %v9540_v45, 2 }
  0x2f   : > { %1915 = vmatpush.bf16.msrb.mxu3 %v9583_v43  ;;  %v9567_v43 = vld [vmem:[%s9943_s18 + $0x40] sm:$0xff] }
  0x30   : > { %8526 = vmatmul.msk.bf16.gmra.mxu1 %vm797_vm2, %v751_v40  ;;  %8532 = vmatmul.msk.bf16.gmra.mxu2 %vm797_vm2, %v763_v41  ;;  %v757_v40 = vsel %vm734_vm1, %v754_v5, %v756_v32  ;;  %v769_v41 = vsel %vm734_vm1, %v766_v6, %v768_v33  ;;  %v9564_v5 = vld [vmem:[%s9943_s18 + $0x28] sm:$0xff]  ;;  %v747_v6 = vsel %vm734_vm1, %v744_v37, %v746_v21  ;;  %v1787_v33 = vrot.slane %v9566_v31, 3 }
  0x31   : > { %v1783_v7 = vrot.slane %v9564_v5, 3  ;;  %v1346_v30 = vsel %vm1341_vm4, %v1343_v11, %v1345_v27 }
  0x32   : > { %8520 = vmatmul.msk.bf16.gmra.mxu0 %vm797_vm2, %v739_v44  ;;  %8538 = vmatmul.msk.bf16.gmra.mxu3 %vm797_vm2, %v775_v0  ;;  %v9563_v44 = vld [vmem:[%s9943_s18 + $0x20] sm:$0xff]  ;;  %v759_v0 = vsel %vm734_vm1, %v756_v32, %v758_v23  ;;  %v8586_v23 = vld [vmem:[%s9943_s18 + $0x10] sm:$0xc]  ;;  %v1788_v37 = vsel %vm1779_vm3, %v1785_v20, %v1787_v33 }
  0x33   : > { %v1781_v49 = vrot.slane %v9563_v44, 3  ;;  %v1786_v22 = vsel %vm1779_vm3, %v1783_v7, %v1785_v20  ;;  %v9587_v32 = vld [vmem:[%s9943_s18 + $0x2c] sm:$0xff]  ;;  %v9588_v44 = vld [vmem:[%s9943_s18 + $0x34] sm:$0xff] }
  0x35   : > { %v1782_v57 = vsel %vm1779_vm3, %v1780_v48, %v1781_v49 }
  0x40   : > { %8527 = vmatmul.msk.bf16.gmra.mxu1 %vm797_vm2, %v753_v58  ;;  %8533 = vmatmul.msk.bf16.gmra.mxu2 %vm797_vm2, %v765_v59  ;;  %v2661_v58 = vunpack.c.l.b16 %v8947_v55  ;;  %v3099_v59 = vpack.c.b16 %v3095_v56, %v3095_v56  ;;  %v1349_v56 = vrot.slane %v9543_v54, 2 }
  0x42   : > { %8521 = vmatmul.msk.bf16.gmra.mxu0 %vm797_vm2, %v741_v61  ;;  %8539 = vmatmul.msk.bf16.gmra.mxu3 %vm797_vm2, %v774_v62  ;;  %v2665_v60 = vpack.c.b16 %v2661_v58, %v2661_v58  ;;  %v9606_v61 = vld [vmem:[%s15066_s2 + $0x70] sm:$0xff]  ;;  %v3167_v62 = vsel %vm861_vm0, %v3099_v59, 0  ;;  %v1350_v58 = vsel %vm1341_vm4, %v1347_v39, %v1349_v56  ;;  %v9568_v59 = vld [vmem:[%s9943_s18 + $0x48] sm:$0xff] }
  0x43   : > { %3173 = vmatpush.bf16.msra.mxu2 %v3167_v62  ;;  %2308 = vmatpush.bf16.msrb.mxu0 %v9606_v61  ;;  %v1791_v62 = vrot.slane %v9568_v59, 3 }
  0x44   : > { %v2733_v63 = vsel %vm861_vm0, %v2665_v60, 0  ;;  %v9589_v60 = vld [vmem:[%s9943_s18 + $0x3c] sm:$0xff]  ;;  %vm4797_vm0 = vsmask.f32 5376 }
  0x45   : > { %2739 = vmatpush.bf16.msra.mxu1 %v2733_v63 }
  0x50   : > { %8528 = vmatmul.msk.bf16.gmra.mxu1 %vm797_vm2, %v755_v8  ;;  %8534 = vmatmul.msk.bf16.gmra.mxu2 %vm797_vm2, %v767_v9  ;;  %v1784_v8 = vsel %vm1779_vm3, %v1781_v49, %v1783_v7  ;;  %v8587_v9 = vor.u32 %v9539_v42, %v8586_v23 }
  0x52   : > { %8522 = vmatmul.msk.bf16.gmra.mxu0 %vm797_vm2, %v743_v16  ;;  %8800 = vmatmul.msk.bf16.vlgmr.msrb.gmra.mxu3 %vm797_vm2, %v1782_v57  ;;  %v1342_v21 = vrot.slane %v8587_v9, 2 }
  0x54   : > { %v1344_v16 = vsel %vm1341_vm4, %v1342_v21, %v1343_v11  ;;  %v9569_v21 = vld [vmem:[%s9943_s18 + $0x50] sm:$0xff]  ;;  %v9590_v11 = vld [vmem:[%s9943_s18 + $0x44] sm:$0xff] }
  0x55   : > { %v1793_v17 = vrot.slane %v9569_v21, 3 }
  0x60   : > { %8529 = vmatmul.msk.bf16.gmra.mxu1 %vm797_vm2, %v757_v40  ;;  %8535 = vmatmul.msk.bf16.gmra.mxu2 %vm797_vm2, %v769_v41  ;;  %v1348_v41 = vsel %vm1341_vm4, %v1345_v27, %v1347_v39 }
  0x62   : > { %8523 = vmatmul.msk.bf16.gmra.mxu0 %vm797_vm2, %v745_v47  ;;  %8801 = vmatmul.msk.bf16.gmra.mxu3 %vm797_vm2, %v1784_v8  ;;  %v1789_v47 = vrot.slane %v9567_v43, 3 }
  0x64   : > { %v1790_v48 = vsel %vm1779_vm3, %v1787_v33, %v1789_v47  ;;  %v1792_v63 = vsel %vm1779_vm3, %v1789_v47, %v1791_v62  ;;  %v9570_v33 = vld [vmem:[%s9943_s18 + $0x58] sm:$0xff] }
  0x70   : > { %8530 = vmatmul.msk.bf16.gmra.mxu1 %vm797_vm2, %v759_v0  ;;  %8536 = vmatmul.msk.bf16.gmra.mxu2 %vm797_vm2, %v771_v1  ;;  %v9654_v1 = vld [vmem:[%s15066_s2 + $0xb8] sm:$0xff] }
  0x71   : > { %3174 = vmatpush.bf16.msra.mxu2 %v9654_v1 }
  0x72   : > { %8524 = vmatmul.msk.bf16.gmra.mxu0 %vm797_vm2, %v747_v6  ;;  %8802 = vmatmul.msk.bf16.gmra.mxu3 %vm797_vm2, %v1786_v22  ;;  %v9544_v6 = vld [vmem:[%s9943_s18 + $0x38] sm:$0xff] }
  0x73   : > { %v1351_v23 = vrot.slane %v9544_v6, 2 }
  0x75   : > { %v1352_v9 = vsel %vm1341_vm4, %v1349_v56, %v1351_v23 }
  0x80   : > { %8556 = vmatmul.msk.bf16.vlgmr.msrb.gmra.mxu1 %vm797_vm2, %v9513_v12  ;;  %8676 = vmatmul.msk.bf16.vlgmr.msrb.gmra.mxu2 %vm797_vm2, %v1344_v16 }
  0x82   : > { %8920 = vmatmul.msk.bf16.vlgmr.msrb.gmra.mxu0 %vm797_vm2, %v9586_v19  ;;  %8803 = vmatmul.msk.bf16.gmra.mxu3 %vm797_vm2, %v1788_v37  ;;  %v1794_v19 = vsel %vm1779_vm3, %v1791_v62, %v1793_v17  ;;  %v9591_v37 = vld [vmem:[%s9943_s18 + $0x4c] sm:$0xff]  ;;  %v9571_v62 = vld [vmem:[%s9943_s18 + $0x60] sm:$0xff] }
  0x90   : > { %8557 = vmatmul.msk.bf16.gmra.mxu1 %vm797_vm2, %v9763_v29  ;;  %8677 = vmatmul.msk.bf16.gmra.mxu2 %vm797_vm2, %v1346_v30  ;;  %v1353_v30 = vrot.slane %v9545_v24, 2 }
  0x92   : > { %8921 = vmatmul.msk.bf16.gmra.mxu0 %vm797_vm2, %v9587_v32  ;;  %8804 = vmatmul.msk.bf16.gmra.mxu3 %vm797_vm2, %v1790_v48  ;;  %v1354_v32 = vsel %vm1341_vm4, %v1351_v23, %v1353_v30  ;;  %v9546_v48 = vld [vmem:[%s9943_s18 + $0x48] sm:$0xff] }
  0x9d   : > { %v10165_v40 = vpop.f32.mrf.mxu1 }
  0x9f   : > { %v10170_v46 = vpop.f32.mrf.mxu0 }
  0xa0   : > { %8558 = vmatmul.msk.bf16.gmra.mxu1 %vm797_vm2, %v9963_v18  ;;  %8678 = vmatmul.msk.bf16.gmra.mxu2 %vm797_vm2, %v1348_v41  ;;  %v1795_v41 = vrot.slane %v9570_v33, 3  ;;  %v9572_v33 = vld [vmem:[%s9943_s18 + $0x68] sm:$0xff] }
  0xa2   : > { %8922 = vmatmul.msk.bf16.gmra.mxu0 %vm797_vm2, %v9588_v44  ;;  %8805 = vmatmul.msk.bf16.gmra.mxu3 %vm797_vm2, %v1792_v63  ;;  %v1796_v43 = vsel %vm1779_vm3, %v1793_v17, %v1795_v41  ;;  %v9592_v63 = vld [vmem:[%s9943_s18 + $0x54] sm:$0xff] }
  0xa3   : > { %v10177_v49 = vpop.f32.mrf.mxu2 }
  0xa5   : > { %v10180_v53 = vpop.f32.mrf.mxu1  ;;  %v10211_v7 = vpop.f32.mrf.mxu3 }
  0xa6   : > { %15157 = vst [vmem:[#allocation3_spill] sm:$0xff] %v10211_v7 }
  0xa7   : > { %v10183_v55 = vpop.f32.mrf.mxu0 }
  0xab   : > { %v10185_v57 = vpop.f32.mrf.mxu2 }
  0xad   : > { %v10187_v18 = vpop.f32.mrf.mxu1  ;;  %v10222_v12 = vpop.f32.mrf.mxu3 }
  0xae   : > { %15158 = vst [vmem:[#allocation4_spill] sm:$0xff] %v10222_v12 }
  0xaf   : > { %v10192_v61 = vpop.f32.mrf.mxu0 }
  0xb0   : > { %8559 = vmatmul.msk.bf16.gmra.mxu1 %vm797_vm2, %v9998_v36  ;;  %8679 = vmatmul.msk.bf16.gmra.mxu2 %vm797_vm2, %v1350_v58  ;;  %v9631_v36 = vld [vmem:[%s15066_s2 + $0x9c] sm:$0xff]  ;;  %v1355_v58 = vrot.slane %v9546_v48, 2  ;;  %v1799_v48 = vrot.slane %v9572_v33, 3 }
  0xb1   : > { %2740 = vmatpush.bf16.msra.mxu1 %v9631_v36  ;;  %v1797_v36 = vrot.slane %v9571_v62, 3 }
  0xb2   : > { %8923 = vmatmul.msk.bf16.gmra.mxu0 %vm797_vm2, %v9589_v60  ;;  %8806 = vmatmul.msk.bf16.gmra.mxu3 %vm797_vm2, %v1794_v19  ;;  %v1356_v60 = vsel %vm1341_vm4, %v1353_v30, %v1355_v58 }
  0xb3   : > { %v10199_v0 = vpop.f32.mrf.mxu2  ;;  %v1798_v23 = vsel %vm1779_vm3, %v1795_v41, %v1797_v36 }
  0xb5   : > { %v10205_v5 = vpop.f32.mrf.mxu1  ;;  %v10237_v27 = vpop.f32.mrf.mxu3 }
  0xb6   : > { %15159 = vst [vmem:[#allocation5_spill] sm:$0xff] %v10237_v27 }
  0xb7   : > { %v10213_v8 = vpop.f32.mrf.mxu0 }
  0xbb   : > { %v10215_v42 = vpop.f32.mrf.mxu2 }
  0xbd   : > { %v10217_v45 = vpop.f32.mrf.mxu1  ;;  %v10248_v38 = vpop.f32.mrf.mxu3 }
  0xbe   : > { %15160 = vst [vmem:[#allocation6_spill] sm:$0xff] %v10248_v38 }
  0xbf   : > { %v10224_v16 = vpop.f32.mrf.mxu0 }
  0xc0   : > { %8560 = vmatmul.msk.bf16.gmra.mxu1 %vm797_vm2, %v10031_v52  ;;  %8680 = vmatmul.msk.bf16.gmra.mxu2 %vm797_vm2, %v1352_v9 }
  0xc2   : > { %8924 = vmatmul.msk.bf16.gmra.mxu0 %vm797_vm2, %v9590_v11  ;;  %8807 = vmatmul.msk.bf16.gmra.mxu3 %vm797_vm2, %v1796_v43  ;;  %v9547_v11 = vld [vmem:[%s9943_s18 + $0x50] sm:$0xff] }
  0xc3   : > { %v10231_v20 = vpop.f32.mrf.mxu2  ;;  %v1357_v24 = vrot.slane %v9547_v11, 2 }
  0xc5   : > { %v10234_v22 = vpop.f32.mrf.mxu1  ;;  %v10263_v54 = vpop.f32.mrf.mxu3 }
  0xc6   : > { %15161 = vst [vmem:[#allocation7_spill] sm:$0xff] %v10263_v54  ;;  %v9594_v54 = vld [vmem:[%s9943_s18 + $0x64] sm:$0xff] }
  0xc7   : > { %v10239_v29 = vpop.f32.mrf.mxu0 }
  0xcb   : > { %v10241_v52 = vpop.f32.mrf.mxu2 }
  0xcd   : > { %v10243_v31 = vpop.f32.mrf.mxu1  ;;  %v976_v1 = vpop.f32.mrf.mxu3 }
  0xcf   : > { %v10250_v39 = vpop.f32.mrf.mxu0 }
  0xd0   : > { %8561 = vmatmul.msk.bf16.gmra.mxu1 %vm797_vm2, %v10058_v4  ;;  %8681 = vmatmul.msk.bf16.gmra.mxu2 %vm797_vm2, %v1354_v32  ;;  %v1358_v32 = vsel %vm1341_vm4, %v1355_v58, %v1357_v24 }
  0xd2   : > { %8925 = vmatmul.msk.bf16.gmra.mxu0 %vm797_vm2, %v9591_v37  ;;  %8808 = vmatmul.msk.bf16.gmra.mxu3 %vm797_vm2, %v1798_v23  ;;  %v9593_v37 = vld [vmem:[%s9943_s18 + $0x5c] sm:$0xff] }
  0xd3   : > { %v10257_v44 = vpop.f32.mrf.mxu2 }
  0xd5   : > { %v10260_v47 = vpop.f32.mrf.mxu1  ;;  %v1917_v19 = vpop.f32.mrf.mxu3 }
  0xd7   : > { %v10265_v56 = vpop.f32.mrf.mxu0 }
  0xdb   : > { %v10267_v4 = vpop.f32.mrf.mxu2 }
  0xdd   : > { %v10269_v59 = vpop.f32.mrf.mxu1  ;;  %v1919_v43 = vpop.f32.mrf.mxu3 }
  0xdf   : > { %v10274_v6 = vpop.f32.mrf.mxu0 }
  0xe0   : > { %8562 = vmatmul.msk.bf16.gmra.mxu1 %vm797_vm2, %v10087_v28  ;;  %8682 = vmatmul.msk.bf16.gmra.mxu2 %vm797_vm2, %v1356_v60  ;;  %v1800_v60 = vsel %vm1779_vm3, %v1797_v36, %v1799_v48  ;;  %v9573_v36 = vld [vmem:[%s9943_s18 + $0x70] sm:$0xff] }
  0xe1   : > { %v1801_v27 = vrot.slane %v9573_v36, 3 }
  0xe2   : > { %8926 = vmatmul.msk.bf16.gmra.mxu0 %vm797_vm2, %v9592_v63  ;;  %8809 = vmatmul.msk.bf16.gmra.mxu3 %vm797_vm2, %v1800_v60  ;;  %v9548_v63 = vld [vmem:[%s9943_s18 + $0x58] sm:$0xff] }
  0xe3   : > { %v10281_v9 = vpop.f32.mrf.mxu2  ;;  %v1359_v11 = vrot.slane %v9548_v63, 2  ;;  %v1802_v63 = vsel %vm1779_vm3, %v1799_v48, %v1801_v27 }
  0xe4   : > { %15162 = vst [vmem:[#allocation8_spill] sm:$0xff] %v10281_v9 }
  0xe5   : > { %v10284_v21 = vpop.f32.mrf.mxu1  ;;  %v1922_v23 = vpop.f32.mrf.mxu3 }
  0xe7   : > { %v10287_v17 = vpop.f32.mrf.mxu0 }
  0xeb   : > { %v10289_v30 = vpop.f32.mrf.mxu2 }
  0xec   : > { %15163 = vst [vmem:[#allocation9_spill] sm:$0xff] %v10289_v30 }
  0xed   : > { %v10291_v28 = vpop.f32.mrf.mxu1  ;;  %v1924_v38 = vpop.f32.mrf.mxu3 }
  0xef   : > { %v10296_v41 = vpop.f32.mrf.mxu0 }
  0xf0   : > { %8563 = vmatmul.msk.bf16.gmra.mxu1 %vm797_vm2, %v9949_v10  ;;  %8683 = vmatmul.msk.bf16.gmra.mxu2 %vm797_vm2, %v1358_v32  ;;  %v1360_v32 = vsel %vm1341_vm4, %v1357_v24, %v1359_v11 }
  0xf2   : > { %8927 = vmatmul.msk.bf16.gmra.mxu0 %vm797_vm2, %v9593_v37  ;;  %8810 = vmatmul.msk.bf16.gmra.mxu3 %vm797_vm2, %v1802_v63 }
  0xf3   : > { %v10303_v62 = vpop.f32.mrf.mxu2 }
  0xf4   : > { %15164 = vst [vmem:[#allocation10_spill] sm:$0xff] %v10303_v62 }
  0xf5   : > { %v10306_v58 = vpop.f32.mrf.mxu1 }
  0xf7   : > { %v10309_v1 = vpop.f32.mrf.mxu0 }
  0xfb   : > { %v10311_v33 = vpop.f32.mrf.mxu2 }
  0xfc   : > { %15165 = vst [vmem:[#allocation11_spill] sm:$0xff] %v10311_v33  ;;  %v9549_v33 = vld [vmem:[%s9943_s18 + $0x60] sm:$0xff] }
  0xfd   : > { %v1085_v10 = vpop.f32.mrf.mxu1  ;;  %v1361_v48 = vrot.slane %v9549_v33, 2 }
  0xfe   : > { %v1086_v60 = vadd.f32 %v1085_v10, %v10170_v46  ;;  %v1927_v46 = vpop.f32.mrf.mxu3 }
  0xff   : > { %v2310_v37 = vpop.f32.mrf.mxu0 }
 0x100   : > { %8564 = vmatmul.msk.bf16.gmra.mxu1 %vm797_vm2, %v9954_v13  ;;  %8684 = vmatmul.msk.bf16.gmra.mxu2 %vm797_vm2, %v1360_v32  ;;  %v9653_v13 = vld [vmem:[%s15066_s2 + $0xb0] sm:$0xff] }
 0x101   : > { %3175 = vmatpush.bf16.msra.mxu2 %v9653_v13 }
 0x102   : > { %8928 = vmatmul.msk.bf16.gmra.mxu0 %vm797_vm2, %v9594_v54 }
 0x103   : > { %v1479_v12 = vpop.f32.mrf.mxu2 }
 0x104   : > { %v1583_v7 = vadd.f32 %v1479_v12, %v1086_v60  ;;  %v9630_v60 = vld [vmem:[%s15066_s2 + $0x94] sm:$0xff] }
 0x105   : > { %v1087_v24 = vpop.f32.mrf.mxu1  ;;  %2741 = vmatpush.bf16.msra.mxu1 %v9630_v60 }
 0x106   : > { %v2021_v36 = vadd.f32 %v1917_v19, %v1583_v7  ;;  %v1088_v54 = vadd.f32 %v1087_v24, %v10183_v55  ;;  %v1362_v7 = vsel %vm1341_vm4, %v1359_v11, %v1361_v48  ;;  %v9574_v19 = vld [vmem:[%s9943_s18 + $0x78] sm:$0xff]  ;;  %v1929_v30 = vpop.f32.mrf.mxu3 }
 0x107   : > { %v2312_v62 = vpop.f32.mrf.mxu0  ;;  %v1803_v33 = vrot.slane %v9574_v19, 3 }
 0x108   : > { %v10324_v10 = vadd.f32 %v2310_v37, %v2021_v36  ;;  %v9595_v36 = vld [vmem:[%s9943_s18 + $0x6c] sm:$0xff] }
 0x109   : > { %v1804_v13 = vsel %vm1779_vm3, %v1801_v27, %v1803_v33 }
 0x10a   : > { %15166 = vst [vmem:[#allocation12_spill] sm:$0xff] %v10324_v10  ;;  %8811 = vmatmul.msk.bf16.gmra.mxu3 %vm797_vm2, %v1804_v13 }
 0x10b   : > { %v1481_v12 = vpop.f32.mrf.mxu2 }
 0x10c   : > { %v1584_v32 = vadd.f32 %v1481_v12, %v1088_v54  ;;  %v9550_v12 = vld [vmem:[%s9943_s18 + $0x68] sm:$0xff] }
 0x10d   : > { %v1090_v63 = vpop.f32.mrf.mxu1 }
 0x10e   : > { %v2022_v37 = vadd.f32 %v1919_v43, %v1584_v32  ;;  %v1091_v55 = vadd.f32 %v1090_v63, %v10192_v61  ;;  %v1932_v32 = vpop.f32.mrf.mxu3 }
 0x10f   : > { %v2315_v10 = vpop.f32.mrf.mxu0 }
 0x110   : > { %v10337_v24 = vadd.f32 %v2312_v62, %v2022_v37  ;;  %8565 = vmatmul.msk.bf16.gmra.mxu1 %vm797_vm2, %v9992_v34  ;;  %8685 = vmatmul.msk.bf16.gmra.mxu2 %vm797_vm2, %v1362_v7  ;;  %v1363_v34 = vrot.slane %v9550_v12, 2 }
 0x112   : > { %15167 = vst [vmem:[#allocation13_spill] sm:$0xff] %v10337_v24  ;;  %8929 = vmatmul.msk.bf16.gmra.mxu0 %vm797_vm2, %v9595_v36  ;;  %v1364_v37 = vsel %vm1341_vm4, %v1361_v48, %v1363_v34  ;;  %v9575_v36 = vld [vmem:[%s9943_s18 + $0x80] sm:$0xff] }
 0x113   : > { %v1484_v43 = vpop.f32.mrf.mxu2  ;;  %v1805_v9 = vrot.slane %v9575_v36, 3 }
 0x114   : > { %v1585_v11 = vadd.f32 %v1484_v43, %v1091_v55  ;;  %v9596_v43 = vld [vmem:[%s9943_s18 + $0x74] sm:$0xff] }
 0x115   : > { %v1092_v54 = vpop.f32.mrf.mxu1 }
 0x116   : > { %v2023_v61 = vadd.f32 %v1922_v23, %v1585_v11  ;;  %v1093_v63 = vadd.f32 %v1092_v54, %v10213_v8  ;;  %v1934_v24 = vpop.f32.mrf.mxu3  ;;  %v1806_v8 = vsel %vm1779_vm3, %v1803_v33, %v1805_v9  ;;  %v9551_v54 = vld [vmem:[%s9943_s18 + $0x70] sm:$0xff] }
 0x117   : > { %v2317_v62 = vpop.f32.mrf.mxu0 }
 0x118   : > { %v10346_v60 = vadd.f32 %v2315_v10, %v2023_v61 }
 0x11a   : > { %8812 = vmatmul.msk.bf16.gmra.mxu3 %vm797_vm2, %v1806_v8 }
 0x11b   : > { %v1486_v7 = vpop.f32.mrf.mxu2 }
 0x11c   : > { %v1586_v27 = vadd.f32 %v1486_v7, %v1093_v63 }
 0x11d   : > { %v1095_v19 = vpop.f32.mrf.mxu1 }
 0x11e   : > { %v2024_v55 = vadd.f32 %v1924_v38, %v1586_v27  ;;  %v1096_v23 = vadd.f32 %v1095_v19, %v10224_v16  ;;  %v1937_v61 = vpop.f32.mrf.mxu3 }
 0x11f   : > { %v2320_v13 = vpop.f32.mrf.mxu0 }
 0x120   : > { %v10353_v11 = vadd.f32 %v2317_v62, %v2024_v55  ;;  %8566 = vmatmul.msk.bf16.gmra.mxu1 %vm797_vm2, %v10025_v50  ;;  %8686 = vmatmul.msk.bf16.gmra.mxu2 %vm797_vm2, %v1364_v37  ;;  %v1365_v50 = vrot.slane %v9551_v54, 2  ;;  %v9576_v37 = vld [vmem:[%s9943_s18 + $0x88] sm:$0xff]  ;;  %v9597_v55 = vld [vmem:[%s9943_s18 + $0x7c] sm:$0xff] }
 0x121   : > { %v1807_v8 = vrot.slane %v9576_v37, 3  ;;  %v9598_v37 = vld [vmem:[%s9943_s18 + $0x84] sm:$0xff] }
 0x122   : > { %8930 = vmatmul.msk.bf16.gmra.mxu0 %vm797_vm2, %v9596_v43  ;;  %v1366_v19 = vsel %vm1341_vm4, %v1363_v34, %v1365_v50 }
 0x123   : > { %v1489_v10 = vpop.f32.mrf.mxu2 }
 0x124   : > { %v1587_v38 = vadd.f32 %v1489_v10, %v1096_v23 }
 0x125   : > { %v1097_v48 = vpop.f32.mrf.mxu1 }
 0x126   : > { %v2025_v16 = vadd.f32 %v1927_v46, %v1587_v38  ;;  %v1098_v63 = vadd.f32 %v1097_v48, %v10239_v29  ;;  %v1939_v23 = vpop.f32.mrf.mxu3  ;;  %v1808_v29 = vsel %vm1779_vm3, %v1805_v9, %v1807_v8  ;;  %v9552_v38 = vld [vmem:[%s9943_s18 + $0x78] sm:$0xff] }
 0x127   : > { %v2322_v12 = vpop.f32.mrf.mxu0 }
 0x128   : > { %v10362_v62 = vadd.f32 %v2320_v13, %v2025_v16 }
 0x12a   : > { %8813 = vmatmul.msk.bf16.gmra.mxu3 %vm797_vm2, %v1808_v29 }
 0x12b   : > { %v1491_v7 = vpop.f32.mrf.mxu2 }
 0x12c   : > { %v1588_v33 = vadd.f32 %v1491_v7, %v1098_v63 }
 0x12d   : > { %v1100_v27 = vpop.f32.mrf.mxu1 }
 0x12e   : > { %v2026_v36 = vadd.f32 %v1929_v30, %v1588_v33  ;;  %v1101_v46 = vadd.f32 %v1100_v27, %v10250_v39  ;;  %v1942_v54 = vpop.f32.mrf.mxu3  ;;  %v9577_v27 = vld [vmem:[%s9943_s18 + $0x90] sm:$0xff] }
 0x12f   : > { %v2325_v43 = vpop.f32.mrf.mxu0 }
 0x130   : > { %v10369_v10 = vadd.f32 %v2322_v12, %v2026_v36  ;;  %8567 = vmatmul.msk.bf16.gmra.mxu1 %vm797_vm2, %v10052_v2  ;;  %8687 = vmatmul.msk.bf16.gmra.mxu2 %vm797_vm2, %v1366_v19  ;;  %v1367_v2 = vrot.slane %v9552_v38, 2 }
 0x132   : > { %8931 = vmatmul.msk.bf16.gmra.mxu0 %vm797_vm2, %v9597_v55  ;;  %v1368_v33 = vsel %vm1341_vm4, %v1365_v50, %v1367_v2 }
 0x133   : > { %v1494_v34 = vpop.f32.mrf.mxu2 }
 0x134   : > { %v1589_v30 = vadd.f32 %v1494_v34, %v1101_v46  ;;  %v1809_v46 = vrot.slane %v9577_v27, 3  ;;  %v9553_v34 = vld [vmem:[%s9943_s18 + $0x80] sm:$0xff] }
 0x135   : > { %v1102_v13 = vpop.f32.mrf.mxu1 }
 0x136   : > { %v2027_v39 = vadd.f32 %v1932_v32, %v1589_v30  ;;  %v1103_v12 = vadd.f32 %v1102_v13, %v10265_v56  ;;  %v1944_v55 = vpop.f32.mrf.mxu3  ;;  %v1810_v56 = vsel %vm1779_vm3, %v1807_v8, %v1809_v46 }
 0x137   : > { %v2327_v48 = vpop.f32.mrf.mxu0 }
 0x138   : > { %v10378_v16 = vadd.f32 %v2325_v43, %v2027_v39 }
 0x13a   : > { %8814 = vmatmul.msk.bf16.gmra.mxu3 %vm797_vm2, %v1810_v56  ;;  %v9554_v56 = vld [vmem:[%s9943_s18 + $0x88] sm:$0xff] }
 0x13b   : > { %v1496_v63 = vpop.f32.mrf.mxu2 }
 0x13c   : > { %v1590_v9 = vadd.f32 %v1496_v63, %v1103_v12 }
 0x13d   : > { %v1105_v7 = vpop.f32.mrf.mxu1 }
 0x13e   : > { %v2028_v19 = vadd.f32 %v1934_v24, %v1590_v9  ;;  %v1106_v32 = vadd.f32 %v1105_v7, %v10274_v6  ;;  %v1947_v13 = vpop.f32.mrf.mxu3  ;;  %v9578_v9 = vld [vmem:[%s9943_s18 + $0x98] sm:$0xff] }
 0x13f   : > { %v2330_v36 = vpop.f32.mrf.mxu0 }
 0x140   : > { %v10385_v29 = vadd.f32 %v2327_v48, %v2028_v19  ;;  %8568 = vmatmul.msk.bf16.gmra.mxu1 %vm797_vm2, %v10081_v25  ;;  %8688 = vmatmul.msk.bf16.gmra.mxu2 %vm797_vm2, %v1368_v33  ;;  %v1369_v25 = vrot.slane %v9553_v34, 2  ;;  %v9599_v33 = vld [vmem:[%s9943_s18 + $0x8c] sm:$0xff] }
 0x142   : > { %8932 = vmatmul.msk.bf16.gmra.mxu0 %vm797_vm2, %v9598_v37  ;;  %v1370_v63 = vsel %vm1341_vm4, %v1367_v2, %v1369_v25  ;;  %v1811_v37 = vrot.slane %v9578_v9, 3 }
 0x143   : > { %v1499_v50 = vpop.f32.mrf.mxu2 }
 0x144   : > { %v1591_v24 = vadd.f32 %v1499_v50, %v1106_v32 }
 0x145   : > { %v1107_v43 = vpop.f32.mrf.mxu1 }
 0x146   : > { %v2029_v6 = vadd.f32 %v1937_v61, %v1591_v24  ;;  %v1108_v39 = vadd.f32 %v1107_v43, %v10287_v17  ;;  %v1949_v19 = vpop.f32.mrf.mxu3  ;;  %v1812_v17 = vsel %vm1779_vm3, %v1809_v46, %v1811_v37 }
 0x147   : > { %v2332_v30 = vpop.f32.mrf.mxu0 }
 0x148   : > { %v10394_v38 = vadd.f32 %v2330_v36, %v2029_v6 }
 0x14a   : > { %8815 = vmatmul.msk.bf16.gmra.mxu3 %vm797_vm2, %v1812_v17  ;;  %v9555_v17 = vld [vmem:[%s9943_s18 + $0x90] sm:$0xff] }
 0x14b   : > { %v1501_v48 = vpop.f32.mrf.mxu2 }
 0x14c   : > { %v1592_v8 = vadd.f32 %v1501_v48, %v1108_v39 }
 0x14d   : > { %v1110_v12 = vpop.f32.mrf.mxu1 }
 0x14e   : > { %v2030_v7 = vadd.f32 %v1939_v23, %v1592_v8  ;;  %v1111_v61 = vadd.f32 %v1110_v12, %v10296_v41  ;;  %v1952_v24 = vpop.f32.mrf.mxu3  ;;  %v9579_v8 = vld [vmem:[%s9943_s18 + $0xa0] sm:$0xff] }
 0x14f   : > { %v2335_v27 = vpop.f32.mrf.mxu0 }
 0x150   : > { %v10401_v32 = vadd.f32 %v2332_v30, %v2030_v7  ;;  %8569 = vmatmul.msk.bf16.gmra.mxu1 %vm797_vm2, %v9957_v14  ;;  %8689 = vmatmul.msk.bf16.gmra.mxu2 %vm797_vm2, %v1370_v63  ;;  %v1371_v14 = vrot.slane %v9554_v56, 2  ;;  %v9652_v30 = vld [vmem:[%s15066_s2 + $0xa8] sm:$0xff]  ;;  %v9600_v63 = vld [vmem:[%s9943_s18 + $0x94] sm:$0xff]  ;;  %v1813_v7 = vrot.slane %v9579_v8, 3 }
 0x151   : > { %3176 = vmatpush.bf16.msra.mxu2 %v9652_v30 }
 0x152   : > { %8933 = vmatmul.msk.bf16.gmra.mxu0 %vm797_vm2, %v9599_v33  ;;  %v1372_v48 = vsel %vm1341_vm4, %v1369_v25, %v1371_v14  ;;  %v1814_v25 = vsel %vm1779_vm3, %v1811_v37, %v1813_v7 }
 0x153   : > { %v1504_v2 = vpop.f32.mrf.mxu2 }
 0x154   : > { %v1593_v23 = vadd.f32 %v1504_v2, %v1111_v61 }
 0x155   : > { %v1112_v36 = vpop.f32.mrf.mxu1 }
 0x156   : > { %v2031_v41 = vadd.f32 %v1942_v54, %v1593_v23  ;;  %v1113_v34 = vadd.f32 %v1112_v36, %v10309_v1  ;;  %v1954_v9 = vpop.f32.mrf.mxu3  ;;  %v9629_v1 = vld [vmem:[%s15066_s2 + $0x8c] sm:$0xff] }
 0x157   : > { %v2337_v50 = vpop.f32.mrf.mxu0  ;;  %2742 = vmatpush.bf16.msra.mxu1 %v9629_v1  ;;  %v9556_v1 = vld [vmem:[%s9943_s18 + $0x98] sm:$0xff] }
 0x158   : > { %v10410_v43 = vadd.f32 %v2335_v27, %v2031_v41  ;;  %v1373_v41 = vrot.slane %v9555_v17, 2 }
 0x15a   : > { %8816 = vmatmul.msk.bf16.gmra.mxu3 %vm797_vm2, %v1814_v25 }
 0x15b   : > { %v1506_v6 = vpop.f32.mrf.mxu2 }
 0x15c   : > { %v1594_v46 = vadd.f32 %v1506_v6, %v1113_v34  ;;  %v1374_v6 = vsel %vm1341_vm4, %v1371_v14, %v1373_v41 }
 0x15d   : > { %v1115_v39 = vpop.f32.mrf.mxu1 }
 0x15e   : > { %v2032_v12 = vadd.f32 %v1944_v55, %v1594_v46  ;;  %v1116_v55 = vadd.f32 %v1115_v39, %v10165_v40  ;;  %v1957_v36 = vpop.f32.mrf.mxu3  ;;  %v9580_v46 = vld [vmem:[%s9943_s18 + $0xa8] sm:$0xff]  ;;  %v9601_v39 = vld [vmem:[%s9943_s18 + $0x9c] sm:$0xff] }
 0x15f   : > { %v2340_v54 = vpop.f32.mrf.mxu0 }
 0x160   : > { %v10419_v33 = vadd.f32 %v2337_v50, %v2032_v12  ;;  %8570 = vmatmul.msk.bf16.gmra.mxu1 %vm797_vm2, %v9960_v15  ;;  %8690 = vmatmul.msk.bf16.gmra.mxu2 %vm797_vm2, %v1372_v48  ;;  %v1815_v12 = vrot.slane %v9580_v46, 3 }
 0x162   : > { %8934 = vmatmul.msk.bf16.gmra.mxu0 %vm797_vm2, %v9600_v63 }
 0x163   : > { %v1509_v27 = vpop.f32.mrf.mxu2 }
 0x164   : > { %v1595_v61 = vadd.f32 %v1509_v27, %v1116_v55 }
 0x165   : > { %v1117_v15 = vpop.f32.mrf.mxu1 }
 0x166   : > { %v2033_v2 = vadd.f32 %v1947_v13, %v1595_v61  ;;  %v1118_v37 = vadd.f32 %v1117_v15, %v10180_v53  ;;  %v1959_v8 = vpop.f32.mrf.mxu3  ;;  %v1816_v53 = vsel %vm1779_vm3, %v1813_v7, %v1815_v12  ;;  %v1375_v61 = vrot.slane %v9556_v1, 2  ;;  %v9582_v1 = vld [vmem:[%s9943_s18 + $0xb8] sm:$0x10] }
 0x167   : > { %v2342_v23 = vpop.f32.mrf.mxu0 }
 0x168   : > { %v10432_v56 = vadd.f32 %v2340_v54, %v2033_v2  ;;  %v1376_v2 = vsel %vm1341_vm4, %v1373_v41, %v1375_v61 }
 0x16a   : > { %8817 = vmatmul.msk.bf16.gmra.mxu3 %vm797_vm2, %v1816_v53 }
 0x16b   : > { %v1511_v40 = vpop.f32.mrf.mxu2 }
 0x16c   : > { %v1596_v50 = vadd.f32 %v1511_v40, %v1118_v37  ;;  %v9602_v40 = vld [vmem:[%s9943_s18 + $0xa4] sm:$0xff] }
 0x16d   : > { %v1120_v34 = vpop.f32.mrf.mxu1 }
 0x16e   : > { %v2034_v30 = vadd.f32 %v1949_v19, %v1596_v50  ;;  %v1121_v63 = vadd.f32 %v1120_v34, %v10187_v18  ;;  %v10448_v27 = vpop.f32.mrf.mxu3 }
 0x16f   : > { %v2345_v48 = vpop.f32.mrf.mxu0 }
 0x170   : > { %v10438_v13 = vadd.f32 %v2342_v23, %v2034_v30  ;;  %8571 = vmatmul.msk.bf16.gmra.mxu1 %vm797_vm2, %v9995_v35  ;;  %8691 = vmatmul.msk.bf16.gmra.mxu2 %vm797_vm2, %v1374_v6  ;;  %v9581_v23 = vld [vmem:[%s9943_s18 + $0xb0] sm:$0xff] }
 0x172   : > { %8935 = vmatmul.msk.bf16.gmra.mxu0 %vm797_vm2, %v9601_v39  ;;  %v9557_v39 = vld [vmem:[%s9943_s18 + $0xa0] sm:$0xff] }
 0x173   : > { %v1514_v14 = vpop.f32.mrf.mxu2 }
 0x174   : > { %v1597_v19 = vadd.f32 %v1514_v14, %v1121_v63 }
 0x175   : > { %v1122_v54 = vpop.f32.mrf.mxu1 }
 0x176   : > { %v2035_v25 = vadd.f32 %v1952_v24, %v1597_v19  ;;  %v1123_v7 = vadd.f32 %v1122_v54, %v10205_v5  ;;  %v10456_v34 = vpop.f32.mrf.mxu3  ;;  %v1817_v24 = vrot.slane %v9581_v23, 3  ;;  %v8786_v54 = vld [vmem:[%s9943_s18 + $0xb8] sm:$0xf] }
 0x177   : > { %v2347_v55 = vpop.f32.mrf.mxu0 }
 0x178   : > { %v10450_v35 = vadd.f32 %v2345_v48, %v2035_v25  ;;  %v1818_v5 = vsel %vm1779_vm3, %v1815_v12, %v1817_v24  ;;  %v1377_v12 = vrot.slane %v9557_v39, 2  ;;  %v328_v39 = vld [vmem:[%s15065_s1 + $0x18] sm:$0xff] }
 0x17a   : > { %8818 = vmatmul.msk.bf16.gmra.mxu3 %vm797_vm2, %v1818_v5 }
 0x17b   : > { %v1516_v18 = vpop.f32.mrf.mxu2 }
 0x17c   : > { %v1598_v15 = vadd.f32 %v1516_v18, %v1123_v7  ;;  %v9867_v7 = vmov 0   ;;  %v8787_v18 = vor.u32 %v9582_v1, %v8786_v54  ;;  %v331_v54 = vld [vmem:[%s15065_s1 + $0x30] sm:$0xff] }
 0x17d   : > { %v1125_v17 = vpop.f32.mrf.mxu1  ;;  %9805 = vset.pattern.permute.xlu0 %v9867_v7  ;;  %9806 = vset.pattern.permute.xlu1 %v9867_v7  ;;  %308 = vst.msk [vmem:[#allocation2] sm:$0xf] %vm307_vm5, %v9867_v7  ;;  %v9604_v1 = vld [vmem:[%s9943_s18 + $0xb4] sm:$0xff] }
 0x17e   : > { %v2036_v37 = vadd.f32 %v1954_v9, %v1598_v15  ;;  %v1126_v41 = vadd.f32 %v1125_v17, %v10217_v45  ;;  %v10468_v63 = vpop.f32.mrf.mxu3  ;;  %v9603_v17 = vld [vmem:[%s9943_s18 + $0xac] sm:$0xff]  ;;  %9807 = vset.pattern.permute.xlu2 %v9867_v7  ;;  %v1819_v23 = vrot.slane %v8787_v18, 3  ;;  %309 = vst.msk [vmem:[#allocation2 + $0x4] sm:$0xf] %vm307_vm5, %v9867_v7 }
 0x17f   : > { %v2350_v50 = vpop.f32.mrf.mxu0  ;;  %322 = vst.msk [vmem:[#allocation2 + $0xac] sm:$0xf] %vm307_vm5, %v9867_v7 }
 0x180   : > { %v10458_v6 = vadd.f32 %v2347_v55, %v2036_v37  ;;  %8572 = vmatmul.msk.bf16.gmra.mxu1 %vm797_vm2, %v10028_v51  ;;  %8692 = vmatmul.msk.bf16.gmra.mxu2 %vm797_vm2, %v1376_v2  ;;  %v1378_v55 = vsel %vm1341_vm4, %v1375_v61, %v1377_v12  ;;  %v1820_v37 = vsel %vm1779_vm3, %v1817_v24, %v1819_v23  ;;  %v326_v24 = vld [vmem:[%s15065_s1 + $0x8] sm:$0xff] }
 0x181   : > { %323 = vst.msk [vmem:[#allocation2 + $0xb0] sm:$0xf] %vm307_vm5, %v9867_v7 }
 0x182   : > { %8936 = vmatmul.msk.bf16.gmra.mxu0 %vm797_vm2, %v9602_v40  ;;  %324 = vst.msk [vmem:[#allocation2 + $0xb4] sm:$0xf] %vm307_vm5, %v9867_v7 }
 0x183   : > { %v1519_v9 = vpop.f32.mrf.mxu2 }
 0x184   : > { %v1599_v46 = vadd.f32 %v1519_v9, %v1126_v41  ;;  %v9558_v41 = vld [vmem:[%s9943_s18 + $0xa8] sm:$0xff] }
 0x185   : > { %v1127_v30 = vpop.f32.mrf.mxu1 }
 0x186   : > { %v2037_v48 = vadd.f32 %v1957_v36, %v1599_v46  ;;  %v1128_v14 = vadd.f32 %v1127_v30, %v10234_v22  ;;  %v325_v36 = vld [vmem:[%s15065_s1] sm:$0xff]  ;;  %v10480_v2 = vpop.f32.mrf.mxu3 }
 0x187   : > { %v2352_v53 = vpop.f32.mrf.mxu0  ;;  %368 = vperm.xlu0 %9805, %v325_v36  }
 0x188   : > { %v10470_v51 = vadd.f32 %v2350_v50, %v2037_v48  ;;  %v1379_v48 = vrot.slane %v9558_v41, 2 }
 0x18a   : > { %8819 = vmatmul.msk.bf16.gmra.mxu3 %vm797_vm2, %v1820_v37 }
 0x18b   : > { %v1521_v45 = vpop.f32.mrf.mxu2 }
 0x18c   : > { %v1600_v19 = vadd.f32 %v1521_v45, %v1128_v14 }
 0x18d   : > { %v1130_v25 = vpop.f32.mrf.mxu1 }
 0x18e   : > { %v2038_v15 = vadd.f32 %v1959_v8, %v1600_v19  ;;  %v327_v8 = vld [vmem:[%s15065_s1 + $0x10] sm:$0xff]  ;;  %v1131_v40 = vadd.f32 %v1130_v25, %v10243_v31  ;;  %v1972_v46 = vpop.f32.mrf.mxu3 }
 0x18f   : > { %v2355_v22 = vpop.f32.mrf.mxu0  ;;  %378 = vperm.xlu1 %9806, %v327_v8   ;;  %373 = vperm.xlu0 %9805, %v326_v24   ;;  %v1229_v25 = vld [vmem:[%s9943_s18 + $0xb0] sm:$0xf] }
 0x190   : > { %v10483_v61 = vadd.f32 %v2352_v53, %v2038_v15  ;;  %8573 = vmatmul.msk.bf16.gmra.mxu1 %vm797_vm2, %v10055_v3  ;;  %8693 = vmatmul.msk.bf16.gmra.mxu2 %vm797_vm2, %v1378_v55 }
 0x192   : > { %8937 = vmatmul.msk.bf16.gmra.mxu0 %vm797_vm2, %v9603_v17 }
 0x193   : > { %v1524_v3 = vpop.f32.mrf.mxu2 }
 0x194   : > { %v1601_v50 = vadd.f32 %v1524_v3, %v1131_v40 }
 0x195   : > { %v1132_v5 = vpop.f32.mrf.mxu1 }
 0x196   : > { %v2039_v31 = vadd.f32 %v10448_v27, %v1601_v50  ;;  %v1133_v53 = vadd.f32 %v1132_v5, %v10260_v47  ;;  %v1380_v27 = vsel %vm1341_vm4, %v1377_v12, %v1379_v48  ;;  %v10520_v7 = vpop.f32.mrf.mxu3  ;;  %v332_v47 = vld [vmem:[%s15065_s1 + $0x38] sm:$0xff]  ;;  %v1319_v12 = vunpack.c.l.b16 %v1229_v25  ;;  %v611_v25 = vld [vmem:[%s9943_s18 + $0xa0] sm:$0x3] }
 0x197   : > { %v10504_v9 = vpop.f32.mrf.mxu0  ;;  %383 = vperm.xlu1 %9806, %v328_v39   ;;  %398 = vperm.xlu0 %9805, %v331_v54   ;;  %v9605_v39 = vld [vmem:[%s9943_s18 + $0xbc] sm:$0xff] }
 0x198   : > { %v10506_v30 = vadd.f32 %v2355_v22, %v2039_v31  ;;  %v1340_v22 = vpack.c.b16 %v1319_v12, %v1319_v12  ;;  %v337_v31 = vld [vmem:[%s15065_s1 + $0x60] sm:$0xff] }
 0x19a   : > { %8820 = vmatmul.msk.bf16.gmra.mxu3 %vm797_vm2, %v1819_v23  ;;  %v335_v23 = vld [vmem:[%s15065_s1 + $0x50] sm:$0xff]  ;;  %v1381_v3 = vrot.slane %v1340_v22, 2  ;;  %v341_v22 = vld [vmem:[%s15065_s1 + $0x80] sm:$0xff] }
 0x19b   : > { %v1526_v14 = vpop.f32.mrf.mxu2 }
 0x19c   : > { %v10512_v45 = vadd.f32 %v1526_v14, %v1133_v53  ;;  %v1382_v24 = vsel %vm1341_vm4, %v1379_v48, %v1381_v3 }
 0x19d   : > { %v1135_v19 = vpop.f32.mrf.mxu1 }
 0x19e   : > { %v1136_v36 = vadd.f32 %v1135_v19, %v10269_v59  ;;  %v10537_v59 = vpop.f32.mrf.mxu3  ;;  %v9811_v19 = vld [vmem:[%s9943_s18 + $0x98] sm:$0xff] }
 0x19f   : > { %v2360_v55 = vpop.f32.mrf.mxu0  ;;  %403 = vperm.xlu1 %9806, %v332_v47  }
 0x1a0   : > { %8574 = vmatmul.msk.bf16.gmra.mxu1 %vm797_vm2, %v10084_v26  ;;  %8694 = vmatmul.msk.bf16.gmra.mxu2 %vm797_vm2, %v1380_v27  ;;  %v334_v26 = vld [vmem:[%s15065_s1 + $0x48] sm:$0xff] }
 0x1a1   : > { %413 = vperm.xlu0 %9805, %v334_v26  }
 0x1a2   : > { %8938 = vmatmul.msk.bf16.gmra.mxu0 %vm797_vm2, %v9604_v1 }
 0x1a3   : > { %v1529_v18 = vpop.f32.mrf.mxu2 }
 0x1a4   : > { %v1603_v15 = vadd.f32 %v1529_v18, %v1136_v36  ;;  %v2102_v36 = vld [vmem:[%s9943_s18 + $0xc4] sm:$0x3] }
 0x1a5   : > { %v1137_v17 = vpop.f32.mrf.mxu1  ;;  %v2192_v26 = vunpack.c.l.b16 %v2102_v36  ;;  %v9633_v36 = vld [vmem:[%s9943_s18 + $0x3c] sm:$0xff] }
 0x1a6   : > { %v2041_v8 = vadd.f32 %v10468_v63, %v1603_v15  ;;  %v1138_v50 = vadd.f32 %v1137_v17, %v10284_v21  ;;  %v10552_v14 = vpop.f32.mrf.mxu3  ;;  %v338_v21 = vld [vmem:[%s15065_s1 + $0x68] sm:$0xff]  ;;  %v329_v17 = vld [vmem:[%s15065_s1 + $0x20] sm:$0xff] }
 0x1a7   : > { %v10535_v37 = vpop.f32.mrf.mxu0  ;;  %418 = vperm.xlu1 %9806, %v335_v23   ;;  %388 = vperm.xlu2 %9807, %v329_v17   ;;  %v346_v17 = vld [vmem:[%s15065_s1 + $0xa8] sm:$0xff] }
 0x1a8   : > { %v10539_v40 = vadd.f32 %v2360_v55, %v2041_v8  ;;  %v340_v55 = vld [vmem:[%s15065_s1 + $0x78] sm:$0xff] }
 0x1a9   : > { %428 = vperm.xlu0 %9805, %v337_v31  }
 0x1ab   : > { %v1531_v5 = vpop.f32.mrf.mxu2 }
 0x1ac   : > { %v10545_v41 = vadd.f32 %v1531_v5, %v1138_v50 }
 0x1ad   : > { %v1140_v63 = vpop.f32.mrf.mxu1 }
 0x1ae   : > { %v1141_v48 = vadd.f32 %v1140_v63, %v10291_v28  ;;  %v10569_v18 = vpop.f32.mrf.mxu3  ;;  %v985_v28 = vunpack.c.l.b16 %v611_v25  ;;  %v343_v63 = vld [vmem:[%s15065_s1 + $0x90] sm:$0xff] }
 0x1af   : > { %v2365_v53 = vpop.f32.mrf.mxu0  ;;  %433 = vperm.xlu1 %9806, %v338_v21  }
 0x1b0   : > { %8575 = vmatmul.msk.bf16.gmra.mxu1 %vm797_vm2, %v9811_v19  ;;  %8695 = vmatmul.msk.bf16.gmra.mxu2 %vm797_vm2, %v1382_v24  ;;  %v988_v50 = vpack.c.b16 %v985_v28, %v985_v28  ;;  %v2213_v24 = vpack.c.b16 %v2192_v26, %v2192_v26  ;;  %v8950_v19 = vld [vmem:[%s9943_s18 + $0x2c] sm:$0xe] }
 0x1b1   : > { %443 = vperm.xlu0 %9805, %v340_v55   ;;  %v9610_v55 = vld [vmem:[%s9943_s18 + $0x34] sm:$0xff] }
 0x1b2   : > { %8939 = vmatmul.msk.bf16.gmra.mxu0 %vm797_vm2, %v9605_v39 }
 0x1b3   : > { %v1534_v27 = vpop.f32.mrf.mxu2 }
 0x1b4   : > { %v1605_v54 = vadd.f32 %v1534_v27, %v1141_v48  ;;  %v9609_v48 = vld [vmem:[%s9943_s18 + $0x2c] sm:$0xf0]  ;;  %v9070_v27 = vld [vmem:[%s9943_s18 + $0x34] sm:$0xc] }
 0x1b5   : > { %v1142_v1 = vpop.f32.mrf.mxu1 }
 0x1b6   : > { %v2043_v47 = vadd.f32 %v1972_v46, %v1605_v54  ;;  %v1143_v46 = vadd.f32 %v1142_v1, %v10306_v58  ;;  %v10585_v39 = vpop.f32.mrf.mxu3  ;;  %v330_v58 = vld [vmem:[%s15065_s1 + $0x28] sm:$0xff]  ;;  %v9632_v54 = vld [vmem:[%s9943_s18 + $0x34] sm:$0xf0] }
 0x1b7   : > { %v10566_v12 = vpop.f32.mrf.mxu0  ;;  %448 = vperm.xlu1 %9806, %v341_v22   ;;  %393 = vperm.xlu2 %9807, %v330_v58   ;;  %v9071_v28 = vor.u32 %v9632_v54, %v9070_v27  ;;  %v3042_v58 = vrot.slane %v9633_v36, 2  ;;  %v349_v27 = vld [vmem:[%s15065_s1 + $0xc0] sm:$0xff] }
 0x1b8   : > { %v10571_v15 = vadd.f32 %v2365_v53, %v2043_v47  ;;  %v344_v53 = vld [vmem:[%s15065_s1 + $0x98] sm:$0xff]  ;;  %v8951_v47 = vor.u32 %v9609_v48, %v8950_v19 }
 0x1b9   : > { %458 = vperm.xlu0 %9805, %v343_v63   ;;  %v2608_v63 = vrot.slane %v9610_v55, 1 }
 0x1bb   : > { %v1536_v8 = vpop.f32.mrf.mxu2 }
 0x1bc   : > { %v10580_v23 = vadd.f32 %v1536_v8, %v1143_v46  ;;  %v333_v8 = vld [vmem:[%s15065_s1 + $0x40] sm:$0xff] }
 0x1bd   : > { %v1145_v5 = vpop.f32.mrf.mxu1 }
 0x1be   : > { %v1146_v21 = vadd.f32 %v1145_v5, %v10177_v49  ;;  %v10609_v46 = vpop.f32.mrf.mxu3  ;;  %v2607_v5 = vrot.slane %v8951_v47, 1 }
 0x1bf   : > { %v2370_v31 = vpop.f32.mrf.mxu0  ;;  %463 = vperm.xlu1 %9806, %v344_v53   ;;  %408 = vperm.xlu2 %9807, %v333_v8  }
 0x1c0   : > { %8576 = vmatmul.msk.bf16.gmra.mxu1 %vm797_vm2, %v988_v50  ;;  %8696 = vmatmul.msk.bf16.gmra.mxu2 %vm797_vm2, %v1381_v3  ;;  %v347_v50 = vld [vmem:[%s15065_s1 + $0xb0] sm:$0xff] }
 0x1c1   : > { %473 = vperm.xlu0 %9805, %v346_v17   ;;  %v9634_v17 = vld [vmem:[%s9943_s18 + $0x44] sm:$0xff] }
 0x1c2   : > { %8940 = vmatmul.msk.bf16.gmra.mxu0 %vm797_vm2, %v2213_v24  ;;  %v3041_v24 = vrot.slane %v9071_v28, 2  ;;  %v9611_v28 = vld [vmem:[%s9943_s18 + $0x3c] sm:$0xff] }
 0x1c3   : > { %v1539_v3 = vpop.f32.mrf.mxu2 }
 0x1c4   : > { %v1607_v1 = vadd.f32 %v1539_v3, %v1146_v21  ;;  %v2609_v21 = vsel %vm734_vm1, %v2607_v5, %v2608_v63  ;;  %v3043_v48 = vsel %vm1341_vm4, %v3041_v24, %v3042_v58 }
 0x1c5   : > { %v1147_v25 = vpop.f32.mrf.mxu1 }
 0x1c6   : > { %v2045_v22 = vadd.f32 %v10537_v59, %v1607_v1  ;;  %v1148_v59 = vadd.f32 %v1147_v25, %v10185_v57  ;;  %v10627_v3 = vpop.f32.mrf.mxu3  ;;  %v336_v57 = vld [vmem:[%s15065_s1 + $0x58] sm:$0xff]  ;;  %v350_v1 = vld [vmem:[%s15065_s1 + $0xc8] sm:$0xff] }
 0x1c7   : > { %v10607_v49 = vpop.f32.mrf.mxu0  ;;  %478 = vperm.xlu1 %9806, %v347_v50   ;;  %15168 = vst [vmem:[#allocation14_spill] sm:$0xff] %v10627_v3  ;;  %423 = vperm.xlu2 %9807, %v336_v57  }
 0x1c8   : > { %v10611_v26 = vadd.f32 %v2370_v31, %v2045_v22  ;;  %v352_v22 = vld [vmem:[%s15065_s1 + $0xd8] sm:$0xff] }
 0x1c9   : > { %488 = vperm.xlu0 %9805, %v349_v27  }
 0x1cb   : > { %v1541_v53 = vpop.f32.mrf.mxu2 }
 0x1cc   : > { %v10620_v19 = vadd.f32 %v1541_v53, %v1148_v59  ;;  %v353_v59 = vld [vmem:[%s15065_s1 + $0xe0] sm:$0xff]  ;;  %v2610_v53 = vrot.slane %v9611_v28, 1 }
 0x1cd   : > { %v1150_v31 = vpop.f32.mrf.mxu1 }
 0x1ce   : > { %v1151_v25 = vadd.f32 %v1150_v31, %v10199_v0  ;;  %v1992_v5 = vpop.f32.mrf.mxu3  ;;  %v339_v0 = vld [vmem:[%s15065_s1 + $0x70] sm:$0xff]  ;;  %v3044_v31 = vrot.slane %v9634_v17, 2  ;;  %v9612_v17 = vld [vmem:[%s9943_s18 + $0x44] sm:$0xff] }
 0x1cf   : > { %v2375_v54 = vpop.f32.mrf.mxu0  ;;  %493 = vperm.xlu1 %9806, %v350_v1   ;;  %438 = vperm.xlu2 %9807, %v339_v0   ;;  %v355_v1 = vld [vmem:[%s15065_s1 + $0xf0] sm:$0xff] }
 0x1d0   : > { %9040 = vmatmul.msk.bf16.vlgmr.msra.gmra.mxu1 %vm797_vm2, %v2609_v21  ;;  %9160 = vmatmul.msk.bf16.vlgmr.msra.gmra.mxu2 %vm797_vm2, %v3043_v48  ;;  %v3045_v57 = vsel %vm1341_vm4, %v3042_v58, %v3044_v31 }
 0x1d1   : > { %503 = vperm.xlu0 %9805, %v352_v22   ;;  %v9635_v22 = vld [vmem:[%s9943_s18 + $0x4c] sm:$0xff] }
 0x1d3   : > { %v1544_v55 = vpop.f32.mrf.mxu2 }
 0x1d4   : > { %v1609_v47 = vadd.f32 %v1544_v55, %v1151_v25 }
 0x1d5   : > { %v1152_v36 = vpop.f32.mrf.mxu1 }
 0x1d6   : > { %v2047_v8 = vadd.f32 %v10569_v18, %v1609_v47  ;;  %v1153_v18 = vadd.f32 %v1152_v36, %v10215_v42  ;;  %v10662_v55 = vpop.f32.mrf.mxu3  ;;  %v342_v42 = vld [vmem:[%s15065_s1 + $0x88] sm:$0xff] }
 0x1d7   : > { %v10644_v50 = vpop.f32.mrf.mxu0  ;;  %508 = vperm.xlu1 %9806, %v353_v59   ;;  %15170 = vst [vmem:[#allocation16_spill] sm:$0xff] %v10662_v55  ;;  %453 = vperm.xlu2 %9807, %v342_v42  }
 0x1d8   : > { %15169 = vst [vmem:[#allocation15_spill] sm:$0xff] %v10644_v50  ;;  %v10646_v24 = vadd.f32 %v2375_v54, %v2047_v8  ;;  %v2611_v54 = vsel %vm734_vm1, %v2608_v63, %v2610_v53  ;;  %v356_v63 = vld [vmem:[%s15065_s1 + $0xf8] sm:$0xff] }
 0x1d9   : > { %518 = vperm.xlu0 %9805, %v355_v1  }
 0x1db   : > { %v1546_v21 = vpop.f32.mrf.mxu2 }
 0x1dc   : > { %v10655_v48 = vadd.f32 %v1546_v21, %v1153_v18  ;;  %v345_v21 = vld [vmem:[%s15065_s1 + $0xa0] sm:$0xff] }
 0x1dd   : > { %v1155_v27 = vpop.f32.mrf.mxu1 }
 0x1de   : > { %v1156_v58 = vadd.f32 %v1155_v27, %v10231_v20  ;;  %v1997_v59 = vpop.f32.mrf.mxu3 }
 0x1df   : > { %v2380_v25 = vpop.f32.mrf.mxu0  ;;  %523 = vperm.xlu1 %9806, %v356_v63   ;;  %468 = vperm.xlu2 %9807, %v345_v21  }
 0x1e0   : > { %9041 = vmatmul.msk.bf16.gmra.mxu1 %vm797_vm2, %v2611_v54  ;;  %9161 = vmatmul.msk.bf16.gmra.mxu2 %vm797_vm2, %v3045_v57  ;;  %v2612_v54 = vrot.slane %v9612_v17, 1  ;;  %v3046_v57 = vrot.slane %v9635_v22, 2  ;;  %v9636_v22 = vld [vmem:[%s9943_s18 + $0x54] sm:$0xff] }
 0x1e2   : > { %v2613_v42 = vsel %vm734_vm1, %v2610_v53, %v2612_v54  ;;  %v9613_v53 = vld [vmem:[%s9943_s18 + $0x4c] sm:$0xff] }
 0x1e3   : > { %v1549_v47 = vpop.f32.mrf.mxu2 }
 0x1e4   : > { %v1611_v36 = vadd.f32 %v1549_v47, %v1156_v58 }
 0x1e5   : > { %v1157_v28 = vpop.f32.mrf.mxu1 }
 0x1e6   : > { %v2049_v8 = vadd.f32 %v10609_v46, %v1611_v36  ;;  %v1158_v20 = vadd.f32 %v1157_v28, %v10241_v52  ;;  %v10688_v58 = vpop.f32.mrf.mxu3  ;;  %v348_v52 = vld [vmem:[%s15065_s1 + $0xb8] sm:$0xff] }
 0x1e7   : > { %v10676_v0 = vpop.f32.mrf.mxu0  ;;  %15174 = vst [vmem:[#allocation20_spill] sm:$0xff] %v10688_v58  ;;  %483 = vperm.xlu2 %9807, %v348_v52  }
 0x1e8   : > { %15171 = vst [vmem:[#allocation17_spill] sm:$0xff] %v10676_v0  ;;  %v10678_v18 = vadd.f32 %v2380_v25, %v2049_v8  ;;  %v3047_v25 = vsel %vm1341_vm4, %v3044_v31, %v3046_v57 }
 0x1ea   : > { %15172 = vst [vmem:[#allocation18_spill] sm:$0xff] %v10678_v18 }
 0x1eb   : > { %v1551_v27 = vpop.f32.mrf.mxu2 }
 0x1ec   : > { %v10684_v1 = vadd.f32 %v1551_v27, %v1158_v20  ;;  %v351_v27 = vld [vmem:[%s15065_s1 + $0xd0] sm:$0xff] }
 0x1ed   : > { %v1160_v46 = vpop.f32.mrf.mxu1 }
 0x1ee   : > { %15173 = vst [vmem:[#allocation19_spill] sm:$0xff] %v10684_v1  ;;  %v1161_v47 = vadd.f32 %v1160_v46, %v10257_v44  ;;  %v2002_v21 = vpop.f32.mrf.mxu3  ;;  %v10877_v1 = vld [vmem:[%s9943_s18 + $0x8c] sm:$0xff] }
 0x1ef   : > { %v2385_v63 = vpop.f32.mrf.mxu0  ;;  %498 = vperm.xlu2 %9807, %v351_v27   ;;  %v9614_v27 = vld [vmem:[%s9943_s18 + $0x54] sm:$0xff] }
 0x1f0   : > { %9042 = vmatmul.msk.bf16.gmra.mxu1 %vm797_vm2, %v2613_v42  ;;  %9162 = vmatmul.msk.bf16.gmra.mxu2 %vm797_vm2, %v3047_v25  ;;  %v2614_v42 = vrot.slane %v9613_v53, 1  ;;  %v3048_v25 = vrot.slane %v9636_v22, 2  ;;  %v15179_v53 = vld [vmem:[#allocation8_spill] sm:$0xff] }
 0x1f3   : > { %v1554_v36 = vpop.f32.mrf.mxu2 }
 0x1f4   : > { %v1613_v28 = vadd.f32 %v1554_v36, %v1161_v47 }
 0x1f5   : > { %v1162_v17 = vpop.f32.mrf.mxu1 }
 0x1f6   : > { %v2051_v31 = vadd.f32 %v1992_v5, %v1613_v28  ;;  %v1163_v44 = vadd.f32 %v1162_v17, %v10267_v4  ;;  %v2615_v5 = vsel %vm734_vm1, %v2612_v54, %v2614_v42  ;;  %v10710_v28 = vpop.f32.mrf.mxu3  ;;  %v9680_v4 = vld [vmem:[%s15068_s4 + $0x38] sm:$0xff]  ;;  %v354_v17 = vld [vmem:[%s15065_s1 + $0xe8] sm:$0xff] }
 0x1f7   : > { %v10698_v8 = vpop.f32.mrf.mxu0  ;;  %15178 = vst [vmem:[#allocation24_spill] sm:$0xff] %v10710_v28  ;;  %513 = vperm.xlu2 %9807, %v354_v17   ;;  %5512 = vmatpush.bf16.msra.mxu3 %v9680_v4  ;;  %v2616_v17 = vrot.slane %v9614_v27, 1  ;;  %v15182_v4 = vld [vmem:[#allocation9_spill] sm:$0xff] }
 0x1f8   : > { %15175 = vst [vmem:[#allocation21_spill] sm:$0xff] %v10698_v8  ;;  %v10700_v20 = vadd.f32 %v2385_v63, %v2051_v31  ;;  %v3049_v63 = vsel %vm1341_vm4, %v3046_v57, %v3048_v25 }
 0x1fa   : > { %15176 = vst [vmem:[#allocation22_spill] sm:$0xff] %v10700_v20  ;;  %v9732_v20 = vld [vmem:[#allocation2] sm:$0xff]  }
 0x1fb   : > { %v1556_v46 = vpop.f32.mrf.mxu2 }
 0x1fc   : > { %v10706_v52 = vadd.f32 %v1556_v46, %v1163_v44  ;;  %v9637_v44 = vld [vmem:[%s9943_s18 + $0x5c] sm:$0xff] }
 0x1fd   : > { %v1165_v47 = vpop.f32.mrf.mxu1 }
 0x1fe   : > { %15177 = vst [vmem:[#allocation23_spill] sm:$0xff] %v10706_v52  ;;  %v1166_v54 = vadd.f32 %v1165_v47, %v15179_v53  ;;  %v2007_v28 = vpop.f32.mrf.mxu3  ;;  %v3050_v47 = vrot.slane %v9637_v44, 2 }
 0x1ff   : > { %v2390_v36 = vpop.f32.mrf.mxu0 }
 0x200   : > { %9043 = vmatmul.msk.bf16.gmra.mxu1 %vm797_vm2, %v2615_v5  ;;  %9163 = vmatmul.msk.bf16.gmra.mxu2 %vm797_vm2, %v3049_v63  ;;  %v9688_v5 = vld [vmem:[%s15068_s4 + $0x78] sm:$0xff]  ;;  %v3051_v8 = vsel %vm1341_vm4, %v3048_v25, %v3050_v47 }
 0x201   : > { %5625 = vmatpush.bf16.msra.mxu0 %v9688_v5  ;;  %v9615_v5 = vld [vmem:[%s9943_s18 + $0x5c] sm:$0xff] }
 0x203   : > { %v1559_v57 = vpop.f32.mrf.mxu2 }
 0x204   : > { %v1615_v22 = vadd.f32 %v1559_v57, %v1166_v54 }
 0x205   : > { %v1167_v31 = vpop.f32.mrf.mxu1 }
 0x206   : > { %v2053_v46 = vadd.f32 %v1997_v59, %v1615_v22  ;;  %v1168_v53 = vadd.f32 %v1167_v31, %v15182_v4  ;;  %v2617_v22 = vsel %vm734_vm1, %v2614_v42, %v2616_v17  ;;  %v9638_v4 = vld [vmem:[%s9943_s18 + $0x64] sm:$0xff] }
 0x207   : > { %v10726_v63 = vpop.f32.mrf.mxu0  ;;  %v9690_v42 = vld [vmem:[%s15068_s4 + $0x88] sm:$0xff] }
 0x208   : > { %15180 = vst [vmem:[#allocation8_spill] sm:$0xff] %v10726_v63  ;;  %v10728_v58 = vadd.f32 %v2390_v36, %v2053_v46  ;;  %v10735_v63 = vpop.f32.mrf.mxu3  ;;  %v15185_v36 = vld [vmem:[#allocation10_spill] sm:$0xff]  ;;  %5744 = vmatpush.bf16.msrb.mxu1 %v9690_v42  ;;  %v9616_v42 = vld [vmem:[%s9943_s18 + $0x64] sm:$0xff] }
 0x209   : > { %15184 = vst [vmem:[#allocation26_spill] sm:$0xff] %v10735_v63 }
 0x20a   : > { %15181 = vst [vmem:[#allocation25_spill] sm:$0xff] %v10728_v58 }
 0x20b   : > { %v1561_v54 = vpop.f32.mrf.mxu2 }
 0x20c   : > { %v10731_v57 = vadd.f32 %v1561_v54, %v1168_v53 }
 0x20d   : > { %v1170_v59 = vpop.f32.mrf.mxu1 }
 0x20e   : > { %15183 = vst [vmem:[#allocation9_spill] sm:$0xff] %v10731_v57  ;;  %v1171_v27 = vadd.f32 %v1170_v59, %v15185_v36  ;;  %v15188_v59 = vld [vmem:[#allocation11_spill] sm:$0xff] }
 0x20f   : > { %v2395_v55 = vpop.f32.mrf.mxu0 }
 0x210   : > { %9044 = vmatmul.msk.bf16.gmra.mxu1 %vm797_vm2, %v2617_v22  ;;  %9164 = vmatmul.msk.bf16.gmra.mxu2 %vm797_vm2, %v3051_v8  ;;  %v2012_v54 = vpop.f32.mrf.mxu3  ;;  %v2618_v22 = vrot.slane %v9615_v5, 1  ;;  %v3052_v8 = vrot.slane %v9638_v4, 2 }
 0x212   : > { %v3053_v63 = vsel %vm1341_vm4, %v3050_v47, %v3052_v8  ;;  %v9679_v47 = vld [vmem:[%s15068_s4 + $0x30] sm:$0xff] }
 0x213   : > { %v1564_v44 = vpop.f32.mrf.mxu2  ;;  %5513 = vmatpush.bf16.msra.mxu3 %v9679_v47 }
 0x214   : > { %v1617_v46 = vadd.f32 %v1564_v44, %v1171_v27 }
 0x215   : > { %v1172_v31 = vpop.f32.mrf.mxu1 }
 0x216   : > { %v2055_v53 = vadd.f32 %v2002_v21, %v1617_v46  ;;  %v1173_v36 = vadd.f32 %v1172_v31, %v15188_v59  ;;  %v2619_v46 = vsel %vm734_vm1, %v2616_v17, %v2618_v22  ;;  %v9639_v59 = vld [vmem:[%s9943_s18 + $0x6c] sm:$0xff] }
 0x217   : > { %v10745_v25 = vpop.f32.mrf.mxu0 }
 0x218   : > { %15186 = vst [vmem:[#allocation10_spill] sm:$0xff] %v10745_v25  ;;  %v10747_v58 = vadd.f32 %v2395_v55, %v2055_v53  ;;  %v10754_v25 = vpop.f32.mrf.mxu3  ;;  %v15191_v55 = vld [vmem:[#allocation3_spill] sm:$0xff] }
 0x219   : > { %15190 = vst [vmem:[#allocation28_spill] sm:$0xff] %v10754_v25  ;;  %v3054_v25 = vrot.slane %v9639_v59, 2 }
 0x21a   : > { %15187 = vst [vmem:[#allocation27_spill] sm:$0xff] %v10747_v58 }
 0x21b   : > { %v1566_v27 = vpop.f32.mrf.mxu2 }
 0x21c   : > { %v10750_v44 = vadd.f32 %v1566_v27, %v1173_v36 }
 0x21d   : > { %v1175_v21 = vpop.f32.mrf.mxu1 }
 0x21e   : > { %15189 = vst [vmem:[#allocation11_spill] sm:$0xff] %v10750_v44  ;;  %v1176_v5 = vadd.f32 %v1175_v21, %v15191_v55 }
 0x21f   : > { %v2400_v57 = vpop.f32.mrf.mxu0 }
 0x220   : > { %9045 = vmatmul.msk.bf16.gmra.mxu1 %vm797_vm2, %v2619_v46  ;;  %9165 = vmatmul.msk.bf16.gmra.mxu2 %vm797_vm2, %v3053_v63  ;;  %v2017_v17 = vpop.f32.mrf.mxu3  ;;  %v2620_v46 = vrot.slane %v9616_v42, 1  ;;  %v15194_v63 = vld [vmem:[#allocation4_spill] sm:$0xff] }
 0x223   : > { %v1569_v4 = vpop.f32.mrf.mxu2 }
 0x224   : > { %v1619_v53 = vadd.f32 %v1569_v4, %v1176_v5  ;;  %v3055_v4 = vsel %vm1341_vm4, %v3052_v8, %v3054_v25 }
 0x225   : > { %v1177_v31 = vpop.f32.mrf.mxu1 }
 0x226   : > { %v2057_v36 = vadd.f32 %v2007_v28, %v1619_v53  ;;  %v1178_v58 = vadd.f32 %v1177_v31, %v15194_v63  ;;  %v2621_v28 = vsel %vm734_vm1, %v2618_v22, %v2620_v46  ;;  %v15196_v22 = vld [vmem:[#allocation5_spill] sm:$0xff] }
 0x227   : > { %v10761_v27 = vpop.f32.mrf.mxu0  ;;  %v9617_v63 = vld [vmem:[%s9943_s18 + $0x6c] sm:$0xff] }
 0x228   : > { %15192 = vst [vmem:[#allocation3_spill] sm:$0xff] %v10761_v27  ;;  %v10763_v44 = vadd.f32 %v2400_v57, %v2057_v36  ;;  %v9687_v57 = vld [vmem:[%s15068_s4 + $0x70] sm:$0xff]  ;;  %v2019_v42 = vpop.f32.mrf.mxu3 }
 0x229   : > { %5626 = vmatpush.bf16.msra.mxu0 %v9687_v57 }
 0x22a   : > { %15193 = vst [vmem:[#allocation29_spill] sm:$0xff] %v10763_v44  ;;  %v15199_v44 = vld [vmem:[#allocation6_spill] sm:$0xff] }
 0x22b   : > { %v1571_v21 = vpop.f32.mrf.mxu2 }
 0x22c   : > { %v10769_v55 = vadd.f32 %v1571_v21, %v1178_v58  ;;  %v313_v58 = vld [vmem:[#allocation2 + $0x8] sm:$0x3]  ;;  %v9640_v21 = vld [vmem:[%s9943_s18 + $0x74] sm:$0xff] }
 0x22d   : > { %v1180_v5 = vpop.f32.mrf.mxu1  ;;  %v314_v31 = vsel %vm312_vm8, 0, %v313_v58  ;;  %v3056_v57 = vrot.slane %v9640_v21, 2  ;;  %v9618_v21 = vld [vmem:[%s9943_s18 + $0x74] sm:$0xff]  ;;  %vm5069_vm8 = vcmask 785408  }
 0x22e   : > { %15195 = vst [vmem:[#allocation4_spill] sm:$0xff] %v10769_v55  ;;  %v1181_v8 = vadd.f32 %v1180_v5, %v15196_v22 }
 0x22f   : > { %v2405_v53 = vpop.f32.mrf.mxu0  ;;  %315 = vst [vmem:[#allocation2 + $0x8] sm:$0x3] %v314_v31 }
 0x230   : > { %9046 = vmatmul.msk.bf16.gmra.mxu1 %vm797_vm2, %v2621_v28  ;;  %9166 = vmatmul.msk.bf16.gmra.mxu2 %vm797_vm2, %v3055_v4  ;;  %v2622_v4 = vrot.slane %v9617_v63, 1 }
 0x232   : > { %v2623_v22 = vsel %vm734_vm1, %v2620_v46, %v2622_v4  ;;  %v2624_v46 = vrot.slane %v9618_v21, 1  ;;  %v10815_v21 = vpop.permute.xlu0 %368 }
 0x233   : > { %v1574_v59 = vpop.f32.mrf.mxu2 }
 0x234   : > { %v1621_v36 = vadd.f32 %v1574_v59, %v1181_v8  ;;  %v3057_v8 = vsel %vm1341_vm4, %v3054_v25, %v3056_v57 }
 0x235   : > { %v1182_v47 = vpop.f32.mrf.mxu1 }
 0x236   : > { %v2059_v42 = vadd.f32 %v2012_v54, %v1621_v36  ;;  %v1183_v55 = vadd.f32 %v1182_v47, %v15199_v44  ;;  %v15201_v54 = vld [vmem:[#allocation7_spill] sm:$0xff] }
 0x237   : > { %v10782_v27 = vpop.f32.mrf.mxu0  ;;  %v9641_v44 = vld [vmem:[%s9943_s18 + $0x7c] sm:$0xff] }
 0x238   : > { %15197 = vst [vmem:[#allocation5_spill] sm:$0xff] %v10782_v27  ;;  %v10784_v28 = vadd.f32 %v2405_v53, %v2059_v42  ;;  %v3058_v25 = vrot.slane %v9641_v44, 2 }
 0x23a   : > { %15198 = vst [vmem:[#allocation30_spill] sm:$0xff] %v10784_v28 }
 0x23b   : > { %v1576_v52 = vpop.f32.mrf.mxu2 }
 0x23c   : > { %v10787_v5 = vadd.f32 %v1576_v52, %v1183_v55 }
 0x23d   : > { %v1185_v58 = vpop.f32.mrf.mxu1 }
 0x23e   : > { %15200 = vst [vmem:[#allocation6_spill] sm:$0xff] %v10787_v5  ;;  %v1186_v53 = vadd.f32 %v1185_v58, %v15201_v54  ;;  %v15203_v58 = vld [vmem:[#allocation12_spill] sm:$0xff] }
 0x23f   : > { %v2410_v31 = vpop.f32.mrf.mxu0  ;;  %15204 = vst [vmem:[#allocation12_spill] sm:$0xff] %v10815_v21 }
 0x240   : > { %9047 = vmatmul.msk.bf16.gmra.mxu1 %vm797_vm2, %v2623_v22  ;;  %9167 = vmatmul.msk.bf16.gmra.mxu2 %vm797_vm2, %v3057_v8  ;;  %v2625_v22 = vsel %vm734_vm1, %v2622_v4, %v2624_v46  ;;  %v3059_v8 = vsel %vm1341_vm4, %v3056_v57, %v3058_v25 }
 0x243   : > { %v1579_v59 = vpop.f32.mrf.mxu2 }
 0x244   : > { %v1623_v36 = vadd.f32 %v1579_v59, %v1186_v53 }
 0x245   : > { %v1187_v63 = vpop.f32.mrf.mxu1 }
 0x246   : > { %v2061_v47 = vadd.f32 %v2017_v17, %v1623_v36  ;;  %v10806_v17 = vld [vmem:[%s15067_s3] ss:$0 sm:$0xff]  ;;  %v10812_v63 = vld [vmem:[%s9943_s18 + $0x84] sm:$0xff] }
 0x247   : > { %v2412_v52 = vpop.f32.mrf.mxu0  ;;  %v10809_v36 = vld [vmem:[%s9943_s18 + $0x7c] sm:$0xff] }
 0x248   : > { %v10796_v55 = vadd.f32 %v2410_v31, %v2061_v47  ;;  %v2626_v44 = vrot.slane %v10809_v36, 1  ;;  %v15205_v52 = vld [vmem:[#allocation13_spill] sm:$0xff] }
 0x24a   : > { %15202 = vst [vmem:[#allocation7_spill] sm:$0xff] %v10796_v55 }
 0x24b   : > { %v1581_v42 = vpop.f32.mrf.mxu2 }
 0x24d   : > { %v2744_v27 = vpop.f32.mrf.mxu1 }
 0x24e   : > { %v2848_v54 = vadd.f32 %v2744_v27, %v15203_v58  ;;  %v3060_v27 = vrot.slane %v10812_v63, 2 }
 0x250   : > { %9048 = vmatmul.msk.bf16.gmra.mxu1 %vm797_vm2, %v2625_v22  ;;  %9168 = vmatmul.msk.bf16.gmra.mxu2 %vm797_vm2, %v3059_v8  ;;  %v3061_v55 = vsel %vm1341_vm4, %v3058_v25, %v3060_v27  ;;  %v10827_v25 = vpop.permute.xlu0 %373 }
 0x251   : > { %15206 = vst [vmem:[#allocation13_spill] sm:$0xff] %v10827_v25 }
 0x253   : > { %v3178_v31 = vpop.f32.mrf.mxu2 }
 0x254   : > { %v3282_v53 = vadd.f32 %v3178_v31, %v2848_v54  ;;  %v2627_v31 = vsel %vm734_vm1, %v2624_v46, %v2626_v44 }
 0x255   : > { %v2746_v59 = vpop.f32.mrf.mxu1 }
 0x256   : > { %v3327_v4 = vadd.f32 %v10806_v17, %v3282_v53  ;;  %v2849_v42 = vadd.f32 %v2746_v59, %v15205_v52  ;;  %v15207_v52 = vmov 0 }
 0x257   : > { %v15208_v52 = vsel %vm10829_vm11, 4294967295, %v15207_v52 }
 0x258   : > { %v3368_v57 = vmax.f32 %v3327_v4, 0.0  ;;  %15209 = vst [vmem:[#allocation31_spill] sm:$0xff] %v15208_v52 }
 0x25a   : > { %v3409_v47 = vmin.f32 %v3368_v57, 6.0 }
 0x25b   : > { %v3180_v22 = vpop.f32.mrf.mxu2 }
 0x25c   : > { %v3450_v8 = vmul.f32 %v3409_v47, %v10815_v21  ;;  %v3283_v58 = vadd.f32 %v3180_v22, %v2849_v42  ;;  %v3986_v42 = vld [vmem:[#allocation2 + $0x8] sm:$0xe] }
 0x25d   : > { %v2749_v54 = vpop.f32.mrf.mxu1 }
 0x25e   : > { %v3491_v53 = vpack.c.bf16 %v3450_v8, %v3450_v8  ;;  %v3328_v4 = vadd.f32 %v10806_v17, %v3283_v58  ;;  %v2850_v46 = vadd.f32 %v2749_v54, %v10346_v60 }
 0x260   : > { %v3535_v5 = vshrl.u32 %v3491_v53, 16  ;;  %v3538_v36 = vshll.u32 %v3491_v53, 16  ;;  %v3369_v63 = vmax.f32 %v3328_v4, 0.0  ;;  %9049 = vmatmul.msk.bf16.gmra.mxu1 %vm797_vm2, %v2627_v31  ;;  %9169 = vmatmul.msk.bf16.gmra.mxu2 %vm797_vm2, %v3061_v55  ;;  %v10835_v4 = vld [vmem:[%s9943_s18 + $0x84] sm:$0xff] }
 0x262   : > { %v3537_v59 = vrot.slane %v3535_v5, 6  ;;  %v3540_v57 = vrot.slane %v3538_v36, 7  ;;  %v3410_v47 = vmin.f32 %v3369_v63, 6.0  ;;  %v10838_v5 = vld [vmem:[%s9943_s18 + $0x8c] sm:$0xff] }
 0x263   : > { %v3183_v22 = vpop.f32.mrf.mxu2  ;;  %v9678_v36 = vld [vmem:[%s15068_s4 + $0x28] sm:$0xff] }
 0x264   : > { %v3541_v8 = vor.u32 %v3540_v57, %v3537_v59  ;;  %v3451_v58 = vmul.f32 %v3410_v47, %v10827_v25  ;;  %v3284_v53 = vadd.f32 %v3183_v22, %v2850_v46  ;;  %v9686_v63 = vld [vmem:[%s15068_s4 + $0x68] sm:$0xff]  ;;  %v10849_v46 = vpop.permute.xlu1 %378  ;;  %5514 = vmatpush.bf16.msra.mxu3 %v9678_v36  ;;  %v15213_v36 = vrot.slane %v10835_v4, 1 }
 0x265   : > { %v2751_v31 = vpop.f32.mrf.mxu1  ;;  %15210 = vst [vmem:[#allocation32_spill] sm:$0xff] %v10849_v46  ;;  %5627 = vmatpush.bf16.msra.mxu0 %v9686_v63 }
 0x266   : > { %v3987_v60 = vsel %vm10829_vm11, %v3541_v8, %v3986_v42  ;;  %v3492_v55 = vpack.c.bf16 %v3451_v58, %v3451_v58  ;;  %v3329_v54 = vadd.f32 %v10806_v17, %v3284_v53  ;;  %v2851_v52 = vadd.f32 %v2751_v31, %v10353_v11 }
 0x267   : > { %3988 = vst [vmem:[#allocation2 + $0x8] sm:$0xe] %v3987_v60  ;;  %v2629_v63 = vsel %vm734_vm1, %v2626_v44, %v15213_v36 }
 0x268   : > { %v3544_v59 = vshrl.u32 %v3492_v55, 16  ;;  %v3547_v57 = vshll.u32 %v3492_v55, 16  ;;  %v3370_v47 = vmax.f32 %v3329_v54, 0.0  ;;  %v3542_v54 = vrot.slane %v3541_v8, 4 }
 0x26a   : > { %v3546_v58 = vrot.slane %v3544_v59, 6  ;;  %v3549_v53 = vrot.slane %v3547_v57, 7  ;;  %v3411_v60 = vmin.f32 %v3370_v47, 6.0  ;;  %v15214_v59 = vrot.slane %v10838_v5, 2  ;;  %v9767_v47 = vld [vmem:[#allocation2] sm:$0xf0] }
 0x26b   : > { %v3185_v55 = vpop.f32.mrf.mxu2 }
 0x26c   : > { %v3550_v21 = vor.u32 %v3549_v53, %v3546_v58  ;;  %v3452_v28 = vmul.f32 %v3411_v60, %v10849_v46  ;;  %v3285_v42 = vadd.f32 %v3185_v55, %v2851_v52  ;;  %v3063_v11 = vsel %vm1341_vm4, %v3060_v27, %v15214_v59  ;;  %v9768_v58 = vld [vmem:[#allocation2] sm:$0xe]  ;;  %v10873_v36 = vpop.permute.xlu1 %383 }
 0x26d   : > { %v2754_v22 = vpop.f32.mrf.mxu1  ;;  %v4198_v52 = vshll.u32 %v9732_v20, 16  ;;  %v9769_v44 = vor.u32 %v9768_v58, %v9767_v47  ;;  %15215 = vst [vmem:[#allocation33_spill] sm:$0xff] %v10873_v36  ;;  %v10880_v47 = vld [vmem:[%s9943_s18 + $0x94] sm:$0xff] }
 0x26e   : > { %v3551_v31 = vsel %vm10855_vm13, %v3542_v54, %v3550_v21  ;;  %v3493_v57 = vpack.c.bf16 %v3452_v28, %v3452_v28  ;;  %v3330_v8 = vadd.f32 %v10806_v17, %v3285_v42  ;;  %v2852_v42 = vadd.f32 %v2754_v22, %v10362_v62 }
 0x26f   : > { %3989 = vst.msk [vmem:[#allocation2 + $0xc] sm:$0xf] %vm307_vm5, %v3551_v31  ;;  %v4196_v31 = vshrl.u32 %v9732_v20, 16  ;;  %v4200_v46 = vrot.slane %v4198_v52, 1  ;;  %v3552_v0 = vrot.slane %v3550_v21, 4 }
 0x270   : > { %v3554_v53 = vshrl.u32 %v3493_v57, 16  ;;  %v3557_v60 = vshll.u32 %v3493_v57, 16  ;;  %v3371_v55 = vmax.f32 %v3330_v8, 0.0  ;;  %9050 = vmatmul.msk.bf16.gmra.mxu1 %vm797_vm2, %v2629_v63  ;;  %9170 = vmatmul.msk.bf16.gmra.mxu2 %vm797_vm2, %v3063_v11  ;;  %v4407_v11 = vrot.slane %v9769_v44, 1 }
 0x271   : > { %v4201_v21 = vor.u32 %v4200_v46, %v4196_v31 }
 0x272   : > { %v3556_v27 = vrot.slane %v3554_v53, 6  ;;  %v3559_v54 = vrot.slane %v3557_v60, 7  ;;  %v3412_v28 = vmin.f32 %v3371_v55, 6.0 }
 0x273   : > { %v3188_v59 = vpop.f32.mrf.mxu2 }
 0x274   : > { %v3560_v57 = vor.u32 %v3559_v54, %v3556_v27  ;;  %v3453_v8 = vmul.f32 %v3412_v28, %v10873_v36  ;;  %v3286_v63 = vadd.f32 %v3188_v59, %v2852_v42  ;;  %v10890_v27 = vpop.permute.xlu2 %388  ;;  %v15078_v28 = vrot.slane %v10877_v1, 1 }
 0x275   : > { %v2756_v3 = vpop.f32.mrf.mxu1  ;;  %15216 = vst [vmem:[#allocation34_spill] sm:$0xff] %v10890_v27  ;;  %v15077_v42 = vrot.slane %v10880_v47, 2 }
 0x276   : > { %v3561_v58 = vsel %vm10855_vm13, %v3552_v0, %v3560_v57  ;;  %v3494_v62 = vpack.c.bf16 %v3453_v8, %v3453_v8  ;;  %v3331_v22 = vadd.f32 %v10806_v17, %v3286_v63  ;;  %v10885_v53 = vld [vmem:[#allocation2 + $0x8] sm:$0xff]   ;;  %v2853_v8 = vadd.f32 %v2756_v3, %v10369_v10 }
 0x277   : > { %3990 = vst.msk [vmem:[#allocation2 + $0x10] sm:$0xf] %vm307_vm5, %v3561_v58  ;;  %v15079_v20 = vrot.slane %v10885_v53, 1  ;;  %v4203_v52 = vshll.u32 %v10885_v53, 16  ;;  %v15217_v10 = vrot.slane %v10835_v4, 1 }
 0x278   : > { %v3564_v60 = vshrl.u32 %v3494_v62, 16  ;;  %v3567_v55 = vshll.u32 %v3494_v62, 16  ;;  %v3372_v44 = vmax.f32 %v3331_v22, 0.0  ;;  %v3562_v62 = vrot.slane %v3560_v57, 4 }
 0x279   : > { %v4409_v0 = vsel %vm734_vm1, %v4407_v11, %v15079_v20  ;;  %v10895_v54 = vrot.slane %v4203_v52, 1  ;;  %v2631_v3 = vsel %vm734_vm1, %v15217_v10, %v15078_v28  ;;  %v15218_v57 = vrot.slane %v10838_v5, 2 }
 0x27a   : > { %v3566_v59 = vrot.slane %v3564_v60, 6  ;;  %v3569_v46 = vrot.slane %v3567_v55, 7  ;;  %v3413_v31 = vmin.f32 %v3372_v44, 6.0  ;;  %4448 = vrot.lane.b32.xlu2 %v4409_v0, %s9868_s13  ;;  %v4082_v60 = vld [vmem:[#allocation2 + $0x8] sm:$0xc]  ;;  %v9738_v0 = vunpack.c.h.b16 %v10885_v53 }
 0x27b   : > { %v3190_v63 = vpop.f32.mrf.mxu2  ;;  %v4206_v58 = vsel %vm4194_vm14, %v4201_v21, %v10895_v54  ;;  %v4077_v55 = vld [vmem:[#allocation2 + $0x8] sm:$0xe]  ;;  %v3065_v21 = vsel %vm1341_vm4, %v15218_v57, %v15077_v42  ;;  %v4652_v4 = vunpack.c.l.b16 %v4082_v60  ;;  %v10923_v42 = vld [vmem:[%s9943_s18 + $0x94] sm:$0xff] }
 0x27c   : > { %v3570_v11 = vor.u32 %v3569_v46, %v3566_v59  ;;  %v3454_v22 = vmul.f32 %v3413_v31, %v10890_v27  ;;  %v3287_v52 = vadd.f32 %v3190_v63, %v2853_v8  ;;  %4362 = vrot.lane.b32.xlu1 %v4206_v58, %s9869_s14  ;;  %v4494_v8 = vunpack.c.l.b16 %v4077_v55 }
 0x27d   : > { %v2759_v44 = vpop.f32.mrf.mxu1  ;;  %v4653_v5 = vpack.c.b16 %v9738_v0, %v4652_v4 }
 0x27e   : > { %v3571_v59 = vsel %vm10855_vm13, %v3562_v62, %v3570_v11  ;;  %v3495_v46 = vpack.c.bf16 %v3454_v22, %v3454_v22  ;;  %v3332_v31 = vadd.f32 %v10806_v17, %v3287_v52  ;;  %v4498_v57 = vpack.c.b16 %v9738_v0, %v4494_v8 }
 0x27f   : > { %3991 = vst.msk [vmem:[#allocation2 + $0x14] sm:$0xf] %vm307_vm5, %v3571_v59  ;;  %v2854_v52 = vadd.f32 %v2759_v44, %v10378_v16  ;;  %v10926_v59 = vpop.permute.xlu2 %393  ;;  %v3572_v55 = vrot.slane %v3570_v11, 4  ;;  %v4654_v4 = vrot.slane %v4653_v5, 2 }
 0x280   : > { %v3574_v63 = vshrl.u32 %v3495_v46, 16  ;;  %v3577_v58 = vshll.u32 %v3495_v46, 16  ;;  %v3373_v10 = vmax.f32 %v3332_v31, 0.0  ;;  %9051 = vmatmul.msk.bf16.gmra.mxu1 %vm797_vm2, %v2631_v3  ;;  %9171 = vmatmul.msk.bf16.gmra.mxu2 %vm797_vm2, %v3065_v21  ;;  %15219 = vst [vmem:[#allocation35_spill] sm:$0xff] %v10926_v59  ;;  %v10930_v3 = vld [vmem:[%s9943_s18 + $0x9c] sm:$0xff]  ;;  %v4501_v0 = vrot.slane %v4498_v57, 1 }
 0x281   : > { %v4554_v11 = vshrl.u32 %v4498_v57, 16 }
 0x282   : > { %v3576_v62 = vrot.slane %v3574_v63, 6  ;;  %v3579_v22 = vrot.slane %v3577_v58, 7  ;;  %v3414_v28 = vmin.f32 %v3373_v10, 6.0 }
 0x283   : > { %v3193_v60 = vpop.f32.mrf.mxu2 }
 0x284   : > { %v3580_v46 = vor.u32 %v3579_v22, %v3576_v62  ;;  %v3455_v31 = vmul.f32 %v3414_v28, %v10926_v59  ;;  %v3288_v20 = vadd.f32 %v3193_v60, %v2854_v52  ;;  %v4557_v62 = vshll.u32 %v4498_v57, 16 }
 0x285   : > { %v2761_v21 = vpop.f32.mrf.mxu1  ;;  %v15221_v59 = vrot.slane %v10923_v42, 1  ;;  %v15222_v57 = vrot.slane %v10877_v1, 1  ;;  %v10976_v1 = vld [vmem:[%s9943_s18 + $0x9c] sm:$0xff] }
 0x286   : > { %v3581_v63 = vsel %vm10855_vm13, %v3572_v55, %v3580_v46  ;;  %v3496_v58 = vpack.c.bf16 %v3455_v31, %v3455_v31  ;;  %v3333_v16 = vadd.f32 %v10806_v17, %v3288_v20  ;;  %v10936_v44 = vld [vmem:[#allocation2 + $0x10] sm:$0xff]   ;;  %v15220_v20 = vrot.slane %v10885_v53, 1 }
 0x287   : > { %3992 = vst.msk [vmem:[#allocation2 + $0x18] sm:$0xf] %vm307_vm5, %v3581_v63  ;;  %v10940_v28 = vrot.slane %v10936_v44, 1  ;;  %v15083_v10 = vrot.slane %v10936_v44, 2  ;;  %v4211_v5 = vshll.u32 %v10936_v44, 16  ;;  %v2855_v36 = vadd.f32 %v2761_v21, %v10385_v29 }
 0x288   : > { %v3584_v22 = vshrl.u32 %v3496_v58, 16  ;;  %v3587_v52 = vshll.u32 %v3496_v58, 16  ;;  %v3374_v60 = vmax.f32 %v3333_v16, 0.0  ;;  %v2633_v58 = vsel %vm734_vm1, %v15222_v57, %v15221_v59 }
 0x289   : > { %v4411_v31 = vsel %vm734_vm1, %v15220_v20, %v10940_v28  ;;  %v4656_v63 = vsel %vm1341_vm4, %v4654_v4, %v15083_v10  ;;  %v4502_v8 = vsel %vm734_vm1, %v4501_v0, %v10940_v28  ;;  %v10962_v20 = vpop.permute.xlu0 %398  ;;  %v4562_v0 = vrot.slane %v4211_v5, 2 }
 0x28a   : > { %v3586_v16 = vrot.slane %v3584_v22, 6  ;;  %v3589_v55 = vrot.slane %v3587_v52, 7  ;;  %v3415_v27 = vmin.f32 %v3374_v60, 6.0  ;;  %4450 = vrot.lane.b32.xlu2 %v4411_v31, %s9868_s13  ;;  %4695 = vrot.lane.b32.xlu1 %v4656_v63, %s9869_s14  ;;  %15223 = vst [vmem:[#allocation36_spill] sm:$0xff] %v10962_v20  ;;  %v4556_v59 = vrot.slane %v4554_v11, 1 }
 0x28b   : > { %4507 = vrot.lane.b32.xlu0 %v4502_v8, %s9870_s15  ;;  %v3195_v4 = vpop.f32.mrf.mxu2  ;;  %v4559_v22 = vrot.slane %v4557_v62, 2  ;;  %v3582_v52 = vrot.slane %v3580_v46, 4  ;;  %v15224_v63 = vrot.slane %v10930_v3, 2  ;;  %v15225_v57 = vrot.slane %v10880_v47, 2 }
 0x28c   : > { %v3590_v60 = vor.u32 %v3589_v55, %v3586_v16  ;;  %v3456_v29 = vmul.f32 %v3415_v27, %v10962_v20  ;;  %v3289_v21 = vadd.f32 %v3195_v4, %v2855_v36  ;;  %v4207_v8 = vshrl.u32 %v10885_v53, 16  ;;  %v4083_v55 = vld [vmem:[#allocation2 + $0x10] sm:$0xc]  ;;  %v10990_v16 = vld [vmem:[%s9943_s18 + $0xa4] sm:$0xff] }
 0x28d   : > { %v2764_v31 = vpop.f32.mrf.mxu1  ;;  %v3067_v10 = vsel %vm1341_vm4, %v15225_v57, %v15224_v63  ;;  %v10973_v18 = vrot.slane %v4211_v5, 1  ;;  %v15226_v46 = vshrl.u32 %v10936_v44, 16  ;;  %v15084_v53 = vunpack.c.h.b16 %v10936_v44  ;;  %v9677_v5 = vld [vmem:[%s15068_s4 + $0x20] sm:$0xff] }
 0x28e   : > { %v3591_v36 = vsel %vm10855_vm13, %v3582_v52, %v3590_v60  ;;  %v3497_v27 = vpack.c.bf16 %v3456_v29, %v3456_v29  ;;  %v3334_v62 = vadd.f32 %v10806_v17, %v3289_v21  ;;  %v4209_v47 = vor.u32 %v4207_v8, %v10895_v54  ;;  %5515 = vmatpush.bf16.msra.mxu3 %v9677_v5 }
 0x28f   : > { %v4561_v11 = vrot.slane %v15226_v46, 1  ;;  %3993 = vst.msk [vmem:[#allocation2 + $0x1c] sm:$0xf] %vm307_vm5, %v3591_v36  ;;  %v4560_v52 = vor.u32 %v4559_v22, %v4556_v59  ;;  %v4740_v57 = vunpack.c.l.b16 %v4083_v55  ;;  %v15086_v8 = vrot.slane %v10976_v1, 1 }
 0x290   : > { %v3594_v29 = vshrl.u32 %v3497_v27, 16  ;;  %v3597_v63 = vshll.u32 %v3497_v27, 16  ;;  %v3375_v21 = vmax.f32 %v3334_v62, 0.0  ;;  %9052 = vmatmul.msk.bf16.gmra.mxu1 %vm797_vm2, %v2633_v58  ;;  %9172 = vmatmul.msk.bf16.gmra.mxu2 %vm797_vm2, %v3067_v10  ;;  %v4214_v54 = vsel %vm4194_vm14, %v4209_v47, %v10973_v18  ;;  %v11005_v58 = vpop.permute.xlu1 %403 }
 0x291   : > { %v10992_v4 = vor.u32 %v4562_v0, %v4561_v11  ;;  %v2856_v11 = vadd.f32 %v2764_v31, %v10394_v38  ;;  %15227 = vst [vmem:[#allocation37_spill] sm:$0xff] %v11005_v58  ;;  %v4743_v36 = vpack.c.b16 %v15084_v53, %v4740_v57  ;;  %v15085_v27 = vrot.slane %v10990_v16, 2 }
 0x292   : > { %v3596_v0 = vrot.slane %v3594_v29, 6  ;;  %v3599_v59 = vrot.slane %v3597_v63, 7  ;;  %v3416_v22 = vmin.f32 %v3375_v21, 6.0  ;;  %4364 = vrot.lane.b32.xlu1 %v4214_v54, %s9869_s14  ;;  %v3592_v62 = vrot.slane %v3590_v60, 4  ;;  %v11021_v60 = vpop.permute.xlu2 %408 }
 0x293   : > { %v11001_v46 = vsel %vm4552_vm15, %v4560_v52, %v10992_v4  ;;  %v3198_v10 = vpop.f32.mrf.mxu2  ;;  %v15228_v21 = vrot.slane %v10923_v42, 1  ;;  %15229 = vst [vmem:[#allocation38_spill] sm:$0xff] %v11021_v60  ;;  %v4746_v57 = vrot.slane %v4743_v36, 2 }
 0x294   : > { %v3600_v55 = vor.u32 %v3599_v59, %v3596_v0  ;;  %v3457_v47 = vmul.f32 %v3416_v22, %v11005_v58  ;;  %v3290_v5 = vadd.f32 %v3198_v10, %v2856_v11  ;;  %v15230_v0 = vrot.slane %v10930_v3, 2  ;;  %v9685_v22 = vld [vmem:[%s15068_s4 + $0x60] sm:$0xff] }
 0x295   : > { %v2766_v52 = vpop.f32.mrf.mxu1  ;;  %v2635_v54 = vsel %vm734_vm1, %v15228_v21, %v15086_v8  ;;  %v4799_v11 = vshrl.u32 %v4743_v36, 16  ;;  %v4802_v10 = vshll.u32 %v4743_v36, 16  ;;  %5628 = vmatpush.bf16.msra.mxu0 %v9685_v22 }
 0x296   : > { %v3601_v29 = vsel %vm10855_vm13, %v3592_v62, %v3600_v55  ;;  %v3498_v38 = vpack.c.bf16 %v3457_v47, %v3457_v47  ;;  %v3335_v31 = vadd.f32 %v10806_v17, %v3290_v5  ;;  %v11014_v63 = vld [vmem:[#allocation2 + $0x18] sm:$0xff]  ;;  %v3069_v59 = vsel %vm1341_vm4, %v15230_v0, %v15085_v27 }
 0x297   : > { %3994 = vst.msk [vmem:[#allocation2 + $0x20] sm:$0xf] %vm307_vm5, %v3601_v29  ;;  %v11033_v5 = vrot.slane %v11014_v63, 2  ;;  %v2857_v29 = vadd.f32 %v2766_v52, %v10401_v32  ;;  %v4412_v21 = vrot.slane %v11014_v63, 1  ;;  %v11038_v3 = vshll.u32 %v11014_v63, 16 }
 0x298   : > { %v3604_v42 = vshrl.u32 %v3498_v38, 16  ;;  %v3607_v62 = vshll.u32 %v3498_v38, 16  ;;  %v3376_v47 = vmax.f32 %v3335_v31, 0.0  ;;  %v11041_v0 = vshrl.u32 %v11014_v63, 16 }
 0x299   : > { %v4747_v38 = vsel %vm1341_vm4, %v4746_v57, %v11033_v5  ;;  %v3602_v31 = vrot.slane %v3600_v55, 4  ;;  %v15231_v32 = vrot.slane %v10936_v44, 2  ;;  %v4413_v22 = vsel %vm734_vm1, %v10940_v28, %v4412_v21 }
 0x29a   : > { %v3606_v53 = vrot.slane %v3604_v42, 6  ;;  %v3609_v27 = vrot.slane %v3607_v62, 7  ;;  %v3417_v36 = vmin.f32 %v3376_v47, 6.0  ;;  %4752 = vrot.lane.b32.xlu2 %v4747_v38, %s9868_s13  ;;  %v4806_v42 = vrot.slane %v11041_v0, 2  ;;  %4509 = vrot.lane.b32.xlu0 %v4413_v22, %s9870_s15 }
 0x29b   : > { %v3200_v8 = vpop.f32.mrf.mxu2  ;;  %v4658_v52 = vsel %vm1341_vm4, %v15231_v32, %v11033_v5  ;;  %v4807_v55 = vrot.slane %v11038_v3, 3  ;;  %v4801_v58 = vrot.slane %v4799_v11, 2  ;;  %v4804_v32 = vrot.slane %v4802_v10, 3 }
 0x29c   : > { %v3610_v62 = vor.u32 %v3609_v27, %v3606_v53  ;;  %v3458_v47 = vmul.f32 %v3417_v36, %v11021_v60  ;;  %v3291_v57 = vadd.f32 %v3200_v8, %v2857_v29  ;;  %4697 = vrot.lane.b32.xlu1 %v4658_v52, %s9869_s14  ;;  %v4565_v20 = vrot.slane %v11041_v0, 1 }
 0x29d   : > { %v2769_v38 = vpop.f32.mrf.mxu1  ;;  %v4566_v50 = vrot.slane %v11038_v3, 2  ;;  %v15089_v8 = vrot.slane %v11038_v3, 1  ;;  %v11066_v29 = vor.u32 %v4807_v55, %v4806_v42  ;;  %v4805_v42 = vor.u32 %v4804_v32, %v4801_v58  ;;  %v11092_v32 = vld [vmem:[%s9943_s18 + $0xa4] sm:$0xff] }
 0x29e   : > { %v3611_v28 = vsel %vm10855_vm13, %v3602_v31, %v3610_v62  ;;  %v3499_v53 = vpack.c.bf16 %v3458_v47, %v3458_v47  ;;  %v3336_v27 = vadd.f32 %v10806_v17, %v3291_v57  ;;  %v11072_v31 = vpop.permute.xlu2 %423  ;;  %v15233_v47 = vshrl.u32 %v10936_v44, 16 }
 0x29f   : > { %3995 = vst.msk [vmem:[#allocation2 + $0x24] sm:$0xf] %vm307_vm5, %v3611_v28  ;;  %v11068_v36 = vor.u32 %v4566_v50, %v4565_v20  ;;  %v2858_v28 = vadd.f32 %v2769_v38, %v10410_v43  ;;  %v4809_v58 = vsel %vm4797_vm0, %v4805_v42, %v11066_v29  ;;  %v15239_v63 = vrot.slane %v10976_v1, 1 }
 0x2a0   : > { %v3614_v11 = vshrl.u32 %v3499_v53, 16  ;;  %v3617_v10 = vshll.u32 %v3499_v53, 16  ;;  %v3377_v52 = vmax.f32 %v3336_v27, 0.0  ;;  %9053 = vmatmul.msk.bf16.gmra.mxu1 %vm797_vm2, %v2635_v54  ;;  %9173 = vmatmul.msk.bf16.gmra.mxu2 %vm797_vm2, %v3069_v59  ;;  %15232 = vst [vmem:[#allocation39_spill] sm:$0xff] %v11072_v31  ;;  %v4217_v57 = vor.u32 %v15233_v47, %v10973_v18  ;;  %v11083_v59 = vpop.permute.xlu0 %413 }
 0x2a1   : > { %v11080_v50 = vsel %vm4552_vm15, %v10992_v4, %v11068_v36  ;;  %15235 = vst [vmem:[#allocation41_spill] sm:$0xff] %v11083_v59  ;;  %v11095_v4 = vld [vmem:[%s9943_s18 + $0xac] sm:$0xff]  ;;  %v3612_v27 = vrot.slane %v3610_v62, 4 }
 0x2a2   : > { %15234 = vst [vmem:[#allocation40_spill] sm:$0xff] %v11080_v50  ;;  %v3616_v20 = vrot.slane %v3614_v11, 6  ;;  %v3619_v55 = vrot.slane %v3617_v10, 7  ;;  %v3418_v54 = vmin.f32 %v3377_v52, 6.0  ;;  %4452 = vrot.lane.b32.xlu2 %v4413_v22, %s9868_s13  ;;  %v4222_v18 = vsel %vm4194_vm14, %v4217_v57, %v15089_v8  ;;  %4896 = vrot.lane.b32.xlu0 %v4809_v58, %s9870_s15  ;;  %v11100_v10 = vpop.permute.xlu1 %418 }
 0x2a3   : > { %v3203_v53 = vpop.f32.mrf.mxu2  ;;  %15236 = vst [vmem:[#allocation42_spill] sm:$0xff] %v11100_v10 }
 0x2a4   : > { %v3620_v11 = vor.u32 %v3619_v55, %v3616_v20  ;;  %v3459_v43 = vmul.f32 %v3418_v54, %v11083_v59  ;;  %v3292_v38 = vadd.f32 %v3203_v53, %v2858_v28  ;;  %4366 = vrot.lane.b32.xlu1 %v4222_v18, %s9869_s14  ;;  %v15238_v59 = vrot.slane %v11092_v32, 1 }
 0x2a5   : > { %v2771_v22 = vpop.f32.mrf.mxu1 }
 0x2a6   : > { %v3621_v52 = vsel %vm10855_vm13, %v3612_v27, %v3620_v11  ;;  %v3500_v47 = vpack.c.bf16 %v3459_v43, %v3459_v43  ;;  %v3337_v57 = vadd.f32 %v10806_v17, %v3292_v38  ;;  %v11105_v42 = vld [vmem:[#allocation2 + $0x20] sm:$0xff]  ;;  %v2859_v18 = vadd.f32 %v2771_v22, %v10419_v33 }
 0x2a7   : > { %3996 = vst.msk [vmem:[#allocation2 + $0x28] sm:$0xf] %vm307_vm5, %v3621_v52  ;;  %v15090_v53 = vrot.slane %v11105_v42, 2  ;;  %v15092_v58 = vrot.slane %v11105_v42, 1  ;;  %v11114_v27 = vshll.u32 %v11105_v42, 16  ;;  %v11117_v43 = vshrl.u32 %v11105_v42, 16 }
 0x2a8   : > { %v3624_v55 = vshrl.u32 %v3500_v47, 16  ;;  %v3627_v54 = vshll.u32 %v3500_v47, 16  ;;  %v3378_v28 = vmax.f32 %v3337_v57, 0.0  ;;  %v11123_v57 = vpop.permute.xlu2 %438  ;;  %v3622_v20 = vrot.slane %v3620_v11, 4 }
 0x2a9   : > { %v4660_v47 = vsel %vm1341_vm4, %v11033_v5, %v15090_v53  ;;  %15237 = vst [vmem:[#allocation43_spill] sm:$0xff] %v11123_v57  ;;  %v4415_v22 = vsel %vm734_vm1, %v4412_v21, %v15092_v58  ;;  %v4569_v11 = vrot.slane %v11117_v43, 1  ;;  %v2637_v21 = vsel %vm734_vm1, %v15239_v63, %v15238_v59 }
 0x2aa   : > { %v3626_v38 = vrot.slane %v3624_v55, 6  ;;  %v3629_v52 = vrot.slane %v3627_v54, 7  ;;  %v3419_v8 = vmin.f32 %v3378_v28, 6.0  ;;  %4754 = vrot.lane.b32.xlu2 %v4660_v47, %s9868_s13  ;;  %v4810_v55 = vrot.slane %v11117_v43, 2  ;;  %4511 = vrot.lane.b32.xlu0 %v4415_v22, %s9870_s15  ;;  %v11157_v63 = vpop.permute.xlu1 %433 }
 0x2ab   : > { %v3205_v33 = vpop.f32.mrf.mxu2  ;;  %v4811_v54 = vrot.slane %v11114_v27, 3  ;;  %v15240_v58 = vrot.slane %v11095_v4, 2  ;;  %v15094_v1 = vrot.slane %v11114_v27, 1  ;;  %15242 = vst [vmem:[#allocation44_spill] sm:$0xff] %v11157_v63 }
 0x2ac   : > { %v3630_v28 = vor.u32 %v3629_v52, %v3626_v38  ;;  %v3460_v62 = vmul.f32 %v3419_v8, %v11100_v10  ;;  %v3293_v5 = vadd.f32 %v3205_v33, %v2859_v18  ;;  %4699 = vrot.lane.b32.xlu1 %v4660_v47, %s9869_s14  ;;  %v15241_v38 = vrot.slane %v10990_v16, 2 }
 0x2ad   : > { %v2774_v53 = vpop.f32.mrf.mxu1  ;;  %v4570_v18 = vrot.slane %v11114_v27, 2  ;;  %v11153_v10 = vor.u32 %v4811_v54, %v4810_v55 }
 0x2ae   : > { %v3071_v8 = vsel %vm1341_vm4, %v15241_v38, %v15240_v58  ;;  %v3631_v52 = vsel %vm10855_vm13, %v3622_v20, %v3630_v28  ;;  %v3501_v47 = vpack.c.bf16 %v3460_v62, %v3460_v62  ;;  %v3338_v33 = vadd.f32 %v10806_v17, %v3293_v5 }
 0x2af   : > { %3997 = vst.msk [vmem:[#allocation2 + $0x2c] sm:$0xf] %vm307_vm5, %v3631_v52  ;;  %v11155_v59 = vor.u32 %v4570_v18, %v4569_v11  ;;  %v15243_v62 = vrot.slane %v11038_v3, 1  ;;  %v2860_v18 = vadd.f32 %v2774_v53, %v10432_v56  ;;  %v4813_v3 = vsel %vm4797_vm0, %v11066_v29, %v11153_v10 }
 0x2b0   : > { %v3634_v16 = vshrl.u32 %v3501_v47, 16  ;;  %v3637_v58 = vshll.u32 %v3501_v47, 16  ;;  %v3379_v38 = vmax.f32 %v3338_v33, 0.0  ;;  %9054 = vmatmul.msk.bf16.gmra.mxu1 %vm797_vm2, %v2637_v21  ;;  %9174 = vmatmul.msk.bf16.gmra.mxu2 %vm797_vm2, %v3071_v8  ;;  %v3632_v8 = vrot.slane %v3630_v28, 4  ;;  %v11186_v53 = vpop.permute.xlu2 %453 }
 0x2b1   : > { %v4225_v20 = vor.u32 %v11041_v0, %v15243_v62  ;;  %v11167_v55 = vsel %vm4552_vm15, %v11068_v36, %v11155_v59  ;;  %v11178_v0 = vld [vmem:[%s9943_s18 + $0xac] sm:$0xff]  ;;  %v11181_v36 = vld [vmem:[%s9943_s18 + $0xb4] sm:$0xff]  ;;  %15245 = vst [vmem:[#allocation46_spill] sm:$0xff] %v11186_v53  ;;  %v15249_v28 = vrot.slane %v11105_v42, 1 }
 0x2b2   : > { %15244 = vst [vmem:[#allocation45_spill] sm:$0xff] %v11167_v55  ;;  %v3636_v54 = vrot.slane %v3634_v16, 6  ;;  %v3639_v5 = vrot.slane %v3637_v58, 7  ;;  %v3420_v11 = vmin.f32 %v3379_v38, 6.0  ;;  %4454 = vrot.lane.b32.xlu2 %v4415_v22, %s9868_s13  ;;  %4898 = vrot.lane.b32.xlu0 %v4813_v3, %s9870_s15 }
 0x2b3   : > { %v3208_v52 = vpop.f32.mrf.mxu2  ;;  %v4230_v21 = vsel %vm4194_vm14, %v4225_v20, %v15094_v1  ;;  %v9676_v20 = vld [vmem:[%s15068_s4 + $0x18] sm:$0xff] }
 0x2b4   : > { %v3640_v47 = vor.u32 %v3639_v5, %v3636_v54  ;;  %v3461_v33 = vmul.f32 %v3420_v11, %v11072_v31  ;;  %v3294_v56 = vadd.f32 %v3208_v52, %v2860_v18  ;;  %4368 = vrot.lane.b32.xlu1 %v4230_v21, %s9869_s14  ;;  %v11199_v54 = vpop.permute.xlu0 %428  ;;  %5516 = vmatpush.bf16.msra.mxu3 %v9676_v20 }
 0x2b5   : > { %v2776_v22 = vpop.f32.mrf.mxu1  ;;  %15246 = vst [vmem:[#allocation47_spill] sm:$0xff] %v11199_v54 }
 0x2b6   : > { %v3641_v16 = vsel %vm10855_vm13, %v3632_v8, %v3640_v47  ;;  %v3502_v29 = vpack.c.bf16 %v3461_v33, %v3461_v33  ;;  %v3339_v58 = vadd.f32 %v10806_v17, %v3294_v56  ;;  %v11191_v38 = vld [vmem:[#allocation2 + $0x28] sm:$0xff]  ;;  %v2861_v21 = vadd.f32 %v2776_v22, %v10438_v13  ;;  %v11210_v56 = vpop.permute.xlu1 %448 }
 0x2b7   : > { %3998 = vst.msk [vmem:[#allocation2 + $0x30] sm:$0xf] %vm307_vm5, %v3641_v16  ;;  %v15097_v52 = vrot.slane %v11191_v38, 2  ;;  %v15098_v3 = vrot.slane %v11191_v38, 1  ;;  %v11205_v8 = vshll.u32 %v11191_v38, 16  ;;  %v11208_v33 = vshrl.u32 %v11191_v38, 16 }
 0x2b8   : > { %v3644_v5 = vshrl.u32 %v3502_v29, 16  ;;  %v3647_v11 = vshll.u32 %v3502_v29, 16  ;;  %v3380_v18 = vmax.f32 %v3339_v58, 0.0  ;;  %15247 = vst [vmem:[#allocation48_spill] sm:$0xff] %v11210_v56  ;;  %v15248_v29 = vrot.slane %v11105_v42, 2 }
 0x2b9   : > { %v3642_v22 = vrot.slane %v3640_v47, 4  ;;  %v4417_v20 = vsel %vm734_vm1, %v15249_v28, %v15098_v3  ;;  %v4573_v47 = vrot.slane %v11208_v33, 1  ;;  %v15251_v42 = vrot.slane %v11092_v32, 1 }
 0x2ba   : > { %v3646_v16 = vrot.slane %v3644_v5, 6  ;;  %v3649_v1 = vrot.slane %v3647_v11, 7  ;;  %v3421_v62 = vmin.f32 %v3380_v18, 6.0  ;;  %v4662_v13 = vsel %vm1341_vm4, %v15248_v29, %v15097_v52  ;;  %4513 = vrot.lane.b32.xlu0 %v4417_v20, %s9870_s15 }
 0x2bb   : > { %v3210_v58 = vpop.f32.mrf.mxu2  ;;  %4756 = vrot.lane.b32.xlu2 %v4662_v13, %s9868_s13  ;;  %v4814_v5 = vrot.slane %v11208_v33, 2  ;;  %v4815_v11 = vrot.slane %v11205_v8, 3  ;;  %v15250_v52 = vrot.slane %v11178_v0, 1  ;;  %v15252_v3 = vrot.slane %v11181_v36, 2 }
 0x2bc   : > { %v3650_v18 = vor.u32 %v3649_v1, %v3646_v16  ;;  %v3462_v31 = vmul.f32 %v3421_v62, %v11199_v54  ;;  %v3295_v60 = vadd.f32 %v3210_v58, %v2861_v21  ;;  %4701 = vrot.lane.b32.xlu1 %v4662_v13, %s9869_s14  ;;  %v15253_v1 = vrot.slane %v11095_v4, 2  ;;  %v11243_v54 = vpop.permute.xlu2 %468  ;;  %v9684_v4 = vld [vmem:[%s15068_s4 + $0x58] sm:$0xff] }
 0x2bd   : > { %v2779_v29 = vpop.f32.mrf.mxu1  ;;  %v2639_v28 = vsel %vm734_vm1, %v15251_v42, %v15250_v52  ;;  %v4574_v21 = vrot.slane %v11205_v8, 2  ;;  %v15100_v32 = vrot.slane %v11205_v8, 1  ;;  %v11247_v52 = vor.u32 %v4815_v11, %v4814_v5  ;;  %5629 = vmatpush.bf16.msra.mxu0 %v9684_v4  ;;  %v11264_v11 = vpop.permute.xlu0 %443 }
 0x2be   : > { %v3073_v62 = vsel %vm1341_vm4, %v15253_v1, %v15252_v3  ;;  %v3651_v16 = vsel %vm10855_vm13, %v3642_v22, %v3650_v18  ;;  %v3503_v13 = vpack.c.bf16 %v3462_v31, %v3462_v31  ;;  %v3340_v58 = vadd.f32 %v10806_v17, %v3295_v60  ;;  %15256 = vst [vmem:[#allocation50_spill] sm:$0xff] %v11264_v11 }
 0x2bf   : > { %3999 = vst.msk [vmem:[#allocation2 + $0x34] sm:$0xf] %vm307_vm5, %v3651_v16  ;;  %v11252_v3 = vor.u32 %v4574_v21, %v4573_v47  ;;  %v15254_v60 = vrot.slane %v11114_v27, 1  ;;  %v3652_v4 = vrot.slane %v3650_v18, 4 }
 0x2c0   : > { %v3654_v42 = vshrl.u32 %v3503_v13, 16  ;;  %v3657_v1 = vshll.u32 %v3503_v13, 16  ;;  %v3381_v31 = vmax.f32 %v3340_v58, 0.0  ;;  %9055 = vmatmul.msk.bf16.gmra.mxu1 %vm797_vm2, %v2639_v28  ;;  %9175 = vmatmul.msk.bf16.gmra.mxu2 %vm797_vm2, %v3073_v62  ;;  %v2862_v13 = vadd.f32 %v2779_v29, %v10450_v35  ;;  %v11278_v62 = vld [vmem:[%s9943_s18 + $0xbc] sm:$0xff]  ;;  %v11280_v58 = vpop.permute.xlu1 %463 }
 0x2c1   : > { %v4233_v22 = vor.u32 %v11117_v43, %v15254_v60  ;;  %v11262_v5 = vsel %vm4552_vm15, %v11155_v59, %v11252_v3  ;;  %v4817_v43 = vsel %vm4797_vm0, %v11153_v10, %v11247_v52  ;;  %v11275_v59 = vld [vmem:[%s9943_s18 + $0xb4] sm:$0xff]  ;;  %v15263_v55 = vrot.slane %v11278_v62, 2 }
 0x2c2   : > { %15255 = vst [vmem:[#allocation49_spill] sm:$0xff] %v11262_v5  ;;  %v3656_v47 = vrot.slane %v3654_v42, 6  ;;  %v3659_v21 = vrot.slane %v3657_v1, 7  ;;  %v3422_v16 = vmin.f32 %v3381_v31, 6.0  ;;  %4900 = vrot.lane.b32.xlu0 %v4817_v43, %s9870_s15 }
 0x2c3   : > { %v3213_v28 = vpop.f32.mrf.mxu2  ;;  %4456 = vrot.lane.b32.xlu2 %v4417_v20, %s9868_s13  ;;  %v4238_v27 = vsel %vm4194_vm14, %v4233_v22, %v15100_v32 }
 0x2c4   : > { %v3660_v42 = vor.u32 %v3659_v21, %v3656_v47  ;;  %v3463_v35 = vmul.f32 %v3422_v16, %v11157_v63  ;;  %v3296_v29 = vadd.f32 %v3213_v28, %v2862_v13  ;;  %4370 = vrot.lane.b32.xlu1 %v4238_v27, %s9869_s14  ;;  %v11294_v28 = vpop.permute.xlu2 %483 }
 0x2c5   : > { %v2781_v20 = vpop.f32.mrf.mxu1  ;;  %15257 = vst [vmem:[#allocation51_spill] sm:$0xff] %v11294_v28 }
 0x2c6   : > { %v3661_v1 = vsel %vm10855_vm13, %v3652_v4, %v3660_v42  ;;  %v3504_v10 = vpack.c.bf16 %v3463_v35, %v3463_v35  ;;  %v3341_v31 = vadd.f32 %v10806_v17, %v3296_v29  ;;  %v11288_v60 = vld [vmem:[#allocation2 + $0x30] sm:$0xff]  ;;  %v2863_v27 = vadd.f32 %v2781_v20, %v10458_v6 }
 0x2c7   : > { %4000 = vst.msk [vmem:[#allocation2 + $0x38] sm:$0xf] %vm307_vm5, %v3661_v1  ;;  %v15102_v13 = vrot.slane %v11288_v60, 2  ;;  %v15103_v43 = vrot.slane %v11288_v60, 1  ;;  %v11299_v4 = vshll.u32 %v11288_v60, 16  ;;  %v11302_v35 = vshrl.u32 %v11288_v60, 16 }
 0x2c8   : > { %v3664_v47 = vshrl.u32 %v3504_v10, 16  ;;  %v3667_v21 = vshll.u32 %v3504_v10, 16  ;;  %v3382_v16 = vmax.f32 %v3341_v31, 0.0  ;;  %v15258_v10 = vrot.slane %v11191_v38, 2 }
 0x2c9   : > { %v3662_v22 = vrot.slane %v3660_v42, 4  ;;  %v15259_v6 = vrot.slane %v11191_v38, 1  ;;  %v4577_v42 = vrot.slane %v11302_v35, 1  ;;  %v15261_v38 = vrot.slane %v11275_v59, 1 }
 0x2ca   : > { %v3666_v29 = vrot.slane %v3664_v47, 6  ;;  %v3669_v1 = vrot.slane %v3667_v21, 7  ;;  %v3423_v32 = vmin.f32 %v3382_v16, 6.0  ;;  %v4664_v31 = vsel %vm1341_vm4, %v15258_v10, %v15102_v13  ;;  %v11317_v16 = vpop.permute.xlu0 %458 }
 0x2cb   : > { %v3215_v18 = vpop.f32.mrf.mxu2  ;;  %4758 = vrot.lane.b32.xlu2 %v4664_v31, %s9868_s13  ;;  %v4419_v20 = vsel %vm734_vm1, %v15259_v6, %v15103_v43  ;;  %v4818_v47 = vrot.slane %v11302_v35, 2  ;;  %v4819_v21 = vrot.slane %v11299_v4, 3  ;;  %15260 = vst [vmem:[#allocation52_spill] sm:$0xff] %v11317_v16  ;;  %v15262_v6 = vrot.slane %v11178_v0, 1 }
 0x2cc   : > { %v3670_v63 = vor.u32 %v3669_v1, %v3666_v29  ;;  %v3464_v5 = vmul.f32 %v3423_v32, %v11123_v57  ;;  %v3297_v10 = vadd.f32 %v3215_v18, %v2863_v27  ;;  %4703 = vrot.lane.b32.xlu1 %v4664_v31, %s9869_s14  ;;  %4515 = vrot.lane.b32.xlu0 %v4419_v20, %s9870_s15  ;;  %v15264_v29 = vrot.slane %v11181_v36, 2  ;;  %v11334_v27 = vpop.permute.xlu1 %478 }
 0x2cd   : > { %v2784_v13 = vpop.f32.mrf.mxu1  ;;  %v2641_v43 = vsel %vm734_vm1, %v15262_v6, %v15261_v38  ;;  %v4578_v18 = vrot.slane %v11299_v4, 2  ;;  %15265 = vst [vmem:[#allocation53_spill] sm:$0xff] %v11334_v27  ;;  %v15105_v0 = vrot.slane %v11299_v4, 1  ;;  %v11341_v38 = vor.u32 %v4819_v21, %v4818_v47 }
 0x2ce   : > { %v3075_v32 = vsel %vm1341_vm4, %v15264_v29, %v15263_v55  ;;  %v3671_v1 = vsel %vm10855_vm13, %v3662_v22, %v3670_v63  ;;  %v3505_v31 = vpack.c.bf16 %v3464_v5, %v3464_v5  ;;  %v3342_v57 = vadd.f32 %v10806_v17, %v3297_v10  ;;  %v9689_v55 = vld [vmem:[%s15068_s4 + $0x80] sm:$0xff] }
 0x2cf   : > { %4001 = vst.msk [vmem:[#allocation2 + $0x3c] sm:$0xf] %vm307_vm5, %v3671_v1  ;;  %v11346_v36 = vor.u32 %v4578_v18, %v4577_v42  ;;  %v15266_v17 = vrot.slane %v11205_v8, 1  ;;  %5745 = vmatpush.bf16.msrb.mxu1 %v9689_v55  ;;  %v11359_v42 = vpop.permute.xlu2 %498  ;;  %v9675_v1 = vld [vmem:[%s15068_s4 + $0x10] sm:$0xff] }
 0x2d0   : > { %v3674_v6 = vshrl.u32 %v3505_v31, 16  ;;  %v3677_v29 = vshll.u32 %v3505_v31, 16  ;;  %v3383_v50 = vmax.f32 %v3342_v57, 0.0  ;;  %9056 = vmatmul.msk.bf16.gmra.mxu1 %vm797_vm2, %v2641_v43  ;;  %9176 = vmatmul.msk.bf16.gmra.mxu2 %vm797_vm2, %v3075_v32  ;;  %v2864_v57 = vadd.f32 %v2784_v13, %v10470_v51  ;;  %15268 = vst [vmem:[#allocation55_spill] sm:$0xff] %v11359_v42  ;;  %v11372_v32 = vld [vmem:[%s9943_s18 + $0xc4] sm:$0xff] }
 0x2d1   : > { %v4241_v5 = vor.u32 %v11208_v33, %v15266_v17  ;;  %v11356_v22 = vsel %vm4552_vm15, %v11252_v3, %v11346_v36  ;;  %v4821_v33 = vsel %vm4797_vm0, %v11247_v52, %v11341_v38  ;;  %v11369_v3 = vld [vmem:[%s9943_s18 + $0xbc] sm:$0xff]  ;;  %5517 = vmatpush.bf16.msra.mxu3 %v9675_v1 }
 0x2d2   : > { %15267 = vst [vmem:[#allocation54_spill] sm:$0xff] %v11356_v22  ;;  %v3676_v47 = vrot.slane %v3674_v6, 6  ;;  %v3679_v21 = vrot.slane %v3677_v29, 7  ;;  %v3424_v10 = vmin.f32 %v3383_v50, 6.0  ;;  %v3672_v50 = vrot.slane %v3670_v63, 4  ;;  %v11380_v31 = vpop.permute.xlu0 %473 }
 0x2d3   : > { %v3218_v43 = vpop.f32.mrf.mxu2  ;;  %4458 = vrot.lane.b32.xlu2 %v4419_v20, %s9868_s13  ;;  %v4246_v8 = vsel %vm4194_vm14, %v4241_v5, %v15105_v0  ;;  %15269 = vst [vmem:[#allocation56_spill] sm:$0xff] %v11380_v31  ;;  %v11387_v63 = vld [vmem:[%s15067_s3] ss:$0 sm:$0xff]  ;;  %v15272_v0 = vrot.slane %v11288_v60, 1 }
 0x2d4   : > { %v3680_v18 = vor.u32 %v3679_v21, %v3676_v47  ;;  %v3465_v51 = vmul.f32 %v3424_v10, %v11264_v11  ;;  %v3298_v13 = vadd.f32 %v3218_v43, %v2864_v57  ;;  %4372 = vrot.lane.b32.xlu1 %v4246_v8, %s9869_s14  ;;  %4902 = vrot.lane.b32.xlu0 %v4821_v33, %s9870_s15  ;;  %v11395_v47 = vpop.permute.xlu1 %493 }
 0x2d5   : > { %v2786_v20 = vpop.f32.mrf.mxu1  ;;  %15270 = vst [vmem:[#allocation57_spill] sm:$0xff] %v11395_v47 }
 0x2d6   : > { %v3681_v52 = vsel %vm10855_vm13, %v3672_v50, %v3680_v18  ;;  %v3506_v55 = vpack.c.bf16 %v3465_v51, %v3465_v51  ;;  %v3343_v6 = vadd.f32 %v11387_v63, %v3298_v13  ;;  %v11390_v29 = vld [vmem:[#allocation2 + $0x38] sm:$0xff]  ;;  %v2865_v8 = vadd.f32 %v2786_v20, %v10483_v61  ;;  %v9674_v13 = vld [vmem:[%s15068_s4 + $0x8] sm:$0xff] }
 0x2d7   : > { %4002 = vst.msk [vmem:[#allocation2 + $0x40] sm:$0xf] %vm307_vm5, %v3681_v52  ;;  %v15107_v43 = vrot.slane %v11390_v29, 2  ;;  %v15108_v33 = vrot.slane %v11390_v29, 1  ;;  %v11401_v50 = vshll.u32 %v11390_v29, 16  ;;  %v11404_v51 = vshrl.u32 %v11390_v29, 16  ;;  %5518 = vmatpush.bf16.msra.mxu3 %v9674_v13 }
 0x2d8   : > { %v3684_v21 = vshrl.u32 %v3506_v55, 16  ;;  %v3687_v10 = vshll.u32 %v3506_v55, 16  ;;  %v3384_v57 = vmax.f32 %v3343_v6, 0.0  ;;  %v15271_v6 = vrot.slane %v11288_v60, 2 }
 0x2d9   : > { %v4421_v5 = vsel %vm734_vm1, %v15272_v0, %v15108_v33  ;;  %v4822_v17 = vrot.slane %v11404_v51, 2  ;;  %v15274_v60 = vrot.slane %v11369_v3, 1  ;;  %v15275_v0 = vrot.slane %v11275_v59, 1 }
 0x2da   : > { %v3686_v1 = vrot.slane %v3684_v21, 6  ;;  %v3689_v52 = vrot.slane %v3687_v10, 7  ;;  %v3425_v55 = vmin.f32 %v3384_v57, 6.0  ;;  %v4666_v61 = vsel %vm1341_vm4, %v15271_v6, %v15107_v43  ;;  %v11425_v6 = vpop.permute.xlu2 %513 }
 0x2db   : > { %v3220_v20 = vpop.f32.mrf.mxu2  ;;  %4760 = vrot.lane.b32.xlu2 %v4666_v61, %s9868_s13  ;;  %v4823_v21 = vrot.slane %v11401_v50, 3  ;;  %v3682_v10 = vrot.slane %v3680_v18, 4  ;;  %15273 = vst [vmem:[#allocation58_spill] sm:$0xff] %v11425_v6  ;;  %v2643_v33 = vsel %vm734_vm1, %v15275_v0, %v15274_v60  ;;  %v15276_v13 = vrot.slane %v11372_v32, 2  ;;  %v11448_v60 = vpop.permute.xlu0 %488 }
 0x2dc   : > { %v3690_v57 = vor.u32 %v3689_v52, %v3686_v1  ;;  %v3466_v11 = vmul.f32 %v3425_v55, %v11210_v56  ;;  %v3299_v22 = vadd.f32 %v3220_v20, %v2865_v8  ;;  %4705 = vrot.lane.b32.xlu1 %v4666_v61, %s9869_s14  ;;  %4517 = vrot.lane.b32.xlu0 %v4421_v5, %s9870_s15  ;;  %v15277_v18 = vrot.slane %v11278_v62, 2  ;;  %v9673_v8 = vld [vmem:[%s15068_s4] sm:$0xff] }
 0x2dd   : > { %v2789_v43 = vpop.f32.mrf.mxu1  ;;  %v11445_v20 = vor.u32 %v4823_v21, %v4822_v17  ;;  %5519 = vmatpush.bf16.msra.mxu3 %v9673_v8  ;;  %v4581_v62 = vrot.slane %v11404_v51, 1  ;;  %15278 = vst [vmem:[#allocation59_spill] sm:$0xff] %v11448_v60  ;;  %v4582_v17 = vrot.slane %v11401_v50, 2  ;;  %v11456_v21 = vpop.permute.xlu1 %508 }
 0x2de   : > { %v3077_v1 = vsel %vm1341_vm4, %v15277_v18, %v15276_v13  ;;  %v3691_v52 = vsel %vm10855_vm13, %v3682_v10, %v3690_v57  ;;  %v3507_v55 = vpack.c.bf16 %v3466_v11, %v3466_v11  ;;  %v3344_v61 = vadd.f32 %v11387_v63, %v3299_v22  ;;  %15280 = vst [vmem:[#allocation60_spill] sm:$0xff] %v11456_v21 }
 0x2df   : > { %4003 = vst.msk [vmem:[#allocation2 + $0x44] sm:$0xf] %vm307_vm5, %v3691_v52  ;;  %v15279_v11 = vrot.slane %v11299_v4, 1 }
 0x2e0   : > { %v3694_v0 = vshrl.u32 %v3507_v55, 16  ;;  %v3697_v13 = vshll.u32 %v3507_v55, 16  ;;  %v3385_v18 = vmax.f32 %v3344_v61, 0.0  ;;  %9057 = vmatmul.msk.bf16.gmra.mxu1 %vm797_vm2, %v2643_v33  ;;  %9177 = vmatmul.msk.bf16.gmra.mxu2 %vm797_vm2, %v3077_v1  ;;  %v2866_v55 = vadd.f32 %v2789_v43, %v10506_v30  ;;  %v11469_v1 = vld [vmem:[%s9943_s18 + $0xc4] sm:$0xff] }
 0x2e1   : > { %v4249_v22 = vor.u32 %v11302_v35, %v15279_v11  ;;  %v2040_v61 = vadd.f32 %v10456_v34, %v10512_v45  ;;  %v15281_v33 = vrot.slane %v11401_v50, 1  ;;  %v4825_v35 = vsel %vm4797_vm0, %v11341_v38, %v11445_v20 }
 0x2e2   : > { %v3696_v10 = vrot.slane %v3694_v0, 6  ;;  %v3699_v8 = vrot.slane %v3697_v13, 7  ;;  %v3426_v52 = vmin.f32 %v3385_v18, 6.0  ;;  %v11472_v0 = vld [vmem:[%s9943_s18 + $0xcc] sm:$0xff]  ;;  %v11474_v13 = vor.u32 %v4582_v17, %v4581_v62 }
 0x2e3   : > { %v3223_v59 = vpop.f32.mrf.mxu2  ;;  %4460 = vrot.lane.b32.xlu2 %v4421_v5, %s9868_s13  ;;  %v4254_v4 = vsel %vm4194_vm14, %v4249_v22, %v15281_v33  ;;  %v3692_v30 = vrot.slane %v3690_v57, 4  ;;  %v11479_v5 = vpop.permute.xlu2 %4448 }
 0x2e4   : > { %v3700_v43 = vor.u32 %v3699_v8, %v3696_v10  ;;  %v3467_v34 = vmul.f32 %v3426_v52, %v11186_v53  ;;  %v3300_v45 = vadd.f32 %v3223_v59, %v2866_v55  ;;  %4374 = vrot.lane.b32.xlu1 %v4254_v4, %s9869_s14  ;;  %4904 = vrot.lane.b32.xlu0 %v4825_v35, %s9870_s15 }
 0x2e5   : > { %v2791_v18 = vpop.f32.mrf.mxu1  ;;  %v11484_v38 = vsel %vm4552_vm15, %v11346_v36, %v11474_v13  ;;  %v2433_v59 = vadd.f32 %v10504_v9, %v2040_v61  ;;  %v9683_v36 = vld [vmem:[%s15068_s4 + $0x50] sm:$0xff]  ;;  %v11522_v17 = vpop.permute.xlu1 %523 }
 0x2e6   : > { %15282 = vst [vmem:[#allocation61_spill] sm:$0xff] %v11484_v38  ;;  %v3701_v62 = vsel %vm10855_vm13, %v3692_v30, %v3700_v43  ;;  %v3508_v57 = vpack.c.bf16 %v3467_v34, %v3467_v34  ;;  %v3345_v11 = vadd.f32 %v11387_v63, %v3300_v45  ;;  %v11489_v22 = vld [vmem:[#allocation2 + $0x40] sm:$0xff]  ;;  %5630 = vmatpush.bf16.msra.mxu0 %v9683_v36  ;;  %v11506_v30 = vpop.permute.xlu0 %503  ;;  %v15285_v36 = vrot.slane %v11390_v29, 1 }
 0x2e7   : > { %4004 = vst.msk [vmem:[#allocation2 + $0x48] sm:$0xf] %vm307_vm5, %v3701_v62  ;;  %v15110_v33 = vrot.slane %v11489_v22, 2  ;;  %v2867_v4 = vadd.f32 %v2791_v18, %v2433_v59  ;;  %v15112_v35 = vrot.slane %v11489_v22, 1  ;;  %v11501_v9 = vshll.u32 %v11489_v22, 16 }
 0x2e8   : > { %v3704_v8 = vshrl.u32 %v3508_v57, 16  ;;  %v3707_v52 = vshll.u32 %v3508_v57, 16  ;;  %v3386_v55 = vmax.f32 %v3345_v11, 0.0  ;;  %v11504_v61 = vshrl.u32 %v11489_v22, 16  ;;  %15283 = vst [vmem:[#allocation62_spill] sm:$0xff] %v11506_v30 }
 0x2e9   : > { %v15284_v18 = vrot.slane %v11390_v29, 2  ;;  %v3702_v11 = vrot.slane %v3700_v43, 4  ;;  %v4423_v10 = vsel %vm734_vm1, %v15285_v36, %v15112_v35  ;;  %15286 = vst [vmem:[#allocation63_spill] sm:$0xff] %v11522_v17  ;;  %v15287_v35 = vrot.slane %v11469_v1, 1 }
 0x2ea   : > { %v3706_v34 = vrot.slane %v3704_v8, 6  ;;  %v3709_v45 = vrot.slane %v3707_v52, 7  ;;  %v3427_v62 = vmin.f32 %v3386_v55, 6.0  ;;  %v4826_v8 = vrot.slane %v11504_v61, 2  ;;  %v2495_v55 = vld [vmem:[%s9943_s18 + $0xcc] sm:$0x7] }
 0x2eb   : > { %v4668_v57 = vsel %vm1341_vm4, %v15284_v18, %v15110_v33  ;;  %v3225_v59 = vpop.f32.mrf.mxu2  ;;  %v4827_v52 = vrot.slane %v11501_v9, 3  ;;  %v2929_v33 = vld [vmem:[%s9943_s18 + $0xd4] sm:$0xf]  ;;  %v4585_v29 = vrot.slane %v11504_v61, 1  ;;  %v11529_v56 = vpop.permute.xlu2 %4450  ;;  %v15288_v38 = vrot.slane %v11369_v3, 1 }
 0x2ec   : > { %4762 = vrot.lane.b32.xlu2 %v4668_v57, %s9868_s13  ;;  %v3710_v53 = vor.u32 %v3709_v45, %v3706_v34  ;;  %v3468_v18 = vmul.f32 %v3427_v62, %v11317_v16  ;;  %v3301_v43 = vadd.f32 %v3225_v59, %v2867_v4  ;;  %4707 = vrot.lane.b32.xlu1 %v4668_v57, %s9869_s14  ;;  %v15289_v34 = vrot.slane %v11472_v0, 2 }
 0x2ed   : > { %4519 = vrot.lane.b32.xlu0 %v4423_v10, %s9870_s15  ;;  %v2794_v36 = vpop.f32.mrf.mxu1  ;;  %v2645_v17 = vsel %vm734_vm1, %v15288_v38, %v15287_v35  ;;  %v15290_v4 = vrot.slane %v11372_v32, 2  ;;  %v4586_v62 = vrot.slane %v11501_v9, 2  ;;  %v2585_v6 = vunpack.c.l.b16 %v2495_v55 }
 0x2ee   : > { %v3711_v57 = vsel %vm10855_vm13, %v3702_v11, %v3710_v53  ;;  %v3509_v59 = vpack.c.bf16 %v3468_v18, %v3468_v18  ;;  %v3346_v16 = vadd.f32 %v11387_v63, %v3301_v43  ;;  %v4261_v3 = vrot.slane %v11501_v9, 1  ;;  %v9682_v43 = vld [vmem:[%s15068_s4 + $0x48] sm:$0xff] }
 0x2ef   : > { %v3079_v45 = vsel %vm1341_vm4, %v15290_v4, %v15289_v34  ;;  %4005 = vst.msk [vmem:[#allocation2 + $0x4c] sm:$0xf] %vm307_vm5, %v3711_v57  ;;  %v11547_v38 = vor.u32 %v4827_v52, %v4826_v8  ;;  %v3019_v35 = vunpack.c.l.b16 %v2929_v33  ;;  %v11549_v21 = vor.u32 %v4586_v62, %v4585_v29  ;;  %v4363_v62 = vpop.permute.xlu1 %4362  ;;  %5631 = vmatpush.bf16.msra.mxu0 %v9682_v43 }
 0x2f0   : > { %v3714_v32 = vshrl.u32 %v3509_v59, 16  ;;  %v3717_v34 = vshll.u32 %v3509_v59, 16  ;;  %v3387_v4 = vmax.f32 %v3346_v16, 0.0  ;;  %9058 = vmatmul.msk.bf16.gmra.mxu1 %vm797_vm2, %v2645_v17  ;;  %9178 = vmatmul.msk.bf16.gmra.mxu2 %vm797_vm2, %v3079_v45  ;;  %v2042_v11 = vadd.f32 %v10480_v2, %v10545_v41 }
 0x2f1   : > { %v15291_v55 = vrot.slane %v11401_v50, 1  ;;  %v11561_v33 = vsel %vm4552_vm15, %v11474_v13, %v11549_v21  ;;  %v2868_v17 = vadd.f32 %v2794_v36, %v10539_v40  ;;  %v4829_v50 = vsel %vm4797_vm0, %v11445_v20, %v11547_v38  ;;  %v11578_v40 = vpop.permute.xlu0 %518 }
 0x2f2   : > { %v3716_v8 = vrot.slane %v3714_v32, 6  ;;  %v3719_v52 = vrot.slane %v3717_v34, 7  ;;  %v3428_v16 = vmin.f32 %v3387_v4, 6.0  ;;  %v11576_v13 = vpack.c.b16 %v3019_v35, %v3019_v35  ;;  %15292 = vst [vmem:[#allocation64_spill] sm:$0xff] %v11578_v40  ;;  %v9681_v34 = vld [vmem:[%s15068_s4 + $0x40] sm:$0xff] }
 0x2f3   : > { %v4257_v18 = vor.u32 %v11404_v51, %v15291_v55  ;;  %v3228_v2 = vpop.f32.mrf.mxu2  ;;  %v11574_v51 = vpack.c.b16 %v2585_v6, %v2585_v6  ;;  %v3712_v29 = vrot.slane %v3710_v53, 4  ;;  %v2435_v6 = vadd.f32 %v10535_v37, %v2042_v11  ;;  %v9813_v4 = vld [vmem:[#allocation2] sm:$0xff]   ;;  %5632 = vmatpush.bf16.msra.mxu0 %v9681_v34 }
 0x2f4   : > { %4462 = vrot.lane.b32.xlu2 %v4423_v10, %s9868_s13  ;;  %v3720_v36 = vor.u32 %v3719_v52, %v3716_v8  ;;  %v3469_v45 = vmul.f32 %v3428_v16, %v11280_v58  ;;  %v3302_v10 = vadd.f32 %v3228_v2, %v2868_v17  ;;  %v11583_v59 = vpop.permute.xlu2 %4752  ;;  %v4984_v55 = vsel %vm4982_vm6, %v9813_v4, %v4363_v62 }
 0x2f5   : > { %v4262_v41 = vsel %vm4194_vm14, %v4257_v18, %v4261_v3  ;;  %4906 = vrot.lane.b32.xlu0 %v4829_v50, %s9870_s15  ;;  %v2796_v57 = vpop.f32.mrf.mxu1  ;;  %v2646_v37 = vrot.slane %v11574_v51, 1  ;;  %v15118_v11 = vrot.slane %v11576_v13, 2  ;;  %v15293_v62 = vrot.slane %v11489_v22, 2 }
 0x2f6   : > { %4376 = vrot.lane.b32.xlu1 %v4262_v41, %s9869_s14  ;;  %v3721_v20 = vsel %vm10855_vm13, %v3712_v29, %v3720_v36  ;;  %v3510_v35 = vpack.c.bf16 %v3469_v45, %v3469_v45  ;;  %v3347_v53 = vadd.f32 %v11387_v63, %v3302_v10  ;;  %v11589_v32 = vld [vmem:[#allocation2 + $0x48] sm:$0xff]  ;;  %v2869_v17 = vadd.f32 %v2796_v57, %v2435_v6 }
 0x2f7   : > { %4006 = vst.msk [vmem:[#allocation2 + $0x50] sm:$0xf] %vm307_vm5, %v3721_v20  ;;  %v4669_v16 = vrot.slane %v11589_v32, 2  ;;  %v15117_v43 = vrot.slane %v11589_v32, 1  ;;  %v11601_v2 = vshll.u32 %v11589_v32, 16  ;;  %v11604_v41 = vshrl.u32 %v11589_v32, 16 }
 0x2f8   : > { %v3724_v18 = vshrl.u32 %v3510_v35, 16  ;;  %v3727_v8 = vshll.u32 %v3510_v35, 16  ;;  %v3388_v52 = vmax.f32 %v3347_v53, 0.0  ;;  %v15294_v57 = vrot.slane %v11489_v22, 1 }
 0x2f9   : > { %v4670_v10 = vsel %vm1341_vm4, %v15293_v62, %v4669_v16  ;;  %v4830_v35 = vrot.slane %v11604_v41, 2  ;;  %v4831_v53 = vrot.slane %v11601_v2, 3  ;;  %v3722_v34 = vrot.slane %v3720_v36, 4 }
 0x2fa   : > { %v3726_v50 = vrot.slane %v3724_v18, 6  ;;  %v3729_v29 = vrot.slane %v3727_v8, 7  ;;  %v3429_v45 = vmin.f32 %v3388_v52, 6.0  ;;  %v4425_v6 = vsel %vm734_vm1, %v15294_v57, %v15117_v43 }
 0x2fb   : > { %v3230_v20 = vpop.f32.mrf.mxu2  ;;  %v5028_v22 = vsel %vm5026_vm7, %v4984_v55, %v11479_v5  ;;  %v15295_v43 = vrot.slane %v11469_v1, 1 }
 0x2fc   : > { %4764 = vrot.lane.b32.xlu2 %v4670_v10, %s9868_s13  ;;  %v3730_v4 = vor.u32 %v3729_v29, %v3726_v50  ;;  %v3470_v18 = vmul.f32 %v3429_v45, %v11243_v54  ;;  %v3303_v8 = vadd.f32 %v3230_v20, %v2869_v17  ;;  %v11621_v52 = vpop.permute.xlu1 %4695  ;;  %v15296_v17 = vrot.slane %v11472_v0, 2  ;;  %v11639_v55 = vpop.permute.xlu2 %4452 }
 0x2fd   : > { %4521 = vrot.lane.b32.xlu0 %v4425_v6, %s9870_s15  ;;  %v4508_v62 = vpop.permute.xlu0 %4507  ;;  %v2799_v57 = vpop.f32.mrf.mxu1  ;;  %v2647_v36 = vsel %vm734_vm1, %v15295_v43, %v2646_v37  ;;  %v4269_v43 = vrot.slane %v11601_v2, 1  ;;  %v11645_v20 = vor.u32 %v4831_v53, %v4830_v35 }
 0x2fe   : > { %4709 = vrot.lane.b32.xlu1 %v4670_v10, %s9869_s14  ;;  %v3081_v50 = vsel %vm1341_vm4, %v15296_v17, %v15118_v11  ;;  %v3731_v29 = vsel %vm10855_vm13, %v3722_v34, %v3730_v4  ;;  %v3511_v45 = vpack.c.bf16 %v3470_v18, %v3470_v18  ;;  %v3348_v5 = vadd.f32 %v11387_v63, %v3303_v8 }
 0x2ff   : > { %v4589_v10 = vrot.slane %v11604_v41, 1  ;;  %4007 = vst.msk [vmem:[#allocation2 + $0x54] sm:$0xf] %vm307_vm5, %v3731_v29  ;;  %v5071_v1 = vsel %vm5069_vm8, %v5028_v22, %v4508_v62  ;;  %v4590_v34 = vrot.slane %v11601_v2, 2  ;;  %v2870_v18 = vadd.f32 %v2799_v57, %v10571_v15 }
 0x300   : > { %v3734_v0 = vshrl.u32 %v3511_v45, 16  ;;  %v3737_v17 = vshll.u32 %v3511_v45, 16  ;;  %v3389_v11 = vmax.f32 %v3348_v5, 0.0  ;;  %5520 = vmatmul.bf16.vlgmr.msra.gmra.mxu3 %v5071_v1  ;;  %9059 = vmatmul.msk.bf16.gmra.mxu1 %vm797_vm2, %v2647_v36  ;;  %v4265_v8 = vor.u32 %v11504_v61, %v4261_v3 }
 0x301   : > { %9179 = vmatmul.msk.bf16.gmra.mxu2 %vm797_vm2, %v3081_v50  ;;  %v11654_v53 = vor.u32 %v4590_v34, %v4589_v10  ;;  %v2044_v29 = vadd.f32 %v10520_v7, %v10580_v23  ;;  %v4833_v9 = vsel %vm4797_vm0, %v11547_v38, %v11645_v20  ;;  %v3732_v61 = vrot.slane %v3730_v4, 4 }
 0x302   : > { %v3736_v22 = vrot.slane %v3734_v0, 6  ;;  %v3739_v62 = vrot.slane %v3737_v17, 7  ;;  %v3430_v35 = vmin.f32 %v3389_v11, 6.0  ;;  %v4270_v15 = vsel %vm4194_vm14, %v4265_v8, %v4269_v43 }
 0x303   : > { %v3233_v45 = vpop.f32.mrf.mxu2  ;;  %v11671_v23 = vsel %vm4552_vm15, %v11549_v21, %v11654_v53  ;;  %v2437_v10 = vadd.f32 %v10566_v12, %v2044_v29 }
 0x304   : > { %4464 = vrot.lane.b32.xlu2 %v4425_v6, %s9868_s13  ;;  %v3740_v3 = vor.u32 %v3739_v62, %v3736_v22  ;;  %v3471_v11 = vmul.f32 %v3430_v35, %v11380_v31  ;;  %v3304_v57 = vadd.f32 %v3233_v45, %v2870_v18  ;;  %v4365_v36 = vpop.permute.xlu1 %4364  ;;  %v11676_v50 = vpop.permute.xlu2 %4754 }
 0x305   : > { %4908 = vrot.lane.b32.xlu0 %v4833_v9, %s9870_s15  ;;  %v2801_v7 = vpop.f32.mrf.mxu1 }
 0x306   : > { %4378 = vrot.lane.b32.xlu1 %v4270_v15, %s9869_s14  ;;  %v3741_v6 = vsel %vm10855_vm13, %v3732_v61, %v3740_v3  ;;  %v3512_v38 = vpack.c.bf16 %v3471_v11, %v3471_v11  ;;  %v3349_v4 = vadd.f32 %v11387_v63, %v3304_v57  ;;  %v11678_v5 = vld [vmem:[#allocation2 + $0x50] sm:$0xff]  ;;  %v2871_v34 = vadd.f32 %v2801_v7, %v2437_v10  ;;  %v9814_v15 = vld [vmem:[#allocation2 + $0x8] sm:$0xff]  }
 0x307   : > { %4008 = vst.msk [vmem:[#allocation2 + $0x58] sm:$0xf] %vm307_vm5, %v3741_v6  ;;  %v4671_v21 = vrot.slane %v11678_v5, 2  ;;  %v4426_v18 = vrot.slane %v11678_v5, 1  ;;  %v11685_v8 = vshll.u32 %v11678_v5, 16  ;;  %v11688_v22 = vshrl.u32 %v11678_v5, 16 }
 0x308   : > { %v3744_v1 = vshrl.u32 %v3512_v38, 16  ;;  %v3747_v0 = vshll.u32 %v3512_v38, 16  ;;  %v3390_v17 = vmax.f32 %v3349_v4, 0.0  ;;  %v3742_v29 = vrot.slane %v3740_v3, 4 }
 0x309   : > { %v4672_v12 = vsel %vm1341_vm4, %v4669_v16, %v4671_v21  ;;  %v4986_v9 = vsel %vm4982_vm6, %v9814_v15, %v4365_v36  ;;  %v15297_v11 = vrot.slane %v11589_v32, 1  ;;  %v4593_v16 = vrot.slane %v11688_v22, 1 }
 0x30a   : > { %v3746_v62 = vrot.slane %v3744_v1, 6  ;;  %v3749_v35 = vrot.slane %v3747_v0, 7  ;;  %v3431_v45 = vmin.f32 %v3390_v17, 6.0  ;;  %v4594_v36 = vrot.slane %v11685_v8, 2 }
 0x30b   : > { %v3235_v61 = vpop.f32.mrf.mxu2  ;;  %v4427_v57 = vsel %vm734_vm1, %v15297_v11, %v4426_v18  ;;  %v2046_v11 = vadd.f32 %v10552_v14, %v10620_v19 }
 0x30c   : > { %4766 = vrot.lane.b32.xlu2 %v4672_v12, %s9868_s13  ;;  %v3750_v7 = vor.u32 %v3749_v35, %v3746_v62  ;;  %v3472_v6 = vmul.f32 %v3431_v45, %v11334_v27  ;;  %v3305_v38 = vadd.f32 %v3235_v61, %v2871_v34  ;;  %v11710_v1 = vpop.permute.xlu2 %4454  ;;  %v4510_v17 = vpop.permute.xlu0 %4509  ;;  %v5030_v34 = vsel %vm5026_vm7, %v4986_v9, %v11529_v56  ;;  %v4087_v61 = vld [vmem:[#allocation2 + $0x10] sm:$0x8] }
 0x30d   : > { %4523 = vrot.lane.b32.xlu0 %v4427_v57, %s9870_s15  ;;  %v2804_v3 = vpop.f32.mrf.mxu1  ;;  %v11717_v62 = vor.u32 %v4594_v36, %v4593_v16  ;;  %v4939_v19 = vunpack.c.l.b16 %v4087_v61  ;;  %v4835_v61 = vrot.slane %v11685_v8, 3 }
 0x30e   : > { %4466 = vrot.lane.b32.xlu1 %v4427_v57, %s9868_s13  ;;  %v3751_v4 = vsel %vm10855_vm13, %v3742_v29, %v3750_v7  ;;  %v3513_v10 = vpack.c.bf16 %v3472_v6, %v3472_v6  ;;  %v3350_v32 = vadd.f32 %v11387_v63, %v3305_v38  ;;  %v11712_v0 = vpop.permute.xlu1 %4697  ;;  %v5074_v29 = vsel %vm5069_vm8, %v5030_v34, %v4510_v17 }
 0x30f   : > { %4009 = vst.msk [vmem:[#allocation2 + $0x5c] sm:$0xf] %vm307_vm5, %v3751_v4  ;;  %v15298_v57 = vrot.slane %v11576_v13, 2  ;;  %v11731_v56 = vsel %vm4552_vm15, %v11654_v53, %v11717_v62  ;;  %v5135_v38 = vsel %vm4982_vm6, %v11001_v46, %v11621_v52  ;;  %v3752_v13 = vrot.slane %v3750_v7, 4 }
 0x310   : > { %v3754_v35 = vshrl.u32 %v3513_v10, 16  ;;  %v3757_v45 = vshll.u32 %v3513_v10, 16  ;;  %v3391_v15 = vmax.f32 %v3350_v32, 0.0  ;;  %9060 = vmatmul.msk.bf16.gmra.mxu1 %vm797_vm2, %v2646_v37  ;;  %5525 = vmatmul.bf16.gmra.mxu3 %v5074_v29  ;;  %v2872_v37 = vadd.f32 %v2804_v3, %v10611_v26  ;;  %v11742_v26 = vld [vmem:[#allocation2 + $0x18] sm:$0xff] }
 0x311   : > { %9180 = vmatmul.msk.bf16.gmra.mxu2 %vm797_vm2, %v15298_v57  ;;  %v2439_v53 = vadd.f32 %v10607_v49, %v2046_v11  ;;  %v15299_v32 = vunpack.c.h.b16 %v10936_v44  ;;  %v4942_v3 = vrot.slane %v11742_v26, 3  ;;  %v4273_v49 = vor.u32 %v11604_v41, %v4269_v43 }
 0x312   : > { %v3756_v9 = vrot.slane %v3754_v35, 6  ;;  %v3759_v51 = vrot.slane %v3757_v45, 7  ;;  %v3432_v6 = vmin.f32 %v3391_v15, 6.0  ;;  %v5197_v44 = vsel %vm5026_vm7, %v5135_v38, %v11583_v59 }
 0x313   : > { %v3238_v14 = vpop.f32.mrf.mxu2  ;;  %v4940_v17 = vpack.c.b16 %v15299_v32, %v4939_v19  ;;  %v4277_v15 = vrot.slane %v11685_v8, 1  ;;  %v4834_v29 = vrot.slane %v11688_v22, 2  ;;  %v9816_v19 = vld [vmem:[#allocation2 + $0x10] sm:$0xff]   ;;  %vm316_vm2 = vcmask 257027  }
 0x314   : > { %v3760_v16 = vor.u32 %v3759_v51, %v3756_v9  ;;  %v3473_v36 = vmul.f32 %v3432_v6, %v11294_v28  ;;  %v3306_v4 = vadd.f32 %v3238_v14, %v2872_v37  ;;  %v4897_v45 = vpop.permute.xlu0 %4896  ;;  %vm12801_vm10 = vmand %vm316_vm2, %vm317_vm9 }
 0x315   : > { %4711 = vrot.lane.b32.xlu0 %v4672_v12, %s9869_s14  ;;  %v2806_v10 = vpop.f32.mrf.mxu1  ;;  %v11748_v34 = vpop.permute.xlu2 %4756  ;;  %v5239_v51 = vsel %vm5069_vm8, %v5197_v44, %v4897_v45  ;;  %v4941_v5 = vrot.slane %v4940_v17, 3 }
 0x316   : > { %v3761_v46 = vsel %vm10855_vm13, %v3752_v13, %v3760_v16  ;;  %v3514_v52 = vpack.c.bf16 %v3473_v36, %v3473_v36  ;;  %v3351_v7 = vadd.f32 %v11387_v63, %v3306_v4  ;;  %v4367_v35 = vpop.permute.xlu1 %4366  ;;  %v11750_v12 = vld [vmem:[#allocation2 + $0x58] sm:$0xff]  ;;  %v2873_v2 = vadd.f32 %v2806_v10, %v2439_v53  ;;  %5633 = vmatmul.bf16.vlgmr.msra.gmra.mxu0 %v5239_v51 }
 0x317   : > { %4010 = vst.msk [vmem:[#allocation2 + $0x60] sm:$0xf] %vm307_vm5, %v3761_v46  ;;  %v4428_v41 = vrot.slane %v11750_v12, 1  ;;  %v4673_v43 = vrot.slane %v11750_v12, 2  ;;  %v11765_v59 = vshll.u32 %v11750_v12, 16  ;;  %v11768_v14 = vshrl.u32 %v11750_v12, 16 }
 0x318   : > { %v3764_v11 = vshrl.u32 %v3514_v52, 16  ;;  %v3767_v57 = vshll.u32 %v3514_v52, 16  ;;  %v3392_v9 = vmax.f32 %v3351_v7, 0.0  ;;  %v4988_v13 = vsel %vm4982_vm6, %v9816_v19, %v4367_v35 }
 0x319   : > { %v11776_v4 = vsel %vm734_vm1, %v4426_v18, %v4428_v41  ;;  %v4674_v53 = vsel %vm1341_vm4, %v4671_v21, %v4673_v43  ;;  %v4278_v10 = vsel %vm4194_vm14, %v4273_v49, %v4277_v15  ;;  %v3762_v32 = vrot.slane %v3760_v16, 4 }
 0x31a   : > { %v3766_v6 = vrot.slane %v3764_v11, 6  ;;  %v3769_v37 = vrot.slane %v3767_v57, 7  ;;  %v3433_v38 = vmin.f32 %v3392_v9, 6.0  ;;  %4525 = vrot.lane.b32.xlu2 %v11776_v4, %s9870_s15  ;;  %4768 = vrot.lane.b32.xlu1 %v4674_v53, %s9868_s13  ;;  %v4597_v21 = vrot.slane %v11768_v14, 1 }
 0x31b   : > { %v3240_v36 = vpop.f32.mrf.mxu2  ;;  %v4598_v35 = vrot.slane %v11765_v59, 2  ;;  %v5032_v17 = vsel %vm5026_vm7, %v4988_v13, %v11639_v55  ;;  %v4943_v9 = vsel %vm1779_vm3, %v4941_v5, %v4942_v3  ;;  %v11806_v51 = vor.u32 %v4835_v61, %v4834_v29 }
 0x31c   : > { %v3770_v46 = vor.u32 %v3769_v37, %v3766_v6  ;;  %v3474_v52 = vmul.f32 %v3433_v38, %v11448_v60  ;;  %v3307_v7 = vadd.f32 %v3240_v36, %v2873_v2  ;;  %v4512_v57 = vpop.permute.xlu0 %4511  ;;  %v2048_v36 = vadd.f32 %v10585_v39, %v10655_v48 }
 0x31d   : > { %4380 = vrot.lane.b32.xlu0 %v4278_v10, %s9869_s14  ;;  %v2809_v18 = vpop.f32.mrf.mxu1  ;;  %v11796_v45 = vpop.permute.xlu2 %4456  ;;  %v11808_v2 = vor.u32 %v4598_v35, %v4597_v21  ;;  %v5077_v19 = vsel %vm5069_vm8, %v5032_v17, %v4512_v57  ;;  %v4837_v39 = vsel %vm4797_vm0, %v11645_v20, %v11806_v51  ;;  %v4281_v17 = vor.u32 %v11688_v22, %v4277_v15 }
 0x31e   : > { %v3771_v16 = vsel %vm10855_vm13, %v3762_v32, %v3770_v46  ;;  %v3515_v49 = vpack.c.bf16 %v3474_v52, %v3474_v52  ;;  %v3352_v44 = vadd.f32 %v11387_v63, %v3307_v7  ;;  %v11798_v11 = vpop.permute.xlu1 %4699  ;;  %v2874_v10 = vadd.f32 %v2809_v18, %v10646_v24  ;;  %v15300_v32 = vld [vmem:[#allocation40_spill] sm:$0xff]  ;;  %v15301_v24 = vld [vmem:[#allocation15_spill] sm:$0xff] }
 0x31f   : > { %4011 = vst.msk [vmem:[#allocation2 + $0x64] sm:$0xf] %vm307_vm5, %v3771_v16  ;;  %v11817_v55 = vsel %vm4552_vm15, %v11717_v62, %v11808_v2  ;;  %v5138_v52 = vsel %vm4982_vm6, %v15300_v32, %v11712_v0  ;;  %v3772_v48 = vrot.slane %v3770_v46, 4  ;;  %v2441_v18 = vadd.f32 %v15301_v24, %v2048_v36 }
 0x320   : > { %v3774_v6 = vshrl.u32 %v3515_v49, 16  ;;  %v3777_v37 = vshll.u32 %v3515_v49, 16  ;;  %v3393_v38 = vmax.f32 %v3352_v44, 0.0  ;;  %9325 = vmatmul.msk.bf16.vlgmr.msrb.gmra.mxu1 %vm4982_vm6, %v4943_v9  ;;  %5530 = vmatmul.bf16.gmra.mxu3 %v5077_v19  ;;  %v4285_v9 = vrot.slane %v11765_v59, 1 }
 0x322   : > { %v3776_v29 = vrot.slane %v3774_v6, 6  ;;  %v3779_v61 = vrot.slane %v3777_v37, 7  ;;  %v3434_v13 = vmin.f32 %v3393_v38, 6.0  ;;  %4713 = vrot.lane.b32.xlu2 %v4674_v53, %s9869_s14  ;;  %v5199_v53 = vsel %vm5026_vm7, %v5138_v52, %v11676_v50  ;;  %v11844_v6 = vld [vmem:[#allocation2 + $0x20] sm:$0xff] }
 0x323   : > { %v3243_v7 = vpop.f32.mrf.mxu2  ;;  %v4944_v37 = vrot.slane %v11844_v6, 3  ;;  %v4839_v50 = vrot.slane %v11765_v59, 3 }
 0x324   : > { %v3780_v5 = vor.u32 %v3779_v61, %v3776_v29  ;;  %v3475_v21 = vmul.f32 %v3434_v13, %v11395_v47  ;;  %v3308_v62 = vadd.f32 %v3243_v7, %v2874_v10  ;;  %v4899_v57 = vpop.permute.xlu0 %4898 }
 0x325   : > { %4910 = vrot.lane.b32.xlu0 %v4837_v39, %s9870_s15  ;;  %v2811_v35 = vpop.f32.mrf.mxu1  ;;  %v11833_v44 = vpop.permute.xlu2 %4758  ;;  %v5242_v29 = vsel %vm5069_vm8, %v5199_v53, %v4899_v57  ;;  %v4286_v39 = vsel %vm4194_vm14, %v4281_v17, %v4285_v9 }
 0x326   : > { %v3781_v0 = vsel %vm10855_vm13, %v3772_v48, %v3780_v5  ;;  %v3516_v16 = vpack.c.bf16 %v3475_v21, %v3475_v21  ;;  %v3353_v49 = vadd.f32 %v11387_v63, %v3308_v62  ;;  %v4369_v20 = vpop.permute.xlu1 %4368  ;;  %v11835_v46 = vld [vmem:[#allocation2 + $0x60] sm:$0xff]  ;;  %v2875_v61 = vadd.f32 %v2811_v35, %v2441_v18  ;;  %5638 = vmatmul.bf16.gmra.mxu0 %v5242_v29 }
 0x327   : > { %4012 = vst.msk [vmem:[#allocation2 + $0x68] sm:$0xf] %vm307_vm5, %v3781_v0  ;;  %v4430_v13 = vrot.slane %v11835_v46, 1  ;;  %v11851_v8 = vshll.u32 %v11835_v46, 16  ;;  %v11854_v32 = vshrl.u32 %v11835_v46, 16  ;;  %v4990_v52 = vsel %vm4982_vm6, %v11742_v26, %v4369_v20 }
 0x328   : > { %v3784_v38 = vshrl.u32 %v3516_v16, 16  ;;  %v3787_v19 = vshll.u32 %v3516_v16, 16  ;;  %v3394_v36 = vmax.f32 %v3353_v49, 0.0  ;;  %v4838_v21 = vrot.slane %v11768_v14, 2 }
 0x329   : > { %v11866_v48 = vsel %vm734_vm1, %v4428_v41, %v4430_v13  ;;  %v3782_v62 = vrot.slane %v3780_v5, 4  ;;  %v4601_v16 = vrot.slane %v11854_v32, 1  ;;  %v4602_v41 = vrot.slane %v11851_v8, 2 }
 0x32a   : > { %v3786_v22 = vrot.slane %v3784_v38, 6  ;;  %v3789_v15 = vrot.slane %v3787_v19, 7  ;;  %v3435_v10 = vmin.f32 %v3394_v36, 6.0  ;;  %4382 = vrot.lane.b32.xlu2 %v4286_v39, %s9869_s14  ;;  %4527 = vrot.lane.b32.xlu1 %v11866_v48, %s9870_s15  ;;  %v5034_v38 = vsel %vm5026_vm7, %v4990_v52, %v11710_v1  ;;  %v15302_v52 = vld [vmem:[#allocation18_spill] sm:$0xff]  ;;  %v358_v39 = vld [vmem:[%s15065_s1 + $0x108] sm:$0xff] }
 0x32b   : > { %v3245_v7 = vpop.f32.mrf.mxu2  ;;  %v11892_v19 = vor.u32 %v4839_v50, %v4838_v21  ;;  %v4675_v36 = vrot.slane %v11835_v46, 2  ;;  %v11895_v29 = vor.u32 %v4602_v41, %v4601_v16  ;;  %v15303_v21 = vld [vmem:[#allocation19_spill] sm:$0xff] }
 0x32c   : > { %v3790_v35 = vor.u32 %v3789_v15, %v3786_v22  ;;  %v3476_v24 = vmul.f32 %v3435_v10, %v11359_v42  ;;  %v3309_v18 = vadd.f32 %v3245_v7, %v2875_v61  ;;  %v4514_v17 = vpop.permute.xlu0 %4513 }
 0x32d   : > { %4468 = vrot.lane.b32.xlu0 %v11776_v4, %s9868_s13  ;;  %v2814_v0 = vpop.f32.mrf.mxu1  ;;  %v11880_v57 = vpop.permute.xlu2 %4458  ;;  %v4945_v4 = vsel %vm1779_vm3, %v4942_v3, %v4944_v37  ;;  %v5080_v10 = vsel %vm5069_vm8, %v5034_v38, %v4514_v17  ;;  %v11902_v26 = vsel %vm4552_vm15, %v11808_v2, %v11895_v29  ;;  %v4841_v2 = vsel %vm4797_vm0, %v11806_v51, %v11892_v19 }
 0x32e   : > { %v3791_v5 = vsel %vm10855_vm13, %v3782_v62, %v3790_v35  ;;  %v3517_v49 = vpack.c.bf16 %v3476_v24, %v3476_v24  ;;  %v3354_v20 = vadd.f32 %v11387_v63, %v3309_v18  ;;  %v11882_v53 = vpop.permute.xlu1 %4701  ;;  %v2876_v7 = vadd.f32 %v2814_v0, %v15302_v52  ;;  %v15304_v62 = vld [vmem:[#allocation14_spill] sm:$0xff]  ;;  %v15305_v18 = vld [vmem:[#allocation45_spill] sm:$0xff] }
 0x32f   : > { %4013 = vst.msk [vmem:[#allocation2 + $0x6c] sm:$0xf] %vm307_vm5, %v3791_v5  ;;  %v2050_v24 = vadd.f32 %v15304_v62, %v15303_v21  ;;  %v5141_v16 = vsel %vm4982_vm6, %v15305_v18, %v11798_v11  ;;  %v4676_v0 = vsel %vm1341_vm4, %v4673_v43, %v4675_v36  ;;  %v3792_v5 = vrot.slane %v3790_v35, 4  ;;  %v357_v62 = vld [vmem:[%s15065_s1 + $0x100] sm:$0xff]  ;;  %v11943_v18 = vld [vmem:[#allocation2 + $0x28] sm:$0xff] }
 0x330   : > { %v3794_v61 = vshrl.u32 %v3517_v49, 16  ;;  %v3797_v22 = vshll.u32 %v3517_v49, 16  ;;  %v3395_v15 = vmax.f32 %v3354_v20, 0.0  ;;  %9326 = vmatmul.msk.bf16.gmra.mxu1 %vm4982_vm6, %v4945_v4  ;;  %5535 = vmatmul.bf16.gmra.mxu3 %v5080_v10 }
 0x332   : > { %v3796_v1 = vrot.slane %v3794_v61, 6  ;;  %v3799_v3 = vrot.slane %v3797_v22, 7  ;;  %v3436_v50 = vmin.f32 %v3395_v15, 6.0  ;;  %4912 = vrot.lane.b32.xlu2 %v4841_v2, %s9870_s15  ;;  %4715 = vrot.lane.b32.xlu1 %v4676_v0, %s9869_s14  ;;  %v15306_v22 = vld [vmem:[#allocation17_spill] sm:$0xff] }
 0x333   : > { %v3248_v41 = vpop.f32.mrf.mxu2  ;;  %v2443_v15 = vadd.f32 %v15306_v22, %v2050_v24  ;;  %v4289_v24 = vor.u32 %v11768_v14, %v4285_v9  ;;  %v4842_v14 = vrot.slane %v11854_v32, 2  ;;  %v4843_v9 = vrot.slane %v11851_v8, 3 }
 0x334   : > { %v3800_v49 = vor.u32 %v3799_v3, %v3796_v1  ;;  %v3477_v20 = vmul.f32 %v3436_v50, %v11506_v30  ;;  %v3310_v4 = vadd.f32 %v3248_v41, %v2876_v7  ;;  %v4901_v10 = vpop.permute.xlu0 %4900  ;;  %v5201_v1 = vsel %vm5026_vm7, %v5141_v16, %v11748_v34  ;;  %v15329_v30 = vld [vmem:[#allocation29_spill] sm:$0xff] }
 0x335   : > { %533 = vperm.xlu0 %9805, %v358_v39   ;;  %v2816_v11 = vpop.f32.mrf.mxu1  ;;  %v11927_v61 = vpop.permute.xlu2 %4760  ;;  %v4293_v3 = vrot.slane %v11851_v8, 1  ;;  %v5245_v39 = vsel %vm5069_vm8, %v5201_v1, %v4901_v10  ;;  %v4946_v34 = vrot.slane %v11943_v18, 3 }
 0x336   : > { %v3801_v51 = vsel %vm10855_vm13, %v3792_v5, %v3800_v49  ;;  %v3518_v17 = vpack.c.bf16 %v3477_v20, %v3477_v20  ;;  %v3355_v38 = vadd.f32 %v11387_v63, %v3310_v4  ;;  %v4371_v43 = vpop.permute.xlu1 %4370  ;;  %v11929_v35 = vld [vmem:[#allocation2 + $0x68] sm:$0xff]  ;;  %v2877_v21 = vadd.f32 %v2816_v11, %v2443_v15  ;;  %5643 = vmatmul.bf16.gmra.mxu0 %v5245_v39 }
 0x337   : > { %4014 = vst.msk [vmem:[#allocation2 + $0x70] sm:$0xf] %vm307_vm5, %v3801_v51  ;;  %v11947_v16 = vshll.u32 %v11929_v35, 16  ;;  %v11950_v20 = vshrl.u32 %v11929_v35, 16  ;;  %v4992_v4 = vsel %vm4982_vm6, %v11844_v6, %v4371_v43  ;;  %v4294_v59 = vsel %vm4194_vm14, %v4289_v24, %v4293_v3 }
 0x338   : > { %v3804_v50 = vshrl.u32 %v3518_v17, 16  ;;  %v3807_v52 = vshll.u32 %v3518_v17, 16  ;;  %v3396_v7 = vmax.f32 %v3355_v38, 0.0  ;;  %v3802_v51 = vrot.slane %v3800_v49, 4  ;;  %v15307_v38 = vld [vmem:[#allocation60_spill] sm:$0xff] }
 0x339   : > { %v4605_v10 = vrot.slane %v11950_v20, 1  ;;  %v4606_v1 = vrot.slane %v11947_v16, 2  ;;  %v11979_v24 = vor.u32 %v4843_v9, %v4842_v14  ;;  %v15308_v14 = vld [vmem:[#allocation22_spill] sm:$0xff] }
 0x33a   : > { %v3806_v41 = vrot.slane %v3804_v50, 6  ;;  %v3809_v2 = vrot.slane %v3807_v52, 7  ;;  %v3437_v5 = vmin.f32 %v3396_v7, 6.0  ;;  %528 = vperm.xlu2 %9807, %v357_v62   ;;  %4384 = vrot.lane.b32.xlu1 %v4294_v59, %s9869_s14  ;;  %v5036_v62 = vsel %vm5026_vm7, %v4992_v4, %v11796_v45 }
 0x33b   : > { %v3250_v11 = vpop.f32.mrf.mxu2 }
 0x33c   : > { %v3810_v17 = vor.u32 %v3809_v2, %v3806_v41  ;;  %v3478_v22 = vmul.f32 %v3437_v5, %v15307_v38  ;;  %v3311_v15 = vadd.f32 %v3250_v11, %v2877_v21  ;;  %v11982_v41 = vor.u32 %v4606_v1, %v4605_v10  ;;  %v15311_v10 = vld [vmem:[#allocation49_spill] sm:$0xff] }
 0x33d   : > { %4770 = vrot.lane.b32.xlu0 %v4676_v0, %s9868_s13  ;;  %v2819_v43 = vpop.f32.mrf.mxu1  ;;  %v11967_v7 = vpop.permute.xlu2 %4460  ;;  %v4947_v0 = vsel %vm1779_vm3, %v4944_v37, %v4946_v34  ;;  %v5144_v1 = vsel %vm4982_vm6, %v15311_v10, %v11882_v53 }
 0x33e   : > { %v3811_v50 = vsel %vm10855_vm13, %v3802_v51, %v3810_v17  ;;  %v3519_v52 = vpack.c.bf16 %v3478_v22, %v3478_v22  ;;  %v3356_v49 = vadd.f32 %v11387_v63, %v3311_v15  ;;  %v11969_v39 = vpop.permute.xlu1 %4703  ;;  %v4516_v21 = vpop.permute.xlu0 %4515  ;;  %v4432_v63 = vrot.slane %v11929_v35, 1  ;;  %v15309_v51 = vld [vmem:[#allocation23_spill] sm:$0xff]  ;;  %v15310_v22 = vld [vmem:[#allocation16_spill] sm:$0xff] }
 0x33f   : > { %4015 = vst.msk [vmem:[#allocation2 + $0x74] sm:$0xf] %vm307_vm5, %v3811_v50  ;;  %v5083_v59 = vsel %vm5069_vm8, %v5036_v62, %v4516_v21  ;;  %v11989_v6 = vsel %vm4552_vm15, %v11895_v29, %v11982_v41  ;;  %v2878_v9 = vadd.f32 %v2819_v43, %v15308_v14  ;;  %v2052_v15 = vadd.f32 %v15310_v22, %v15309_v51 }
 0x340   : > { %v3814_v2 = vshrl.u32 %v3519_v52, 16  ;;  %v3817_v5 = vshll.u32 %v3519_v52, 16  ;;  %v3397_v11 = vmax.f32 %v3356_v49, 0.0  ;;  %9327 = vmatmul.msk.bf16.gmra.mxu1 %vm4982_vm6, %v4947_v0  ;;  %5540 = vmatmul.bf16.gmra.mxu3 %v5083_v59  ;;  %v4845_v52 = vsel %vm4797_vm0, %v11892_v19, %v11979_v24  ;;  %v15312_v0 = vld [vmem:[#allocation58_spill] sm:$0xff]  ;;  %v15313_v59 = vld [vmem:[#allocation21_spill] sm:$0xff] }
 0x341   : > { %v12005_v29 = vsel %vm734_vm1, %v4430_v13, %v4432_v63  ;;  %v3812_v43 = vrot.slane %v3810_v17, 4  ;;  %v12018_v13 = vld [vmem:[%s15067_s3] ss:$0 sm:$0xff]  ;;  %v15119_v14 = vrot.slane %v11929_v35, 2 }
 0x342   : > { %v3816_v45 = vrot.slane %v3814_v2, 6  ;;  %v3819_v37 = vrot.slane %v3817_v5, 7  ;;  %v3438_v4 = vmin.f32 %v3397_v11, 6.0  ;;  %4470 = vrot.lane.b32.xlu2 %v11866_v48, %s9868_s13  ;;  %4914 = vrot.lane.b32.xlu1 %v4845_v52, %s9870_s15 }
 0x343   : > { %v3253_v50 = vpop.f32.mrf.mxu2 }
 0x344   : > { %v3820_v49 = vor.u32 %v3819_v37, %v3816_v45  ;;  %v3479_v21 = vmul.f32 %v3438_v4, %v15312_v0  ;;  %v3312_v62 = vadd.f32 %v3253_v50, %v2878_v9  ;;  %v2445_v45 = vadd.f32 %v15313_v59, %v2052_v15  ;;  %v360_v50 = vld [vmem:[%s15065_s1 + $0x118] sm:$0xff]  ;;  %v359_v15 = vld [vmem:[%s15065_s1 + $0x110] sm:$0xff] }
 0x345   : > { %4529 = vrot.lane.b32.xlu0 %v12005_v29, %s9870_s15  ;;  %v2821_v53 = vpop.f32.mrf.mxu1  ;;  %v5203_v4 = vsel %vm5026_vm7, %v5144_v1, %v11833_v44 }
 0x346   : > { %v3821_v19 = vsel %vm10855_vm13, %v3812_v43, %v3820_v49  ;;  %v3520_v2 = vpack.c.bf16 %v3479_v21, %v3479_v21  ;;  %v3357_v17 = vadd.f32 %v12018_v13, %v3312_v62  ;;  %v12021_v5 = vpop.permute.xlu2 %4762  ;;  %v4373_v48 = vpop.permute.xlu1 %4372  ;;  %v12023_v11 = vld [vmem:[#allocation2 + $0x70] sm:$0xff]  ;;  %v2879_v21 = vadd.f32 %v2821_v53, %v2445_v45 }
 0x347   : > { %4016 = vst.msk [vmem:[#allocation2 + $0x78] sm:$0xf] %vm307_vm5, %v3821_v19  ;;  %v4903_v37 = vpop.permute.xlu0 %4902  ;;  %v12038_v52 = vshrl.u32 %v12023_v11, 16  ;;  %v4994_v62 = vsel %vm4982_vm6, %v11943_v18, %v4373_v48  ;;  %v4297_v18 = vor.u32 %v11854_v32, %v4293_v3  ;;  %v4846_v32 = vrot.slane %v11950_v20, 2 }
 0x348   : > { %v3824_v9 = vshrl.u32 %v3520_v2, 16  ;;  %v3827_v51 = vshll.u32 %v3520_v2, 16  ;;  %v3398_v22 = vmax.f32 %v3357_v17, 0.0  ;;  %v5248_v10 = vsel %vm5069_vm8, %v5203_v4, %v4903_v37  ;;  %v12047_v17 = vld [vmem:[#allocation2 + $0x30] sm:$0xff] }
 0x349   : > { %5648 = vmatmul.bf16.gmra.mxu0 %v5248_v10  ;;  %v4678_v2 = vsel %vm1341_vm4, %v4675_v36, %v15119_v14  ;;  %v15120_v59 = vrot.slane %v12047_v17, 3  ;;  %v12051_v37 = vshll.u32 %v12023_v11, 16  ;;  %v3822_v4 = vrot.slane %v3820_v49, 4 }
 0x34a   : > { %v3826_v44 = vrot.slane %v3824_v9, 6  ;;  %v3829_v1 = vrot.slane %v3827_v51, 7  ;;  %v3439_v43 = vmin.f32 %v3398_v22, 6.0  ;;  %543 = vperm.xlu2 %9807, %v360_v50   ;;  %538 = vperm.xlu1 %9806, %v359_v15   ;;  %v4609_v36 = vrot.slane %v12038_v52, 1 }
 0x34b   : > { %v3255_v19 = vpop.f32.mrf.mxu2  ;;  %v5038_v50 = vsel %vm5026_vm7, %v4994_v62, %v11880_v57  ;;  %v4949_v15 = vsel %vm1779_vm3, %v4946_v34, %v15120_v59  ;;  %v15314_v57 = vld [vmem:[#allocation9_spill] sm:$0xff]  ;;  %v15315_v62 = vld [vmem:[#allocation20_spill] sm:$0xff]  ;;  %v4847_v3 = vrot.slane %v11947_v16, 3  ;;  %v4309_v27 = vrot.slane %v12051_v37, 1 }
 0x34c   : > { %v3830_v9 = vor.u32 %v3829_v1, %v3826_v44  ;;  %v3480_v53 = vmul.f32 %v3439_v43, %v11578_v40  ;;  %v3313_v45 = vadd.f32 %v3255_v19, %v2879_v21  ;;  %v15121_v44 = vrot.slane %v11947_v16, 1 }
 0x34d   : > { %4717 = vrot.lane.b32.xlu0 %v4678_v2, %s9869_s14  ;;  %v12055_v48 = vpop.f32.mrf.mxu1  ;;  %v4610_v1 = vrot.slane %v12051_v37, 2 }
 0x34e   : > { %v3831_v51 = vsel %vm10855_vm13, %v3822_v4, %v3830_v9  ;;  %v3521_v22 = vpack.c.bf16 %v3480_v53, %v3480_v53  ;;  %v3358_v10 = vadd.f32 %v12018_v13, %v3313_v45  ;;  %v12061_v14 = vpop.permute.xlu1 %4705  ;;  %v12073_v4 = vpop.permute.xlu2 %4462  ;;  %v2054_v45 = vadd.f32 %v15315_v62, %v15314_v57  ;;  %v15318_v57 = vld [vmem:[#allocation8_spill] sm:$0xff] }
 0x34f   : > { %4017 = vst.msk [vmem:[#allocation2 + $0x7c] sm:$0xf] %vm307_vm5, %v3831_v51  ;;  %v4518_v49 = vpop.permute.xlu0 %4517  ;;  %v12082_v34 = vor.u32 %v4610_v1, %v4609_v36  ;;  %v4302_v8 = vsel %vm4194_vm14, %v4297_v18, %v15121_v44  ;;  %v15316_v1 = vld [vmem:[#allocation54_spill] sm:$0xff] }
 0x350   : > { %v3834_v43 = vshrl.u32 %v3521_v22, 16  ;;  %v3837_v21 = vshll.u32 %v3521_v22, 16  ;;  %v3399_v19 = vmax.f32 %v3358_v10, 0.0  ;;  %v5086_v53 = vsel %vm5069_vm8, %v5038_v50, %v4518_v49  ;;  %9328 = vmatmul.msk.bf16.gmra.mxu1 %vm4982_vm6, %v4949_v15  ;;  %v9716_v10 = vld [vmem:[%s15070_s6 + $0x38] sm:$0xff] }
 0x351   : > { %5545 = vmatmul.bf16.gmra.mxu3 %v5086_v53  ;;  %v9724_v49 = vld [vmem:[%s15070_s6 + $0x78] sm:$0xff]  ;;  %v12100_v36 = vsel %vm4552_vm15, %v11982_v41, %v12082_v34  ;;  %v3832_v15 = vrot.slane %v3830_v9, 4  ;;  %v2447_v62 = vadd.f32 %v15318_v57, %v2054_v45  ;;  %7939 = vmatpush.bf16.msrb.mxu2 %v9716_v10  ;;  %v15122_v45 = vrot.slane %v12023_v11, 1 }
 0x352   : > { %v3836_v51 = vrot.slane %v3834_v43, 6  ;;  %v3839_v59 = vrot.slane %v3837_v21, 7  ;;  %v3440_v22 = vmin.f32 %v3399_v19, 6.0  ;;  %v5147_v43 = vsel %vm4982_vm6, %v15316_v1, %v11969_v39  ;;  %v15317_v19 = vld [vmem:[#allocation63_spill] sm:$0xff]  ;;  %4772 = vrot.lane.b32.xlu2 %v4678_v2, %s9868_s13  ;;  %4472 = vrot.lane.b32.xlu1 %v12005_v29, %s9868_s13 }
 0x353   : > { %v12090_v50 = vpop.f32.mrf.mxu2  ;;  %8052 = vmatpush.bf16.msrb.mxu3 %v9724_v49  ;;  %v5205_v29 = vsel %vm5026_vm7, %v5147_v43, %v11927_v61  ;;  %v362_v49 = vld [vmem:[%s15065_s1 + $0x128] sm:$0xff]  ;;  %v12130_v61 = vld [vmem:[#allocation2 + $0x38] sm:$0xff] }
 0x354   : > { %v3840_v21 = vor.u32 %v3839_v59, %v3836_v51  ;;  %v3481_v53 = vmul.f32 %v3440_v22, %v15317_v19  ;;  %v15126_v43 = vrot.slane %v12130_v61, 3  ;;  %v15322_v19 = vld [vmem:[#allocation24_spill] sm:$0xff]  ;;  %v15330_v28 = vrot.slane %v12130_v61, 3 }
 0x355   : > { %4386 = vrot.lane.b32.xlu0 %v4302_v8, %s9869_s14  ;;  %v2826_v18 = vpop.f32.mrf.mxu1  ;;  %v4848_v8 = vor.u32 %v4847_v3, %v4846_v32  ;;  %v9726_v32 = vld [vmem:[%s15070_s6 + $0x88] sm:$0xff] }
 0x356   : > { %v3841_v41 = vsel %vm10855_vm13, %v3832_v15, %v3840_v21  ;;  %v3522_v9 = vpack.c.bf16 %v3481_v53, %v3481_v53  ;;  %v4375_v44 = vpop.permute.xlu1 %4374  ;;  %v12113_v39 = vld [vmem:[#allocation2 + $0x78] sm:$0xff]  ;;  %v12116_v2 = vadd.f32 %v2826_v18, %v2447_v62  ;;  %v12128_v57 = vpop.permute.xlu2 %4764  ;;  %v4435_v62 = vsel %vm734_vm1, %v4432_v63, %v15122_v45  ;;  %8171 = vmatpush.bf16.msrb.mxu0 %v9726_v32 }
 0x357   : > { %4018 = vst.msk [vmem:[#allocation2 + $0x80] sm:$0xf] %vm307_vm5, %v3841_v41  ;;  %v4905_v59 = vpop.permute.xlu0 %4904  ;;  %v12126_v15 = vshrl.u32 %v12113_v39, 16  ;;  %v4850_v18 = vrot.slane %v12038_v52, 2  ;;  %v4851_v41 = vrot.slane %v12051_v37, 3 }
 0x358   : > { %v3844_v51 = vshrl.u32 %v3522_v9, 16  ;;  %v3847_v22 = vshll.u32 %v3522_v9, 16  ;;  %v5251_v10 = vsel %vm5069_vm8, %v5205_v29, %v4905_v59  ;;  %v12146_v9 = vshll.u32 %v12113_v39, 16 }
 0x359   : > { %5653 = vmatmul.bf16.gmra.mxu0 %v5251_v10  ;;  %v3842_v59 = vrot.slane %v3840_v21, 4  ;;  %v4613_v10 = vrot.slane %v12126_v15, 1 }
 0x35a   : > { %v3846_v1 = vrot.slane %v3844_v51, 6  ;;  %v3849_v53 = vrot.slane %v3847_v22, 7  ;;  %v4996_v51 = vsel %vm4982_vm6, %v12047_v17, %v4375_v44  ;;  %4531 = vrot.lane.b32.xlu2 %v4435_v62, %s9870_s15  ;;  %553 = vperm.xlu1 %9806, %v362_v49   ;;  %v4849_v22 = vsel %vm4797_vm0, %v11979_v24, %v4848_v8 }
 0x35b   : > { %v12136_v3 = vpop.f32.mrf.mxu2  ;;  %v15320_v44 = vrot.slane %v12047_v17, 3  ;;  %v5040_v32 = vsel %vm5026_vm7, %v4996_v51, %v11967_v7 }
 0x35c   : > { %v12148_v29 = vor.u32 %v3849_v53, %v3846_v1  ;;  %v15319_v1 = vld [vmem:[#allocation27_spill] sm:$0xff] }
 0x35d   : > { %4916 = vrot.lane.b32.xlu0 %v4849_v22, %s9870_s15  ;;  %v2829_v63 = vpop.f32.mrf.mxu1  ;;  %v4951_v24 = vsel %vm1779_vm3, %v15320_v44, %v15126_v43  ;;  %v12171_v22 = vor.u32 %v4851_v41, %v4850_v18  ;;  %v15323_v41 = vrot.slane %v11929_v35, 2  ;;  %v15325_v44 = vld [vmem:[#allocation61_spill] sm:$0xff] }
 0x35e   : > { %v3851_v21 = vsel %vm10855_vm13, %v3842_v59, %v12148_v29  ;;  %v2882_v53 = vadd.f32 %v2829_v63, %v15319_v1  ;;  %v12161_v45 = vpop.permute.xlu1 %4707  ;;  %v15125_v59 = vrot.slane %v12023_v11, 2  ;;  %v4614_v63 = vrot.slane %v12146_v9, 2  ;;  %v15321_v1 = vld [vmem:[#allocation11_spill] sm:$0xff] }
 0x35f   : > { %4019 = vst.msk [vmem:[#allocation2 + $0x84] sm:$0xf] %vm307_vm5, %v3851_v21  ;;  %v4520_v49 = vpop.permute.xlu0 %4519  ;;  %v2056_v40 = vadd.f32 %v15322_v19, %v15321_v1  ;;  %v361_v21 = vld [vmem:[%s15065_s1 + $0x120] sm:$0xff]  ;;  %v4853_v18 = vsel %vm4797_vm0, %v4848_v8, %v12171_v22 }
 0x360   : > { %v5089_v0 = vsel %vm5069_vm8, %v5040_v32, %v4520_v49  ;;  %9329 = vmatmul.msk.bf16.gmra.mxu1 %vm4982_vm6, %v4951_v24  ;;  %v4615_v17 = vor.u32 %v4614_v63, %v4613_v10  ;;  %v4680_v19 = vsel %vm1341_vm4, %v15323_v41, %v15125_v59  ;;  %v5150_v24 = vsel %vm4982_vm6, %v15325_v44, %v12061_v14  ;;  %v12197_v49 = vpop.permute.xlu2 %4464  ;;  %v15328_v59 = vld [vmem:[#allocation26_spill] sm:$0xff] }
 0x361   : > { %5550 = vmatmul.bf16.gmra.mxu3 %v5089_v0  ;;  %v15324_v0 = vld [vmem:[#allocation10_spill] sm:$0xff]  ;;  %v5207_v41 = vsel %vm5026_vm7, %v5150_v24, %v12021_v5  ;;  %v15124_v14 = vrot.slane %v12113_v39, 1  ;;  %v12226_v5 = vld [vmem:[#allocation2 + $0x40] sm:$0xff]  ;;  %v4854_v24 = vrot.slane %v12126_v15, 2 }
 0x362   : > { %v12191_v51 = vsel %vm4552_vm15, %v12082_v34, %v4615_v17  ;;  %v2449_v10 = vadd.f32 %v15324_v0, %v2056_v40  ;;  %4918 = vrot.lane.b32.xlu2 %v4853_v18, %s9870_s15  ;;  %4774 = vrot.lane.b32.xlu1 %v4680_v19, %s9868_s13  ;;  %v15326_v0 = vrot.slane %v12023_v11, 1  ;;  %v4952_v44 = vrot.slane %v12226_v5, 3 }
 0x363   : > { %v3263_v7 = vpop.f32.mrf.mxu2 }
 0x364   : > { %v12199_v32 = vadd.f32 %v3263_v7, %v2882_v53 }
 0x365   : > { %548 = vperm.xlu0 %9805, %v361_v21   ;;  %v2831_v8 = vpop.f32.mrf.mxu1 }
 0x366   : > { %v12203_v63 = vadd.f32 %v2831_v8, %v2449_v10  ;;  %v12205_v1 = vld [vmem:[#allocation2 + $0x80] sm:$0xff]  ;;  %v12224_v10 = vsel %vm734_vm1, %v15326_v0, %v15124_v14  ;;  %v4855_v8 = vrot.slane %v12146_v9, 3 }
 0x367   : > { %v4907_v40 = vpop.permute.xlu0 %4906  ;;  %v12212_v7 = vshll.u32 %v12205_v1, 16  ;;  %v12215_v21 = vshrl.u32 %v12205_v1, 16  ;;  %v15327_v14 = vld [vmem:[#allocation4_spill] sm:$0xff] }
 0x368   : > { %v4377_v34 = vpop.permute.xlu1 %4376  ;;  %v5254_v53 = vsel %vm5069_vm8, %v5207_v41, %v4907_v40  ;;  %v2058_v43 = vadd.f32 %v15328_v59, %v15327_v14  ;;  %v12241_v38 = vpop.permute.xlu2 %4766  ;;  %v4856_v31 = vor.u32 %v4855_v8, %v4854_v24 }
 0x369   : > { %5658 = vmatmul.bf16.gmra.mxu0 %v5254_v53  ;;  %v4998_v40 = vsel %vm4982_vm6, %v12130_v61, %v4377_v34  ;;  %v4617_v41 = vrot.slane %v12215_v21, 1  ;;  %v4618_v53 = vrot.slane %v12212_v7, 2 }
 0x36a   : > { %4719 = vrot.lane.b32.xlu2 %v4680_v19, %s9869_s14  ;;  %4533 = vrot.lane.b32.xlu1 %v12224_v10, %s9870_s15  ;;  %v5042_v60 = vsel %vm5026_vm7, %v4998_v40, %v12073_v4  ;;  %v15331_v4 = vrot.slane %v11947_v16, 1  ;;  %v15332_v40 = vld [vmem:[#allocation3_spill] sm:$0xff]  ;;  %v15333_v16 = vrot.slane %v12023_v11, 2 }
 0x36b   : > { %v12217_v18 = vpop.f32.mrf.mxu2  ;;  %v12244_v34 = vor.u32 %v4618_v53, %v4617_v41  ;;  %v363_v53 = vld [vmem:[%s15065_s1 + $0x130] sm:$0xff] }
 0x36c   : > { %v4305_v61 = vor.u32 %v11950_v20, %v15331_v4 }
 0x36d   : > { %4474 = vrot.lane.b32.xlu0 %v4435_v62, %s9868_s13  ;;  %v2834_v0 = vpop.f32.mrf.mxu1  ;;  %v4953_v62 = vsel %vm1779_vm3, %v15330_v28, %v4952_v44  ;;  %v12259_v14 = vsel %vm4552_vm15, %v4615_v17, %v12244_v34  ;;  %v2451_v28 = vadd.f32 %v15332_v40, %v2058_v43  ;;  %v4859_v40 = vrot.slane %v12212_v7, 3 }
 0x36e   : > { %v2884_v42 = vadd.f32 %v2834_v0, %v15329_v30  ;;  %v4681_v30 = vrot.slane %v12113_v39, 2  ;;  %v4310_v37 = vsel %vm4194_vm14, %v4305_v61, %v4309_v27  ;;  %v364_v0 = vld [vmem:[%s15065_s1 + $0x138] sm:$0xff] }
 0x36f   : > { %v4522_v47 = vpop.permute.xlu0 %4521 }
 0x370   : > { %v12246_v19 = vpop.permute.xlu1 %4709  ;;  %v5092_v59 = vsel %vm5069_vm8, %v5042_v60, %v4522_v47  ;;  %9330 = vmatmul.msk.bf16.gmra.mxu1 %vm4982_vm6, %v4953_v62  ;;  %v4857_v47 = vsel %vm4797_vm0, %v12171_v22, %v4856_v31  ;;  %v5153_v60 = vsel %vm4982_vm6, %v11561_v33, %v12161_v45  ;;  %v4682_v20 = vsel %vm1341_vm4, %v15333_v16, %v4681_v30 }
 0x371   : > { %5555 = vmatmul.bf16.gmra.mxu3 %v5092_v59  ;;  %v9823_v59 = vld [vmem:[#allocation2 + $0x48] sm:$0xff] }
 0x372   : > { %4388 = vrot.lane.b32.xlu2 %v4310_v37, %s9869_s14  ;;  %4920 = vrot.lane.b32.xlu1 %v4857_v47, %s9870_s15  ;;  %v4954_v4 = vrot.slane %v9823_v59, 3 }
 0x373   : > { %v3268_v41 = vpop.f32.mrf.mxu2 }
 0x374   : > { %v12271_v24 = vadd.f32 %v3268_v41, %v2884_v42  ;;  %v12281_v22 = vpop.permute.xlu2 %4525  ;;  %v5209_v42 = vsel %vm5026_vm7, %v5153_v60, %v12128_v57  ;;  %v4858_v57 = vrot.slane %v12215_v21, 2  ;;  %v15334_v41 = vld [vmem:[#allocation30_spill] sm:$0xff] }
 0x375   : > { %4776 = vrot.lane.b32.xlu0 %v4682_v20, %s9868_s13  ;;  %v2836_v43 = vpop.f32.mrf.mxu1 }
 0x376   : > { %v12279_v17 = vadd.f32 %v2836_v43, %v2451_v28  ;;  %v4955_v43 = vsel %vm1779_vm3, %v4952_v44, %v4954_v4  ;;  %v9723_v44 = vld [vmem:[%s15070_s6 + $0x70] sm:$0xff] }
 0x377   : > { %v4909_v8 = vpop.permute.xlu0 %4908  ;;  %8053 = vmatpush.bf16.msrb.mxu3 %v9723_v44 }
 0x378   : > { %v5257_v33 = vsel %vm5069_vm8, %v5209_v42, %v4909_v8  ;;  %v4379_v45 = vpop.permute.xlu1 %4378  ;;  %v15335_v8 = vld [vmem:[#allocation6_spill] sm:$0xff]  ;;  %v15336_v42 = vld [vmem:[#allocation28_spill] sm:$0xff] }
 0x379   : > { %5663 = vmatmul.bf16.gmra.mxu0 %v5257_v33  ;;  %v5000_v61 = vsel %vm4982_vm6, %v12226_v5, %v4379_v45  ;;  %v15135_v5 = vrot.slane %v12205_v1, 2  ;;  %v2060_v33 = vadd.f32 %v15336_v42, %v15335_v8  ;;  %v15338_v8 = vld [vmem:[#allocation25_spill] sm:$0xff] }
 0x37a   : > { %558 = vperm.xlu2 %9807, %v363_v53   ;;  %4721 = vrot.lane.b32.xlu1 %v4682_v20, %s9869_s14  ;;  %v5044_v16 = vsel %vm5026_vm7, %v5000_v61, %v12197_v49  ;;  %v4317_v20 = vrot.slane %v12146_v9, 1  ;;  %v12311_v53 = vor.u32 %v4859_v40, %v4858_v57  ;;  %v9715_v49 = vld [vmem:[%s15070_s6 + $0x30] sm:$0xff]  ;;  %v15337_v40 = vld [vmem:[#allocation5_spill] sm:$0xff]  ;;  %v2880_v42 = vadd.f32 %v12055_v48, %v15338_v8 }
 0x37b   : > { %v12292_v62 = vpop.f32.mrf.mxu2  ;;  %7940 = vmatpush.bf16.msrb.mxu2 %v9715_v49  ;;  %v9824_v49 = vld [vmem:[#allocation2 + $0x50] sm:$0xff]  ;;  %v15339_v48 = vrot.slane %v12113_v39, 1 }
 0x37c   : > { %v12300_v47 = vpop.permute.xlu2 %4713 }
 0x37d   : > { %563 = vperm.xlu0 %9805, %v364_v0   ;;  %v2839_v28 = vpop.f32.mrf.mxu1  ;;  %v4313_v0 = vor.u32 %v12038_v52, %v4309_v27  ;;  %v4861_v52 = vsel %vm4797_vm0, %v4856_v31, %v12311_v53  ;;  %v3314_v31 = vadd.f32 %v12090_v50, %v2880_v42 }
 0x37e   : > { %v2886_v37 = vadd.f32 %v2839_v28, %v15334_v41  ;;  %v4684_v28 = vsel %vm1341_vm4, %v4681_v30, %v15135_v5  ;;  %v2453_v41 = vadd.f32 %v15337_v40, %v2060_v33 }
 0x37f   : > { %v4524_v60 = vpop.permute.xlu0 %4523  ;;  %v4318_v57 = vsel %vm4194_vm14, %v4313_v0, %v4317_v20  ;;  %v3359_v44 = vadd.f32 %v12018_v13, %v3314_v31 }
 0x380   : > { %v5095_v45 = vsel %vm5069_vm8, %v5044_v16, %v4524_v60  ;;  %9331 = vmatmul.msk.bf16.gmra.mxu1 %vm4982_vm6, %v4955_v43  ;;  %v4467_v8 = vpop.permute.xlu1 %4466 }
 0x381   : > { %5560 = vmatmul.bf16.gmra.mxu3 %v5095_v45  ;;  %v15134_v45 = vrot.slane %v12205_v1, 1 }
 0x382   : > { %4778 = vrot.lane.b32.xlu2 %v4684_v28, %s9868_s13  ;;  %4390 = vrot.lane.b32.xlu1 %v4318_v57, %s9869_s14  ;;  %v4956_v57 = vrot.slane %v9824_v49, 3 }
 0x383   : > { %v5521_v61 = vpop.f32.mrf.mxu3  ;;  %v12358_v50 = vsel %vm734_vm1, %v15339_v48, %v15134_v45  ;;  %v3400_v48 = vmax.f32 %v3359_v44, 0.0  ;;  %v12383_v44 = vld [vmem:[%s15069_s5] ss:$0 sm:$0xff] }
 0x384   : > { %v3273_v27 = vpop.f32.mrf.mxu2  ;;  %v12336_v43 = vpop.permute.xlu2 %4382  ;;  %v4957_v42 = vsel %vm1779_vm3, %v4954_v4, %v4956_v57 }
 0x385   : > { %v12331_v60 = vadd.f32 %v3273_v27, %v2886_v37  ;;  %4922 = vrot.lane.b32.xlu0 %v4861_v52, %s9870_s15  ;;  %v2841_v16 = vpop.f32.mrf.mxu1  ;;  %v365_v37 = vld [vmem:[%s15065_s1 + $0x140] sm:$0xf]  ;;  %v15340_v27 = vld [vmem:[#allocation7_spill] sm:$0xff]  ;;  %v3441_v4 = vmin.f32 %v3400_v48, 6.0  ;;  %v4321_v48 = vor.u32 %v12126_v15, %v4317_v20 }
 0x386   : > { %v12334_v30 = vadd.f32 %v2841_v16, %v2453_v41 }
 0x387   : > { %v12340_v33 = vpop.permute.xlu0 %4711 }
 0x38a   : > { %4476 = vrot.lane.b32.xlu2 %v12224_v10, %s9868_s13  ;;  %568 = vperm.xlu1 %9806, %v365_v37  }
 0x38b   : > { %v12347_v0 = vpop.f32.mrf.mxu3 }
 0x38c   : > { %v12349_v40 = vpop.f32.mrf.mxu2  ;;  %v12364_v16 = vpop.permute.xlu2 %4912 }
 0x38d   : > { %4535 = vrot.lane.b32.xlu0 %v12358_v50, %s9870_s15  ;;  %v2844_v41 = vpop.f32.mrf.mxu1 }
 0x38e   : > { %v2888_v52 = vadd.f32 %v2844_v41, %v15340_v27  ;;  %v5156_v41 = vsel %vm4982_vm6, %v11671_v23, %v12246_v19 }
 0x38f   : > { %v4381_v10 = vpop.permute.xlu0 %4380 }
 0x390   : > { %v5002_v37 = vsel %vm4982_vm6, %v9823_v59, %v4381_v10  ;;  %9332 = vmatmul.msk.bf16.gmra.mxu1 %vm4982_vm6, %v4957_v42  ;;  %v5211_v42 = vsel %vm5026_vm7, %v5156_v41, %v12241_v38 }
 0x391   : > { %v5046_v45 = vsel %vm5026_vm7, %v5002_v37, %v4467_v8  ;;  %v4769_v8 = vpop.permute.xlu1 %4768 }
 0x392   : > { %v5098_v31 = vsel %vm5069_vm8, %v5046_v45, %v12281_v22  ;;  %4723 = vrot.lane.b32.xlu2 %v4684_v28, %s9869_s14  ;;  %v15137_v28 = vrot.slane %v12212_v7, 1 }
 0x393   : > { %5565 = vmatmul.bf16.gmra.mxu3 %v5098_v31  ;;  %v12375_v5 = vpop.f32.mrf.mxu3  ;;  %v5634_v22 = vpop.f32.mrf.mxu0  ;;  %v5522_v31 = vadd.f32 %v12383_v44, %v5521_v61 }
 0x394   : > { %v3278_v27 = vpop.f32.mrf.mxu2  ;;  %v12385_v45 = vpop.permute.xlu2 %528  ;;  %v4326_v38 = vsel %vm4194_vm14, %v4321_v48, %v15137_v28 }
 0x395   : > { %v12378_v59 = vadd.f32 %v3278_v27, %v2888_v52  ;;  %v2846_v10 = vpop.f32.mrf.mxu1  ;;  %15341 = vst [vmem:[#allocation40_spill] sm:$0xff] %v12385_v45  ;;  %v3482_v23 = vmul.f32 %v3441_v4, %v12385_v45  ;;  %v4958_v27 = vrot.slane %v11750_v12, 3  ;;  %v3315_v4 = vadd.f32 %v12136_v3, %v12116_v2  ;;  %v15346_v12 = vld [vmem:[#allocation32_spill] sm:$0xff] }
 0x396   : > { %v5635_v41 = vadd.f32 %v5634_v22, %v5522_v31  ;;  %v3852_v3 = vrot.slane %v12148_v29, 4 }
 0x397   : > { %v4911_v19 = vpop.permute.xlu0 %4910  ;;  %v3523_v37 = vpack.c.bf16 %v3482_v23, %v3482_v23  ;;  %v4959_v2 = vsel %vm1779_vm3, %v4956_v57, %v4958_v27  ;;  %v3360_v22 = vadd.f32 %v12018_v13, %v3315_v4  ;;  %v5524_v4 = vadd.f32 %v12383_v44, %v12347_v0 }
 0x398   : > { %v5260_v52 = vsel %vm5069_vm8, %v5211_v42, %v4911_v19 }
 0x399   : > { %5668 = vmatmul.bf16.gmra.mxu0 %v5260_v52  ;;  %v3854_v10 = vshrl.u32 %v3523_v37, 16  ;;  %v3857_v45 = vshll.u32 %v3523_v37, 16  ;;  %v5004_v37 = vsel %vm4982_vm6, %v9824_v49, %v12336_v43  ;;  %v15342_v43 = vld [vmem:[#allocation12_spill] sm:$0xff] }
 0x39a   : > { %4392 = vrot.lane.b32.xlu2 %v4326_v38, %s9869_s14 }
 0x39b   : > { %v12402_v23 = vpop.f32.mrf.mxu3  ;;  %v3856_v15 = vrot.slane %v3854_v10, 6  ;;  %v3859_v20 = vrot.slane %v3857_v45, 7  ;;  %v5636_v19 = vpop.f32.mrf.mxu0 }
 0x39c   : > { %v3280_v9 = vpop.f32.mrf.mxu2  ;;  %v12405_v52 = vpop.permute.xlu2 %4470 }
 0x39d   : > { %v5747_v61 = vpop.f32.mrf.mxu1  ;;  %v12414_v48 = vor.u32 %v3859_v20, %v3856_v15  ;;  %v4528_v31 = vpop.permute.xlu1 %4527  ;;  %v5159_v9 = vsel %vm4982_vm6, %v11731_v56, %v12340_v33  ;;  %v5637_v15 = vadd.f32 %v5636_v19, %v5524_v4  ;;  %v5527_v4 = vadd.f32 %v12383_v44, %v12375_v5 }
 0x39e   : > { %v5748_v42 = vadd.f32 %v5747_v61, %v5635_v41  ;;  %v3401_v41 = vmax.f32 %v3360_v22, 0.0 }
 0x39f   : > { %v4469_v45 = vpop.permute.xlu0 %4468  ;;  %v3861_v57 = vsel %vm10855_vm13, %v3852_v3, %v12414_v48 }
 0x3a0   : > { %v5851_v10 = vmax.f32 %v5748_v42, 0.0  ;;  %v5048_v38 = vsel %vm5026_vm7, %v5004_v37, %v4469_v45  ;;  %9333 = vmatmul.msk.bf16.gmra.mxu1 %vm4982_vm6, %v4959_v2  ;;  %4020 = vst.msk [vmem:[#allocation2 + $0x88] sm:$0xf] %vm307_vm5, %v3861_v57  ;;  %v5213_v42 = vsel %vm5026_vm7, %v5159_v9, %v4769_v8  ;;  %v3317_v8 = vadd.f32 %v12217_v18, %v12203_v63 }
 0x3a1   : > { %v5101_v29 = vsel %vm5069_vm8, %v5048_v38, %v4528_v31  ;;  %v5263_v19 = vsel %vm5069_vm8, %v5213_v42, %v12364_v16 }
 0x3a2   : > { %v5892_v49 = vmul.f32 %v5851_v10, %v15342_v43  ;;  %v3442_v10 = vmin.f32 %v3401_v41, 6.0  ;;  %v3362_v63 = vadd.f32 %v12018_v13, %v3317_v8 }
 0x3a3   : > { %5570 = vmatmul.bf16.gmra.mxu3 %v5101_v29  ;;  %v12429_v61 = vpop.f32.mrf.mxu3  ;;  %v5639_v0 = vpop.f32.mrf.mxu0 }
 0x3a4   : > { %v5933_v20 = vpack.c.bf16 %v5892_v49, %v5892_v49  ;;  %v12432_v45 = vpop.permute.xlu2 %543  ;;  %v15344_v49 = vld [vmem:[#allocation13_spill] sm:$0xff]  ;;  %v5640_v16 = vadd.f32 %v5639_v0, %v5527_v4 }
 0x3a5   : > { %v5749_v2 = vpop.f32.mrf.mxu1  ;;  %v12434_v22 = vpop.permute.xlu1 %4715  ;;  %v9722_v0 = vld [vmem:[%s15070_s6 + $0x68] sm:$0xff] }
 0x3a6   : > { %v5975_v3 = vshrl.u32 %v5933_v20, 16  ;;  %v5978_v37 = vshll.u32 %v5933_v20, 16  ;;  %v5750_v31 = vadd.f32 %v5749_v2, %v5637_v15  ;;  %v4960_v15 = vrot.slane %v11835_v46, 3  ;;  %v9825_v20 = vld [vmem:[#allocation2 + $0x8] sm:$0xe]  ;;  %8054 = vmatpush.bf16.msrb.mxu3 %v9722_v0 }
 0x3a7   : > { %v12436_v38 = vpop.permute.xlu0 %533 }
 0x3a8   : > { %15343 = vst [vmem:[#allocation15_spill] sm:$0xff] %v12436_v38  ;;  %v5977_v57 = vrot.slane %v5975_v3, 6  ;;  %v5980_v56 = vrot.slane %v5978_v37, 7  ;;  %v5852_v33 = vmax.f32 %v5750_v31, 0.0  ;;  %v3483_v29 = vmul.f32 %v3442_v10, %v12436_v38 }
 0x3a9   : > { %5673 = vmatmul.bf16.gmra.mxu0 %v5263_v19 }
 0x3aa   : > { %v5981_v43 = vor.u32 %v5980_v56, %v5977_v57  ;;  %v5893_v41 = vmul.f32 %v5852_v33, %v15344_v49  ;;  %v3524_v9 = vpack.c.bf16 %v3483_v29, %v3483_v29  ;;  %v9714_v29 = vld [vmem:[%s15070_s6 + $0x28] sm:$0xff] }
 0x3ab   : > { %v12449_v37 = vpop.f32.mrf.mxu3  ;;  %v5641_v56 = vpop.f32.mrf.mxu0  ;;  %7941 = vmatpush.bf16.msrb.mxu2 %v9714_v29 }
 0x3ac   : > { %v6423_v3 = vsel %vm10829_vm11, %v5981_v43, %v9825_v20  ;;  %v5934_v42 = vpack.c.bf16 %v5893_v41, %v5893_v41  ;;  %v3864_v18 = vshrl.u32 %v3524_v9, 16  ;;  %v3867_v31 = vshll.u32 %v3524_v9, 16  ;;  %v12452_v19 = vpop.permute.xlu2 %4772 }
 0x3ad   : > { %6424 = vst [vmem:[#allocation2 + $0x8] sm:$0xe] %v6423_v3  ;;  %v5752_v5 = vpop.f32.mrf.mxu1  ;;  %v4385_v49 = vpop.permute.xlu1 %4384  ;;  %v4961_v9 = vsel %vm1779_vm3, %v4958_v27, %v4960_v15  ;;  %v3361_v27 = vadd.f32 %v12018_v13, %v12199_v32  ;;  %v3319_v32 = vadd.f32 %v12292_v62, %v12279_v17  ;;  %vm4029_vm11 = vsmask.f32 3328 }
 0x3ae   : > { %v5984_v10 = vshrl.u32 %v5934_v42, 16  ;;  %v5987_v57 = vshll.u32 %v5934_v42, 16  ;;  %v5753_v33 = vadd.f32 %v5752_v5, %v5640_v16  ;;  %v3866_v4 = vrot.slane %v3864_v18, 6  ;;  %vm12917_vm12 = vmand %vm307_vm5, %vm4029_vm11 }
 0x3af   : > { %v3869_v8 = vrot.slane %v3867_v31, 7  ;;  %v4771_v41 = vpop.permute.xlu0 %4770  ;;  %v3403_v16 = vmax.f32 %v3362_v63, 0.0  ;;  %v3862_v42 = vrot.slane %v12414_v48, 4  ;;  %v5529_v18 = vadd.f32 %v12383_v44, %v12402_v23 }
 0x3b0   : > { %v5986_v20 = vrot.slane %v5984_v10, 6  ;;  %v5989_v2 = vrot.slane %v5987_v57, 7  ;;  %v5853_v3 = vmax.f32 %v5753_v33, 0.0  ;;  %9334 = vmatmul.msk.bf16.gmra.mxu1 %vm4982_vm6, %v4961_v9  ;;  %v5982_v31 = vrot.slane %v5981_v43, 4  ;;  %v9826_v33 = vld [vmem:[#allocation2 + $0x58] sm:$0xff] }
 0x3b1   : > { %v12467_v5 = vor.u32 %v3869_v8, %v3866_v4  ;;  %v5642_v63 = vadd.f32 %v5641_v56, %v5529_v18  ;;  %v5006_v23 = vsel %vm4982_vm6, %v9826_v33, %v4385_v49  ;;  %v3444_v29 = vmin.f32 %v3403_v16, 6.0 }
 0x3b2   : > { %v5990_v28 = vor.u32 %v5989_v2, %v5986_v20  ;;  %v5894_v38 = vmul.f32 %v5853_v3, %v15346_v12  ;;  %v15140_v4 = vrot.slane %v11929_v35, 3  ;;  %v5162_v8 = vsel %vm4982_vm6, %v11817_v55, %v12300_v47 }
 0x3b3   : > { %v3871_v10 = vsel %vm10855_vm13, %v3862_v42, %v12467_v5  ;;  %v12481_v43 = vpop.f32.mrf.mxu3  ;;  %v5644_v9 = vpop.f32.mrf.mxu0  ;;  %v3402_v2 = vmax.f32 %v3361_v27, 0.0  ;;  %v3485_v3 = vmul.f32 %v3444_v29, %v12432_v45  ;;  %v5215_v17 = vsel %vm5026_vm7, %v5162_v8, %v4771_v41 }
 0x3b4   : > { %v5991_v48 = vsel %vm10855_vm13, %v5982_v31, %v5990_v28  ;;  %4021 = vst.msk [vmem:[#allocation2 + $0x8c] sm:$0xf] %vm307_vm5, %v3871_v10  ;;  %v5935_v57 = vpack.c.bf16 %v5894_v38, %v5894_v38  ;;  %v12490_v49 = vpop.permute.xlu2 %4531  ;;  %v5050_v42 = vsel %vm5026_vm7, %v5006_v23, %v12405_v52  ;;  %v12498_v47 = vadd.f32 %v12018_v13, %v3319_v32 }
 0x3b5   : > { %6425 = vst.msk [vmem:[#allocation2 + $0xc] sm:$0xf] %vm307_vm5, %v5991_v48  ;;  %v5754_v0 = vpop.f32.mrf.mxu1  ;;  %v4915_v62 = vpop.permute.xlu1 %4914  ;;  %v5532_v10 = vadd.f32 %v12383_v44, %v12429_v61  ;;  %v5992_v41 = vrot.slane %v5990_v28, 4  ;;  %v3443_v52 = vmin.f32 %v3402_v2, 6.0  ;;  %v3526_v33 = vpack.c.bf16 %v3485_v3, %v3485_v3 }
 0x3b6   : > { %v5994_v56 = vshrl.u32 %v5935_v57, 16  ;;  %v5997_v38 = vshll.u32 %v5935_v57, 16  ;;  %v5755_v20 = vadd.f32 %v5754_v0, %v5642_v63  ;;  %v5266_v27 = vsel %vm5069_vm8, %v5215_v17, %v4915_v62  ;;  %v15347_v63 = vld [vmem:[#allocation33_spill] sm:$0xff] }
 0x3b7   : > { %v4530_v16 = vpop.permute.xlu0 %4529  ;;  %v4963_v29 = vsel %vm1779_vm3, %v4960_v15, %v15140_v4  ;;  %v4964_v32 = vrot.slane %v12023_v11, 3  ;;  %v5645_v28 = vadd.f32 %v5644_v9, %v5532_v10  ;;  %v15348_v8 = vrot.slane %v12212_v7, 1 }
 0x3b8   : > { %v5996_v18 = vrot.slane %v5994_v56, 6  ;;  %v5999_v31 = vrot.slane %v5997_v38, 7  ;;  %v5854_v12 = vmax.f32 %v5755_v20, 0.0  ;;  %v5104_v55 = vsel %vm5069_vm8, %v5050_v42, %v4530_v16 }
 0x3b9   : > { %5575 = vmatmul.bf16.gmra.mxu3 %v5104_v55  ;;  %5678 = vmatmul.bf16.gmra.mxu0 %v5266_v27  ;;  %v4329_v56 = vor.u32 %v12215_v21, %v15348_v8  ;;  %v12519_v38 = vadd.f32 %v12018_v13, %v12271_v24  ;;  %v3405_v7 = vmax.f32 %v12498_v47, 0.0  ;;  %v3884_v16 = vshrl.u32 %v3526_v33, 16 }
 0x3ba   : > { %v6000_v48 = vor.u32 %v5999_v31, %v5996_v18  ;;  %v5895_v57 = vmul.f32 %v5854_v12, %v15347_v63  ;;  %v15349_v31 = vrot.slane %v12205_v1, 2 }
 0x3bb   : > { %v12504_v23 = vld [vmem:[#allocation2 + $0x88] sm:$0xff]  ;;  %v12522_v46 = vpop.f32.mrf.mxu3  ;;  %v5646_v17 = vpop.f32.mrf.mxu0 }
 0x3bc   : > { %v6001_v61 = vsel %vm10855_vm13, %v5992_v41, %v6000_v48  ;;  %v5936_v0 = vpack.c.bf16 %v5895_v57, %v5895_v57  ;;  %v15139_v20 = vrot.slane %v12504_v23, 2  ;;  %v12526_v2 = vshll.u32 %v12504_v23, 16  ;;  %v12532_v62 = vpop.permute.xlu2 %4918 }
 0x3bd   : > { %6426 = vst.msk [vmem:[#allocation2 + $0x10] sm:$0xf] %vm307_vm5, %v6001_v61  ;;  %v5757_v15 = vpop.f32.mrf.mxu1  ;;  %v12529_v9 = vshrl.u32 %v12504_v23, 16  ;;  %v12534_v42 = vpop.permute.xlu1 %538  ;;  %v12550_v61 = vadd.f32 %v12018_v13, %v12331_v60 }
 0x3be   : > { %v6004_v21 = vshrl.u32 %v5936_v0, 16  ;;  %v6007_v3 = vshll.u32 %v5936_v0, 16  ;;  %v5758_v24 = vadd.f32 %v5757_v15, %v5645_v28  ;;  %v4686_v12 = vsel %vm1341_vm4, %v15349_v31, %v15139_v20 }
 0x3bf   : > { %v12536_v18 = vpop.permute.xlu0 %4717  ;;  %v4862_v55 = vrot.slane %v12529_v9, 2  ;;  %v4863_v27 = vrot.slane %v12526_v2, 3  ;;  %v3484_v57 = vmul.f32 %v3443_v52, %v12534_v42  ;;  %4725 = vrot.lane.b32.xlu2 %v4686_v12, %s9869_s14  ;;  %4780 = vrot.lane.b32.xlu0 %v4686_v12, %s9868_s13  ;;  %v3887_v28 = vshll.u32 %v3526_v33, 16 }
 0x3c0   : > { %v6006_v10 = vrot.slane %v6004_v21, 6  ;;  %v6009_v41 = vrot.slane %v6007_v3, 7  ;;  %v5855_v63 = vmax.f32 %v5758_v24, 0.0  ;;  %v5534_v0 = vadd.f32 %v12383_v44, %v12449_v37  ;;  %9335 = vmatmul.msk.bf16.gmra.mxu1 %vm4982_vm6, %v4963_v29  ;;  %v15350_v3 = vld [vmem:[#allocation34_spill] sm:$0xff] }
 0x3c1   : > { %v12555_v8 = vor.u32 %v4863_v27, %v4862_v55  ;;  %v6002_v15 = vrot.slane %v6000_v48, 4  ;;  %v3525_v24 = vpack.c.bf16 %v3484_v57, %v3484_v57  ;;  %v3886_v31 = vrot.slane %v3884_v16, 6 }
 0x3c2   : > { %v6010_v21 = vor.u32 %v6009_v41, %v6006_v10  ;;  %v5896_v52 = vmul.f32 %v5855_v63, %v15350_v3  ;;  %v4333_v13 = vrot.slane %v12526_v2, 1  ;;  %v4621_v60 = vrot.slane %v12529_v9, 1 }
 0x3c3   : > { %v4865_v12 = vsel %vm4797_vm0, %v12311_v53, %v12555_v8  ;;  %v5647_v33 = vadd.f32 %v5646_v17, %v5534_v0  ;;  %v3874_v55 = vshrl.u32 %v3525_v24, 16  ;;  %v3889_v48 = vrot.slane %v3887_v28, 7  ;;  %v12577_v4 = vpop.f32.mrf.mxu3 }
 0x3c4   : > { %v6011_v37 = vsel %vm10855_vm13, %v6002_v15, %v6010_v21  ;;  %v5937_v29 = vpack.c.bf16 %v5896_v52, %v5896_v52  ;;  %4924 = vrot.lane.b32.xlu1 %v4865_v12, %s9870_s15  ;;  %v3872_v27 = vrot.slane %v12467_v5, 4  ;;  %v3877_v16 = vshll.u32 %v3525_v24, 16  ;;  %v12569_v15 = vpop.permute.xlu2 %4719 }
 0x3c5   : > { %6427 = vst.msk [vmem:[#allocation2 + $0x14] sm:$0xf] %vm307_vm5, %v6011_v37  ;;  %v5759_v10 = vpop.f32.mrf.mxu1  ;;  %v4622_v53 = vrot.slane %v12526_v2, 2  ;;  %v3876_v57 = vrot.slane %v3874_v55, 6  ;;  %v4473_v0 = vpop.permute.xlu1 %4472  ;;  %v4334_v5 = vsel %vm4194_vm14, %v4329_v56, %v4333_v13  ;;  %v4440_v28 = vrot.slane %v12504_v23, 1  ;;  %v9827_v55 = vld [vmem:[#allocation2 + $0x60] sm:$0xff] }
 0x3c6   : > { %v6014_v41 = vshrl.u32 %v5937_v29, 16  ;;  %v6017_v63 = vshll.u32 %v5937_v29, 16  ;;  %v5649_v3 = vpop.f32.mrf.mxu0  ;;  %v5760_v20 = vadd.f32 %v5759_v10, %v5647_v33  ;;  %v3879_v17 = vrot.slane %v3877_v16, 7 }
 0x3c7   : > { %v4387_v52 = vpop.permute.xlu0 %4386  ;;  %v12575_v24 = vor.u32 %v4622_v53, %v4621_v60  ;;  %4478 = vrot.lane.b32.xlu0 %v12358_v50, %s9868_s13  ;;  %4394 = vrot.lane.b32.xlu2 %v4334_v5, %s9869_s14  ;;  %v5537_v56 = vadd.f32 %v12383_v44, %v12481_v43  ;;  %v4966_v5 = vrot.slane %v12113_v39, 3  ;;  %v5168_v11 = vsel %vm4982_vm6, %v11989_v6, %v12536_v18  ;;  %v9713_v18 = vld [vmem:[%s15070_s6 + $0x20] sm:$0xff] }
 0x3c8   : > { %v6016_v12 = vrot.slane %v6014_v41, 6  ;;  %v6019_v37 = vrot.slane %v6017_v63, 7  ;;  %v5856_v29 = vmax.f32 %v5760_v20, 0.0  ;;  %v5008_v33 = vsel %vm4982_vm6, %v9827_v55, %v4387_v52  ;;  %v15351_v41 = vld [vmem:[#allocation35_spill] sm:$0xff]  ;;  %7942 = vmatpush.bf16.msrb.mxu2 %v9713_v18 }
 0x3c9   : > { %v3880_v16 = vor.u32 %v3879_v17, %v3876_v57  ;;  %v5052_v60 = vsel %vm5026_vm7, %v5008_v33, %v4473_v0  ;;  %v12589_v10 = vsel %vm4552_vm15, %v12244_v34, %v12575_v24  ;;  %v6012_v20 = vrot.slane %v6010_v21, 4 }
 0x3ca   : > { %v6020_v53 = vor.u32 %v6019_v37, %v6016_v12  ;;  %v5897_v63 = vmul.f32 %v5856_v29, %v15351_v41  ;;  %v5107_v50 = vsel %vm5069_vm8, %v5052_v60, %v12490_v49  ;;  %v12594_v52 = vor.u32 %v3889_v48, %v3886_v31 }
 0x3cb   : > { %v3881_v43 = vsel %vm10855_vm13, %v3872_v27, %v3880_v16  ;;  %v3882_v57 = vrot.slane %v3880_v16, 4  ;;  %5580 = vmatmul.bf16.gmra.mxu3 %v5107_v50  ;;  %v15352_v17 = vrot.slane %v12205_v1, 1  ;;  %v5650_v49 = vadd.f32 %v5649_v3, %v5537_v56 }
 0x3cc   : > { %v6021_v21 = vsel %vm10855_vm13, %v6012_v20, %v6020_v53  ;;  %4022 = vst.msk [vmem:[#allocation2 + $0x90] sm:$0xf] %vm307_vm5, %v3881_v43  ;;  %v5938_v31 = vpack.c.bf16 %v5897_v63, %v5897_v63  ;;  %v3404_v48 = vmax.f32 %v12519_v38, 0.0  ;;  %v3446_v27 = vmin.f32 %v3405_v7, 6.0  ;;  %v4389_v7 = vpop.permute.xlu2 %4388 }
 0x3cd   : > { %v12603_v34 = vsel %vm734_vm1, %v15352_v17, %v4440_v28  ;;  %6428 = vst.msk [vmem:[#allocation2 + $0x18] sm:$0xf] %vm307_vm5, %v6021_v21  ;;  %v3891_v1 = vsel %vm10855_vm13, %v3882_v57, %v12594_v52  ;;  %v5762_v0 = vpop.f32.mrf.mxu1  ;;  %v5165_v3 = vsel %vm4982_vm6, %v11902_v26, %v12434_v22  ;;  %v3406_v29 = vmax.f32 %v12550_v61, 0.0  ;;  %v12625_v33 = vpop.permute.xlu1 %553  ;;  %v15354_v17 = vld [vmem:[#allocation36_spill] sm:$0xff] }
 0x3ce   : > { %4537 = vrot.lane.b32.xlu1 %v12603_v34, %s9870_s15  ;;  %4023 = vst.msk [vmem:[#allocation2 + $0x94] sm:$0xf] %vm307_vm5, %v3891_v1  ;;  %v6024_v12 = vshrl.u32 %v5938_v31, 16  ;;  %v6027_v38 = vshll.u32 %v5938_v31, 16  ;;  %v5651_v37 = vpop.f32.mrf.mxu0  ;;  %v5763_v47 = vadd.f32 %v5762_v0, %v5650_v49  ;;  %v5217_v55 = vsel %vm5026_vm7, %v5165_v3, %v12452_v19  ;;  %v5543_v57 = vpop.f32.mrf.mxu3 }
 0x3cf   : > { %v4917_v56 = vpop.permute.xlu0 %4916  ;;  %v15353_v16 = vrot.slane %v11929_v35, 3  ;;  %v3487_v41 = vmul.f32 %v3446_v27, %v12625_v33  ;;  %v3445_v63 = vmin.f32 %v3404_v48, 6.0  ;;  %v5539_v61 = vadd.f32 %v12383_v44, %v12522_v46 }
 0x3d0   : > { %v6026_v22 = vrot.slane %v6024_v12, 6  ;;  %v6029_v60 = vrot.slane %v6027_v38, 7  ;;  %v5857_v20 = vmax.f32 %v5763_v47, 0.0  ;;  %v5269_v19 = vsel %vm5069_vm8, %v5217_v55, %v4917_v56  ;;  %v9828_v56 = vld [vmem:[#allocation2 + $0x68] sm:$0xff] }
 0x3d1   : > { %v4965_v26 = vsel %vm1779_vm3, %v15353_v16, %v4964_v32  ;;  %v12642_v35 = vsel %vm1779_vm3, %v4964_v32, %v4966_v5  ;;  %v6022_v50 = vrot.slane %v6020_v53, 4  ;;  %v3528_v49 = vpack.c.bf16 %v3487_v41, %v3487_v41  ;;  %5683 = vmatmul.bf16.gmra.mxu0 %v5269_v19 }
 0x3d2   : > { %9336 = vmatmul.msk.bf16.gmra.mxu1 %vm4982_vm6, %v4965_v26  ;;  %v6030_v43 = vor.u32 %v6029_v60, %v6026_v22  ;;  %v5898_v21 = vmul.f32 %v5857_v20, %v15354_v17  ;;  %v3447_v31 = vmin.f32 %v3406_v29, 6.0  ;;  %v12647_v46 = vadd.f32 %v12349_v40, %v12334_v30 }
 0x3d3   : > { %v3892_v48 = vrot.slane %v12594_v52, 4  ;;  %v5652_v53 = vadd.f32 %v5651_v37, %v5539_v61  ;;  %v3904_v1 = vshrl.u32 %v3528_v49, 16  ;;  %v5542_v0 = vadd.f32 %v12383_v44, %v12577_v4 }
 0x3d4   : > { %v6031_v32 = vsel %vm10855_vm13, %v6022_v50, %v6030_v43  ;;  %v5939_v27 = vpack.c.bf16 %v5898_v21, %v5898_v21  ;;  %v12659_v30 = vadd.f32 %v12383_v44, %v5543_v57  ;;  %v3907_v40 = vshll.u32 %v3528_v49, 16  ;;  %v12671_v55 = vpop.permute.xlu2 %558 }
 0x3d5   : > { %6429 = vst.msk [vmem:[#allocation2 + $0x1c] sm:$0xf] %vm307_vm5, %v6031_v32  ;;  %v5764_v3 = vpop.f32.mrf.mxu1  ;;  %v12661_v12 = vld [vmem:[#allocation2 + $0x90] sm:$0xff]  ;;  %v12666_v6 = vor.u32 %v12529_v9, %v4333_v13  ;;  %v3906_v37 = vrot.slane %v3904_v1, 6  ;;  %v5010_v16 = vsel %vm4982_vm6, %v9828_v56, %v4389_v7  ;;  %v3488_v2 = vmul.f32 %v3447_v31, %v12671_v55  ;;  %v4775_v22 = vpop.permute.xlu1 %4774  ;;  %v15357_v31 = vld [vmem:[#allocation37_spill] sm:$0xff] }
 0x3d6   : > { %v6034_v38 = vshrl.u32 %v5939_v27, 16  ;;  %v6037_v4 = vshll.u32 %v5939_v27, 16  ;;  %v5654_v47 = vpop.f32.mrf.mxu0  ;;  %v5765_v29 = vadd.f32 %v5764_v3, %v5652_v53  ;;  %15355 = vst [vmem:[#allocation18_spill] sm:$0xff] %v12671_v55  ;;  %v3909_v26 = vrot.slane %v3907_v40, 7 }
 0x3d7   : > { %v12675_v9 = vpop.permute.xlu0 %548  ;;  %v4687_v13 = vrot.slane %v12661_v12, 2  ;;  %v6032_v60 = vrot.slane %v6030_v43, 4  ;;  %v3529_v50 = vpack.c.bf16 %v3488_v2, %v3488_v2  ;;  %v15356_v7 = vrot.slane %v12504_v23, 2 }
 0x3d8   : > { %v6036_v20 = vrot.slane %v6034_v38, 6  ;;  %v6039_v41 = vrot.slane %v6037_v4, 7  ;;  %v5858_v61 = vmax.f32 %v5765_v29, 0.0  ;;  %v12678_v19 = vor.u32 %v3909_v26, %v3906_v37 }
 0x3d9   : > { %v3486_v57 = vmul.f32 %v3445_v63, %v12675_v9  ;;  %v4688_v17 = vsel %vm1341_vm4, %v15356_v7, %v4687_v13  ;;  %v5655_v49 = vadd.f32 %v5654_v47, %v5542_v0  ;;  %v12690_v43 = vshrl.u32 %v12661_v12, 16 }
 0x3da   : > { %v6040_v21 = vor.u32 %v6039_v41, %v6036_v20  ;;  %v5899_v32 = vmul.f32 %v5858_v61, %v15357_v31  ;;  %4782 = vrot.lane.b32.xlu0 %v4688_v17, %s9868_s13  ;;  %4727 = vrot.lane.b32.xlu2 %v4688_v17, %s9869_s14  ;;  %v3914_v53 = vshrl.u32 %v3529_v50, 16  ;;  %v3917_v27 = vshll.u32 %v3529_v50, 16  ;;  %v5546_v17 = vpop.f32.mrf.mxu3 }
 0x3db   : > { %v5219_v63 = vsel %vm5026_vm7, %v5168_v11, %v4775_v22  ;;  %v3527_v1 = vpack.c.bf16 %v3486_v57, %v3486_v57  ;;  %v3912_v3 = vrot.slane %v12678_v19, 4  ;;  %v12697_v18 = vshll.u32 %v12661_v12, 16 }
 0x3dc   : > { %v6041_v40 = vsel %vm10855_vm13, %v6032_v60, %v6040_v21  ;;  %v5940_v0 = vpack.c.bf16 %v5899_v32, %v5899_v32  ;;  %v3916_v38 = vrot.slane %v3914_v53, 6  ;;  %v3919_v4 = vrot.slane %v3917_v27, 7  ;;  %v9721_v60 = vld [vmem:[%s15070_s6 + $0x60] sm:$0xff] }
 0x3dd   : > { %6430 = vst.msk [vmem:[#allocation2 + $0x20] sm:$0xf] %vm307_vm5, %v6041_v40  ;;  %v3894_v37 = vshrl.u32 %v3527_v1, 16  ;;  %v3897_v47 = vshll.u32 %v3527_v1, 16  ;;  %v5767_v29 = vpop.f32.mrf.mxu1  ;;  %v4866_v22 = vrot.slane %v12690_v43, 2  ;;  %v6042_v20 = vrot.slane %v6040_v21, 4  ;;  %v4534_v57 = vpop.permute.xlu1 %4533  ;;  %8055 = vmatpush.bf16.msrb.mxu3 %v9721_v60 }
 0x3de   : > { %v6044_v56 = vshrl.u32 %v5940_v0, 16  ;;  %v6047_v26 = vshll.u32 %v5940_v0, 16  ;;  %v5656_v11 = vpop.f32.mrf.mxu0  ;;  %v5768_v2 = vadd.f32 %v5767_v29, %v5655_v49  ;;  %v12704_v41 = vor.u32 %v3919_v4, %v3916_v38  ;;  %v15358_v38 = vld [vmem:[#allocation38_spill] sm:$0xff] }
 0x3df   : > { %v3896_v61 = vrot.slane %v3894_v37, 6  ;;  %v3899_v50 = vrot.slane %v3897_v47, 7  ;;  %v4475_v7 = vpop.permute.xlu0 %4474  ;;  %v4867_v27 = vrot.slane %v12697_v18, 3  ;;  %v5657_v21 = vadd.f32 %v5656_v11, %v12659_v30 }
 0x3e0   : > { %v6046_v31 = vrot.slane %v6044_v56, 6  ;;  %v6049_v32 = vrot.slane %v6047_v26, 7  ;;  %v5859_v53 = vmax.f32 %v5768_v2, 0.0  ;;  %v3921_v49 = vsel %vm10855_vm13, %v3912_v3, %v12704_v41 }
 0x3e1   : > { %v3900_v1 = vor.u32 %v3899_v50, %v3896_v61  ;;  %v5054_v40 = vsel %vm5026_vm7, %v5010_v16, %v4475_v7  ;;  %4026 = vst.msk [vmem:[#allocation2 + $0xa0] sm:$0xf] %vm307_vm5, %v3921_v49  ;;  %v12716_v37 = vor.u32 %v4867_v27, %v4866_v22  ;;  %v5272_v47 = vsel %vm5069_vm8, %v5219_v63, %v12532_v62  ;;  %v12754_v7 = vld [vmem:[#allocation2 + $0x80] sm:$0xff] }
 0x3e2   : > { %9337 = vmatmul.msk.bf16.gmra.mxu1 %vm4982_vm6, %v12642_v35  ;;  %v6050_v0 = vor.u32 %v6049_v32, %v6046_v31  ;;  %v5900_v4 = vmul.f32 %v5859_v53, %v15358_v38  ;;  %5688 = vmatmul.bf16.gmra.mxu0 %v5272_v47  ;;  %v4341_v35 = vrot.slane %v12697_v18, 1  ;;  %v5110_v16 = vsel %vm5069_vm8, %v5054_v40, %v4534_v57  ;;  %v5548_v49 = vpop.f32.mrf.mxu3 }
 0x3e3   : > { %v3901_v30 = vsel %vm10855_vm13, %v3892_v48, %v3900_v1  ;;  %v3902_v3 = vrot.slane %v3900_v1, 4  ;;  %4480 = vrot.lane.b32.xlu0 %v12603_v34, %s9868_s13  ;;  %v4869_v52 = vsel %vm4797_vm0, %v12555_v8, %v12716_v37  ;;  %5585 = vmatmul.bf16.gmra.mxu3 %v5110_v16  ;;  %v4442_v57 = vrot.slane %v12661_v12, 1  ;;  %v15359_v1 = vld [vmem:[#allocation41_spill] sm:$0xff] }
 0x3e4   : > { %v6051_v29 = vsel %vm10855_vm13, %v6042_v20, %v6050_v0  ;;  %4024 = vst.msk [vmem:[#allocation2 + $0x98] sm:$0xf] %vm307_vm5, %v3901_v30  ;;  %v5941_v62 = vpack.c.bf16 %v5900_v4, %v5900_v4  ;;  %4926 = vrot.lane.b32.xlu1 %v4869_v52, %s9870_s15  ;;  %v4342_v48 = vsel %vm4194_vm14, %v12666_v6, %v4341_v35  ;;  %v4625_v6 = vrot.slane %v12690_v43, 1 }
 0x3e5   : > { %6431 = vst.msk [vmem:[#allocation2 + $0x24] sm:$0xf] %vm307_vm5, %v6051_v29  ;;  %v3911_v34 = vsel %vm10855_vm13, %v3902_v3, %v12678_v19  ;;  %v5769_v63 = vpop.f32.mrf.mxu1  ;;  %4396 = vrot.lane.b32.xlu2 %v4342_v48, %s9869_s14  ;;  %v12748_v19 = vld [vmem:[%s15067_s3] ss:$0 sm:$0xff]  ;;  %v4921_v22 = vpop.permute.xlu1 %4920  ;;  %v4968_v31 = vrot.slane %v12754_v7, 3  ;;  %v4626_v32 = vrot.slane %v12697_v18, 2  ;;  %v5547_v53 = vadd.f32 %v12383_v44, %v5546_v17 }
 0x3e6   : > { %4025 = vst.msk [vmem:[#allocation2 + $0x9c] sm:$0xf] %vm307_vm5, %v3911_v34  ;;  %v6054_v56 = vshrl.u32 %v5941_v62, 16  ;;  %v6057_v26 = vshll.u32 %v5941_v62, 16  ;;  %v5659_v8 = vpop.f32.mrf.mxu0  ;;  %v5770_v11 = vadd.f32 %v5769_v63, %v5657_v21  ;;  %v3366_v2 = vadd.f32 %v12748_v19, %v12647_v46 }
 0x3e7   : > { %v4777_v60 = vpop.permute.xlu0 %4776  ;;  %v6052_v27 = vrot.slane %v6050_v0, 4  ;;  %v12760_v38 = vor.u32 %v4626_v32, %v4625_v6  ;;  %v5660_v47 = vadd.f32 %v5659_v8, %v5547_v53  ;;  %v12769_v3 = vsel %vm734_vm1, %v4440_v28, %v4442_v57 }
 0x3e8   : > { %v6056_v20 = vrot.slane %v6054_v56, 6  ;;  %v6059_v61 = vrot.slane %v6057_v26, 7  ;;  %v5860_v50 = vmax.f32 %v5770_v11, 0.0  ;;  %v3407_v40 = vmax.f32 %v3366_v2, 0.0 }
 0x3e9   : > { %v4969_v0 = vsel %vm1779_vm3, %v4966_v5, %v4968_v31  ;;  %v12784_v28 = vsel %vm4552_vm15, %v12575_v24, %v12760_v38  ;;  %v5171_v29 = vsel %vm4982_vm6, %v12100_v36, %v12569_v15  ;;  %v5549_v8 = vadd.f32 %v12383_v44, %v5548_v49 }
 0x3ea   : > { %v6060_v46 = vor.u32 %v6059_v61, %v6056_v20  ;;  %v5901_v21 = vmul.f32 %v5860_v50, %v15359_v1  ;;  %v3448_v39 = vmin.f32 %v3407_v40, 6.0  ;;  %v5221_v5 = vsel %vm5026_vm7, %v5171_v29, %v4777_v60  ;;  %v319_v60 = vld [vmem:[#allocation2 + $0xa8] sm:$0x8] }
 0x3eb   : > { %v5275_v1 = vsel %vm5069_vm8, %v5221_v5, %v4921_v22  ;;  %v4345_v2 = vor.u32 %v12690_v43, %v4341_v35  ;;  %v4075_v35 = vld [vmem:[#allocation2 + $0xa0] sm:$0x7] }
 0x3ec   : > { %v6061_v4 = vsel %vm10855_vm13, %v6052_v27, %v6060_v46  ;;  %v5942_v30 = vpack.c.bf16 %v5901_v21, %v5901_v21  ;;  %4539 = vrot.lane.b32.xlu1 %v12769_v3, %s9870_s15  ;;  %v6062_v32 = vrot.slane %v6060_v46, 4  ;;  %v15363_v27 = vld [vmem:[#allocation42_spill] sm:$0xff]  ;;  %v4779_v46 = vpop.permute.xlu2 %4778 }
 0x3ed   : > { %6432 = vst.msk [vmem:[#allocation2 + $0x28] sm:$0xf] %vm307_vm5, %v6061_v4  ;;  %v5772_v17 = vpop.f32.mrf.mxu1  ;;  %v12779_v16 = vld [vmem:[#allocation2 + $0x98] sm:$0xff]  ;;  %v12790_v63 = vpop.permute.xlu1 %4721  ;;  %v3367_v4 = vadd.f32 %v12748_v19, %v12378_v59 }
 0x3ee   : > { %v6064_v62 = vshrl.u32 %v5942_v30, 16  ;;  %v6067_v52 = vshll.u32 %v5942_v30, 16  ;;  %v5661_v34 = vpop.f32.mrf.mxu0  ;;  %v5773_v48 = vadd.f32 %v5772_v17, %v5660_v47  ;;  %v4689_v26 = vrot.slane %v12779_v16, 2  ;;  %v5551_v47 = vpop.f32.mrf.mxu3 }
 0x3ef   : > { %v12792_v56 = vpop.permute.xlu0 %563  ;;  %v12796_v24 = vshll.u32 %v12779_v16, 16  ;;  %v12813_v61 = vshrl.u32 %v12779_v16, 16  ;;  %v5662_v22 = vadd.f32 %v5661_v34, %v5549_v8 }
 0x3f0   : > { %15360 = vst [vmem:[#allocation19_spill] sm:$0xff] %v12792_v56  ;;  %v6066_v11 = vrot.slane %v6064_v62, 6  ;;  %v6069_v36 = vrot.slane %v6067_v52, 7  ;;  %v5861_v15 = vmax.f32 %v5773_v48, 0.0  ;;  %v3489_v6 = vmul.f32 %v3448_v39, %v12792_v56  ;;  %v15386_v56 = vld [vmem:[#allocation52_spill] sm:$0xff] }
 0x3f1   : > { %v4690_v20 = vsel %vm1341_vm4, %v4687_v13, %v4689_v26  ;;  %v4871_v50 = vrot.slane %v12796_v24, 3  ;;  %v4870_v40 = vrot.slane %v12813_v61, 2  ;;  %v320_v13 = vsel %vm12801_vm10, 0, %v319_v60 }
 0x3f2   : > { %9338 = vmatmul.msk.bf16.gmra.mxu1 %vm4982_vm6, %v4969_v0  ;;  %v6070_v53 = vor.u32 %v6069_v36, %v6066_v11  ;;  %v5902_v49 = vmul.f32 %v5861_v15, %v15363_v27  ;;  %4729 = vrot.lane.b32.xlu2 %v4690_v20, %s9869_s14  ;;  %v3530_v21 = vpack.c.bf16 %v3489_v6, %v3489_v6  ;;  %v4349_v48 = vrot.slane %v12796_v24, 1 }
 0x3f3   : > { %4784 = vrot.lane.b32.xlu0 %v4690_v20, %s9868_s13  ;;  %5693 = vmatmul.bf16.gmra.mxu0 %v5275_v1  ;;  %321 = vst [vmem:[#allocation2 + $0xa8] sm:$0x8] %v320_v13  ;;  %v12828_v52 = vor.u32 %v4871_v50, %v4870_v40  ;;  %v3408_v50 = vmax.f32 %v3367_v4, 0.0  ;;  %v12856_v13 = vrot.slane %v12779_v16, 1 }
 0x3f4   : > { %v6071_v30 = vsel %vm10855_vm13, %v6062_v32, %v6070_v53  ;;  %v5943_v17 = vpack.c.bf16 %v5902_v49, %v5902_v49  ;;  %v3924_v0 = vshrl.u32 %v3530_v21, 16  ;;  %v3927_v29 = vshll.u32 %v3530_v21, 16  ;;  %v15364_v21 = vld [vmem:[#allocation39_spill] sm:$0xff] }
 0x3f5   : > { %6433 = vst.msk [vmem:[#allocation2 + $0x2c] sm:$0xf] %vm307_vm5, %v6071_v30  ;;  %v5774_v62 = vpop.f32.mrf.mxu1  ;;  %v4873_v34 = vsel %vm4797_vm0, %v12716_v37, %v12828_v52  ;;  %v4391_v8 = vpop.permute.xlu1 %4390  ;;  %v3922_v32 = vrot.slane %v12704_v41, 4  ;;  %v4350_v37 = vsel %vm4194_vm14, %v4345_v2, %v4349_v48  ;;  %v5552_v49 = vadd.f32 %v12383_v44, %v5551_v47  ;;  %v9831_v30 = vld [vmem:[#allocation2 + $0x70] sm:$0xff] }
 0x3f6   : > { %v6074_v39 = vshrl.u32 %v5943_v17, 16  ;;  %v6077_v5 = vshll.u32 %v5943_v17, 16  ;;  %v5664_v59 = vpop.f32.mrf.mxu0  ;;  %v5775_v19 = vadd.f32 %v5774_v62, %v5662_v22  ;;  %v3926_v11 = vrot.slane %v3924_v0, 6  ;;  %4928 = vrot.lane.b32.xlu1 %v4873_v34, %s9870_s15  ;;  %v4477_v0 = vpop.permute.xlu2 %4476 }
 0x3f7   : > { %v3929_v36 = vrot.slane %v3927_v29, 7  ;;  %v4923_v15 = vpop.permute.xlu0 %4922  ;;  %v6072_v1 = vrot.slane %v6070_v53, 4  ;;  %v5174_v41 = vsel %vm4982_vm6, %v12191_v51, %v12790_v63  ;;  %v4970_v53 = vrot.slane %v12504_v23, 3  ;;  %v5553_v29 = vpop.f32.mrf.mxu3  ;;  %v4085_v23 = vld [vmem:[#allocation2 + $0xb0] sm:$0xf] }
 0x3f8   : > { %v6076_v60 = vrot.slane %v6074_v39, 6  ;;  %v6079_v6 = vrot.slane %v6077_v5, 7  ;;  %v5862_v20 = vmax.f32 %v5775_v19, 0.0  ;;  %v5012_v22 = vsel %vm4982_vm6, %v9831_v30, %v4391_v8 }
 0x3f9   : > { %v12839_v27 = vor.u32 %v3929_v36, %v3926_v11  ;;  %v4192_v63 = vunpack.c.l.b16 %v4075_v35  ;;  %v3449_v17 = vmin.f32 %v3408_v50, 6.0  ;;  %v12868_v19 = vsel %vm734_vm1, %v4442_v57, %v12856_v13 }
 0x3fa   : > { %v6080_v18 = vor.u32 %v6079_v6, %v6076_v60  ;;  %v5903_v43 = vmul.f32 %v5862_v20, %v15364_v21  ;;  %4398 = vrot.lane.b32.xlu2 %v4350_v37, %s9869_s14  ;;  %v5056_v36 = vsel %vm5026_vm7, %v5012_v22, %v4477_v0  ;;  %v5223_v34 = vsel %vm5026_vm7, %v5174_v41, %v4779_v46 }
 0x3fb   : > { %4482 = vrot.lane.b32.xlu0 %v12769_v3, %s9868_s13  ;;  %v3931_v40 = vsel %vm10855_vm13, %v3922_v32, %v12839_v27  ;;  %v5665_v3 = vadd.f32 %v5664_v59, %v5552_v49  ;;  %v4971_v8 = vsel %vm1779_vm3, %v4968_v31, %v4970_v53  ;;  %v5554_v20 = vadd.f32 %v12383_v44, %v5553_v29  ;;  %v15366_v49 = vld [vmem:[#allocation47_spill] sm:$0xff] }
 0x3fc   : > { %v6081_v4 = vsel %vm10855_vm13, %v6072_v1, %v6080_v18  ;;  %4027 = vst.msk [vmem:[#allocation2 + $0xa4] sm:$0xf] %vm307_vm5, %v3931_v40  ;;  %v5944_v47 = vpack.c.bf16 %v5903_v43, %v5903_v43  ;;  %v5278_v46 = vsel %vm5069_vm8, %v5223_v34, %v4923_v15  ;;  %v12886_v7 = vpack.c.b16 %v4192_v63, %v4192_v63 }
 0x3fd   : > { %6434 = vst.msk [vmem:[#allocation2 + $0x30] sm:$0xf] %vm307_vm5, %v6081_v4  ;;  %v5777_v51 = vpop.f32.mrf.mxu1  ;;  %v12870_v59 = vpop.permute.xlu1 %568  ;;  %v6082_v31 = vrot.slane %v6080_v18, 4  ;;  %v3932_v34 = vrot.slane %v12839_v27, 4  ;;  %v4630_v27 = vrot.slane %v12796_v24, 2 }
 0x3fe   : > { %v6084_v62 = vshrl.u32 %v5944_v47, 16  ;;  %v6087_v39 = vshll.u32 %v5944_v47, 16  ;;  %v5778_v5 = vadd.f32 %v5777_v51, %v5665_v3  ;;  %15365 = vst [vmem:[#allocation14_spill] sm:$0xff] %v12870_v59  ;;  %4541 = vrot.lane.b32.xlu1 %v12868_v19, %s9870_s15  ;;  %v3490_v57 = vmul.f32 %v3449_v17, %v12870_v59  ;;  %v5666_v50 = vpop.f32.mrf.mxu0 }
 0x3ff   : > { %v4536_v11 = vpop.permute.xlu0 %4535  ;;  %v5667_v35 = vadd.f32 %v5666_v50, %v5554_v20  ;;  %v4355_v47 = vshll.u32 %v12886_v7, 16  ;;  %v4629_v20 = vrot.slane %v12813_v61, 1 }
 0x400   : > { %v6086_v2 = vrot.slane %v6084_v62, 6  ;;  %v6089_v60 = vrot.slane %v6087_v39, 7  ;;  %v5863_v6 = vmax.f32 %v5778_v5, 0.0  ;;  %v5113_v32 = vsel %vm5069_vm8, %v5056_v36, %v4536_v11  ;;  %v9712_v36 = vld [vmem:[%s15070_s6 + $0x18] sm:$0xff] }
 0x401   : > { %v3531_v21 = vpack.c.bf16 %v3490_v57, %v3490_v57  ;;  %5590 = vmatmul.bf16.gmra.mxu3 %v5113_v32  ;;  %7943 = vmatpush.bf16.msrb.mxu2 %v9712_v36 }
 0x402   : > { %9339 = vmatmul.msk.bf16.gmra.mxu1 %vm4982_vm6, %v4971_v8  ;;  %v6090_v37 = vor.u32 %v6089_v60, %v6086_v2  ;;  %v5904_v1 = vmul.f32 %v5863_v6, %v15366_v49  ;;  %v5556_v8 = vpop.f32.mrf.mxu3  ;;  %v15367_v2 = vmov 0  ;;  %v4031_v60 = vld [vmem:[#allocation2 + $0xa8] sm:$0xf] }
 0x403   : > { %5698 = vmatmul.bf16.gmra.mxu0 %v5278_v46  ;;  %v12889_v43 = vld [vmem:[#allocation2 + $0xa0] sm:$0xff]  ;;  %v3934_v15 = vshrl.u32 %v3531_v21, 16  ;;  %v3937_v40 = vshll.u32 %v3531_v21, 16  ;;  %v15368_v2 = vsel %vm12917_vm12, 4294967295, %v15367_v2  ;;  %v4353_v21 = vor.u32 %v12813_v61, %v4349_v48 }
 0x404   : > { %v6091_v44 = vsel %vm10855_vm13, %v6082_v31, %v6090_v37  ;;  %v5945_v41 = vpack.c.bf16 %v5904_v1, %v5904_v1  ;;  %v12895_v18 = vrot.slane %v12889_v43, 2  ;;  %v4634_v3 = vshrl.u32 %v12889_v43, 16  ;;  %15369 = vst [vmem:[#allocation45_spill] sm:$0xff] %v15368_v2  ;;  %v15370_v46 = vld [vmem:[#allocation44_spill] sm:$0xff] }
 0x405   : > { %6435 = vst.msk [vmem:[#allocation2 + $0x34] sm:$0xf] %vm307_vm5, %v6091_v44  ;;  %v5779_v4 = vpop.f32.mrf.mxu1  ;;  %v3936_v51 = vrot.slane %v3934_v15, 6  ;;  %v3939_v17 = vrot.slane %v3937_v40, 7  ;;  %v4637_v29 = vshll.u32 %v12889_v43, 16  ;;  %v6092_v50 = vrot.slane %v6090_v37, 4 }
 0x406   : > { %v6094_v30 = vshrl.u32 %v5945_v41, 16  ;;  %v6097_v22 = vshll.u32 %v5945_v41, 16  ;;  %v5780_v63 = vadd.f32 %v5779_v4, %v5667_v35  ;;  %v4692_v0 = vsel %vm1341_vm4, %v4689_v26, %v12895_v18  ;;  %v9720_v26 = vld [vmem:[%s15070_s6 + $0x58] sm:$0xff] }
 0x407   : > { %v4874_v62 = vrot.slane %v4634_v3, 2  ;;  %4731 = vrot.lane.b32.xlu2 %v4692_v0, %s9869_s14  ;;  %4786 = vrot.lane.b32.xlu0 %v4692_v0, %s9868_s13  ;;  %v3940_v6 = vor.u32 %v3939_v17, %v3936_v51  ;;  %v4875_v57 = vrot.slane %v4637_v29, 3  ;;  %v12933_v44 = vrot.slane %v4355_v47, 1  ;;  %v9725_v51 = vld [vmem:[%s15070_s6 + $0x80] sm:$0xff] }
 0x408   : > { %v6096_v39 = vrot.slane %v6094_v30, 6  ;;  %v6099_v5 = vrot.slane %v6097_v22, 7  ;;  %v5864_v11 = vmax.f32 %v5780_v63, 0.0  ;;  %8056 = vmatpush.bf16.msrb.mxu3 %v9720_v26  ;;  %v4972_v15 = vrot.slane %v12661_v12, 3  ;;  %8172 = vmatpush.bf16.msrb.mxu0 %v9725_v51 }
 0x409   : > { %v3941_v49 = vsel %vm10855_vm13, %v3932_v34, %v3940_v6  ;;  %v12928_v1 = vor.u32 %v4875_v57, %v4874_v62  ;;  %v12945_v4 = vor.u32 %v4630_v27, %v4629_v20  ;;  %v4358_v47 = vsel %vm4194_vm14, %v4353_v21, %v12933_v44  ;;  %v4086_v62 = vld [vmem:[#allocation2 + $0xb4] sm:$0x1] }
 0x40a   : > { %v6100_v32 = vor.u32 %v6099_v5, %v6096_v39  ;;  %v5905_v31 = vmul.f32 %v5864_v11, %v15370_v46  ;;  %v4032_v35 = vsel %vm12917_vm12, %v3941_v49, %v4031_v60  ;;  %v4503_v17 = vrot.slane %v12889_v43, 1 }
 0x40b   : > { %v4877_v40 = vsel %vm4797_vm0, %v12828_v52, %v12928_v1  ;;  %4033 = vst [vmem:[#allocation2 + $0xa8] sm:$0xf] %v4032_v35  ;;  %v4973_v52 = vsel %vm1779_vm3, %v4970_v53, %v4972_v15  ;;  %v12963_v63 = vsel %vm4552_vm15, %v12760_v38, %v12945_v4  ;;  %v5558_v53 = vpop.f32.mrf.mxu3  ;;  %v12975_v38 = vld [vmem:[%s15069_s5] ss:$0 sm:$0xff]  ;;  %v12985_v34 = vunpack.c.l.b16 %v4085_v23 }
 0x40c   : > { %v6101_v37 = vsel %vm10855_vm13, %v6092_v50, %v6100_v32  ;;  %v5946_v41 = vpack.c.bf16 %v5905_v31, %v5905_v31  ;;  %4930 = vrot.lane.b32.xlu1 %v4877_v40, %s9870_s15  ;;  %v5557_v5 = vadd.f32 %v12975_v38, %v5556_v8  ;;  %v4504_v11 = vsel %vm734_vm1, %v12856_v13, %v4503_v17 }
 0x40d   : > { %6436 = vst.msk [vmem:[#allocation2 + $0x38] sm:$0xf] %vm307_vm5, %v6101_v37  ;;  %v5782_v24 = vpop.f32.mrf.mxu1  ;;  %v4795_v60 = vunpack.c.l.b16 %v4086_v62  ;;  %v15143_v51 = vrot.slane %v12779_v16, 3  ;;  %v15371_v62 = vld [vmem:[#allocation43_spill] sm:$0xff] }
 0x40e   : > { %v6104_v61 = vshrl.u32 %v5946_v41, 16  ;;  %v6107_v48 = vshll.u32 %v5946_v41, 16 }
 0x40f   : > { %4400 = vrot.lane.b32.xlu2 %v4358_v47, %s9869_s14  ;;  %4484 = vrot.lane.b32.xlu0 %v12868_v19, %s9868_s13  ;;  %v6102_v19 = vrot.slane %v6100_v32, 4  ;;  %v13005_v47 = vld [vmem:[#allocation2] sm:$0xff]  }
 0x410   : > { %v6106_v30 = vrot.slane %v6104_v61, 6  ;;  %v6109_v22 = vrot.slane %v6107_v48, 7  ;;  %v13003_v61 = vpack.c.b16 %v4795_v60, %v12985_v34  ;;  %v6630_v60 = vshll.u32 %v13005_v47, 16 }
 0x412   : > { %9340 = vmatmul.msk.bf16.gmra.mxu1 %vm4982_vm6, %v4973_v52  ;;  %v12967_v0 = vor.u32 %v6109_v22, %v6106_v30  ;;  %v12983_v26 = vld [vmem:[#allocation2 + $0xa8] sm:$0xff]   ;;  %v13007_v30 = vpop.permute.xlu2 %4723  ;;  %v15141_v52 = vrot.slane %v12886_v7, 1 }
 0x413   : > { %v4748_v57 = vrot.slane %v12983_v26, 2  ;;  %v9745_v8 = vunpack.c.l.b16 %v12983_v26  ;;  %v4879_v20 = vshrl.u32 %v12983_v26, 16  ;;  %v4882_v50 = vshll.u32 %v12983_v26, 16  ;;  %v4080_v32 = vld [vmem:[#allocation2 + $0xa8] sm:$0x7]  ;;  %v5561_v23 = vpop.f32.mrf.mxu3 }
 0x414   : > { %v6111_v39 = vsel %vm10855_vm13, %v6102_v19, %v12967_v0  ;;  %4543 = vrot.lane.b32.xlu1 %v4504_v11, %s9870_s15  ;;  %v4497_v35 = vunpack.c.l.b16 %v4080_v32  ;;  %v5559_v19 = vadd.f32 %v12975_v38, %v5558_v53  ;;  %v4891_v53 = vshll.u32 %v13003_v61, 16  ;;  %v13032_v32 = vld [vmem:[#allocation2] sm:$0xe] }
 0x415   : > { %6437 = vst.msk [vmem:[#allocation2 + $0x3c] sm:$0xf] %vm307_vm5, %v6111_v39  ;;  %v5784_v36 = vpop.f32.mrf.mxu1  ;;  %v4749_v31 = vsel %vm1341_vm4, %v12895_v18, %v4748_v57  ;;  %v12996_v27 = vpack.c.b16 %v9745_v8, %v9745_v8  ;;  %v4881_v49 = vrot.slane %v4879_v20, 2  ;;  %v4884_v21 = vrot.slane %v4882_v50, 3  ;;  %v13030_v50 = vld [vmem:[#allocation2] sm:$0xf0] }
 0x416   : > { %v5669_v6 = vpop.f32.mrf.mxu0  ;;  %v13023_v11 = vpack.c.b16 %v4497_v35, %v4497_v35 }
 0x417   : > { %v5670_v46 = vadd.f32 %v5669_v6, %v5557_v5  ;;  %4788 = vrot.lane.b32.xlu0 %v4749_v31, %s9868_s13  ;;  %v15144_v41 = vrot.slane %v12996_v27, 2  ;;  %v13000_v40 = vor.u32 %v4884_v21, %v4881_v49  ;;  %v4975_v31 = vsel %vm1779_vm3, %v4972_v15, %v15143_v51 }
 0x418   : > { %v4359_v49 = vshrl.u32 %v12886_v7, 16  ;;  %v4745_v21 = vpack.c.b16 %v12985_v34, %v12985_v34 }
 0x419   : > { %v5783_v37 = vadd.f32 %v5782_v24, %v5670_v46  ;;  %v4694_v24 = vsel %vm1341_vm4, %v12895_v18, %v15144_v41  ;;  %v4886_v22 = vsel %vm4797_vm0, %v12928_v1, %v13000_v40  ;;  %v4888_v1 = vshrl.u32 %v13003_v61, 16 }
 0x41a   : > { %4733 = vrot.lane.b32.xlu2 %v4694_v24, %s9869_s14  ;;  %v4447_v46 = vsel %vm734_vm1, %v12856_v13, %v15141_v52  ;;  %v15142_v13 = vrot.slane %v13023_v11, 1  ;;  %v13049_v24 = vld [vmem:[#allocation2 + $0x8] sm:$0xff]   ;;  %v4361_v12 = vor.u32 %v4359_v49, %v12933_v44  ;;  %v6112_v49 = vrot.slane %v12967_v0, 4  ;;  %v15372_v52 = vld [vmem:[#allocation50_spill] sm:$0xff] }
 0x41b   : > { %v5865_v48 = vmax.f32 %v5783_v37, 0.0  ;;  %v4890_v15 = vrot.slane %v4888_v1, 2 }
 0x41c   : > { %4932 = vrot.lane.b32.xlu1 %v4886_v22, %s9870_s15  ;;  %v13051_v22 = vld [vmem:[#allocation2 + $0x8] sm:$0xe] }
 0x41d   : > { %v5906_v39 = vmul.f32 %v5865_v48, %v15371_v62  ;;  %v13021_v5 = vpop.f32.mrf.mxu1  ;;  %v13058_v62 = vld [vmem:[#allocation2 + $0x18] sm:$0xff] }
 0x41e   : > { %v5671_v18 = vpop.f32.mrf.mxu0  ;;  %v13081_v0 = vshrl.u32 %v13058_v62, 16 }
 0x41f   : > { %v5947_v6 = vpack.c.bf16 %v5906_v39, %v5906_v39  ;;  %v5672_v8 = vadd.f32 %v5671_v18, %v5559_v19  ;;  %4486 = vrot.lane.b32.xlu0 %v4447_v46, %s9868_s13  ;;  %v13054_v19 = vrot.slane %v6630_v60, 1  ;;  %v13062_v46 = vrot.slane %v4745_v21, 2  ;;  %v13067_v60 = vld [vmem:[#allocation2 + $0x20] sm:$0xff] }
 0x420   : > { %v13099_v1 = vshll.u32 %v13067_v60, 16  ;;  %v13102_v51 = vshrl.u32 %v13067_v60, 16 }
 0x421   : > { %v6114_v37 = vshrl.u32 %v5947_v6, 16  ;;  %v6117_v35 = vshll.u32 %v5947_v6, 16  ;;  %v5785_v48 = vadd.f32 %v5784_v36, %v5672_v8  ;;  %v4893_v6 = vrot.slane %v4891_v53, 3  ;;  %v13060_v8 = vld [vmem:[#allocation2 + $0x10] sm:$0xff]  }
 0x422   : > { %9341 = vmatmul.msk.bf16.gmra.mxu1 %vm4982_vm6, %v4975_v31  ;;  %v6635_v31 = vshll.u32 %v13049_v24, 16  ;;  %4402 = vrot.lane.b32.xlu2 %v4361_v12, %s9869_s14  ;;  %v4506_v53 = vsel %vm734_vm1, %v4503_v17, %v15142_v13  ;;  %v15147_v44 = vshll.u32 %v13060_v8, 16  ;;  %v13084_v12 = vpop.permute.xlu2 %4392  ;;  %v4751_v13 = vsel %vm1341_vm4, %v4748_v57, %v13062_v46 }
 0x423   : > { %v6116_v36 = vrot.slane %v6114_v37, 6  ;;  %v6119_v39 = vrot.slane %v6117_v35, 7  ;;  %v5866_v18 = vmax.f32 %v5785_v48, 0.0  ;;  %v5562_v35 = vadd.f32 %v12975_v38, %v5561_v23 }
 0x424   : > { %4545 = vrot.lane.b32.xlu1 %v4506_v53, %s9870_s15  ;;  %v13091_v23 = vshll.u32 %v13058_v62, 16 }
 0x425   : > { %v6120_v34 = vor.u32 %v6119_v39, %v6116_v36  ;;  %v5907_v37 = vmul.f32 %v5866_v18, %v15372_v52  ;;  %v5789_v21 = vpop.f32.mrf.mxu1  ;;  %v15146_v52 = vshrl.u32 %v13060_v8, 16  ;;  %v5563_v36 = vpop.f32.mrf.mxu3  ;;  %v13088_v18 = vor.u32 %v4893_v6, %v4890_v15 }
 0x426   : > { %v5674_v48 = vpop.f32.mrf.mxu0  ;;  %v4636_v6 = vrot.slane %v4634_v3, 1  ;;  %v5564_v3 = vadd.f32 %v12975_v38, %v5563_v36  ;;  %v7000_v36 = vrot.slane %v13102_v51, 1 }
 0x427   : > { %v6121_v39 = vsel %vm10855_vm13, %v6112_v49, %v6120_v34  ;;  %v5948_v17 = vpack.c.bf16 %v5907_v37, %v5907_v37  ;;  %v5675_v53 = vadd.f32 %v5674_v48, %v5562_v35  ;;  %4790 = vrot.lane.b32.xlu0 %v4751_v13, %s9868_s13  ;;  %v4639_v37 = vrot.slane %v4637_v29, 2 }
 0x428   : > { %6438 = vst.msk [vmem:[#allocation2 + $0x40] sm:$0xf] %vm307_vm5, %v6121_v39  ;;  %v6992_v57 = vrot.slane %v15146_v52, 1  ;;  %v6993_v48 = vrot.slane %v15147_v44, 2  ;;  %v6996_v39 = vrot.slane %v13081_v0, 1  ;;  %v4895_v29 = vsel %vm4797_vm0, %v13000_v40, %v13088_v18 }
 0x429   : > { %v6124_v49 = vshrl.u32 %v5948_v17, 16  ;;  %v6127_v15 = vshll.u32 %v5948_v17, 16  ;;  %v5788_v35 = vadd.f32 %v13021_v5, %v5675_v53  ;;  %v13116_v41 = vor.u32 %v4639_v37, %v4636_v6  ;;  %v15374_v6 = vld [vmem:[#allocation48_spill] sm:$0xff] }
 0x42a   : > { %v6997_v5 = vrot.slane %v13091_v23, 2  ;;  %v6122_v53 = vrot.slane %v6120_v34, 4  ;;  %v13141_v44 = vpop.permute.xlu2 %4725 }
 0x42b   : > { %v6126_v20 = vrot.slane %v6124_v49, 6  ;;  %v6129_v17 = vrot.slane %v6127_v15, 7  ;;  %v5867_v2 = vmax.f32 %v5788_v35, 0.0  ;;  %v15373_v49 = vrot.slane %v12996_v27, 2 }
 0x42c   : > { %v13131_v15 = vsel %vm4552_vm15, %v12945_v4, %v13116_v41  ;;  %4934 = vrot.lane.b32.xlu1 %v4895_v29, %s9870_s15  ;;  %v6998_v34 = vor.u32 %v6997_v5, %v6996_v39  ;;  %v15377_v39 = vrot.slane %v12779_v16, 3 }
 0x42d   : > { %v13123_v52 = vor.u32 %v6129_v17, %v6126_v20  ;;  %4735 = vrot.lane.b32.xlu2 %v15373_v49, %s9869_s14  ;;  %v5908_v37 = vmul.f32 %v5867_v2, %v15374_v6  ;;  %v13136_v35 = vpop.f32.mrf.mxu1  ;;  %v13138_v20 = vor.u32 %v6993_v48, %v6992_v57  ;;  %v7001_v17 = vrot.slane %v13099_v1, 2  ;;  %v5566_v49 = vpop.f32.mrf.mxu3 }
 0x42e   : > { %v5676_v40 = vpop.f32.mrf.mxu0  ;;  %v15375_v2 = vshrl.u32 %v13005_v47, 16  ;;  %v6637_v6 = vrot.slane %v6635_v31, 1  ;;  %v15376_v48 = vrot.slane %v12889_v43, 3  ;;  %v15378_v47 = vrot.slane %v12886_v7, 1 }
 0x42f   : > { %v6131_v4 = vsel %vm10855_vm13, %v6122_v53, %v13123_v52  ;;  %v5677_v13 = vadd.f32 %v5676_v40, %v5564_v3  ;;  %v5949_v57 = vpack.c.bf16 %v5908_v37, %v5908_v37  ;;  %v13157_v59 = vsel %vm4552_vm15, %v13138_v20, %v6998_v34  ;;  %v9711_v37 = vld [vmem:[%s15070_s6 + $0x10] sm:$0xff] }
 0x430   : > { %v6633_v29 = vor.u32 %v13054_v19, %v15375_v2  ;;  %6439 = vst.msk [vmem:[#allocation2 + $0x44] sm:$0xf] %vm307_vm5, %v6131_v4  ;;  %v4977_v5 = vsel %vm1779_vm3, %v15377_v39, %v15376_v48  ;;  %v13159_v53 = vor.u32 %v7001_v17, %v7000_v36  ;;  %4488 = vrot.lane.b32.xlu0 %v15378_v47, %s9868_s13  ;;  %v15379_v19 = vunpack.c.l.b16 %v13051_v22 }
 0x431   : > { %v5790_v3 = vadd.f32 %v5789_v21, %v5677_v13  ;;  %v15380_v31 = vunpack.c.h.b16 %v13049_v24  ;;  %v9719_v21 = vld [vmem:[%s15070_s6 + $0x50] sm:$0xff]  ;;  %v6515_v13 = vld [vmem:[#allocation2 + $0x8] sm:$0xc]  ;;  %v6134_v36 = vshrl.u32 %v5949_v57, 16  ;;  %v6137_v7 = vshll.u32 %v5949_v57, 16  ;;  %v4781_v40 = vpop.permute.xlu0 %4780  ;;  %7944 = vmatpush.bf16.msrb.mxu2 %v9711_v37 }
 0x432   : > { %9342 = vmatmul.msk.bf16.gmra.mxu1 %vm4982_vm6, %v4977_v5  ;;  %v13179_v17 = vsel %vm4552_vm15, %v6998_v34, %v13159_v53  ;;  %v13182_v4 = vrot.slane %v13060_v8, 1  ;;  %v15381_v2 = vor.u32 %v13032_v32, %v13030_v50  ;;  %v15149_v39 = vrot.slane %v13049_v24, 1  ;;  %8057 = vmatpush.bf16.msrb.mxu3 %v9719_v21 }
 0x433   : > { %v13169_v16 = vpack.c.b16 %v15380_v31, %v15379_v19  ;;  %v5868_v22 = vmax.f32 %v5790_v3, 0.0  ;;  %v6136_v5 = vrot.slane %v6134_v36, 6  ;;  %v6139_v47 = vrot.slane %v6137_v7, 7  ;;  %v15382_v3 = vld [vmem:[#allocation46_spill] sm:$0xff] }
 0x434   : > { %v6839_v48 = vrot.slane %v15381_v2, 1  ;;  %v6638_v57 = vsel %vm4194_vm14, %v6633_v29, %v6637_v6  ;;  %v7083_v19 = vunpack.c.l.b16 %v6515_v13  ;;  %v5177_v34 = vsel %vm4982_vm6, %v12259_v14, %v13007_v30  ;;  %v13196_v2 = vld [vmem:[#allocation2 + $0x28] sm:$0xff] }
 0x435   : > { %v5909_v31 = vmul.f32 %v5868_v22, %v15382_v3  ;;  %6794 = vrot.lane.b32.xlu2 %v6638_v57, %s9869_s14  ;;  %v6933_v50 = vrot.slane %v13169_v16, 1  ;;  %v6639_v32 = vshrl.u32 %v13049_v24, 16  ;;  %v5567_v37 = vadd.f32 %v12975_v38, %v5566_v49 }
 0x436   : > { %v6132_v21 = vrot.slane %v13123_v52, 4  ;;  %v6140_v29 = vor.u32 %v6139_v47, %v6136_v5  ;;  %v5225_v13 = vsel %vm5026_vm7, %v5177_v34, %v4781_v40  ;;  %v15383_v14 = vrot.slane %v13023_v11, 1  ;;  %v4925_v30 = vpop.permute.xlu1 %4924  ;;  %v5679_v7 = vpop.f32.mrf.mxu0  ;;  %v6516_v52 = vld [vmem:[#allocation2 + $0x10] sm:$0xc] }
 0x437   : > { %v5950_v36 = vpack.c.bf16 %v5909_v31, %v5909_v31  ;;  %v5281_v22 = vsel %vm5069_vm8, %v5225_v13, %v4925_v30  ;;  %v6934_v57 = vsel %vm734_vm1, %v6933_v50, %v13182_v4  ;;  %v6841_v49 = vsel %vm734_vm1, %v6839_v48, %v15149_v39  ;;  %v5794_v5 = vpop.f32.mrf.mxu1  ;;  %v5568_v31 = vpop.f32.mrf.mxu3 }
 0x438   : > { %4547 = vrot.lane.b32.xlu1 %v15383_v14, %s9870_s15  ;;  %v6141_v40 = vsel %vm10855_vm13, %v6132_v21, %v6140_v29  ;;  %v5680_v47 = vadd.f32 %v5679_v7, %v5567_v37  ;;  %5703 = vmatmul.bf16.gmra.mxu0 %v5281_v22  ;;  %v6641_v11 = vor.u32 %v6639_v32, %v6637_v6  ;;  %v15384_v34 = vunpack.c.h.b16 %v13049_v24  ;;  %v13216_v13 = vpop.permute.xlu2 %4394 }
 0x439   : > { %6440 = vst.msk [vmem:[#allocation2 + $0x48] sm:$0xf] %vm307_vm5, %v6141_v40  ;;  %v6144_v50 = vshrl.u32 %v5950_v36, 16  ;;  %v6147_v14 = vshll.u32 %v5950_v36, 16  ;;  %4792 = vrot.lane.b32.xlu0 %v13062_v46, %s9868_s13  ;;  %v15385_v48 = vshll.u32 %v13060_v8, 16  ;;  %v13226_v6 = vshrl.u32 %v13196_v2, 16  ;;  %v4479_v22 = vpop.permute.xlu0 %4478 }
 0x43a   : > { %v13214_v3 = vpack.c.b16 %v15384_v34, %v7083_v19  ;;  %v5793_v19 = vadd.f32 %v13136_v35, %v5680_v47  ;;  %v7171_v37 = vunpack.c.l.b16 %v6516_v52  ;;  %v13231_v30 = vshll.u32 %v13196_v2, 16  ;;  %v9833_v34 = vld [vmem:[#allocation2 + $0x78] sm:$0xff] }
 0x43b   : > { %v13223_v21 = vrot.slane %v15385_v48, 1  ;;  %v6146_v7 = vrot.slane %v6144_v50, 6  ;;  %v6149_v36 = vrot.slane %v6147_v14, 7  ;;  %v4643_v40 = vshrl.u32 %v12996_v27, 16 }
 0x43c   : > { %v5014_v48 = vsel %vm4982_vm6, %v9833_v34, %v13084_v12  ;;  %v5569_v39 = vadd.f32 %v12975_v38, %v5568_v31  ;;  %v5869_v35 = vmax.f32 %v5793_v19, 0.0  ;;  %v4646_v47 = vshll.u32 %v12996_v27, 16 }
 0x43d   : > { %v6142_v52 = vrot.slane %v6140_v29, 4  ;;  %v6150_v32 = vor.u32 %v6149_v36, %v6146_v7  ;;  %6939 = vrot.lane.b32.xlu2 %v6934_v57, %s9870_s15  ;;  %v4645_v50 = vrot.slane %v4643_v40, 1  ;;  %v7004_v14 = vrot.slane %v13226_v6, 1 }
 0x43e   : > { %v5910_v46 = vmul.f32 %v5869_v35, %v15386_v56  ;;  %v5058_v55 = vsel %vm5026_vm7, %v5014_v48, %v4479_v22  ;;  %v4648_v34 = vrot.slane %v4646_v47, 2  ;;  %v7005_v31 = vrot.slane %v13231_v30, 2  ;;  %v5681_v29 = vpop.f32.mrf.mxu0 }
 0x43f   : > { %v6151_v27 = vsel %vm10855_vm13, %v6142_v52, %v6150_v32  ;;  %v15387_v19 = vrot.slane %v12983_v26, 3  ;;  %v15388_v7 = vrot.slane %v12889_v43, 3  ;;  %v15389_v36 = vunpack.c.h.b16 %v13060_v8 }
 0x440   : > { %4936 = vrot.lane.b32.xlu1 %v13088_v18, %s9870_s15  ;;  %v4538_v12 = vpop.permute.xlu1 %4537  ;;  %6441 = vst.msk [vmem:[#allocation2 + $0x4c] sm:$0xf] %vm307_vm5, %v6151_v27  ;;  %v5951_v18 = vpack.c.bf16 %v5910_v46, %v5910_v46  ;;  %v5682_v40 = vadd.f32 %v5681_v29, %v5569_v39  ;;  %v13257_v48 = vor.u32 %v4648_v34, %v4645_v50  ;;  %v13259_v35 = vpop.permute.xlu2 %4727  ;;  %v7086_v43 = vrot.slane %v13060_v8, 2 }
 0x441   : > { %v5116_v57 = vsel %vm5069_vm8, %v5058_v55, %v4538_v12  ;;  %v4979_v56 = vsel %vm1779_vm3, %v15388_v7, %v15387_v19  ;;  %v7174_v22 = vpack.c.b16 %v15389_v36, %v7171_v37  ;;  %6880 = vrot.lane.b32.xlu0 %v6841_v49, %s9868_s13  ;;  %v6646_v55 = vsel %vm4194_vm14, %v6641_v11, %v13223_v21  ;;  %v5797_v46 = vpop.f32.mrf.mxu1  ;;  %v5571_v27 = vpop.f32.mrf.mxu3  ;;  %v13288_v19 = vld [vmem:[#allocation2 + $0x30] sm:$0xff] }
 0x442   : > { %5595 = vmatmul.bf16.gmra.mxu3 %v5116_v57  ;;  %9343 = vmatmul.msk.bf16.gmra.mxu1 %vm4982_vm6, %v4979_v56  ;;  %v13266_v47 = vor.u32 %v7005_v31, %v7004_v14  ;;  %v6154_v37 = vshrl.u32 %v5951_v18, 16  ;;  %v6157_v52 = vshll.u32 %v5951_v18, 16  ;;  %v5795_v39 = vadd.f32 %v5794_v5, %v5682_v40 }
 0x443   : > { %v13271_v50 = vsel %vm4552_vm15, %v13116_v41, %v13257_v48  ;;  %v7085_v49 = vrot.slane %v13214_v3, 2  ;;  %v13275_v12 = vrot.slane %v13058_v62, 2  ;;  %v7229_v34 = vshrl.u32 %v7174_v22, 16 }
 0x444   : > { %v7232_v11 = vshll.u32 %v7174_v22, 16  ;;  %v6156_v29 = vrot.slane %v6154_v37, 6  ;;  %v6159_v14 = vrot.slane %v6157_v52, 7  ;;  %v5870_v31 = vmax.f32 %v5795_v39, 0.0 }
 0x445   : > { %v13280_v5 = vsel %vm4552_vm15, %v13159_v53, %v13266_v47  ;;  %6796 = vrot.lane.b32.xlu2 %v6646_v55, %s9869_s14  ;;  %v7087_v41 = vsel %vm1341_vm4, %v7085_v49, %v7086_v43  ;;  %v7236_v3 = vrot.slane %v13081_v0, 2  ;;  %v7237_v57 = vrot.slane %v13091_v23, 3 }
 0x446   : > { %v6152_v7 = vrot.slane %v6150_v32, 4  ;;  %v6160_v56 = vor.u32 %v6159_v14, %v6156_v29  ;;  %v5911_v36 = vmul.f32 %v5870_v31, %v11280_v58  ;;  %v7177_v53 = vrot.slane %v7174_v22, 2 }
 0x447   : > { %v7231_v18 = vrot.slane %v7229_v34, 2  ;;  %v7234_v40 = vrot.slane %v7232_v11, 3  ;;  %v15152_v39 = vrot.slane %v13058_v62, 1  ;;  %v13299_v32 = vor.u32 %v7237_v57, %v7236_v3 }
 0x448   : > { %7126 = vrot.lane.b32.xlu1 %v7087_v41, %s9869_s14  ;;  %v6161_v55 = vsel %vm10855_vm13, %v6152_v7, %v6160_v56  ;;  %v5952_v37 = vpack.c.bf16 %v5911_v36, %v5911_v36  ;;  %v7178_v52 = vsel %vm1341_vm4, %v7177_v53, %v13275_v12  ;;  %v13302_v58 = vshrl.u32 %v13288_v19, 16  ;;  %v13307_v11 = vpop.permute.xlu2 %4396 }
 0x449   : > { %6442 = vst.msk [vmem:[#allocation2 + $0x50] sm:$0xf] %vm307_vm5, %v6161_v55  ;;  %7183 = vrot.lane.b32.xlu0 %v7178_v52, %s9868_s13  ;;  %v13305_v34 = vshll.u32 %v13288_v19, 16  ;;  %v7235_v29 = vor.u32 %v7234_v40, %v7231_v18  ;;  %v5799_v41 = vpop.f32.mrf.mxu1  ;;  %v13313_v3 = vsel %vm734_vm1, %v13182_v4, %v15152_v39  ;;  %v15153_v57 = vrot.slane %v13003_v61, 3  ;;  %v5573_v18 = vpop.f32.mrf.mxu3 }
 0x44a   : > { %v6164_v22 = vshrl.u32 %v5952_v37, 16  ;;  %v6167_v49 = vshll.u32 %v5952_v37, 16  ;;  %v7008_v36 = vrot.slane %v13302_v58, 1  ;;  %v5572_v53 = vadd.f32 %v12975_v38, %v5571_v27 }
 0x44b   : > { %v7239_v7 = vsel %vm4797_vm0, %v7235_v29, %v13299_v32  ;;  %v6162_v40 = vrot.slane %v6160_v56, 4  ;;  %v7009_v37 = vrot.slane %v13305_v34, 2  ;;  %v6653_v29 = vrot.slane %v13091_v23, 1 }
 0x44c   : > { %v6166_v14 = vrot.slane %v6164_v22, 6  ;;  %v6169_v31 = vrot.slane %v6167_v49, 7  ;;  %v15390_v22 = vrot.slane %v13049_v24, 1  ;;  %v15391_v56 = vrot.slane %v12983_v26, 3  ;;  %v4783_v24 = vpop.permute.xlu0 %4782 }
 0x44d   : > { %6941 = vrot.lane.b32.xlu2 %v13313_v3, %s9870_s15 }
 0x44e   : > { %v13322_v55 = vor.u32 %v6169_v31, %v6166_v14  ;;  %v5684_v52 = vpop.f32.mrf.mxu0  ;;  %v6843_v49 = vsel %vm734_vm1, %v15390_v22, %v13182_v4  ;;  %v4981_v14 = vsel %vm1779_vm3, %v15391_v56, %v15153_v57  ;;  %v13339_v31 = vor.u32 %v7009_v37, %v7008_v36 }
 0x44f   : > { %v5685_v39 = vadd.f32 %v5684_v52, %v5572_v53  ;;  %v7090_v52 = vrot.slane %v13067_v60, 2  ;;  %v5574_v22 = vadd.f32 %v12975_v38, %v5573_v18 }
 0x450   : > { %7326 = vrot.lane.b32.xlu1 %v7239_v7, %s9870_s15  ;;  %v6171_v27 = vsel %vm10855_vm13, %v6162_v40, %v13322_v55  ;;  %v15392_v7 = vshrl.u32 %v13060_v8, 16  ;;  %v13350_v26 = vsel %vm4552_vm15, %v13266_v47, %v13339_v31  ;;  %v13352_v40 = vpop.permute.xlu2 %4729  ;;  %v7241_v47 = vrot.slane %v13099_v1, 3 }
 0x451   : > { %6443 = vst.msk [vmem:[#allocation2 + $0x54] sm:$0xf] %vm307_vm5, %v6171_v27  ;;  %6882 = vrot.lane.b32.xlu0 %v6843_v49, %s9868_s13  ;;  %v5798_v4 = vadd.f32 %v5797_v46, %v5685_v39  ;;  %v7240_v46 = vrot.slane %v13102_v51, 2  ;;  %v5180_v39 = vsel %vm4982_vm6, %v12589_v10, %v13141_v44  ;;  %v5576_v49 = vpop.f32.mrf.mxu3  ;;  %v5802_v56 = vpop.f32.mrf.mxu1  ;;  %v7091_v10 = vsel %vm1341_vm4, %v13275_v12, %v7090_v52  ;;  %v13378_v44 = vld [vmem:[#allocation2 + $0x38] sm:$0xff] }
 0x452   : > { %9344 = vmatmul.msk.bf16.gmra.mxu1 %vm4982_vm6, %v4981_v14  ;;  %v6649_v53 = vor.u32 %v15392_v7, %v13223_v21  ;;  %v7089_v21 = vsel %vm1341_vm4, %v7086_v43, %v13275_v12  ;;  %v5227_v14 = vsel %vm5026_vm7, %v5180_v39, %v4783_v24  ;;  %v6846_v7 = vrot.slane %v13067_v60, 1  ;;  %v9718_v39 = vld [vmem:[%s15070_s6 + $0x48] sm:$0xff] }
 0x453   : > { %v5871_v36 = vmax.f32 %v5798_v4, 0.0  ;;  %v15393_v12 = vrot.slane %v13058_v62, 1  ;;  %8058 = vmatpush.bf16.msrb.mxu3 %v9718_v39 }
 0x454   : > { %v6654_v37 = vsel %vm4194_vm14, %v6649_v53, %v6653_v29 }
 0x455   : > { %6798 = vrot.lane.b32.xlu2 %v6654_v37, %s9869_s14  ;;  %v5912_v27 = vmul.f32 %v5871_v36, %v11243_v54  ;;  %v13381_v54 = vor.u32 %v7241_v47, %v7240_v46 }
 0x456   : > { %v4927_v4 = vpop.permute.xlu1 %4926  ;;  %v5686_v43 = vpop.f32.mrf.mxu0 }
 0x457   : > { %v5953_v53 = vpack.c.bf16 %v5912_v27, %v5912_v27  ;;  %v5284_v37 = vsel %vm5069_vm8, %v5227_v14, %v4927_v4  ;;  %v5687_v57 = vadd.f32 %v5686_v43, %v5574_v22  ;;  %v13394_v22 = vsel %vm734_vm1, %v15393_v12, %v6846_v7  ;;  %v4481_v27 = vpop.permute.xlu0 %4480 }
 0x458   : > { %7128 = vrot.lane.b32.xlu1 %v7089_v21, %s9869_s14  ;;  %5708 = vmatmul.bf16.gmra.mxu0 %v5284_v37  ;;  %v9710_v21 = vld [vmem:[%s15070_s6 + $0x8] sm:$0xff]  ;;  %v13401_v43 = vpop.permute.xlu2 %4398  ;;  %v7243_v62 = vsel %vm4797_vm0, %v13299_v32, %v13381_v54  ;;  %v6661_v12 = vrot.slane %v13099_v1, 1  ;;  %v7094_v1 = vrot.slane %v13288_v19, 2 }
 0x459   : > { %7185 = vrot.lane.b32.xlu0 %v7091_v10, %s9868_s13  ;;  %v6174_v18 = vshrl.u32 %v5953_v53, 16  ;;  %v6177_v24 = vshll.u32 %v5953_v53, 16  ;;  %v5800_v36 = vadd.f32 %v5799_v41, %v5687_v57  ;;  %7945 = vmatpush.bf16.msrb.mxu2 %v9710_v21  ;;  %v13397_v41 = vshrl.u32 %v13378_v44, 16  ;;  %v9834_v57 = vld [vmem:[#allocation2 + $0x80] sm:$0xff] }
 0x45a   : > { %v5016_v4 = vsel %vm4982_vm6, %v9834_v57, %v13216_v13  ;;  %v6172_v53 = vrot.slane %v13322_v55, 4  ;;  %v5577_v13 = vadd.f32 %v12975_v38, %v5576_v49  ;;  %v5578_v57 = vpop.f32.mrf.mxu3 }
 0x45b   : > { %v6176_v46 = vrot.slane %v6174_v18, 6  ;;  %v6179_v47 = vrot.slane %v6177_v24, 7  ;;  %v5872_v14 = vmax.f32 %v5800_v36, 0.0  ;;  %v15394_v18 = vld [vmem:[#allocation56_spill] sm:$0xff]  ;;  %v13412_v36 = vshll.u32 %v13378_v44, 16 }
 0x45c   : > { %v5060_v21 = vsel %vm5026_vm7, %v5016_v4, %v4481_v27  ;;  %v6657_v27 = vor.u32 %v13081_v0, %v6653_v29 }
 0x45d   : > { %6943 = vrot.lane.b32.xlu2 %v13394_v22, %s9870_s15  ;;  %v6180_v37 = vor.u32 %v6179_v47, %v6176_v46  ;;  %v5913_v24 = vmul.f32 %v5872_v14, %v15394_v18  ;;  %v7012_v14 = vrot.slane %v13397_v41, 1  ;;  %v15395_v18 = vrot.slane %v13003_v61, 3 }
 0x45e   : > { %v4540_v39 = vpop.permute.xlu1 %4539 }
 0x45f   : > { %v6181_v32 = vsel %vm10855_vm13, %v6172_v53, %v6180_v37  ;;  %v5954_v55 = vpack.c.bf16 %v5913_v24, %v5913_v24  ;;  %v5119_v46 = vsel %vm5069_vm8, %v5060_v21, %v4540_v39  ;;  %v5689_v47 = vpop.f32.mrf.mxu0  ;;  %v7013_v24 = vrot.slane %v13412_v36, 2 }
 0x460   : > { %7328 = vrot.lane.b32.xlu1 %v7243_v62, %s9870_s15  ;;  %6444 = vst.msk [vmem:[#allocation2 + $0x58] sm:$0xf] %vm307_vm5, %v6181_v32  ;;  %v5804_v62 = vpop.f32.mrf.mxu1  ;;  %5600 = vmatmul.bf16.gmra.mxu3 %v5119_v46  ;;  %v5690_v49 = vadd.f32 %v5689_v47, %v5577_v13  ;;  %v6662_v13 = vsel %vm4194_vm14, %v6657_v27, %v6661_v12  ;;  %v6182_v46 = vrot.slane %v6180_v37, 4  ;;  %v15396_v27 = vld [vmem:[#allocation53_spill] sm:$0xff]  ;;  %v6848_v37 = vrot.slane %v13196_v2, 1 }
 0x461   : > { %6884 = vrot.lane.b32.xlu0 %v13313_v3, %s9868_s13  ;;  %v6184_v4 = vshrl.u32 %v5954_v55, 16  ;;  %v6187_v53 = vshll.u32 %v5954_v55, 16  ;;  %v15154_v3 = vrot.slane %v13196_v2, 2  ;;  %v13435_v23 = vor.u32 %v7013_v24, %v7012_v14  ;;  %v13437_v29 = vpop.permute.xlu2 %4731 }
 0x462   : > { %9345 = vmatmul.msk.bf16.gmra.mxu1 %vm4982_vm6, %v15395_v18  ;;  %v5803_v21 = vadd.f32 %v5802_v56, %v5690_v49  ;;  %v7244_v55 = vrot.slane %v13226_v6, 2  ;;  %v7245_v56 = vrot.slane %v13231_v30, 3  ;;  %v5579_v14 = vadd.f32 %v12975_v38, %v5578_v57 }
 0x463   : > { %v6186_v39 = vrot.slane %v6184_v4, 6  ;;  %v6189_v32 = vrot.slane %v6187_v53, 7  ;;  %v13446_v49 = vsel %vm4552_vm15, %v13339_v31, %v13435_v23  ;;  %v5581_v53 = vpop.f32.mrf.mxu3 }
 0x464   : > { %v5873_v0 = vmax.f32 %v5803_v21, 0.0  ;;  %v13460_v57 = vor.u32 %v7245_v56, %v7244_v55  ;;  %v13472_v55 = vsel %vm734_vm1, %v6846_v7, %v6848_v37  ;;  %v5582_v60 = vadd.f32 %v12975_v38, %v5581_v53 }
 0x465   : > { %6800 = vrot.lane.b32.xlu2 %v6662_v13, %s9869_s14  ;;  %v4785_v61 = vpop.permute.xlu0 %4784  ;;  %v6190_v47 = vor.u32 %v6189_v32, %v6186_v39  ;;  %v5183_v13 = vsel %vm4982_vm6, %v12784_v28, %v13259_v35  ;;  %v13480_v35 = vld [vmem:[#allocation2 + $0x40] sm:$0xff] }
 0x466   : > { %v5914_v4 = vmul.f32 %v5873_v0, %v15396_v27  ;;  %v7247_v28 = vsel %vm4797_vm0, %v13381_v54, %v13460_v57 }
 0x467   : > { %v6191_v18 = vsel %vm10855_vm13, %v6182_v46, %v6190_v47  ;;  %v5691_v24 = vpop.f32.mrf.mxu0 }
 0x468   : > { %7130 = vrot.lane.b32.xlu1 %v7091_v10, %s9869_s14  ;;  %v7093_v10 = vsel %vm1341_vm4, %v7090_v52, %v15154_v3  ;;  %6445 = vst.msk [vmem:[#allocation2 + $0x5c] sm:$0xf] %vm307_vm5, %v6191_v18  ;;  %v5955_v31 = vpack.c.bf16 %v5914_v4, %v5914_v4  ;;  %v5692_v21 = vadd.f32 %v5691_v24, %v5579_v14  ;;  %v4929_v39 = vpop.permute.xlu1 %4928  ;;  %v5807_v46 = vpop.f32.mrf.mxu1 }
 0x469   : > { %7187 = vrot.lane.b32.xlu0 %v7093_v10, %s9868_s13  ;;  %v5229_v52 = vsel %vm5026_vm7, %v5183_v13, %v4785_v61  ;;  %v15397_v61 = vld [vmem:[#allocation51_spill] sm:$0xff]  ;;  %v13484_v24 = vpop.permute.xlu2 %4400  ;;  %v9835_v13 = vld [vmem:[#allocation2 + $0x88] sm:$0xff] }
 0x46a   : > { %v6194_v32 = vshrl.u32 %v5955_v31, 16  ;;  %v6197_v0 = vshll.u32 %v5955_v31, 16  ;;  %v5805_v27 = vadd.f32 %v5804_v62, %v5692_v21  ;;  %v5287_v3 = vsel %vm5069_vm8, %v5229_v52, %v4929_v39 }
 0x46b   : > { %5713 = vmatmul.bf16.gmra.mxu0 %v5287_v3  ;;  %v6192_v62 = vrot.slane %v6190_v47, 4  ;;  %v6669_v21 = vrot.slane %v13231_v30, 1  ;;  %v5018_v54 = vsel %vm4982_vm6, %v9835_v13, %v13307_v11  ;;  %v5583_v47 = vpop.f32.mrf.mxu3  ;;  %v13499_v11 = vshll.u32 %v13480_v35, 16 }
 0x46c   : > { %v6196_v56 = vrot.slane %v6194_v32, 6  ;;  %v6199_v14 = vrot.slane %v6197_v0, 7  ;;  %v5874_v4 = vmax.f32 %v5805_v27, 0.0  ;;  %v6665_v27 = vor.u32 %v13102_v51, %v6661_v12 }
 0x46d   : > { %6945 = vrot.lane.b32.xlu2 %v13472_v55, %s9870_s15  ;;  %v4483_v3 = vpop.permute.xlu0 %4482  ;;  %v7249_v51 = vrot.slane %v13305_v34, 3  ;;  %v5584_v13 = vadd.f32 %v12975_v38, %v5583_v47  ;;  %v7252_v30 = vrot.slane %v13397_v41, 2 }
 0x46e   : > { %v6200_v7 = vor.u32 %v6199_v14, %v6196_v56  ;;  %v5915_v18 = vmul.f32 %v5874_v4, %v15397_v61  ;;  %v5062_v53 = vsel %vm5026_vm7, %v5018_v54, %v4483_v3  ;;  %v13502_v56 = vshrl.u32 %v13480_v35, 16 }
 0x46f   : > { %v7248_v3 = vrot.slane %v13302_v58, 2 }
 0x470   : > { %7330 = vrot.lane.b32.xlu1 %v7247_v28, %s9870_s15  ;;  %v5694_v31 = vpop.f32.mrf.mxu0  ;;  %v6201_v39 = vsel %vm10855_vm13, %v6192_v62, %v6200_v7  ;;  %v5956_v32 = vpack.c.bf16 %v5915_v18, %v5915_v18  ;;  %v4542_v52 = vpop.permute.xlu1 %4541  ;;  %v6202_v54 = vrot.slane %v6200_v7, 4 }
 0x471   : > { %v5695_v0 = vadd.f32 %v5694_v31, %v5582_v60  ;;  %6886 = vrot.lane.b32.xlu0 %v13394_v22, %s9868_s13  ;;  %6446 = vst.msk [vmem:[#allocation2 + $0x60] sm:$0xf] %vm307_vm5, %v6201_v39  ;;  %v5122_v22 = vsel %vm5069_vm8, %v5062_v53, %v4542_v52  ;;  %v6670_v60 = vsel %vm4194_vm14, %v6665_v27, %v6669_v21  ;;  %v5809_v61 = vpop.f32.mrf.mxu1  ;;  %v7017_v31 = vrot.slane %v13499_v11, 2 }
 0x472   : > { %v6204_v14 = vshrl.u32 %v5956_v32, 16  ;;  %v6207_v4 = vshll.u32 %v5956_v32, 16  ;;  %5605 = vmatmul.bf16.gmra.mxu3 %v5122_v22  ;;  %v15398_v32 = vld [vmem:[#allocation59_spill] sm:$0xff]  ;;  %v15399_v27 = vrot.slane %v13196_v2, 2  ;;  %v13530_v22 = vor.u32 %v7249_v51, %v7248_v3 }
 0x473   : > { %v5808_v28 = vadd.f32 %v5807_v46, %v5695_v0  ;;  %v7016_v46 = vrot.slane %v13502_v56, 1 }
 0x474   : > { %v6206_v12 = vrot.slane %v6204_v14, 6  ;;  %v6209_v62 = vrot.slane %v6207_v4, 7  ;;  %v13517_v53 = vpop.permute.xlu2 %4733  ;;  %v7095_v14 = vsel %vm1341_vm4, %v15399_v27, %v7094_v1 }
 0x475   : > { %v5875_v18 = vmax.f32 %v5808_v28, 0.0  ;;  %6802 = vrot.lane.b32.xlu2 %v6670_v60, %s9869_s14  ;;  %v13525_v4 = vor.u32 %v7017_v31, %v7016_v46  ;;  %v5586_v60 = vpop.f32.mrf.mxu3 }
 0x476   : > { %v6210_v39 = vor.u32 %v6209_v62, %v6206_v12  ;;  %v9709_v62 = vld [vmem:[%s15070_s6] sm:$0xff]  ;;  %v5587_v2 = vadd.f32 %v12975_v38, %v5586_v60 }
 0x477   : > { %v5916_v0 = vmul.f32 %v5875_v18, %v15398_v32  ;;  %v9717_v18 = vld [vmem:[%s15070_s6 + $0x40] sm:$0xff]  ;;  %v13542_v46 = vsel %vm4552_vm15, %v13435_v23, %v13525_v4  ;;  %7946 = vmatpush.bf16.msrb.mxu2 %v9709_v62  ;;  %v7251_v23 = vsel %vm4797_vm0, %v13460_v57, %v13530_v22  ;;  %v5186_v62 = vsel %vm4982_vm6, %v12963_v63, %v13352_v40 }
 0x478   : > { %7132 = vrot.lane.b32.xlu1 %v7093_v10, %s9869_s14  ;;  %v5696_v52 = vpop.f32.mrf.mxu0  ;;  %v6850_v10 = vrot.slane %v13288_v19, 1  ;;  %v6211_v47 = vsel %vm10855_vm13, %v6202_v54, %v6210_v39  ;;  %8059 = vmatpush.bf16.msrb.mxu3 %v9717_v18  ;;  %v15155_v57 = vrot.slane %v13305_v34, 1  ;;  %v6673_v63 = vor.u32 %v13226_v6, %v6669_v21 }
 0x479   : > { %v5957_v7 = vpack.c.bf16 %v5916_v0, %v5916_v0  ;;  %v5697_v28 = vadd.f32 %v5696_v52, %v5584_v13  ;;  %7189 = vrot.lane.b32.xlu0 %v7095_v14, %s9868_s13  ;;  %6447 = vst.msk [vmem:[#allocation2 + $0x64] sm:$0xf] %vm307_vm5, %v6211_v47  ;;  %v4787_v12 = vpop.permute.xlu0 %4786  ;;  %v5812_v27 = vpop.f32.mrf.mxu1  ;;  %v15400_v47 = vld [vmem:[#allocation57_spill] sm:$0xff]  ;;  %v7253_v6 = vrot.slane %v13412_v36, 3 }
 0x47a   : > { %v13549_v13 = vsel %vm734_vm1, %v6848_v37, %v6850_v10  ;;  %v6212_v37 = vrot.slane %v6210_v39, 4  ;;  %v5231_v38 = vsel %vm5026_vm7, %v5186_v62, %v4787_v12 }
 0x47b   : > { %v6214_v31 = vshrl.u32 %v5957_v7, 16  ;;  %v6217_v51 = vshll.u32 %v5957_v7, 16  ;;  %v5810_v3 = vadd.f32 %v5809_v61, %v5697_v28  ;;  %v13557_v61 = vld [vmem:[#allocation2 + $0x48] sm:$0xff] }
 0x47c   : > { %v13561_v28 = vpop.permute.xlu2 %4402  ;;  %v13578_v40 = vshll.u32 %v13557_v61, 16 }
 0x47d   : > { %v6216_v54 = vrot.slane %v6214_v31, 6  ;;  %v6219_v32 = vrot.slane %v6217_v51, 7  ;;  %v5876_v0 = vmax.f32 %v5810_v3, 0.0  ;;  %6947 = vrot.lane.b32.xlu2 %v13549_v13, %s9870_s15 }
 0x47e   : > { %v4931_v18 = vpop.permute.xlu1 %4930 }
 0x47f   : > { %v6220_v52 = vor.u32 %v6219_v32, %v6216_v54  ;;  %v5917_v7 = vmul.f32 %v5876_v0, %v15400_v47  ;;  %v5290_v60 = vsel %vm5069_vm8, %v5231_v38, %v4931_v18  ;;  %v13581_v32 = vshrl.u32 %v13557_v61, 16 }
 0x480   : > { %7332 = vrot.lane.b32.xlu1 %v7251_v23, %s9870_s15  ;;  %v5699_v31 = vpop.f32.mrf.mxu0  ;;  %5718 = vmatmul.bf16.gmra.mxu0 %v5290_v60  ;;  %v7021_v18 = vrot.slane %v13578_v40, 2 }
 0x481   : > { %v6221_v51 = vsel %vm10855_vm13, %v6212_v37, %v6220_v52  ;;  %v5958_v3 = vpack.c.bf16 %v5917_v7, %v5917_v7  ;;  %v5700_v39 = vadd.f32 %v5699_v31, %v5587_v2  ;;  %6888 = vrot.lane.b32.xlu0 %v13472_v55, %s9868_s13  ;;  %v4485_v54 = vpop.permute.xlu0 %4484  ;;  %v5588_v55 = vpop.f32.mrf.mxu3  ;;  %v6678_v2 = vsel %vm4194_vm14, %v6673_v63, %v15155_v57  ;;  %v13597_v31 = vld [vmem:[%s15069_s5] ss:$0 sm:$0xff] }
 0x482   : > { %6448 = vst.msk [vmem:[#allocation2 + $0x68] sm:$0xf] %vm307_vm5, %v6221_v51  ;;  %v7096_v37 = vrot.slane %v13378_v44, 2  ;;  %v7020_v62 = vrot.slane %v13581_v32, 1  ;;  %v5589_v51 = vadd.f32 %v13597_v31, %v5588_v55  ;;  %v13610_v57 = vor.u32 %v7253_v6, %v7252_v30 }
 0x483   : > { %v6224_v12 = vshrl.u32 %v5958_v3, 16  ;;  %v6227_v0 = vshll.u32 %v5958_v3, 16  ;;  %v5813_v23 = vadd.f32 %v5812_v27, %v5700_v39  ;;  %v6852_v27 = vrot.slane %v13378_v44, 1  ;;  %v15401_v39 = vld [vmem:[#allocation55_spill] sm:$0xff] }
 0x484   : > { %v6222_v3 = vrot.slane %v6220_v52, 4  ;;  %v13612_v52 = vor.u32 %v7021_v18, %v7020_v62 }
 0x485   : > { %v6226_v21 = vrot.slane %v6224_v12, 6  ;;  %v6229_v47 = vrot.slane %v6227_v0, 7  ;;  %v5877_v7 = vmax.f32 %v5813_v23, 0.0  ;;  %6804 = vrot.lane.b32.xlu2 %v6678_v2, %s9869_s14  ;;  %v7097_v2 = vsel %vm1341_vm4, %v7094_v1, %v7096_v37 }
 0x486   : > { %v4544_v0 = vpop.permute.xlu1 %4543  ;;  %v13623_v1 = vsel %vm4552_vm15, %v13525_v4, %v13612_v52  ;;  %v7255_v4 = vsel %vm4797_vm0, %v13530_v22, %v13610_v57 }
 0x487   : > { %v6230_v38 = vor.u32 %v6229_v47, %v6226_v21  ;;  %v5918_v60 = vmul.f32 %v5877_v7, %v15401_v39  ;;  %v13601_v63 = vpop.permute.xlu2 %4735 }
 0x488   : > { %7134 = vrot.lane.b32.xlu1 %v7095_v14, %s9869_s14  ;;  %v9837_v14 = vld [vmem:[#allocation2 + $0x90] sm:$0xff]  ;;  %v5701_v23 = vpop.f32.mrf.mxu0 }
 0x489   : > { %v5020_v12 = vsel %vm4982_vm6, %v9837_v14, %v13401_v43  ;;  %v6231_v55 = vsel %vm10855_vm13, %v6222_v3, %v6230_v38  ;;  %v5959_v21 = vpack.c.bf16 %v5918_v60, %v5918_v60  ;;  %v5702_v7 = vadd.f32 %v5701_v23, %v5589_v51  ;;  %7191 = vrot.lane.b32.xlu0 %v7097_v2, %s9868_s13  ;;  %v5814_v43 = vpop.f32.mrf.mxu1  ;;  %v4789_v18 = vpop.permute.xlu0 %4788 }
 0x48a   : > { %v5064_v47 = vsel %vm5026_vm7, %v5020_v12, %v4485_v54  ;;  %6449 = vst.msk [vmem:[#allocation2 + $0x6c] sm:$0xf] %vm307_vm5, %v6231_v55  ;;  %v13630_v54 = vsel %vm734_vm1, %v6850_v10, %v6852_v27  ;;  %v5189_v14 = vsel %vm4982_vm6, %v13131_v15, %v13437_v29  ;;  %v6232_v19 = vrot.slane %v6230_v38, 4  ;;  %v15402_v10 = vld [vmem:[#allocation62_spill] sm:$0xff] }
 0x48b   : > { %v5125_v39 = vsel %vm5069_vm8, %v5064_v47, %v4544_v0  ;;  %v6234_v30 = vshrl.u32 %v5959_v21, 16  ;;  %v6237_v6 = vshll.u32 %v5959_v21, 16  ;;  %v5815_v62 = vadd.f32 %v5814_v43, %v5702_v7  ;;  %v13655_v43 = vld [vmem:[#allocation2 + $0x50] sm:$0xff] }
 0x48c   : > { %5610 = vmatmul.bf16.gmra.mxu3 %v5125_v39  ;;  %v5233_v55 = vsel %vm5026_vm7, %v5189_v14, %v4789_v18  ;;  %v6685_v47 = vrot.slane %v13412_v36, 1  ;;  %v15403_v29 = vrot.slane %v13305_v34, 1  ;;  %v13661_v18 = vshll.u32 %v13655_v43, 16 }
 0x48d   : > { %v6236_v51 = vrot.slane %v6234_v30, 6  ;;  %v6239_v3 = vrot.slane %v6237_v6, 7  ;;  %v5878_v60 = vmax.f32 %v5815_v62, 0.0  ;;  %6949 = vrot.lane.b32.xlu2 %v13630_v54, %s9870_s15  ;;  %v7098_v62 = vrot.slane %v13480_v35, 2 }
 0x48e   : > { %v4933_v21 = vpop.permute.xlu1 %4932  ;;  %v6681_v38 = vor.u32 %v13302_v58, %v15403_v29  ;;  %v7257_v58 = vrot.slane %v13499_v11, 3  ;;  %v13666_v34 = vshrl.u32 %v13655_v43, 16 }
 0x48f   : > { %v6240_v12 = vor.u32 %v6239_v3, %v6236_v51  ;;  %v5919_v0 = vmul.f32 %v5878_v60, %v15402_v10  ;;  %v13642_v23 = vpop.permute.xlu2 %6794  ;;  %v5293_v15 = vsel %vm5069_vm8, %v5233_v55, %v4933_v21  ;;  %v9838_v60 = vld [vmem:[#allocation2 + $0x98] sm:$0xff] }
 0x490   : > { %7334 = vrot.lane.b32.xlu1 %v7255_v4, %s9870_s15  ;;  %5723 = vmatmul.bf16.gmra.mxu0 %v5293_v15  ;;  %v6686_v6 = vsel %vm4194_vm14, %v6681_v38, %v6685_v47  ;;  %v5022_v4 = vsel %vm4982_vm6, %v9838_v60, %v13484_v24 }
 0x491   : > { %v6241_v22 = vsel %vm10855_vm13, %v6232_v19, %v6240_v12  ;;  %v5960_v7 = vpack.c.bf16 %v5919_v0, %v5919_v0  ;;  %6890 = vrot.lane.b32.xlu0 %v13549_v13, %s9868_s13  ;;  %v4487_v36 = vpop.permute.xlu0 %4486  ;;  %v7256_v13 = vrot.slane %v13502_v56, 2  ;;  %v6242_v14 = vrot.slane %v6240_v12, 4 }
 0x492   : > { %6450 = vst.msk [vmem:[#allocation2 + $0x70] sm:$0xf] %vm307_vm5, %v6241_v22  ;;  %v7024_v0 = vrot.slane %v13666_v34, 1  ;;  %v5066_v55 = vsel %vm5026_vm7, %v5022_v4, %v4487_v36  ;;  %v7099_v22 = vsel %vm1341_vm4, %v7096_v37, %v7098_v62  ;;  %v5192_v36 = vsel %vm4982_vm6, %v13271_v50, %v13517_v53 }
 0x493   : > { %v6244_v39 = vshrl.u32 %v5960_v7, 16  ;;  %v6247_v30 = vshll.u32 %v5960_v7, 16  ;;  %v7025_v7 = vrot.slane %v13661_v18, 2  ;;  %v7258_v15 = vor.u32 %v7257_v58, %v7256_v13 }
 0x494   : > { %v7100_v53 = vrot.slane %v13557_v61, 2  ;;  %v7261_v4 = vrot.slane %v13578_v40, 3 }
 0x495   : > { %v6246_v51 = vrot.slane %v6244_v39, 6  ;;  %v6249_v3 = vrot.slane %v6247_v30, 7  ;;  %6806 = vrot.lane.b32.xlu2 %v6686_v6, %s9869_s14  ;;  %v13688_v29 = vor.u32 %v7025_v7, %v7024_v0  ;;  %v7259_v39 = vsel %vm4797_vm0, %v13610_v57, %v7258_v15  ;;  %v4074_v30 = vld [vmem:[#allocation2 + $0xa0] sm:$0x3] }
 0x496   : > { %v4546_v21 = vpop.permute.xlu1 %4545  ;;  %v4169_v13 = vunpack.c.l.b16 %v4074_v30  ;;  %v7101_v0 = vsel %vm1341_vm4, %v7098_v62, %v7100_v53  ;;  %v5591_v30 = vpop.f32.mrf.mxu3 }
 0x497   : > { %v13671_v19 = vor.u32 %v6249_v3, %v6246_v51  ;;  %v13673_v10 = vpop.permute.xlu2 %6939  ;;  %v5128_v12 = vsel %vm5069_vm8, %v5066_v55, %v4546_v21  ;;  %v13696_v37 = vsel %vm4552_vm15, %v13612_v52, %v13688_v29  ;;  %v6693_v52 = vrot.slane %v13499_v11, 1  ;;  %v13713_v3 = vpop.f32.mrf.mxu1 }
 0x498   : > { %7136 = vrot.lane.b32.xlu1 %v7097_v2, %s9869_s14  ;;  %v6854_v2 = vrot.slane %v13480_v35, 1  ;;  %v6689_v51 = vor.u32 %v13397_v41, %v6685_v47  ;;  %v4190_v60 = vpack.c.b16 %v4169_v13, %v4169_v13  ;;  %v7260_v11 = vrot.slane %v13581_v32, 2 }
 0x499   : > { %v6251_v24 = vsel %vm10855_vm13, %v6242_v14, %v13671_v19  ;;  %7193 = vrot.lane.b32.xlu0 %v7099_v22, %s9868_s13  ;;  %v4791_v38 = vpop.permute.xlu0 %4790  ;;  %v6856_v55 = vrot.slane %v13557_v61, 1 }
 0x49a   : > { %6451 = vst.msk [vmem:[#allocation2 + $0x74] sm:$0xf] %vm307_vm5, %v6251_v24  ;;  %v6855_v35 = vsel %vm734_vm1, %v6852_v27, %v6854_v2  ;;  %v5235_v27 = vsel %vm5026_vm7, %v5192_v36, %v4791_v38  ;;  %v6694_v50 = vsel %vm4194_vm14, %v6689_v51, %v6693_v52  ;;  %v5025_v41 = vsel %vm4982_vm6, %v4190_v60, %v13561_v28 }
 0x49b   : > { %v13732_v7 = vor.u32 %v7261_v4, %v7260_v11  ;;  %v13739_v24 = vsel %vm734_vm1, %v6854_v2, %v6856_v55  ;;  %v5195_v2 = vsel %vm4982_vm6, %v13257_v48, %v13601_v63  ;;  %v9839_v48 = vld [vmem:[#allocation2] sm:$0xff]   ;;  %v6985_v11 = vshrl.u32 %v13169_v16, 16 }
 0x49c   : > { %5615 = vmatmul.bf16.gmra.mxu3 %v5128_v12  ;;  %v7413_v63 = vsel %vm4982_vm6, %v9839_v48, %v13642_v23  ;;  %v6988_v4 = vshll.u32 %v13169_v16, 16  ;;  %v7102_v23 = vrot.slane %v13655_v43, 2 }
 0x49d   : > { %6951 = vrot.lane.b32.xlu2 %v6855_v35, %s9870_s15  ;;  %v7263_v38 = vsel %vm4797_vm0, %v7258_v15, %v13732_v7  ;;  %v6701_v15 = vrot.slane %v13578_v40, 1 }
 0x49e   : > { %v4935_v6 = vpop.permute.xlu1 %4934 }
 0x49f   : > { %v13705_v44 = vpop.permute.xlu2 %6796  ;;  %v5296_v57 = vsel %vm5069_vm8, %v5235_v27, %v4935_v6  ;;  %v13744_v62 = vpop.f32.mrf.mxu1 }
 0x4a0   : > { %7336 = vrot.lane.b32.xlu1 %v7259_v39, %s9870_s15  ;;  %5728 = vmatmul.bf16.gmra.mxu0 %v5296_v57 }
 0x4a1   : > { %6892 = vrot.lane.b32.xlu0 %v13630_v54, %s9868_s13 }
 0x4a2   : > { %v4489_v58 = vpop.permute.xlu0 %4488 }
 0x4a3   : > { %v5068_v47 = vsel %vm5026_vm7, %v5025_v41, %v4489_v58  ;;  %v5592_v41 = vadd.f32 %v13597_v31, %v5591_v30 }
 0x4a5   : > { %6808 = vrot.lane.b32.xlu2 %v6694_v50, %s9869_s14  ;;  %v6697_v50 = vor.u32 %v13502_v56, %v6693_v52 }
 0x4a7   : > { %v13723_v54 = vpop.permute.xlu2 %6941  ;;  %v6702_v56 = vsel %vm4194_vm14, %v6697_v50, %v6701_v15 }
 0x4a8   : > { %7138 = vrot.lane.b32.xlu1 %v7099_v22, %s9869_s14  ;;  %v13734_v22 = vld [vmem:[#allocation2 + $0x58] sm:$0xff] }
 0x4a9   : > { %7195 = vrot.lane.b32.xlu0 %v7101_v0, %s9868_s13  ;;  %v13742_v12 = vshll.u32 %v13734_v22, 16  ;;  %v13751_v39 = vshrl.u32 %v13734_v22, 16 }
 0x4aa   : > { %v4548_v14 = vpop.permute.xlu1 %4547 }
 0x4ab   : > { %v5131_v21 = vsel %vm5069_vm8, %v5068_v47, %v4548_v14  ;;  %v4793_v28 = vpop.permute.xlu0 %4792  ;;  %v7028_v27 = vrot.slane %v13751_v39, 1  ;;  %v7029_v6 = vrot.slane %v13742_v12, 2  ;;  %v7264_v14 = vrot.slane %v13666_v34, 2 }
 0x4ac   : > { %5620 = vmatmul.bf16.gmra.mxu3 %v5131_v21  ;;  %v5237_v13 = vsel %vm5026_vm7, %v5195_v2, %v4793_v28  ;;  %v6520_v28 = vld [vmem:[#allocation2 + $0x10] sm:$0x8]  ;;  %v6987_v2 = vrot.slane %v6985_v11, 1 }
 0x4ad   : > { %6953 = vrot.lane.b32.xlu2 %v13739_v24, %s9870_s15  ;;  %v13765_v58 = vor.u32 %v7029_v6, %v7028_v27  ;;  %v7369_v50 = vunpack.c.l.b16 %v6520_v28 }
 0x4af   : > { %v13757_v36 = vpop.permute.xlu2 %6798 }
 0x4b0   : > { %7338 = vrot.lane.b32.xlu1 %v7263_v38, %s9870_s15  ;;  %v13789_v38 = vpop.f32.mrf.mxu1 }
 0x4b1   : > { %6894 = vrot.lane.b32.xlu0 %v6855_v35, %s9868_s13  ;;  %v13775_v35 = vsel %vm4552_vm15, %v13688_v29, %v13765_v58  ;;  %v7265_v29 = vrot.slane %v13661_v18, 3 }
 0x4b2   : > { %v4937_v57 = vpop.permute.xlu1 %4936 }
 0x4b3   : > { %v5299_v51 = vsel %vm5069_vm8, %v5237_v13, %v4937_v57  ;;  %v6881_v60 = vpop.permute.xlu0 %6880  ;;  %v7103_v13 = vsel %vm1341_vm4, %v7100_v53, %v7102_v23  ;;  %v5593_v57 = vpop.f32.mrf.mxu3 }
 0x4b4   : > { %5733 = vmatmul.bf16.gmra.mxu0 %v5299_v51  ;;  %v7456_v47 = vsel %vm5026_vm7, %v7413_v63, %v6881_v60  ;;  %v13801_v51 = vor.u32 %v7265_v29, %v7264_v14  ;;  %v13803_v63 = vld [vmem:[#allocation2 + $0x60] sm:$0xff]  ;;  %v15404_v60 = vunpack.c.h.b16 %v13060_v8 }
 0x4b5   : > { %v7498_v52 = vsel %vm5069_vm8, %v7456_v47, %v13673_v10  ;;  %6810 = vrot.lane.b32.xlu2 %v6702_v56, %s9869_s14  ;;  %v5704_v16 = vpop.f32.mrf.mxu0  ;;  %v6990_v10 = vrot.slane %v6988_v4, 2  ;;  %v5594_v4 = vadd.f32 %v13597_v31, %v5593_v57 }
 0x4b6   : > { %v5705_v21 = vadd.f32 %v5704_v16, %v5592_v41  ;;  %7947 = vmatmul.bf16.vlgmr.msrb.gmra.mxu2 %v7498_v52  ;;  %v7370_v11 = vpack.c.b16 %v15404_v60, %v7369_v50  ;;  %v15405_v41 = vld [vmem:[#allocation60_spill] sm:$0xff]  ;;  %v7267_v8 = vsel %vm4797_vm0, %v13732_v7, %v13801_v51  ;;  %v13821_v16 = vld [vmem:[#allocation2 + $0x18] sm:$0xff] }
 0x4b7   : > { %v13791_v30 = vpop.permute.xlu2 %6943  ;;  %v6991_v53 = vor.u32 %v6990_v10, %v6987_v2  ;;  %v7372_v14 = vrot.slane %v13821_v16, 3  ;;  %v13835_v10 = vshll.u32 %v13803_v63, 16 }
 0x4b8   : > { %7140 = vrot.lane.b32.xlu1 %v7101_v0, %s9869_s14  ;;  %v5818_v27 = vadd.f32 %v13713_v3, %v5705_v21  ;;  %v6858_v0 = vrot.slane %v13655_v43, 1  ;;  %v7371_v7 = vrot.slane %v7370_v11, 3  ;;  %v6705_v11 = vor.u32 %v13581_v32, %v6701_v15 }
 0x4b9   : > { %7197 = vrot.lane.b32.xlu0 %v7103_v13, %s9868_s13  ;;  %v6995_v21 = vsel %vm4552_vm15, %v6991_v53, %v13138_v20  ;;  %v7033_v32 = vrot.slane %v13835_v10, 2 }
 0x4ba   : > { %v7127_v6 = vpop.permute.xlu1 %7126  ;;  %v5879_v48 = vmax.f32 %v5818_v27, 0.0  ;;  %v13814_v56 = vsel %vm734_vm1, %v6856_v55, %v6858_v0  ;;  %v13828_v55 = vshrl.u32 %v13803_v63, 16  ;;  %v6709_v27 = vrot.slane %v13661_v18, 1 }
 0x4bb   : > { %v7184_v3 = vpop.permute.xlu0 %7183  ;;  %v7562_v28 = vsel %vm4982_vm6, %v6995_v21, %v7127_v6  ;;  %v7373_v6 = vsel %vm1779_vm3, %v7371_v7, %v7372_v14  ;;  %v15406_v21 = vld [vmem:[#allocation58_spill] sm:$0xff]  ;;  %v7268_v7 = vrot.slane %v13751_v39, 2 }
 0x4bc   : > { %v5920_v47 = vmul.f32 %v5879_v48, %v15405_v41  ;;  %v7624_v20 = vsel %vm5026_vm7, %v7562_v28, %v7184_v3  ;;  %v6710_v40 = vsel %vm4194_vm14, %v6705_v11, %v6709_v27 }
 0x4bd   : > { %6955 = vrot.lane.b32.xlu2 %v13814_v56, %s9870_s15  ;;  %v5706_v52 = vpop.f32.mrf.mxu0 }
 0x4be   : > { %v5961_v29 = vpack.c.bf16 %v5920_v47, %v5920_v47  ;;  %v5707_v61 = vadd.f32 %v5706_v52, %v5594_v4  ;;  %v13839_v4 = vpop.f32.mrf.mxu1  ;;  %v9841_v52 = vld [vmem:[#allocation2 + $0x8] sm:$0xff]  }
 0x4bf   : > { %v13831_v2 = vpop.permute.xlu2 %6800 }
 0x4c0   : > { %7340 = vrot.lane.b32.xlu1 %v7267_v8, %s9870_s15  ;;  %v6254_v57 = vshrl.u32 %v5961_v29, 16  ;;  %v6257_v50 = vshll.u32 %v5961_v29, 16  ;;  %v5820_v48 = vadd.f32 %v13744_v62, %v5707_v61  ;;  %v7032_v62 = vrot.slane %v13828_v55, 1 }
 0x4c1   : > { %6896 = vrot.lane.b32.xlu0 %v13739_v24, %s9868_s13  ;;  %v6252_v8 = vrot.slane %v13671_v19, 4  ;;  %v7415_v24 = vsel %vm4982_vm6, %v9841_v52, %v13705_v44  ;;  %v7104_v19 = vrot.slane %v13734_v22, 2 }
 0x4c2   : > { %v7327_v60 = vpop.permute.xlu1 %7326  ;;  %v6256_v47 = vrot.slane %v6254_v57, 6  ;;  %v6259_v3 = vrot.slane %v6257_v50, 7  ;;  %v5880_v53 = vmax.f32 %v5820_v48, 0.0  ;;  %v7269_v57 = vrot.slane %v13742_v12, 3 }
 0x4c3   : > { %v7666_v41 = vsel %vm5069_vm8, %v7624_v20, %v7327_v60  ;;  %v6883_v29 = vpop.permute.xlu0 %6882  ;;  %v7034_v50 = vor.u32 %v7033_v32, %v7032_v62 }
 0x4c4   : > { %8060 = vmatmul.bf16.vlgmr.msrb.gmra.mxu3 %v7666_v41  ;;  %9490 = vmatmul.msk.bf16.vlgmr.msrb.gmra.mxu0 %vm4982_vm6, %v7373_v6  ;;  %v6260_v15 = vor.u32 %v6259_v3, %v6256_v47  ;;  %v5921_v61 = vmul.f32 %v5880_v53, %v15406_v21  ;;  %v7458_v28 = vsel %vm5026_vm7, %v7415_v24, %v6883_v29 }
 0x4c5   : > { %6812 = vrot.lane.b32.xlu2 %v6710_v40, %s9869_s14  ;;  %v7501_v44 = vsel %vm5069_vm8, %v7458_v28, %v13723_v54  ;;  %v13875_v41 = vsel %vm4552_vm15, %v13765_v58, %v7034_v50  ;;  %v7105_v47 = vsel %vm1341_vm4, %v7102_v23, %v7104_v19  ;;  %v13884_v3 = vor.u32 %v7269_v57, %v7268_v7  ;;  %v5596_v28 = vpop.f32.mrf.mxu3 }
 0x4c6   : > { %v6261_v20 = vsel %vm10855_vm13, %v6252_v8, %v6260_v15  ;;  %v5962_v48 = vpack.c.bf16 %v5921_v61, %v5921_v61  ;;  %7952 = vmatmul.bf16.gmra.mxu2 %v7501_v44  ;;  %v13886_v8 = vld [vmem:[#allocation2 + $0x68] sm:$0xff]  ;;  %v13888_v58 = vpop.f32.mrf.mxu1  ;;  %v6262_v24 = vrot.slane %v6260_v15, 4  ;;  %v6717_v57 = vrot.slane %v13742_v12, 1 }
 0x4c7   : > { %6452 = vst.msk [vmem:[#allocation2 + $0x78] sm:$0xf] %vm307_vm5, %v6261_v20  ;;  %v13871_v60 = vpop.permute.xlu2 %6945  ;;  %v7271_v40 = vsel %vm4797_vm0, %v13801_v51, %v13884_v3  ;;  %v13905_v32 = vshll.u32 %v13886_v8, 16  ;;  %v13908_v15 = vshrl.u32 %v13886_v8, 16  ;;  %v6713_v12 = vor.u32 %v13666_v34, %v6709_v27 }
 0x4c8   : > { %7142 = vrot.lane.b32.xlu1 %v7103_v13, %s9869_s14  ;;  %v6264_v54 = vshrl.u32 %v5962_v48, 16  ;;  %v6267_v6 = vshll.u32 %v5962_v48, 16  ;;  %v6860_v13 = vrot.slane %v13734_v22, 1  ;;  %v7272_v27 = vrot.slane %v13828_v55, 2  ;;  %v13990_v22 = vld [vmem:[#allocation2 + $0x28] sm:$0xff] }
 0x4c9   : > { %7199 = vrot.lane.b32.xlu0 %v7105_v47, %s9868_s13  ;;  %v7036_v20 = vrot.slane %v13908_v15, 1  ;;  %v7037_v48 = vrot.slane %v13905_v32, 2 }
 0x4ca   : > { %v7129_v11 = vpop.permute.xlu1 %7128  ;;  %v6266_v53 = vrot.slane %v6264_v54, 6  ;;  %v6269_v62 = vrot.slane %v6267_v6, 7  ;;  %v13897_v23 = vsel %vm734_vm1, %v6858_v0, %v6860_v13  ;;  %v13914_v0 = vld [vmem:[#allocation2 + $0x20] sm:$0xff] }
 0x4cb   : > { %v7186_v52 = vpop.permute.xlu0 %7185  ;;  %v7374_v21 = vrot.slane %v13914_v0, 3  ;;  %v7565_v51 = vsel %vm4982_vm6, %v13157_v59, %v7129_v11  ;;  %v13937_v6 = vor.u32 %v7037_v48, %v7036_v20  ;;  %v9843_v11 = vld [vmem:[#allocation2 + $0x10] sm:$0xff]  }
 0x4cc   : > { %v13890_v29 = vor.u32 %v6269_v62, %v6266_v53  ;;  %v7626_v44 = vsel %vm5026_vm7, %v7565_v51, %v7186_v52  ;;  %v7417_v53 = vsel %vm4982_vm6, %v9843_v11, %v13757_v36  ;;  %v6718_v52 = vsel %vm4194_vm14, %v6713_v12, %v6717_v57  ;;  %v13970_v48 = vld [vmem:[#allocation2 + $0x70] sm:$0xff]  ;;  %v15407_v11 = vld [vmem:[#allocation64_spill] sm:$0xff] }
 0x4cd   : > { %6957 = vrot.lane.b32.xlu2 %v13897_v23, %s9870_s15  ;;  %v7375_v59 = vsel %vm1779_vm3, %v7372_v14, %v7374_v21  ;;  %v13947_v18 = vsel %vm4552_vm15, %v7034_v50, %v13937_v6  ;;  %v5597_v14 = vadd.f32 %v13597_v31, %v5596_v28 }
 0x4ce   : > { %v6271_v43 = vsel %vm10855_vm13, %v6262_v24, %v13890_v29  ;;  %v7106_v24 = vrot.slane %v13803_v63, 2  ;;  %v13949_v34 = vpop.f32.mrf.mxu1 }
 0x4cf   : > { %6453 = vst.msk [vmem:[#allocation2 + $0x7c] sm:$0xf] %vm307_vm5, %v6271_v43  ;;  %v13920_v61 = vpop.permute.xlu2 %6802 }
 0x4d0   : > { %7342 = vrot.lane.b32.xlu1 %v7271_v40, %s9870_s15  ;;  %v7273_v40 = vrot.slane %v13835_v10, 3  ;;  %v7107_v28 = vsel %vm1341_vm4, %v7104_v19, %v7106_v24 }
 0x4d1   : > { %6898 = vrot.lane.b32.xlu0 %v13814_v56, %s9868_s13 }
 0x4d2   : > { %v7329_v7 = vpop.permute.xlu1 %7328  ;;  %v13968_v20 = vor.u32 %v7273_v40, %v7272_v27 }
 0x4d3   : > { %v7669_v54 = vsel %vm5069_vm8, %v7626_v44, %v7329_v7  ;;  %v6885_v56 = vpop.permute.xlu0 %6884 }
 0x4d4   : > { %8065 = vmatmul.bf16.gmra.mxu3 %v7669_v54  ;;  %9491 = vmatmul.msk.bf16.gmra.mxu0 %vm4982_vm6, %v7375_v59  ;;  %v7460_v62 = vsel %vm5026_vm7, %v7417_v53, %v6885_v56  ;;  %v7275_v53 = vsel %vm4797_vm0, %v13884_v3, %v13968_v20  ;;  %v13987_v56 = vshrl.u32 %v13970_v48, 16 }
 0x4d5   : > { %6814 = vrot.lane.b32.xlu2 %v6718_v52, %s9869_s14  ;;  %v7504_v36 = vsel %vm5069_vm8, %v7460_v62, %v13791_v30  ;;  %v5709_v43 = vpop.f32.mrf.mxu0  ;;  %v15156_v30 = vrot.slane %v13803_v63, 1  ;;  %v6725_v52 = vrot.slane %v13835_v10, 1 }
 0x4d6   : > { %7957 = vmatmul.bf16.gmra.mxu2 %v7504_v36  ;;  %v5710_v51 = vadd.f32 %v5709_v43, %v5597_v14  ;;  %v13995_v14 = vshll.u32 %v13970_v48, 16  ;;  %v13997_v36 = vpop.f32.mrf.mxu1 }
 0x4d7   : > { %v13958_v50 = vpop.permute.xlu2 %6947  ;;  %v13977_v12 = vsel %vm734_vm1, %v6860_v13, %v15156_v30  ;;  %v7376_v13 = vrot.slane %v13990_v22, 3 }
 0x4d8   : > { %7144 = vrot.lane.b32.xlu1 %v7105_v47, %s9869_s14  ;;  %v5823_v7 = vadd.f32 %v13789_v38, %v5710_v51  ;;  %v5598_v47 = vpop.f32.mrf.mxu3 }
 0x4d9   : > { %7201 = vrot.lane.b32.xlu0 %v7107_v28, %s9868_s13  ;;  %v5599_v19 = vadd.f32 %v13597_v31, %v5598_v47  ;;  %v6721_v47 = vor.u32 %v13751_v39, %v6717_v57  ;;  %v7377_v39 = vsel %vm1779_vm3, %v7374_v21, %v7376_v13  ;;  %v7041_v57 = vrot.slane %v13995_v14, 2 }
 0x4da   : > { %v7131_v44 = vpop.permute.xlu1 %7130  ;;  %v5881_v54 = vmax.f32 %v5823_v7, 0.0  ;;  %v7276_v21 = vrot.slane %v13908_v15, 2 }
 0x4db   : > { %v7188_v59 = vpop.permute.xlu0 %7187  ;;  %v7568_v3 = vsel %vm4982_vm6, %v13179_v17, %v7131_v44  ;;  %v7419_v17 = vsel %vm4982_vm6, %v13821_v16, %v13831_v2  ;;  %v7108_v16 = vrot.slane %v13886_v8, 2  ;;  %v6272_v2 = vrot.slane %v13890_v29, 4 }
 0x4dc   : > { %v5922_v38 = vmul.f32 %v5881_v54, %v15407_v11  ;;  %v7628_v51 = vsel %vm5026_vm7, %v7568_v3, %v7188_v59  ;;  %v7040_v54 = vrot.slane %v13987_v56, 1 }
 0x4dd   : > { %6959 = vrot.lane.b32.xlu2 %v13977_v12, %s9870_s15  ;;  %v5711_v62 = vpop.f32.mrf.mxu0 }
 0x4de   : > { %v5963_v27 = vpack.c.bf16 %v5922_v38, %v5922_v38  ;;  %v5712_v40 = vadd.f32 %v5711_v62, %v5599_v19  ;;  %v14027_v3 = vor.u32 %v7041_v57, %v7040_v54 }
 0x4df   : > { %v14001_v43 = vpop.permute.xlu2 %6804 }
 0x4e0   : > { %7344 = vrot.lane.b32.xlu1 %v7275_v53, %s9870_s15  ;;  %v6274_v11 = vshrl.u32 %v5963_v27, 16  ;;  %v6277_v53 = vshll.u32 %v5963_v27, 16  ;;  %v5825_v30 = vadd.f32 %v13839_v4, %v5712_v40  ;;  %v6726_v4 = vsel %vm4194_vm14, %v6721_v47, %v6725_v52 }
 0x4e1   : > { %6900 = vrot.lane.b32.xlu0 %v13897_v23, %s9868_s13  ;;  %v7277_v47 = vrot.slane %v13905_v32, 3  ;;  %v14038_v29 = vsel %vm4552_vm15, %v13937_v6, %v14027_v3 }
 0x4e2   : > { %v7331_v7 = vpop.permute.xlu1 %7330  ;;  %v6276_v23 = vrot.slane %v6274_v11, 6  ;;  %v6279_v44 = vrot.slane %v6277_v53, 7  ;;  %v5882_v59 = vmax.f32 %v5825_v30, 0.0 }
 0x4e3   : > { %v7672_v38 = vsel %vm5069_vm8, %v7628_v51, %v7331_v7  ;;  %v6887_v19 = vpop.permute.xlu0 %6886  ;;  %v5601_v62 = vpop.f32.mrf.mxu3  ;;  %v15408_v51 = vld [vmem:[#allocation63_spill] sm:$0xff]  ;;  %v14055_v57 = vor.u32 %v7277_v47, %v7276_v21  ;;  %v14071_v47 = vld [vmem:[#allocation2 + $0x30] sm:$0xff] }
 0x4e4   : > { %8070 = vmatmul.bf16.gmra.mxu3 %v7672_v38  ;;  %9492 = vmatmul.msk.bf16.gmra.mxu0 %vm4982_vm6, %v7377_v39  ;;  %v7462_v27 = vsel %vm5026_vm7, %v7419_v17, %v6887_v19  ;;  %v6280_v40 = vor.u32 %v6279_v44, %v6276_v23  ;;  %v5923_v7 = vmul.f32 %v5882_v59, %v15408_v51  ;;  %v14051_v17 = vpop.f32.mrf.mxu1 }
 0x4e5   : > { %6816 = vrot.lane.b32.xlu2 %v6726_v4, %s9869_s14  ;;  %v7507_v30 = vsel %vm5069_vm8, %v7462_v27, %v13871_v60  ;;  %v7109_v60 = vsel %vm1341_vm4, %v7106_v24, %v7108_v16  ;;  %v5602_v4 = vadd.f32 %v13597_v31, %v5601_v62  ;;  %v15409_v24 = vrot.slane %v13803_v63, 1 }
 0x4e6   : > { %7962 = vmatmul.bf16.gmra.mxu2 %v7507_v30  ;;  %v6281_v54 = vsel %vm10855_vm13, %v6272_v2, %v6280_v40  ;;  %v5964_v11 = vpack.c.bf16 %v5923_v7, %v5923_v7  ;;  %v6282_v51 = vrot.slane %v6280_v40, 4  ;;  %v7279_v21 = vsel %vm4797_vm0, %v13968_v20, %v14055_v57 }
 0x4e7   : > { %v14042_v53 = vpop.permute.xlu2 %6949  ;;  %6454 = vst.msk [vmem:[#allocation2 + $0x80] sm:$0xf] %vm307_vm5, %v6281_v54  ;;  %v7378_v63 = vrot.slane %v14071_v47, 3 }
 0x4e8   : > { %7146 = vrot.lane.b32.xlu1 %v7107_v28, %s9869_s14  ;;  %v6864_v28 = vrot.slane %v13886_v8, 1  ;;  %v6284_v6 = vshrl.u32 %v5964_v11, 16  ;;  %v6287_v39 = vshll.u32 %v5964_v11, 16  ;;  %v5714_v23 = vpop.f32.mrf.mxu0 }
 0x4e9   : > { %7203 = vrot.lane.b32.xlu0 %v7109_v60, %s9868_s13  ;;  %v5715_v19 = vadd.f32 %v5714_v23, %v5602_v4  ;;  %v15410_v23 = vld [vmem:[#allocation40_spill] sm:$0xff] }
 0x4ea   : > { %v7133_v38 = vpop.permute.xlu1 %7132  ;;  %v6286_v44 = vrot.slane %v6284_v6, 6  ;;  %v6289_v59 = vrot.slane %v6287_v39, 7  ;;  %v14062_v27 = vsel %vm734_vm1, %v15409_v24, %v6864_v28  ;;  %v6733_v6 = vrot.slane %v13905_v32, 1 }
 0x4eb   : > { %v7190_v2 = vpop.permute.xlu0 %7189  ;;  %v5828_v62 = vadd.f32 %v13888_v58, %v5715_v19  ;;  %v5603_v30 = vpop.f32.mrf.mxu3  ;;  %v7571_v58 = vsel %vm4982_vm6, %v13280_v5, %v7133_v38  ;;  %v6729_v5 = vor.u32 %v13828_v55, %v6725_v52  ;;  %v7379_v19 = vsel %vm1779_vm3, %v7376_v13, %v7378_v63 }
 0x4ec   : > { %v6290_v7 = vor.u32 %v6289_v59, %v6286_v44  ;;  %v7630_v20 = vsel %vm5026_vm7, %v7571_v58, %v7190_v2  ;;  %v5604_v4 = vadd.f32 %v13597_v31, %v5603_v30  ;;  %v14096_v2 = vpop.f32.mrf.mxu1  ;;  %v7280_v13 = vrot.slane %v13987_v56, 2 }
 0x4ed   : > { %6961 = vrot.lane.b32.xlu2 %v14062_v27, %s9870_s15  ;;  %v5883_v54 = vmax.f32 %v5828_v62, 0.0  ;;  %v6734_v55 = vsel %vm4194_vm14, %v6729_v5, %v6733_v6  ;;  %v7110_v62 = vrot.slane %v13970_v48, 2 }
 0x4ee   : > { %v6291_v40 = vsel %vm10855_vm13, %v6282_v51, %v6290_v7 }
 0x4ef   : > { %v14078_v11 = vpop.permute.xlu2 %6806  ;;  %6455 = vst.msk [vmem:[#allocation2 + $0x84] sm:$0xf] %vm307_vm5, %v6291_v40  ;;  %v5924_v44 = vmul.f32 %v5883_v54, %v15410_v23  ;;  %v6866_v23 = vrot.slane %v13970_v48, 1 }
 0x4f0   : > { %7346 = vrot.lane.b32.xlu1 %v7279_v21, %s9870_s15  ;;  %v5716_v38 = vpop.f32.mrf.mxu0  ;;  %v7281_v21 = vrot.slane %v13995_v14, 3 }
 0x4f1   : > { %6902 = vrot.lane.b32.xlu0 %v13977_v12, %s9868_s13  ;;  %v7421_v12 = vsel %vm4982_vm6, %v13914_v0, %v13920_v61  ;;  %v5965_v24 = vpack.c.bf16 %v5924_v44, %v5924_v44  ;;  %v5717_v51 = vadd.f32 %v5716_v38, %v5604_v4  ;;  %v6292_v44 = vrot.slane %v6290_v7, 4  ;;  %v14136_v7 = vld [vmem:[#allocation2 + $0x78] sm:$0xff] }
 0x4f2   : > { %v7333_v39 = vpop.permute.xlu1 %7332 }
 0x4f3   : > { %v7675_v59 = vsel %vm5069_vm8, %v7630_v20, %v7333_v39  ;;  %v6889_v10 = vpop.permute.xlu0 %6888  ;;  %v6294_v30 = vshrl.u32 %v5965_v24, 16  ;;  %v6297_v40 = vshll.u32 %v5965_v24, 16  ;;  %v5830_v0 = vadd.f32 %v13949_v34, %v5717_v51 }
 0x4f4   : > { %8075 = vmatmul.bf16.gmra.mxu3 %v7675_v59  ;;  %9493 = vmatmul.msk.bf16.gmra.mxu0 %vm4982_vm6, %v7379_v19  ;;  %v7464_v52 = vsel %vm5026_vm7, %v7421_v12, %v6889_v10  ;;  %v7111_v34 = vsel %vm1341_vm4, %v7108_v16, %v7110_v62  ;;  %v14134_v16 = vsel %vm734_vm1, %v6864_v28, %v6866_v23  ;;  %v14138_v51 = vpop.f32.mrf.mxu1 }
 0x4f5   : > { %6818 = vrot.lane.b32.xlu2 %v6734_v55, %s9869_s14  ;;  %v7510_v61 = vsel %vm5069_vm8, %v7464_v52, %v13958_v50  ;;  %v6296_v58 = vrot.slane %v6294_v30, 6  ;;  %v6299_v54 = vrot.slane %v6297_v40, 7  ;;  %v5884_v20 = vmax.f32 %v5830_v0, 0.0  ;;  %v15411_v50 = vld [vmem:[#allocation15_spill] sm:$0xff]  ;;  %v5606_v38 = vpop.f32.mrf.mxu3 }
 0x4f6   : > { %7967 = vmatmul.bf16.gmra.mxu2 %v7510_v61  ;;  %v5607_v30 = vadd.f32 %v13597_v31, %v5606_v38  ;;  %v6737_v38 = vor.u32 %v13908_v15, %v6733_v6 }
 0x4f7   : > { %v14114_v39 = vpop.permute.xlu2 %6951  ;;  %v6300_v59 = vor.u32 %v6299_v54, %v6296_v58  ;;  %v5925_v5 = vmul.f32 %v5884_v20, %v15411_v50  ;;  %v6741_v20 = vrot.slane %v13995_v14, 1 }
 0x4f8   : > { %7148 = vrot.lane.b32.xlu1 %v7109_v60, %s9869_s14  ;;  %v14124_v60 = vor.u32 %v7281_v21, %v7280_v13  ;;  %v14146_v13 = vld [vmem:[#allocation2 + $0x38] sm:$0xff] }
 0x4f9   : > { %7205 = vrot.lane.b32.xlu0 %v7111_v34, %s9868_s13  ;;  %v6301_v19 = vsel %vm10855_vm13, %v6292_v44, %v6300_v59  ;;  %v5966_v12 = vpack.c.bf16 %v5925_v5, %v5925_v5  ;;  %v7380_v8 = vrot.slane %v14146_v13, 3  ;;  %v6302_v61 = vrot.slane %v6300_v59, 4 }
 0x4fa   : > { %v7135_v4 = vpop.permute.xlu1 %7134  ;;  %6456 = vst.msk [vmem:[#allocation2 + $0x88] sm:$0xf] %vm307_vm5, %v6301_v19  ;;  %v7283_v52 = vsel %vm4797_vm0, %v14055_v57, %v14124_v60  ;;  %v14157_v44 = vshll.u32 %v14136_v7, 16  ;;  %v6742_v15 = vsel %vm4194_vm14, %v6737_v38, %v6741_v20 }
 0x4fb   : > { %v7192_v24 = vpop.permute.xlu0 %7191  ;;  %v6304_v10 = vshrl.u32 %v5966_v12, 16  ;;  %v6307_v55 = vshll.u32 %v5966_v12, 16  ;;  %v7574_v40 = vsel %vm4982_vm6, %v13350_v26, %v7135_v4  ;;  %v14165_v4 = vshrl.u32 %v14136_v7, 16 }
 0x4fc   : > { %v7632_v58 = vsel %vm5026_vm7, %v7574_v40, %v7192_v24  ;;  %v7381_v59 = vsel %vm1779_vm3, %v7378_v63, %v7380_v8 }
 0x4fd   : > { %6963 = vrot.lane.b32.xlu2 %v14134_v16, %s9870_s15  ;;  %v6306_v28 = vrot.slane %v6304_v10, 6  ;;  %v6309_v21 = vrot.slane %v6307_v55, 7  ;;  %v5719_v54 = vpop.f32.mrf.mxu0  ;;  %v5608_v63 = vpop.f32.mrf.mxu3  ;;  %v7284_v6 = vrot.slane %v14165_v4, 2  ;;  %v7285_v10 = vrot.slane %v14157_v44, 3 }
 0x4fe   : > { %v5720_v5 = vadd.f32 %v5719_v54, %v5607_v30  ;;  %v14195_v55 = vpop.f32.mrf.mxu1 }
 0x4ff   : > { %v14152_v0 = vpop.permute.xlu2 %6808  ;;  %v14159_v50 = vor.u32 %v6309_v21, %v6306_v28  ;;  %v14208_v54 = vor.u32 %v7285_v10, %v7284_v6 }
 0x500   : > { %7348 = vrot.lane.b32.xlu1 %v7283_v52, %s9870_s15  ;;  %v5833_v12 = vadd.f32 %v13997_v36, %v5720_v5  ;;  %v5609_v52 = vadd.f32 %v13597_v31, %v5608_v63 }
 0x501   : > { %6904 = vrot.lane.b32.xlu0 %v14062_v27, %s9868_s13  ;;  %v7423_v27 = vsel %vm4982_vm6, %v13990_v22, %v14001_v43  ;;  %v6311_v19 = vsel %vm10855_vm13, %v6302_v61, %v14159_v50  ;;  %v7112_v22 = vrot.slane %v14136_v7, 2  ;;  %v6868_v61 = vrot.slane %v14136_v7, 1 }
 0x502   : > { %v7335_v57 = vpop.permute.xlu1 %7334  ;;  %6457 = vst.msk [vmem:[#allocation2 + $0x8c] sm:$0xf] %vm307_vm5, %v6311_v19  ;;  %v5885_v43 = vmax.f32 %v5833_v12, 0.0  ;;  %v6312_v63 = vrot.slane %v14159_v50, 4 }
 0x503   : > { %v7678_v26 = vsel %vm5069_vm8, %v7632_v58, %v7335_v57  ;;  %v6891_v24 = vpop.permute.xlu0 %6890 }
 0x504   : > { %8080 = vmatmul.bf16.gmra.mxu3 %v7678_v26  ;;  %9494 = vmatmul.msk.bf16.gmra.mxu0 %vm4982_vm6, %v7381_v59  ;;  %v7466_v32 = vsel %vm5026_vm7, %v7423_v27, %v6891_v24  ;;  %v5926_v28 = vmul.f32 %v5885_v43, %v12534_v42  ;;  %v14216_v59 = vsel %vm734_vm1, %v6866_v23, %v6868_v61  ;;  %v14226_v24 = vld [vmem:[#allocation2 + $0x40] sm:$0xff]  ;;  %v6749_v23 = vrot.slane %v14157_v44, 1 }
 0x505   : > { %6820 = vrot.lane.b32.xlu2 %v6742_v15, %s9869_s14  ;;  %v7513_v36 = vsel %vm5069_vm8, %v7466_v32, %v14042_v53  ;;  %v5721_v30 = vpop.f32.mrf.mxu0  ;;  %v7113_v53 = vsel %vm1341_vm4, %v7110_v62, %v7112_v22  ;;  %v14218_v62 = vld [vmem:[#allocation2 + $0x80] sm:$0xff]  ;;  %v7382_v48 = vrot.slane %v14226_v24, 3 }
 0x506   : > { %7972 = vmatmul.bf16.gmra.mxu2 %v7513_v36  ;;  %v5722_v58 = vadd.f32 %v5721_v30, %v5609_v52  ;;  %v6745_v52 = vor.u32 %v13987_v56, %v6741_v20  ;;  %v14244_v50 = vshrl.u32 %v14218_v62, 16  ;;  %v7425_v56 = vsel %vm4982_vm6, %v14071_v47, %v14078_v11 }
 0x507   : > { %v14199_v21 = vpop.permute.xlu2 %6953  ;;  %v7383_v20 = vsel %vm1779_vm3, %v7380_v8, %v7382_v48  ;;  %v7114_v11 = vrot.slane %v14218_v62, 2 }
 0x508   : > { %7150 = vrot.lane.b32.xlu1 %v7111_v34, %s9869_s14  ;;  %v5967_v34 = vpack.c.bf16 %v5926_v28, %v5926_v28  ;;  %v5835_v5 = vadd.f32 %v14051_v17, %v5722_v58  ;;  %v7287_v17 = vsel %vm4797_vm0, %v14124_v60, %v14208_v54  ;;  %v14241_v28 = vshll.u32 %v14218_v62, 16 }
 0x509   : > { %7207 = vrot.lane.b32.xlu0 %v7113_v53, %s9868_s13 }
 0x50a   : > { %v7137_v40 = vpop.permute.xlu1 %7136  ;;  %v6314_v57 = vshrl.u32 %v5967_v34, 16  ;;  %v6317_v42 = vshll.u32 %v5967_v34, 16  ;;  %v5886_v19 = vmax.f32 %v5835_v5, 0.0  ;;  %v7288_v5 = vrot.slane %v14244_v50, 2 }
 0x50b   : > { %v7194_v26 = vpop.permute.xlu0 %7193  ;;  %v7577_v60 = vsel %vm4982_vm6, %v13446_v49, %v7137_v40  ;;  %v14251_v49 = vpop.f32.mrf.mxu1  ;;  %v7289_v8 = vrot.slane %v14241_v28, 3 }
 0x50c   : > { %v6316_v38 = vrot.slane %v6314_v57, 6  ;;  %v6319_v27 = vrot.slane %v6317_v42, 7  ;;  %v5927_v15 = vmul.f32 %v5886_v19, %v12432_v45  ;;  %v7634_v30 = vsel %vm5026_vm7, %v7577_v60, %v7194_v26  ;;  %v14282_v60 = vld [vmem:[%s15069_s5] ss:$0 sm:$0xff] }
 0x50d   : > { %6965 = vrot.lane.b32.xlu2 %v14216_v59, %s9870_s15  ;;  %v5724_v6 = vpop.f32.mrf.mxu0  ;;  %v7044_v26 = vrot.slane %v14165_v4, 1 }
 0x50e   : > { %v6320_v32 = vor.u32 %v6319_v27, %v6316_v38 }
 0x50f   : > { %v5611_v12 = vpop.f32.mrf.mxu3  ;;  %v14233_v36 = vpop.permute.xlu2 %6810 }
 0x510   : > { %7350 = vrot.lane.b32.xlu1 %v7287_v17, %s9870_s15  ;;  %v5612_v43 = vadd.f32 %v13597_v31, %v5611_v12  ;;  %v6321_v45 = vsel %vm10855_vm13, %v6312_v63, %v6320_v32  ;;  %v5968_v31 = vpack.c.bf16 %v5927_v15, %v5927_v15  ;;  %v7045_v12 = vrot.slane %v14157_v44, 2 }
 0x511   : > { %6906 = vrot.lane.b32.xlu0 %v14134_v16, %s9868_s13  ;;  %6458 = vst.msk [vmem:[#allocation2 + $0x90] sm:$0xf] %vm307_vm5, %v6321_v45  ;;  %v6750_v16 = vsel %vm4194_vm14, %v6745_v52, %v6749_v23  ;;  %v6322_v63 = vrot.slane %v6320_v32, 4 }
 0x512   : > { %v7337_v10 = vpop.permute.xlu1 %7336  ;;  %v5725_v34 = vadd.f32 %v5724_v6, %v5612_v43  ;;  %v6324_v40 = vshrl.u32 %v5968_v31, 16  ;;  %v6327_v58 = vshll.u32 %v5968_v31, 16  ;;  %v14295_v32 = vor.u32 %v7045_v12, %v7044_v26 }
 0x513   : > { %v7681_v14 = vsel %vm5069_vm8, %v7634_v30, %v7337_v10  ;;  %v6893_v47 = vpop.permute.xlu0 %6892 }
 0x514   : > { %v5838_v57 = vadd.f32 %v14096_v2, %v5725_v34  ;;  %8085 = vmatmul.bf16.gmra.mxu3 %v7681_v14  ;;  %9495 = vmatmul.msk.bf16.gmra.mxu0 %vm4982_vm6, %v7383_v20  ;;  %v7468_v42 = vsel %vm5026_vm7, %v7425_v56, %v6893_v47  ;;  %v6326_v38 = vrot.slane %v6324_v40, 6  ;;  %v6329_v27 = vrot.slane %v6327_v58, 7  ;;  %v14304_v56 = vpop.f32.mrf.mxu1 }
 0x515   : > { %6822 = vrot.lane.b32.xlu2 %v6750_v16, %s9869_s14  ;;  %v7516_v2 = vsel %vm5069_vm8, %v7468_v42, %v14114_v39  ;;  %v5726_v39 = vpop.f32.mrf.mxu0  ;;  %v14301_v34 = vor.u32 %v7289_v8, %v7288_v5  ;;  %v14327_v8 = vld [vmem:[#allocation2 + $0x48] sm:$0xff] }
 0x516   : > { %v5887_v19 = vmax.f32 %v5838_v57, 0.0  ;;  %7977 = vmatmul.bf16.gmra.mxu2 %v7516_v2  ;;  %v6330_v15 = vor.u32 %v6329_v27, %v6326_v38  ;;  %v14319_v57 = vld [vmem:[#allocation2 + $0x88] sm:$0xff]  ;;  %v7384_v7 = vrot.slane %v14327_v8, 3 }
 0x517   : > { %v5613_v17 = vpop.f32.mrf.mxu3  ;;  %v14285_v10 = vpop.permute.xlu2 %6955 }
 0x518   : > { %7152 = vrot.lane.b32.xlu1 %v7113_v53, %s9869_s14  ;;  %v5928_v43 = vmul.f32 %v5887_v19, %v12675_v9  ;;  %v5614_v6 = vadd.f32 %v14282_v60, %v5613_v17  ;;  %v14292_v53 = vsel %vm1341_vm4, %v7112_v22, %v7114_v11  ;;  %v6870_v9 = vrot.slane %v14218_v62, 1 }
 0x519   : > { %v6331_v45 = vsel %vm10855_vm13, %v6322_v63, %v6330_v15  ;;  %7209 = vrot.lane.b32.xlu0 %v14292_v53, %s9868_s13  ;;  %v14309_v22 = vsel %vm4552_vm15, %v14027_v3, %v14295_v32  ;;  %v7291_v3 = vsel %vm4797_vm0, %v14208_v54, %v14301_v34  ;;  %v6332_v26 = vrot.slane %v6330_v15, 4 }
 0x51a   : > { %v7139_v52 = vpop.permute.xlu1 %7138  ;;  %v5969_v31 = vpack.c.bf16 %v5928_v43, %v5928_v43  ;;  %v5727_v30 = vadd.f32 %v5726_v39, %v5614_v6  ;;  %6459 = vst.msk [vmem:[#allocation2 + $0x94] sm:$0xf] %vm307_vm5, %v6331_v45  ;;  %v14317_v58 = vsel %vm734_vm1, %v6868_v61, %v6870_v9  ;;  %v6757_v61 = vrot.slane %v14241_v28, 1 }
 0x51b   : > { %v7196_v40 = vpop.permute.xlu0 %7195  ;;  %v7580_v54 = vsel %vm4982_vm6, %v13542_v46, %v7139_v52  ;;  %v6753_v63 = vor.u32 %v14165_v4, %v6749_v23  ;;  %v14341_v43 = vshll.u32 %v14319_v57, 16  ;;  %v14344_v15 = vshrl.u32 %v14319_v57, 16 }
 0x51c   : > { %v6334_v14 = vshrl.u32 %v5969_v31, 16  ;;  %v6337_v20 = vshll.u32 %v5969_v31, 16  ;;  %v5840_v16 = vadd.f32 %v14138_v51, %v5727_v30  ;;  %v7636_v39 = vsel %vm5026_vm7, %v7580_v54, %v7196_v40  ;;  %v5849_v23 = vpop.f32.mrf.mxu1 }
 0x51d   : > { %6967 = vrot.lane.b32.xlu2 %v14317_v58, %s9870_s15  ;;  %v5729_v17 = vpop.f32.mrf.mxu0  ;;  %v7427_v46 = vsel %vm4982_vm6, %v14146_v13, %v14152_v0  ;;  %v7385_v4 = vsel %vm1779_vm3, %v7382_v48, %v7384_v7  ;;  %v6758_v13 = vsel %vm4194_vm14, %v6753_v63, %v6757_v61  ;;  %v7293_v48 = vrot.slane %v14341_v43, 3 }
 0x51e   : > { %v6336_v47 = vrot.slane %v6334_v14, 6  ;;  %v6339_v42 = vrot.slane %v6337_v20, 7  ;;  %v5888_v5 = vmax.f32 %v5840_v16, 0.0  ;;  %v7116_v14 = vrot.slane %v14319_v57, 2 }
 0x51f   : > { %v5616_v51 = vpop.f32.mrf.mxu3  ;;  %v14333_v2 = vpop.permute.xlu2 %6812  ;;  %v7292_v20 = vrot.slane %v14344_v15, 2 }
 0x520   : > { %7352 = vrot.lane.b32.xlu1 %v7291_v3, %s9870_s15  ;;  %v6340_v38 = vor.u32 %v6339_v42, %v6336_v47  ;;  %v5929_v27 = vmul.f32 %v5888_v5, %v12625_v33  ;;  %v5617_v19 = vadd.f32 %v14282_v60, %v5616_v51  ;;  %v15412_v51 = vld [vmem:[#allocation18_spill] sm:$0xff] }
 0x521   : > { %6908 = vrot.lane.b32.xlu0 %v14216_v59, %s9868_s13  ;;  %v14405_v23 = vld [vmem:[#allocation2 + $0x90] sm:$0xff] }
 0x522   : > { %v7339_v12 = vpop.permute.xlu1 %7338  ;;  %v6341_v33 = vsel %vm10855_vm13, %v6332_v26, %v6340_v38  ;;  %v5970_v6 = vpack.c.bf16 %v5929_v27, %v5929_v27  ;;  %v5730_v45 = vadd.f32 %v5729_v17, %v5617_v19  ;;  %v6342_v5 = vrot.slane %v6340_v38, 4 }
 0x523   : > { %6460 = vst.msk [vmem:[#allocation2 + $0x98] sm:$0xf] %vm307_vm5, %v6341_v33  ;;  %v7684_v44 = vsel %vm5069_vm8, %v7636_v39, %v7339_v12  ;;  %v6895_v59 = vpop.permute.xlu0 %6894  ;;  %v14391_v33 = vor.u32 %v7293_v48, %v7292_v20 }
 0x524   : > { %v6344_v52 = vshrl.u32 %v5970_v6, 16  ;;  %v6347_v31 = vshll.u32 %v5970_v6, 16  ;;  %v5843_v30 = vadd.f32 %v14195_v55, %v5730_v45  ;;  %8090 = vmatmul.bf16.gmra.mxu3 %v7684_v44  ;;  %9496 = vmatmul.msk.bf16.gmra.mxu0 %vm4982_vm6, %v7385_v4  ;;  %v7470_v0 = vsel %vm5026_vm7, %v7427_v46, %v6895_v59  ;;  %v14402_v44 = vld [vmem:[#allocation2 + $0x50] sm:$0xff] }
 0x525   : > { %6824 = vrot.lane.b32.xlu2 %v6758_v13, %s9869_s14  ;;  %v7519_v55 = vsel %vm5069_vm8, %v7470_v0, %v14199_v21  ;;  %v5731_v54 = vpop.f32.mrf.mxu0  ;;  %v14384_v21 = vsel %vm1341_vm4, %v7114_v11, %v7116_v14  ;;  %v7386_v4 = vrot.slane %v14402_v44, 3  ;;  %v6765_v59 = vrot.slane %v14341_v43, 1 }
 0x526   : > { %v6346_v16 = vrot.slane %v6344_v52, 6  ;;  %v6349_v40 = vrot.slane %v6347_v31, 7  ;;  %v5889_v47 = vmax.f32 %v5843_v30, 0.0  ;;  %7982 = vmatmul.bf16.gmra.mxu2 %v7519_v55  ;;  %v7048_v13 = vrot.slane %v14244_v50, 1 }
 0x527   : > { %v5618_v42 = vpop.f32.mrf.mxu3  ;;  %v14377_v19 = vpop.permute.xlu2 %6957  ;;  %v7049_v0 = vrot.slane %v14241_v28, 2 }
 0x528   : > { %7154 = vrot.lane.b32.xlu1 %v14292_v53, %s9869_s14  ;;  %v6350_v3 = vor.u32 %v6349_v40, %v6346_v16  ;;  %v5930_v26 = vmul.f32 %v5889_v47, %v15412_v51  ;;  %v5619_v27 = vadd.f32 %v14282_v60, %v5618_v42  ;;  %v6872_v53 = vrot.slane %v14319_v57, 1  ;;  %v15413_v16 = vld [vmem:[#allocation19_spill] sm:$0xff] }
 0x529   : > { %7211 = vrot.lane.b32.xlu0 %v14384_v21, %s9868_s13  ;;  %v14431_v28 = vor.u32 %v7049_v0, %v7048_v13 }
 0x52a   : > { %v7141_v17 = vpop.permute.xlu1 %7140  ;;  %v6351_v38 = vsel %vm10855_vm13, %v6342_v5, %v6350_v3  ;;  %v5971_v12 = vpack.c.bf16 %v5930_v26, %v5930_v26  ;;  %v5732_v63 = vadd.f32 %v5731_v54, %v5619_v27  ;;  %v14400_v46 = vsel %vm734_vm1, %v6870_v9, %v6872_v53 }
 0x52b   : > { %6461 = vst.msk [vmem:[#allocation2 + $0x9c] sm:$0xf] %vm307_vm5, %v6351_v38  ;;  %v7198_v11 = vpop.permute.xlu0 %7197  ;;  %v6761_v9 = vor.u32 %v14244_v50, %v6757_v61  ;;  %v6352_v20 = vrot.slane %v6350_v3, 4  ;;  %v7583_v55 = vsel %vm4982_vm6, %v13623_v1, %v7141_v17  ;;  %v14426_v61 = vshll.u32 %v14405_v23, 16 }
 0x52c   : > { %v6354_v6 = vshrl.u32 %v5971_v12, 16  ;;  %v6357_v39 = vshll.u32 %v5971_v12, 16  ;;  %v5845_v45 = vadd.f32 %v14251_v49, %v5732_v63  ;;  %v7295_v49 = vsel %vm4797_vm0, %v14301_v34, %v14391_v33 }
 0x52d   : > { %6969 = vrot.lane.b32.xlu2 %v14400_v46, %s9870_s15  ;;  %v14429_v50 = vshrl.u32 %v14405_v23, 16  ;;  %v7429_v1 = vsel %vm4982_vm6, %v14226_v24, %v14233_v36  ;;  %v7387_v54 = vsel %vm1779_vm3, %v7384_v7, %v7386_v4  ;;  %v14451_v17 = vsel %vm4552_vm15, %v14295_v32, %v14431_v28 }
 0x52e   : > { %v6356_v52 = vrot.slane %v6354_v6, 6  ;;  %v6359_v31 = vrot.slane %v6357_v39, 7  ;;  %v5890_v30 = vmax.f32 %v5845_v45, 0.0  ;;  %v6766_v36 = vsel %vm4194_vm14, %v6761_v9, %v6765_v59 }
 0x52f   : > { %v5621_v62 = vpop.f32.mrf.mxu3  ;;  %v14421_v34 = vpop.permute.xlu2 %6814  ;;  %v7118_v7 = vrot.slane %v14405_v23, 2  ;;  %v7296_v6 = vrot.slane %v14429_v50, 2  ;;  %v7297_v32 = vrot.slane %v14426_v61, 3 }
 0x530   : > { %7354 = vrot.lane.b32.xlu1 %v7295_v49, %s9870_s15  ;;  %v6360_v48 = vor.u32 %v6359_v31, %v6356_v52  ;;  %v5931_v40 = vmul.f32 %v5890_v30, %v15413_v16  ;;  %v5622_v47 = vadd.f32 %v14282_v60, %v5621_v62  ;;  %v7638_v60 = vsel %vm5026_vm7, %v7583_v55, %v7198_v11  ;;  %v15414_v49 = vld [vmem:[#allocation14_spill] sm:$0xff] }
 0x531   : > { %v5734_v42 = vpop.f32.mrf.mxu0  ;;  %6910 = vrot.lane.b32.xlu0 %v14317_v58, %s9868_s13 }
 0x532   : > { %v7341_v5 = vpop.permute.xlu1 %7340  ;;  %v6361_v3 = vsel %vm10855_vm13, %v6352_v20, %v6360_v48  ;;  %v5972_v51 = vpack.c.bf16 %v5931_v40, %v5931_v40  ;;  %v5735_v26 = vadd.f32 %v5734_v42, %v5622_v47  ;;  %v6362_v31 = vrot.slane %v6360_v48, 4 }
 0x533   : > { %6462 = vst.msk [vmem:[#allocation2 + $0xa0] sm:$0xf] %vm307_vm5, %v6361_v3  ;;  %v7687_v27 = vsel %vm5069_vm8, %v7638_v60, %v7341_v5  ;;  %v6897_v24 = vpop.permute.xlu0 %6896  ;;  %v7119_v20 = vsel %vm1341_vm4, %v7116_v14, %v7118_v7  ;;  %v14479_v40 = vor.u32 %v7297_v32, %v7296_v6  ;;  %v14494_v60 = vld [vmem:[#allocation2 + $0x98] sm:$0xff]  ;;  %v6464_v6 = vld [vmem:[#allocation2 + $0xa8] sm:$0xf] }
 0x534   : > { %v6364_v58 = vshrl.u32 %v5972_v51, 16  ;;  %v6367_v38 = vshll.u32 %v5972_v51, 16  ;;  %v5848_v12 = vadd.f32 %v14304_v56, %v5735_v26  ;;  %8095 = vmatmul.bf16.gmra.mxu3 %v7687_v27  ;;  %9497 = vmatmul.msk.bf16.gmra.mxu0 %vm4982_vm6, %v7387_v54  ;;  %v7472_v63 = vsel %vm5026_vm7, %v7429_v1, %v6897_v24  ;;  %v14497_v26 = vld [vmem:[#allocation2 + $0x58] sm:$0xff] }
 0x535   : > { %6826 = vrot.lane.b32.xlu2 %v6766_v36, %s9869_s14  ;;  %v7522_v56 = vsel %vm5069_vm8, %v7472_v63, %v14285_v10  ;;  %v6874_v10 = vrot.slane %v14405_v23, 1  ;;  %v7299_v51 = vsel %vm4797_vm0, %v14391_v33, %v14479_v40  ;;  %v7388_v1 = vrot.slane %v14497_v26, 3 }
 0x536   : > { %v6366_v39 = vrot.slane %v6364_v58, 6  ;;  %v6369_v45 = vrot.slane %v6367_v38, 7  ;;  %v5891_v11 = vmax.f32 %v5848_v12, 0.0  ;;  %7987 = vmatmul.bf16.gmra.mxu2 %v7522_v56  ;;  %v14507_v38 = vld [vmem:[%s15071_s7] ss:$0 sm:$0xff]  ;;  %v6773_v36 = vrot.slane %v14426_v61, 1 }
 0x537   : > { %v5623_v52 = vpop.f32.mrf.mxu3  ;;  %v14468_v9 = vpop.permute.xlu2 %6959  ;;  %v14487_v14 = vsel %vm734_vm1, %v6872_v53, %v6874_v10  ;;  %v7389_v25 = vsel %vm1779_vm3, %v7386_v4, %v7388_v1 }
 0x538   : > { %7156 = vrot.lane.b32.xlu1 %v14384_v21, %s9869_s14  ;;  %v6370_v30 = vor.u32 %v6369_v45, %v6366_v39  ;;  %v5932_v62 = vmul.f32 %v5891_v11, %v15414_v49  ;;  %v14517_v39 = vshll.u32 %v14494_v60, 16  ;;  %v14520_v45 = vshrl.u32 %v14494_v60, 16 }
 0x539   : > { %v5736_v13 = vpop.f32.mrf.mxu0  ;;  %7213 = vrot.lane.b32.xlu0 %v7119_v20, %s9868_s13  ;;  %v7948_v48 = vpop.f32.mrf.mxu2  ;;  %v7431_v52 = vsel %vm4982_vm6, %v14327_v8, %v14333_v2 }
 0x53a   : > { %v7143_v0 = vpop.permute.xlu1 %7142  ;;  %v6371_v21 = vsel %vm10855_vm13, %v6362_v31, %v6370_v30  ;;  %v5973_v16 = vpack.c.bf16 %v5932_v62, %v5932_v62  ;;  %v6372_v27 = vrot.slane %v6370_v30, 4  ;;  %v7949_v30 = vadd.f32 %v14507_v38, %v7948_v48 }
 0x53b   : > { %6463 = vst.msk [vmem:[#allocation2 + $0xa4] sm:$0xf] %vm307_vm5, %v6371_v21  ;;  %v7200_v42 = vpop.permute.xlu0 %7199  ;;  %v7586_v54 = vsel %vm4982_vm6, %v13696_v37, %v7143_v0  ;;  %v7120_v62 = vrot.slane %v14494_v60, 2  ;;  %v7300_v2 = vrot.slane %v14520_v45, 2  ;;  %v7301_v13 = vrot.slane %v14517_v39, 3 }
 0x53c   : > { %v6374_v47 = vshrl.u32 %v5973_v16, 16  ;;  %v6377_v55 = vshll.u32 %v5973_v16, 16  ;;  %v7640_v33 = vsel %vm5026_vm7, %v7586_v54, %v7200_v42  ;;  %v7052_v16 = vrot.slane %v14344_v15, 1 }
 0x53d   : > { %6971 = vrot.lane.b32.xlu2 %v14487_v14, %s9870_s15  ;;  %v7053_v48 = vrot.slane %v14341_v43, 2  ;;  %vm8319_vm5 = vcmask 64512  }
 0x53e   : > { %v6376_v5 = vrot.slane %v6374_v47, 6  ;;  %v6379_v3 = vrot.slane %v6377_v55, 7 }
 0x53f   : > { %v14502_v58 = vpop.permute.xlu2 %6816 }
 0x540   : > { %7356 = vrot.lane.b32.xlu1 %v7299_v51, %s9870_s15  ;;  %v6380_v53 = vor.u32 %v6379_v3, %v6376_v5  ;;  %v14559_v5 = vrot.slane %v14494_v60, 1 }
 0x541   : > { %v8174_v12 = vpop.f32.mrf.mxu0  ;;  %6912 = vrot.lane.b32.xlu0 %v14400_v46, %s9868_s13  ;;  %v7950_v37 = vpop.f32.mrf.mxu2  ;;  %v6769_v46 = vor.u32 %v14344_v15, %v6765_v59  ;;  %v14567_v15 = vor.u32 %v7301_v13, %v7300_v2 }
 0x542   : > { %v7343_v24 = vpop.permute.xlu1 %7342  ;;  %v6381_v63 = vsel %vm10855_vm13, %v6372_v27, %v6380_v53  ;;  %v7951_v27 = vadd.f32 %v14507_v38, %v7950_v37  ;;  %v14583_v53 = vsel %vm734_vm1, %v6874_v10, %v14559_v5 }
 0x543   : > { %v7690_v32 = vsel %vm5069_vm8, %v7640_v33, %v7343_v24  ;;  %v6465_v56 = vsel %vm12917_vm12, %v6381_v63, %v6464_v6  ;;  %v6899_v31 = vpop.permute.xlu0 %6898  ;;  %v6774_v4 = vsel %vm4194_vm14, %v6769_v46, %v6773_v36  ;;  %v7303_v33 = vsel %vm4797_vm0, %v14479_v40, %v14567_v15  ;;  %v14593_v24 = vld [vmem:[#allocation2 + $0x60] sm:$0xff] }
 0x544   : > { %6466 = vst [vmem:[#allocation2 + $0xa8] sm:$0xf] %v6465_v56  ;;  %8100 = vmatmul.bf16.gmra.mxu3 %v7690_v32  ;;  %9498 = vmatmul.msk.bf16.gmra.mxu0 %vm4982_vm6, %v7389_v25  ;;  %v7474_v49 = vsel %vm5026_vm7, %v7431_v52, %v6899_v31  ;;  %v7390_v63 = vrot.slane %v14593_v24, 3  ;;  %v6781_v40 = vrot.slane %v14517_v39, 1  ;;  %v6508_v25 = vld [vmem:[#allocation2 + $0xa0] sm:$0x7] }
 0x545   : > { %6828 = vrot.lane.b32.xlu2 %v6774_v4, %s9869_s14  ;;  %v7525_v8 = vsel %vm5069_vm8, %v7474_v49, %v14377_v19  ;;  %v7121_v19 = vsel %vm1341_vm4, %v7118_v7, %v7120_v62  ;;  %v6777_v4 = vor.u32 %v14429_v50, %v6773_v36 }
 0x546   : > { %7992 = vmatmul.bf16.gmra.mxu2 %v7525_v8  ;;  %v7391_v49 = vsel %vm1779_vm3, %v7388_v1, %v7390_v63  ;;  %v6625_v8 = vunpack.c.l.b16 %v6508_v25  ;;  %v7057_v25 = vrot.slane %v14426_v61, 2 }
 0x547   : > { %v8061_v59 = vpop.f32.mrf.mxu3  ;;  %v14549_v21 = vpop.permute.xlu2 %6961  ;;  %v6782_v1 = vsel %vm4194_vm14, %v6777_v4, %v6781_v40 }
 0x548   : > { %v8062_v0 = vadd.f32 %v8061_v59, %v7949_v30  ;;  %7158 = vrot.lane.b32.xlu1 %v7119_v20, %s9869_s14  ;;  %v14569_v20 = vor.u32 %v7053_v48, %v7052_v16 }
 0x549   : > { %v8176_v55 = vpop.f32.mrf.mxu0  ;;  %7215 = vrot.lane.b32.xlu0 %v7121_v19, %s9868_s13  ;;  %v7953_v43 = vpop.f32.mrf.mxu2 }
 0x54a   : > { %v8175_v47 = vadd.f32 %v8174_v12, %v8062_v0  ;;  %v7145_v42 = vpop.permute.xlu1 %7144  ;;  %v14574_v7 = vsel %vm4552_vm15, %v14431_v28, %v14569_v20  ;;  %v14590_v28 = vld [vmem:[#allocation2 + $0xa0] sm:$0xff]  ;;  %v7954_v2 = vadd.f32 %v14507_v38, %v7953_v43 }
 0x54b   : > { %v7202_v51 = vpop.permute.xlu0 %7201  ;;  %v7589_v10 = vsel %vm4982_vm6, %v13775_v35, %v7145_v42  ;;  %v7065_v31 = vshrl.u32 %v14590_v28, 16  ;;  %v7068_v35 = vshll.u32 %v14590_v28, 16  ;;  %v14627_v36 = vrot.slane %v14590_v28, 2 }
 0x54c   : > { %v8278_v3 = vmax.f32 %v8175_v47, 0.0  ;;  %v7642_v37 = vsel %vm5026_vm7, %v7589_v10, %v7202_v51  ;;  %v6935_v51 = vrot.slane %v14590_v28, 1 }
 0x54d   : > { %6973 = vrot.lane.b32.xlu2 %v14583_v53, %s9870_s15  ;;  %v7304_v0 = vrot.slane %v7065_v31, 2  ;;  %v7305_v16 = vrot.slane %v7068_v35, 3 }
 0x54e   : > { %8320 = vst.msk [vmem:[%s14564_s26] sm:$0xff] %vm8319_vm5, %v8278_v3 }
 0x54f   : > { %v8063_v54 = vpop.f32.mrf.mxu3  ;;  %v14598_v6 = vpop.permute.xlu2 %6818 }
 0x550   : > { %v8064_v12 = vadd.f32 %v8063_v54, %v7951_v27  ;;  %7358 = vrot.lane.b32.xlu1 %v7303_v33, %s9870_s15 }
 0x551   : > { %v8179_v11 = vpop.f32.mrf.mxu0  ;;  %6914 = vrot.lane.b32.xlu0 %v14487_v14, %s9868_s13  ;;  %v7955_v46 = vpop.f32.mrf.mxu2  ;;  %v7433_v14 = vsel %vm4982_vm6, %v14402_v44, %v14421_v34 }
 0x552   : > { %v8177_v32 = vadd.f32 %v8176_v55, %v8064_v12  ;;  %v7345_v56 = vpop.permute.xlu1 %7344  ;;  %v14639_v55 = vpack.c.b16 %v6625_v8, %v6625_v8  ;;  %v7956_v10 = vadd.f32 %v14507_v38, %v7955_v46 }
 0x553   : > { %v7693_v52 = vsel %vm5069_vm8, %v7642_v37, %v7345_v56  ;;  %v6901_v59 = vpop.permute.xlu0 %6900  ;;  %v7056_v37 = vrot.slane %v14429_v50, 1  ;;  %v6513_v56 = vld [vmem:[#allocation2 + $0xa8] sm:$0x7] }
 0x554   : > { %v8279_v30 = vmax.f32 %v8177_v32, 0.0  ;;  %8105 = vmatmul.bf16.gmra.mxu3 %v7693_v52  ;;  %9499 = vmatmul.msk.bf16.gmra.mxu0 %vm4982_vm6, %v7391_v49  ;;  %v7476_v13 = vsel %vm5026_vm7, %v7433_v14, %v6901_v59  ;;  %v6787_v12 = vshll.u32 %v14639_v55, 16  ;;  %v14664_v52 = vld [vmem:[#allocation2 + $0x68] sm:$0xff] }
 0x555   : > { %6830 = vrot.lane.b32.xlu2 %v6782_v1, %s9869_s14  ;;  %v7528_v34 = vsel %vm5069_vm8, %v7476_v13, %v14468_v9  ;;  %v7123_v9 = vsel %vm1341_vm4, %v7120_v62, %v14627_v36  ;;  %v6936_v62 = vsel %vm734_vm1, %v14559_v5, %v6935_v51  ;;  %v14667_v49 = vld [vmem:[#allocation2 + $0xa8] sm:$0xff]   ;;  %v6785_v13 = vor.u32 %v14520_v45, %v6781_v40 }
 0x556   : > { %8321 = vst.msk [vmem:[%s14564_s26 + $0x8] sm:$0xff] %vm8319_vm5, %v8279_v30  ;;  %7997 = vmatmul.bf16.gmra.mxu2 %v7528_v34  ;;  %v7392_v30 = vrot.slane %v14664_v52, 3  ;;  %v14673_v14 = vrot.slane %v6787_v12, 1  ;;  %v6929_v1 = vunpack.c.l.b16 %v6513_v56  ;;  %v7309_v34 = vshrl.u32 %v14667_v49, 16 }
 0x557   : > { %v8066_v44 = vpop.f32.mrf.mxu3  ;;  %v14637_v47 = vpop.permute.xlu2 %6963 }
 0x558   : > { %v8067_v48 = vadd.f32 %v8066_v44, %v7954_v2  ;;  %7160 = vrot.lane.b32.xlu1 %v7121_v19, %s9869_s14  ;;  %v14647_v19 = vor.u32 %v7305_v16, %v7304_v0  ;;  %v7312_v0 = vshll.u32 %v14667_v49, 16  ;;  %v7393_v40 = vsel %vm1779_vm3, %v7390_v63, %v7392_v30 }
 0x559   : > { %v8181_v43 = vpop.f32.mrf.mxu0  ;;  %7217 = vrot.lane.b32.xlu0 %v7123_v9, %s9868_s13  ;;  %v7958_v27 = vpop.f32.mrf.mxu2  ;;  %v14707_v63 = vpack.c.b16 %v6929_v1, %v6929_v1 }
 0x55a   : > { %v8180_v42 = vadd.f32 %v8179_v11, %v8067_v48  ;;  %v7147_v3 = vpop.permute.xlu1 %7146  ;;  %v7307_v11 = vsel %vm4797_vm0, %v14567_v15, %v14647_v19  ;;  %v14675_v15 = vor.u32 %v7057_v25, %v7056_v37  ;;  %v7314_v12 = vrot.slane %v7312_v0, 3 }
 0x55b   : > { %v7204_v33 = vpop.permute.xlu0 %7203  ;;  %v7592_v50 = vsel %vm4982_vm6, %v13875_v41, %v7147_v3  ;;  %v7061_v0 = vrot.slane %v14517_v39, 2 }
 0x55c   : > { %v8280_v54 = vmax.f32 %v8180_v42, 0.0  ;;  %v7644_v61 = vsel %vm5026_vm7, %v7592_v50, %v7204_v33  ;;  %v14689_v16 = vsel %vm4552_vm15, %v14569_v20, %v14675_v15  ;;  %v7959_v20 = vadd.f32 %v14507_v38, %v7958_v27  ;;  %v6518_v27 = vld [vmem:[#allocation2 + $0xb0] sm:$0xf] }
 0x55d   : > { %6975 = vrot.lane.b32.xlu2 %v6936_v62, %s9870_s15  ;;  %v7311_v33 = vrot.slane %v7309_v34, 2  ;;  %v6519_v62 = vld [vmem:[#allocation2 + $0xb4] sm:$0x1]  ;;  %v9761_v50 = vunpack.c.l.b16 %v14667_v49  ;;  %v7060_v34 = vrot.slane %v14520_v45, 1 }
 0x55e   : > { %8322 = vst.msk [vmem:[%s14564_s26 + $0x10] sm:$0xff] %vm8319_vm5, %v8280_v54  ;;  %v7179_v54 = vrot.slane %v14667_v49, 2 }
 0x55f   : > { %v8068_v32 = vpop.f32.mrf.mxu3  ;;  %v14671_v4 = vpop.permute.xlu2 %6820 }
 0x560   : > { %v8069_v46 = vadd.f32 %v8068_v32, %v7956_v10  ;;  %7360 = vrot.lane.b32.xlu1 %v7307_v11, %s9870_s15  ;;  %v7180_v25 = vsel %vm1341_vm4, %v14627_v36, %v7179_v54 }
 0x561   : > { %v8184_v8 = vpop.f32.mrf.mxu0  ;;  %6916 = vrot.lane.b32.xlu0 %v14583_v53, %s9868_s13  ;;  %v7960_v41 = vpop.f32.mrf.mxu2  ;;  %v7435_v53 = vsel %vm4982_vm6, %v14497_v26, %v14502_v58 }
 0x562   : > { %v8182_v59 = vadd.f32 %v8181_v43, %v8069_v46  ;;  %v7347_v2 = vpop.permute.xlu1 %7346  ;;  %v6790_v43 = vsel %vm4194_vm14, %v6785_v13, %v14673_v14  ;;  %v6878_v13 = vrot.slane %v14639_v55, 1  ;;  %v7961_v1 = vadd.f32 %v14507_v38, %v7960_v41 }
 0x563   : > { %v7696_v44 = vsel %vm5069_vm8, %v7644_v61, %v7347_v2  ;;  %v6903_v42 = vpop.permute.xlu0 %6902  ;;  %v7173_v61 = vunpack.c.l.b16 %v6518_v27  ;;  %v14739_v41 = vpack.c.b16 %v9761_v50, %v9761_v50 }
 0x564   : > { %v8281_v48 = vmax.f32 %v8182_v59, 0.0  ;;  %8110 = vmatmul.bf16.gmra.mxu3 %v7696_v44  ;;  %9500 = vmatmul.msk.bf16.gmra.mxu0 %vm4982_vm6, %v7393_v40  ;;  %v7478_v3 = vsel %vm5026_vm7, %v7435_v53, %v6903_v42  ;;  %v7226_v59 = vunpack.c.l.b16 %v6519_v62 }
 0x565   : > { %6832 = vrot.lane.b32.xlu2 %v6790_v43, %s9869_s14  ;;  %v7531_v58 = vsel %vm5069_vm8, %v7478_v3, %v14549_v21  ;;  %v6937_v21 = vrot.slane %v14707_v63, 1  ;;  %v14744_v43 = vld [vmem:[#allocation2 + $0x70] sm:$0xff]  ;;  %v7124_v62 = vrot.slane %v14739_v41, 2 }
 0x566   : > { %8323 = vst.msk [vmem:[%s14564_s26 + $0x18] sm:$0xff] %vm8319_vm5, %v8281_v48  ;;  %8002 = vmatmul.bf16.gmra.mxu2 %v7531_v58  ;;  %v14741_v53 = vpack.c.b16 %v7226_v59, %v7173_v61  ;;  %v7394_v45 = vrot.slane %v14744_v43, 3 }
 0x567   : > { %v8071_v26 = vpop.f32.mrf.mxu3  ;;  %v14713_v37 = vpop.permute.xlu2 %6965  ;;  %v6938_v44 = vsel %vm734_vm1, %v6935_v51, %v6937_v21  ;;  %v14747_v51 = vor.u32 %v7061_v0, %v7060_v34 }
 0x568   : > { %v8072_v10 = vadd.f32 %v8071_v26, %v7959_v20  ;;  %7162 = vrot.lane.b32.xlu1 %v7123_v9, %s9869_s14  ;;  %v14721_v9 = vor.u32 %v7314_v12, %v7311_v33  ;;  %v6791_v20 = vshrl.u32 %v14639_v55, 16  ;;  %v7176_v12 = vpack.c.b16 %v7173_v61, %v7173_v61 }
 0x569   : > { %v8186_v11 = vpop.f32.mrf.mxu0  ;;  %7219 = vrot.lane.b32.xlu0 %v7180_v25, %s9868_s13  ;;  %v7963_v46 = vpop.f32.mrf.mxu2  ;;  %v7437_v25 = vsel %vm4982_vm6, %v14593_v24, %v14598_v6  ;;  %v7125_v24 = vsel %vm1341_vm4, %v14627_v36, %v7124_v62 }
 0x56a   : > { %v8185_v32 = vadd.f32 %v8184_v8, %v8072_v10  ;;  %v7149_v56 = vpop.permute.xlu1 %7148  ;;  %v7316_v40 = vsel %vm4797_vm0, %v14647_v19, %v14721_v9  ;;  %v6879_v19 = vsel %vm734_vm1, %v14559_v5, %v6878_v13  ;;  %v14760_v10 = vsel %vm4552_vm15, %v14675_v15, %v14747_v51 }
 0x56b   : > { %v7206_v8 = vpop.permute.xlu0 %7205  ;;  %v7595_v39 = vsel %vm4982_vm6, %v13947_v18, %v7149_v56  ;;  %v7395_v15 = vsel %vm1779_vm3, %v7392_v30, %v7394_v45  ;;  %v6793_v61 = vor.u32 %v6791_v20, %v14673_v14  ;;  %v7964_v59 = vadd.f32 %v14507_v38, %v7963_v46 }
 0x56c   : > { %v8282_v2 = vmax.f32 %v8185_v32, 0.0  ;;  %v7646_v3 = vsel %vm5026_vm7, %v7595_v39, %v7206_v8  ;;  %v7318_v32 = vshrl.u32 %v14741_v53, 16  ;;  %v14783_v8 = vrot.slane %v7176_v12, 2 }
 0x56d   : > { %6977 = vrot.lane.b32.xlu2 %v6938_v44, %s9870_s15  ;;  %v7070_v20 = vrot.slane %v7068_v35, 2  ;;  %vm8360_vm1 = vcmask 60416  }
 0x56e   : > { %8324 = vst.msk [vmem:[%s14564_s26 + $0x20] sm:$0xff] %vm8319_vm5, %v8282_v2  ;;  %v7320_v14 = vrot.slane %v7318_v32, 2 }
 0x56f   : > { %v8073_v48 = vpop.f32.mrf.mxu3  ;;  %v14762_v18 = vpop.permute.xlu2 %6822 }
 0x570   : > { %v8074_v42 = vadd.f32 %v8073_v48, %v7961_v1  ;;  %7362 = vrot.lane.b32.xlu1 %v7316_v40, %s9870_s15  ;;  %v7182_v48 = vsel %vm1341_vm4, %v7179_v54, %v14783_v8 }
 0x571   : > { %v8189_v58 = vpop.f32.mrf.mxu0  ;;  %6918 = vrot.lane.b32.xlu0 %v6879_v19, %s9868_s13  ;;  %v7965_v27 = vpop.f32.mrf.mxu2 }
 0x572   : > { %v8187_v26 = vadd.f32 %v8186_v11, %v8074_v42  ;;  %v7349_v33 = vpop.permute.xlu1 %7348  ;;  %v7321_v11 = vshll.u32 %v14741_v53, 16  ;;  %v7966_v19 = vadd.f32 %v14507_v38, %v7965_v27 }
 0x573   : > { %v7699_v5 = vsel %vm5069_vm8, %v7646_v3, %v7349_v33  ;;  %v6905_v50 = vpop.permute.xlu0 %6904  ;;  %v7067_v3 = vrot.slane %v7065_v31, 1 }
 0x574   : > { %v8283_v56 = vmax.f32 %v8187_v26, 0.0  ;;  %9501 = vmatmul.msk.bf16.gmra.mxu0 %vm4982_vm6, %v7395_v15  ;;  %8115 = vmatmul.bf16.gmra.mxu3 %v7699_v5  ;;  %v7480_v2 = vsel %vm5026_vm7, %v7437_v25, %v6905_v50  ;;  %v7323_v46 = vrot.slane %v7321_v11, 3  ;;  %v7406_v15 = vrot.slane %v14590_v28, 3 }
 0x575   : > { %6834 = vrot.lane.b32.xlu2 %v6793_v61, %s9869_s14  ;;  %v7534_v6 = vsel %vm5069_vm8, %v7480_v2, %v14637_v47  ;;  %v7071_v27 = vor.u32 %v7070_v20, %v7067_v3  ;;  %v7408_v25 = vrot.slane %v14667_v49, 3  ;;  %v7439_v50 = vsel %vm4982_vm6, %v14664_v52, %v14671_v4 }
 0x576   : > { %8325 = vst.msk [vmem:[%s14564_s26 + $0x28] sm:$0xff] %vm8319_vm5, %v8283_v56  ;;  %8007 = vmatmul.bf16.gmra.mxu2 %v7534_v6  ;;  %v7324_v40 = vor.u32 %v7323_v46, %v7320_v14 }
 0x577   : > { %v8076_v30 = vpop.f32.mrf.mxu3  ;;  %v14798_v42 = vpop.permute.xlu2 %6967  ;;  %v14846_v49 = vsel %vm1779_vm3, %v7406_v15, %v7408_v25 }
 0x578   : > { %v8077_v1 = vadd.f32 %v8076_v30, %v7964_v59  ;;  %7164 = vrot.lane.b32.xlu1 %v7125_v24, %s9869_s14  ;;  %v7325_v26 = vsel %vm4797_vm0, %v14721_v9, %v7324_v40  ;;  %v14821_v9 = vsel %vm4552_vm15, %v14747_v51, %v7071_v27  ;;  %v7410_v51 = vrot.slane %v14741_v53, 3 }
 0x579   : > { %v8191_v34 = vpop.f32.mrf.mxu0  ;;  %7221 = vrot.lane.b32.xlu0 %v7182_v48, %s9868_s13  ;;  %v7968_v36 = vpop.f32.mrf.mxu2  ;;  %v7074_v30 = vshrl.u32 %v14739_v41, 16  ;;  %v7077_v24 = vshll.u32 %v14739_v41, 16 }
 0x57a   : > { %v8190_v44 = vadd.f32 %v8189_v58, %v8077_v1  ;;  %v7151_v0 = vpop.permute.xlu1 %7150  ;;  %v14812_v58 = vld [vmem:[#allocation2 + $0x78] sm:$0xff]  ;;  %v7969_v55 = vadd.f32 %v14507_v38, %v7968_v36  ;;  %v14851_v61 = vsel %vm1779_vm3, %v7408_v25, %v7410_v51 }
 0x57b   : > { %v7208_v39 = vpop.permute.xlu0 %7207  ;;  %v7396_v33 = vrot.slane %v14812_v58, 3  ;;  %v7598_v35 = vsel %vm4982_vm6, %v14038_v29, %v7151_v0  ;;  %v7076_v1 = vrot.slane %v7074_v30, 1 }
 0x57c   : > { %v8284_v47 = vmax.f32 %v8190_v44, 0.0  ;;  %v7648_v31 = vsel %vm5026_vm7, %v7598_v35, %v7208_v39  ;;  %v7079_v44 = vrot.slane %v7077_v24, 2  ;;  %v14874_v39 = vld [vmem:[#allocation2 + $0x80] sm:$0xff] }
 0x57d   : > { %6979 = vrot.lane.b32.xlu2 %v6937_v21, %s9870_s15  ;;  %v7397_v32 = vsel %vm1779_vm3, %v7394_v45, %v7396_v33 }
 0x57e   : > { %8326 = vst.msk [vmem:[%s14564_s26 + $0x30] sm:$0xff] %vm8319_vm5, %v8284_v47  ;;  %v14864_v0 = vor.u32 %v7079_v44, %v7076_v1 }
 0x57f   : > { %v8078_v54 = vpop.f32.mrf.mxu3  ;;  %v14853_v52 = vpop.permute.xlu2 %6824 }
 0x580   : > { %v8079_v12 = vadd.f32 %v8078_v54, %v7966_v19  ;;  %7364 = vrot.lane.b32.xlu1 %v7325_v26, %s9870_s15  ;;  %v14871_v41 = vsel %vm4552_vm15, %v7071_v27, %v14864_v0  ;;  %v7443_v44 = vsel %vm4982_vm6, %v14812_v58, %v14853_v52 }
 0x581   : > { %v8194_v63 = vpop.f32.mrf.mxu0  ;;  %6920 = vrot.lane.b32.xlu0 %v6878_v13, %s9868_s13  ;;  %v7970_v29 = vpop.f32.mrf.mxu2 }
 0x582   : > { %v8192_v5 = vadd.f32 %v8191_v34, %v8079_v12  ;;  %v7351_v21 = vpop.permute.xlu1 %7350 }
 0x583   : > { %v7702_v11 = vsel %vm5069_vm8, %v7648_v31, %v7351_v21  ;;  %v6907_v45 = vpop.permute.xlu0 %6906 }
 0x584   : > { %v8285_v56 = vmax.f32 %v8192_v5, 0.0  ;;  %9502 = vmatmul.msk.bf16.gmra.mxu0 %vm4982_vm6, %v7397_v32  ;;  %8120 = vmatmul.bf16.gmra.mxu3 %v7702_v11  ;;  %v7482_v13 = vsel %vm5026_vm7, %v7439_v50, %v6907_v45  ;;  %v7441_v5 = vsel %vm4982_vm6, %v14744_v43, %v14762_v18 }
 0x585   : > { %v7537_v59 = vsel %vm5069_vm8, %v7482_v13, %v14713_v37 }
 0x586   : > { %8327 = vst.msk [vmem:[%s14564_s26 + $0x38] sm:$0xff] %vm8319_vm5, %v8285_v56  ;;  %8012 = vmatmul.bf16.gmra.mxu2 %v7537_v59 }
 0x587   : > { %v8081_v4 = vpop.f32.mrf.mxu3  ;;  %v6970_v19 = vpop.permute.xlu2 %6969 }
 0x588   : > { %v8082_v2 = vadd.f32 %v8081_v4, %v7969_v55  ;;  %7166 = vrot.lane.b32.xlu1 %v7124_v62, %s9869_s14  ;;  %v7971_v62 = vadd.f32 %v14507_v38, %v7970_v29  ;;  %v7400_v4 = vrot.slane %v14319_v57, 3 }
 0x589   : > { %v8196_v14 = vpop.f32.mrf.mxu0  ;;  %7223 = vrot.lane.b32.xlu0 %v14783_v8, %s9868_s13  ;;  %v7973_v37 = vpop.f32.mrf.mxu2  ;;  %v7398_v8 = vrot.slane %v14874_v39, 3 }
 0x58a   : > { %v8195_v6 = vadd.f32 %v8194_v63, %v8082_v2  ;;  %v7153_v46 = vpop.permute.xlu1 %7152  ;;  %v7974_v21 = vadd.f32 %v14507_v38, %v7973_v37 }
 0x58b   : > { %v7210_v48 = vpop.permute.xlu0 %7209  ;;  %v7601_v20 = vsel %vm4982_vm6, %v14309_v22, %v7153_v46  ;;  %v7401_v1 = vsel %vm1779_vm3, %v7398_v8, %v7400_v4 }
 0x58c   : > { %v8286_v34 = vmax.f32 %v8195_v6, 0.0  ;;  %v7650_v3 = vsel %vm5026_vm7, %v7601_v20, %v7210_v48 }
 0x58e   : > { %8328 = vst.msk [vmem:[%s14564_s26 + $0x40] sm:$0xff] %vm8319_vm5, %v8286_v34 }
 0x58f   : > { %v8083_v36 = vpop.f32.mrf.mxu3  ;;  %v6827_v43 = vpop.permute.xlu2 %6826 }
 0x590   : > { %v8084_v47 = vadd.f32 %v8083_v36, %v7971_v62  ;;  %7366 = vrot.lane.b32.xlu1 %v7324_v40, %s9870_s15  ;;  %v7399_v40 = vsel %vm1779_vm3, %v7396_v33, %v7398_v8 }
 0x591   : > { %v8199_v26 = vpop.f32.mrf.mxu0  ;;  %v7975_v27 = vpop.f32.mrf.mxu2 }
 0x592   : > { %v8197_v54 = vadd.f32 %v8196_v14, %v8084_v47  ;;  %v7353_v12 = vpop.permute.xlu1 %7352  ;;  %v7976_v55 = vadd.f32 %v14507_v38, %v7975_v27 }
 0x593   : > { %v7705_v35 = vsel %vm5069_vm8, %v7650_v3, %v7353_v12  ;;  %v6909_v22 = vpop.permute.xlu0 %6908 }
 0x594   : > { %v8287_v31 = vmax.f32 %v8197_v54, 0.0  ;;  %8125 = vmatmul.bf16.gmra.mxu3 %v7705_v35  ;;  %9503 = vmatmul.msk.bf16.gmra.mxu0 %vm4982_vm6, %v7399_v40  ;;  %v7484_v63 = vsel %vm5026_vm7, %v7441_v5, %v6909_v22  ;;  %v7402_v35 = vrot.slane %v14405_v23, 3 }
 0x595   : > { %v7540_v32 = vsel %vm5069_vm8, %v7484_v63, %v14798_v42 }
 0x596   : > { %8329 = vst.msk [vmem:[%s14564_s26 + $0x48] sm:$0xff] %vm8319_vm5, %v8287_v31  ;;  %8017 = vmatmul.bf16.gmra.mxu2 %v7540_v32 }
 0x597   : > { %v8086_v29 = vpop.f32.mrf.mxu3  ;;  %v6972_v57 = vpop.permute.xlu2 %6971 }
 0x598   : > { %v8087_v33 = vadd.f32 %v8086_v29, %v7974_v21  ;;  %v7403_v29 = vsel %vm1779_vm3, %v7400_v4, %v7402_v35 }
 0x599   : > { %v8201_v11 = vpop.f32.mrf.mxu0  ;;  %v7978_v25 = vpop.f32.mrf.mxu2 }
 0x59a   : > { %v7155_v56 = vpop.permute.xlu1 %7154  ;;  %v8200_v18 = vadd.f32 %v8199_v26, %v8087_v33  ;;  %v7979_v48 = vadd.f32 %v14507_v38, %v7978_v25  ;;  %v7445_v33 = vsel %vm4982_vm6, %v14874_v39, %v6827_v43 }
 0x59b   : > { %v7212_v45 = vpop.permute.xlu0 %7211  ;;  %v7604_v42 = vsel %vm4982_vm6, %v14451_v17, %v7155_v56 }
 0x59c   : > { %v8288_v50 = vmax.f32 %v8200_v18, 0.0  ;;  %v7652_v2 = vsel %vm5026_vm7, %v7604_v42, %v7212_v45 }
 0x59e   : > { %8330 = vst.msk [vmem:[%s14564_s26 + $0x50] sm:$0xff] %vm8319_vm5, %v8288_v50 }
 0x59f   : > { %v8088_v13 = vpop.f32.mrf.mxu3  ;;  %v6829_v26 = vpop.permute.xlu2 %6828 }
 0x5a0   : > { %v8089_v59 = vadd.f32 %v8088_v13, %v7976_v55 }
 0x5a1   : > { %v8204_v30 = vpop.f32.mrf.mxu0  ;;  %v7980_v14 = vpop.f32.mrf.mxu2 }
 0x5a2   : > { %v7355_v24 = vpop.permute.xlu1 %7354  ;;  %v8202_v6 = vadd.f32 %v8201_v11, %v8089_v59  ;;  %v7981_v12 = vadd.f32 %v14507_v38, %v7980_v14 }
 0x5a3   : > { %v7708_v46 = vsel %vm5069_vm8, %v7652_v2, %v7355_v24  ;;  %v6911_v17 = vpop.permute.xlu0 %6910  ;;  %v7404_v24 = vrot.slane %v14494_v60, 3 }
 0x5a4   : > { %v8289_v37 = vmax.f32 %v8202_v6, 0.0  ;;  %8130 = vmatmul.bf16.gmra.mxu3 %v7708_v46  ;;  %9504 = vmatmul.msk.bf16.gmra.mxu0 %vm4982_vm6, %v7401_v1  ;;  %v7486_v34 = vsel %vm5026_vm7, %v7443_v44, %v6911_v17 }
 0x5a5   : > { %v7543_v62 = vsel %vm5069_vm8, %v7486_v34, %v6970_v19 }
 0x5a6   : > { %8331 = vst.msk [vmem:[%s14564_s26 + $0x58] sm:$0xff] %vm8319_vm5, %v8289_v37  ;;  %8022 = vmatmul.bf16.gmra.mxu2 %v7543_v62  ;;  %v9857_v62 = vld [vmem:[#allocation2 + $0x88] sm:$0xff] }
 0x5a7   : > { %v8091_v36 = vpop.f32.mrf.mxu3  ;;  %v6974_v45 = vpop.permute.xlu2 %6973 }
 0x5a8   : > { %v8092_v47 = vadd.f32 %v8091_v36, %v7979_v48  ;;  %v7405_v48 = vsel %vm1779_vm3, %v7402_v35, %v7404_v24  ;;  %v7447_v36 = vsel %vm4982_vm6, %v9857_v62, %v6829_v26 }
 0x5a9   : > { %v8206_v8 = vpop.f32.mrf.mxu0  ;;  %v7983_v20 = vpop.f32.mrf.mxu2 }
 0x5aa   : > { %v7157_v58 = vpop.permute.xlu1 %7156  ;;  %v8205_v52 = vadd.f32 %v8204_v30, %v8092_v47  ;;  %v7984_v18 = vadd.f32 %v14507_v38, %v7983_v20 }
 0x5ab   : > { %v7214_v54 = vpop.permute.xlu0 %7213  ;;  %v7607_v19 = vsel %vm4982_vm6, %v14574_v7, %v7157_v58 }
 0x5ac   : > { %v8290_v3 = vmax.f32 %v8205_v52, 0.0  ;;  %v7654_v40 = vsel %vm5026_vm7, %v7607_v19, %v7214_v54 }
 0x5ae   : > { %8332 = vst.msk [vmem:[%s14564_s26 + $0x60] sm:$0xff] %vm8319_vm5, %v8290_v3 }
 0x5af   : > { %v8093_v27 = vpop.f32.mrf.mxu3 }
 0x5b0   : > { %v8094_v31 = vadd.f32 %v8093_v27, %v7981_v12 }
 0x5b1   : > { %v8209_v5 = vpop.f32.mrf.mxu0  ;;  %v7985_v21 = vpop.f32.mrf.mxu2 }
 0x5b2   : > { %v7357_v22 = vpop.permute.xlu1 %7356  ;;  %v8207_v63 = vadd.f32 %v8206_v8, %v8094_v31  ;;  %v7986_v2 = vadd.f32 %v14507_v38, %v7985_v21 }
 0x5b3   : > { %v7711_v32 = vsel %vm5069_vm8, %v7654_v40, %v7357_v22  ;;  %v6913_v7 = vpop.permute.xlu0 %6912 }
 0x5b4   : > { %v8291_v11 = vmax.f32 %v8207_v63, 0.0  ;;  %8135 = vmatmul.bf16.gmra.mxu3 %v7711_v32  ;;  %9505 = vmatmul.msk.bf16.gmra.mxu0 %vm4982_vm6, %v7403_v29  ;;  %v7488_v56 = vsel %vm5026_vm7, %v7445_v33, %v6913_v7 }
 0x5b5   : > { %v7546_v25 = vsel %vm5069_vm8, %v7488_v56, %v6972_v57  ;;  %v6831_v57 = vpop.permute.xlu2 %6830  ;;  %v7407_v56 = vsel %vm1779_vm3, %v7404_v24, %v7406_v15 }
 0x5b6   : > { %8333 = vst.msk [vmem:[%s14564_s26 + $0x68] sm:$0xff] %vm8319_vm5, %v8291_v11  ;;  %8027 = vmatmul.bf16.gmra.mxu2 %v7546_v25 }
 0x5b7   : > { %v8096_v50 = vpop.f32.mrf.mxu3 }
 0x5b8   : > { %v8097_v55 = vadd.f32 %v8096_v50, %v7984_v18  ;;  %v7449_v18 = vsel %vm4982_vm6, %v14405_v23, %v6831_v57 }
 0x5b9   : > { %v8211_v13 = vpop.f32.mrf.mxu0  ;;  %v7988_v4 = vpop.f32.mrf.mxu2 }
 0x5ba   : > { %v7159_v39 = vpop.permute.xlu1 %7158  ;;  %v8210_v43 = vadd.f32 %v8209_v5, %v8097_v55  ;;  %v7989_v58 = vadd.f32 %v14507_v38, %v7988_v4 }
 0x5bb   : > { %v7216_v59 = vpop.permute.xlu0 %7215  ;;  %v7610_v6 = vsel %vm4982_vm6, %v14689_v16, %v7159_v39 }
 0x5bc   : > { %v8292_v42 = vmax.f32 %v8210_v43, 0.0  ;;  %v7656_v46 = vsel %vm5026_vm7, %v7610_v6, %v7216_v59 }
 0x5bd   : > { %v6976_v35 = vpop.permute.xlu2 %6975 }
 0x5be   : > { %8334 = vst.msk [vmem:[%s14564_s26 + $0x70] sm:$0xff] %vm8319_vm5, %v8292_v42 }
 0x5bf   : > { %v8098_v30 = vpop.f32.mrf.mxu3 }
 0x5c0   : > { %v8099_v14 = vadd.f32 %v8098_v30, %v7986_v2 }
 0x5c1   : > { %v8214_v1 = vpop.f32.mrf.mxu0  ;;  %v7990_v17 = vpop.f32.mrf.mxu2 }
 0x5c2   : > { %v7359_v44 = vpop.permute.xlu1 %7358  ;;  %v8212_v37 = vadd.f32 %v8211_v13, %v8099_v14  ;;  %v7991_v40 = vadd.f32 %v14507_v38, %v7990_v17 }
 0x5c3   : > { %v7714_v34 = vsel %vm5069_vm8, %v7656_v46, %v7359_v44  ;;  %v6915_v16 = vpop.permute.xlu0 %6914 }
 0x5c4   : > { %v8293_v47 = vmax.f32 %v8212_v37, 0.0  ;;  %8140 = vmatmul.bf16.gmra.mxu3 %v7714_v34  ;;  %9506 = vmatmul.msk.bf16.gmra.mxu0 %vm4982_vm6, %v7405_v48  ;;  %v7490_v8 = vsel %vm5026_vm7, %v7447_v36, %v6915_v16 }
 0x5c5   : > { %v7549_v52 = vsel %vm5069_vm8, %v7490_v8, %v6974_v45  ;;  %v6833_v45 = vpop.permute.xlu2 %6832 }
 0x5c6   : > { %8335 = vst.msk [vmem:[%s14564_s26 + $0x78] sm:$0xff] %vm8319_vm5, %v8293_v47  ;;  %8032 = vmatmul.bf16.gmra.mxu2 %v7549_v52  ;;  %v7451_v34 = vsel %vm4982_vm6, %v14494_v60, %v6833_v45 }
 0x5c7   : > { %v8101_v20 = vpop.f32.mrf.mxu3 }
 0x5c8   : > { %v8102_v3 = vadd.f32 %v8101_v20, %v7989_v58 }
 0x5c9   : > { %v8216_v54 = vpop.f32.mrf.mxu0  ;;  %v7993_v27 = vpop.f32.mrf.mxu2 }
 0x5ca   : > { %v7161_v12 = vpop.permute.xlu1 %7160  ;;  %v8215_v26 = vadd.f32 %v8214_v1, %v8102_v3  ;;  %v7994_v55 = vadd.f32 %v14507_v38, %v7993_v27  ;;  %v6507_v3 = vld [vmem:[#allocation2 + $0xa0] sm:$0x3] }
 0x5cb   : > { %v7218_v31 = vpop.permute.xlu0 %7217  ;;  %v7613_v22 = vsel %vm4982_vm6, %v14760_v10, %v7161_v12 }
 0x5cc   : > { %v8294_v19 = vmax.f32 %v8215_v26, 0.0  ;;  %v7658_v21 = vsel %vm5026_vm7, %v7613_v22, %v7218_v31  ;;  %v6602_v26 = vunpack.c.l.b16 %v6507_v3 }
 0x5cd   : > { %v6978_v24 = vpop.permute.xlu2 %6977 }
 0x5ce   : > { %8336 = vst.msk [vmem:[%s14564_s26 + $0x80] sm:$0xff] %vm8319_vm5, %v8294_v19 }
 0x5cf   : > { %v8103_v5 = vpop.f32.mrf.mxu3 }
 0x5d0   : > { %v8104_v63 = vadd.f32 %v8103_v5, %v7991_v40 }
 0x5d1   : > { %v8219_v32 = vpop.f32.mrf.mxu0  ;;  %v7995_v11 = vpop.f32.mrf.mxu2 }
 0x5d2   : > { %v7361_v29 = vpop.permute.xlu1 %7360  ;;  %v8217_v33 = vadd.f32 %v8216_v54, %v8104_v63  ;;  %v7996_v2 = vadd.f32 %v14507_v38, %v7995_v11  ;;  %v6623_v63 = vpack.c.b16 %v6602_v26, %v6602_v26 }
 0x5d3   : > { %v7717_v7 = vsel %vm5069_vm8, %v7658_v21, %v7361_v29  ;;  %v6917_v10 = vpop.permute.xlu0 %6916 }
 0x5d4   : > { %v8295_v25 = vmax.f32 %v8217_v33, 0.0  ;;  %8145 = vmatmul.bf16.gmra.mxu3 %v7717_v7  ;;  %9507 = vmatmul.msk.bf16.gmra.mxu0 %vm4982_vm6, %v7407_v56  ;;  %v7492_v50 = vsel %vm5026_vm7, %v7449_v18, %v6917_v10 }
 0x5d5   : > { %v7552_v28 = vsel %vm5069_vm8, %v7492_v50, %v6976_v35  ;;  %v6835_v54 = vpop.permute.xlu2 %6834 }
 0x5d6   : > { %8337 = vst.msk [vmem:[%s14564_s26 + $0x88] sm:$0xff] %vm8319_vm5, %v8295_v25  ;;  %8037 = vmatmul.bf16.gmra.mxu2 %v7552_v28  ;;  %v7454_v33 = vsel %vm4982_vm6, %v6623_v63, %v6835_v54 }
 0x5d7   : > { %v8106_v13 = vpop.f32.mrf.mxu3 }
 0x5d8   : > { %v8107_v15 = vadd.f32 %v8106_v13, %v7994_v55 }
 0x5d9   : > { %v8221_v39 = vpop.f32.mrf.mxu0  ;;  %v7998_v4 = vpop.f32.mrf.mxu2 }
 0x5da   : > { %v7163_v23 = vpop.permute.xlu1 %7162  ;;  %v8220_v43 = vadd.f32 %v8219_v32, %v8107_v15  ;;  %v7999_v36 = vadd.f32 %v14507_v38, %v7998_v4 }
 0x5db   : > { %v7220_v59 = vpop.permute.xlu0 %7219  ;;  %v7616_v6 = vsel %vm4982_vm6, %v14821_v9, %v7163_v23 }
 0x5dc   : > { %v8296_v42 = vmax.f32 %v8220_v43, 0.0  ;;  %v7660_v46 = vsel %vm5026_vm7, %v7616_v6, %v7220_v59 }
 0x5de   : > { %8338 = vst.msk [vmem:[%s14564_s26 + $0x90] sm:$0xff] %vm8319_vm5, %v8296_v42 }
 0x5df   : > { %v8108_v30 = vpop.f32.mrf.mxu3 }
 0x5e0   : > { %v8109_v14 = vadd.f32 %v8108_v30, %v7996_v2 }
 0x5e1   : > { %v8224_v1 = vpop.f32.mrf.mxu0  ;;  %v8000_v37 = vpop.f32.mrf.mxu2 }
 0x5e2   : > { %v7363_v44 = vpop.permute.xlu1 %7362  ;;  %v8222_v57 = vadd.f32 %v8221_v39, %v8109_v14  ;;  %v8001_v27 = vadd.f32 %v14507_v38, %v8000_v37 }
 0x5e3   : > { %v7720_v17 = vsel %vm5069_vm8, %v7660_v46, %v7363_v44  ;;  %v6919_v62 = vpop.permute.xlu0 %6918 }
 0x5e4   : > { %v8297_v48 = vmax.f32 %v8222_v57, 0.0  ;;  %8150 = vmatmul.bf16.gmra.mxu3 %v7720_v17  ;;  %9508 = vmatmul.msk.bf16.gmra.mxu0 %vm4982_vm6, %v14846_v49  ;;  %v7494_v9 = vsel %vm5026_vm7, %v7451_v34, %v6919_v62 }
 0x5e5   : > { %v7555_v47 = vsel %vm5069_vm8, %v7494_v9, %v6978_v24 }
 0x5e6   : > { %8339 = vst.msk [vmem:[%s14564_s26 + $0x98] sm:$0xff] %vm8319_vm5, %v8297_v48  ;;  %8042 = vmatmul.bf16.gmra.mxu2 %v7555_v47 }
 0x5e7   : > { %v8111_v16 = vpop.f32.mrf.mxu3 }
 0x5e8   : > { %v8112_v8 = vadd.f32 %v8111_v16, %v7999_v36 }
 0x5e9   : > { %v8226_v58 = vpop.f32.mrf.mxu0  ;;  %v8003_v20 = vpop.f32.mrf.mxu2 }
 0x5ea   : > { %v7165_v60 = vpop.permute.xlu1 %7164  ;;  %v8225_v52 = vadd.f32 %v8224_v1, %v8112_v8  ;;  %v8004_v18 = vadd.f32 %v14507_v38, %v8003_v20 }
 0x5eb   : > { %v7222_v12 = vpop.permute.xlu0 %7221  ;;  %v7619_v19 = vsel %vm4982_vm6, %v14871_v41, %v7165_v60  ;;  %v6980_v41 = vpop.permute.xlu2 %6979 }
 0x5ec   : > { %v8298_v49 = vmax.f32 %v8225_v52, 0.0  ;;  %v7662_v40 = vsel %vm5026_vm7, %v7619_v19, %v7222_v12 }
 0x5ee   : > { %8340 = vst.msk [vmem:[%s14564_s26 + $0xa0] sm:$0xff] %vm8319_vm5, %v8298_v49 }
 0x5ef   : > { %v8113_v35 = vpop.f32.mrf.mxu3 }
 0x5f0   : > { %v8114_v31 = vadd.f32 %v8113_v35, %v8001_v27 }
 0x5f1   : > { %v8229_v5 = vpop.f32.mrf.mxu0  ;;  %v8005_v32 = vpop.f32.mrf.mxu2 }
 0x5f2   : > { %v7365_v22 = vpop.permute.xlu1 %7364  ;;  %v8227_v21 = vadd.f32 %v8226_v58, %v8114_v31 }
 0x5f3   : > { %v7723_v29 = vsel %vm5069_vm8, %v7662_v40, %v7365_v22  ;;  %v6921_v7 = vpop.permute.xlu0 %6920 }
 0x5f4   : > { %v8299_v11 = vmax.f32 %v8227_v21, 0.0  ;;  %8155 = vmatmul.bf16.gmra.mxu3 %v7723_v29  ;;  %9509 = vmatmul.msk.bf16.gmra.mxu0 %vm4982_vm6, %v14851_v61  ;;  %v7496_v56 = vsel %vm5026_vm7, %v7454_v33, %v6921_v7  ;;  %v14997_v61 = vld [vmem:[%s15071_s7] ss:$0 sm:$0xff] }
 0x5f5   : > { %v7558_v25 = vsel %vm5069_vm8, %v7496_v56, %v6980_v41  ;;  %v8006_v39 = vadd.f32 %v14997_v61, %v8005_v32 }
 0x5f6   : > { %8341 = vst.msk [vmem:[%s14564_s26 + $0xa8] sm:$0xff] %vm8319_vm5, %v8299_v11  ;;  %8047 = vmatmul.bf16.gmra.mxu2 %v7558_v25 }
 0x5f7   : > { %v8116_v10 = vpop.f32.mrf.mxu3 }
 0x5f8   : > { %v8117_v50 = vadd.f32 %v8116_v10, %v8004_v18 }
 0x5f9   : > { %v8231_v45 = vpop.f32.mrf.mxu0  ;;  %v8008_v13 = vpop.f32.mrf.mxu2 }
 0x5fa   : > { %v7167_v55 = vpop.permute.xlu1 %7166  ;;  %v8230_v28 = vadd.f32 %v8229_v5, %v8117_v50  ;;  %v8009_v46 = vadd.f32 %v14997_v61, %v8008_v13 }
 0x5fb   : > { %v7224_v38 = vpop.permute.xlu0 %7223  ;;  %v7622_v43 = vsel %vm4982_vm6, %v14864_v0, %v7167_v55 }
 0x5fc   : > { %v8300_v15 = vmax.f32 %v8230_v28, 0.0  ;;  %v7664_v42 = vsel %vm5026_vm7, %v7622_v43, %v7224_v38 }
 0x5fe   : > { %8342 = vst.msk [vmem:[%s14564_s26 + $0xb0] sm:$0xff] %vm8319_vm5, %v8300_v15 }
 0x5ff   : > { %v8118_v23 = vpop.f32.mrf.mxu3 }
 0x600   : > { %v8119_v4 = vadd.f32 %v8118_v23, %v8006_v39 }
 0x601   : > { %v8234_v59 = vpop.f32.mrf.mxu0  ;;  %v8010_v24 = vpop.f32.mrf.mxu2 }
 0x602   : > { %v7367_v2 = vpop.permute.xlu1 %7366  ;;  %v8232_v30 = vadd.f32 %v8231_v45, %v8119_v4  ;;  %v8011_v34 = vadd.f32 %v14997_v61, %v8010_v24 }
 0x603   : > { %v7726_v6 = vsel %vm5069_vm8, %v7664_v42, %v7367_v2 }
 0x604   : > { %v8301_v14 = vmax.f32 %v8232_v30, 0.0  ;;  %8160 = vmatmul.bf16.gmra.mxu3 %v7726_v6  ;;  %9510 = vmatmul.msk.bf16.gmra.mxu0 %vm4982_vm6, %v7410_v51 }
 0x606   : > { %8343 = vst.msk [vmem:[%s14564_s26 + $0xb8] sm:$0xff] %vm8319_vm5, %v8301_v14 }
 0x607   : > { %v8121_v0 = vpop.f32.mrf.mxu3 }
 0x608   : > { %v8122_v1 = vadd.f32 %v8121_v0, %v8009_v46 }
 0x609   : > { %v8236_v44 = vpop.f32.mrf.mxu0  ;;  %v8013_v37 = vpop.f32.mrf.mxu2 }
 0x60a   : > { %v8235_v57 = vadd.f32 %v8234_v59, %v8122_v1  ;;  %v8014_v47 = vadd.f32 %v14997_v61, %v8013_v37 }
 0x60c   : > { %v8302_v17 = vmax.f32 %v8235_v57, 0.0 }
 0x60e   : > { %8344 = vst.msk [vmem:[%s14564_s26 + $0xc0] sm:$0xff] %vm8319_vm5, %v8302_v17 }
 0x60f   : > { %v8123_v48 = vpop.f32.mrf.mxu3 }
 0x610   : > { %v8124_v53 = vadd.f32 %v8123_v48, %v8011_v34 }
 0x611   : > { %v8239_v62 = vpop.f32.mrf.mxu0  ;;  %v8015_v9 = vpop.f32.mrf.mxu2 }
 0x612   : > { %v8237_v51 = vadd.f32 %v8236_v44, %v8124_v53  ;;  %v8016_v3 = vadd.f32 %v14997_v61, %v8015_v9 }
 0x614   : > { %v8303_v36 = vmax.f32 %v8237_v51, 0.0 }
 0x616   : > { %8345 = vst.msk [vmem:[%s14564_s26 + $0xc8] sm:$0xff] %vm8319_vm5, %v8303_v36 }
 0x617   : > { %v8126_v16 = vpop.f32.mrf.mxu3 }
 0x618   : > { %v8127_v8 = vadd.f32 %v8126_v16, %v8014_v47 }
 0x619   : > { %v8241_v58 = vpop.f32.mrf.mxu0  ;;  %v8018_v52 = vpop.f32.mrf.mxu2 }
 0x61a   : > { %v8240_v60 = vadd.f32 %v8239_v62, %v8127_v8  ;;  %v8019_v19 = vadd.f32 %v14997_v61, %v8018_v52 }
 0x61c   : > { %v8304_v20 = vmax.f32 %v8240_v60, 0.0 }
 0x61e   : > { %8346 = vst.msk [vmem:[%s14564_s26 + $0xd0] sm:$0xff] %vm8319_vm5, %v8304_v20 }
 0x61f   : > { %v8128_v54 = vpop.f32.mrf.mxu3 }
 0x620   : > { %v8129_v49 = vadd.f32 %v8128_v54, %v8016_v3 }
 0x621   : > { %v8244_v12 = vpop.f32.mrf.mxu0  ;;  %v8020_v27 = vpop.f32.mrf.mxu2 }
 0x622   : > { %v8242_v26 = vadd.f32 %v8241_v58, %v8129_v49  ;;  %v8021_v32 = vadd.f32 %v14997_v61, %v8020_v27 }
 0x624   : > { %v8305_v35 = vmax.f32 %v8242_v26, 0.0 }
 0x626   : > { %8347 = vst.msk [vmem:[%s14564_s26 + $0xd8] sm:$0xff] %vm8319_vm5, %v8305_v35 }
 0x627   : > { %v8131_v31 = vpop.f32.mrf.mxu3 }
 0x628   : > { %v8132_v40 = vadd.f32 %v8131_v31, %v8019_v19 }
 0x629   : > { %v8246_v5 = vpop.f32.mrf.mxu0  ;;  %v8023_v63 = vpop.f32.mrf.mxu2 }
 0x62a   : > { %v8245_v22 = vadd.f32 %v8244_v12, %v8132_v40  ;;  %v8024_v18 = vadd.f32 %v14997_v61, %v8023_v63 }
 0x62c   : > { %v8306_v21 = vmax.f32 %v8245_v22, 0.0 }
 0x62e   : > { %8348 = vst.msk [vmem:[%s14564_s26 + $0xe0] sm:$0xff] %vm8319_vm5, %v8306_v21 }
 0x62f   : > { %v8133_v29 = vpop.f32.mrf.mxu3 }
 0x630   : > { %v8134_v33 = vadd.f32 %v8133_v29, %v8021_v32 }
 0x631   : > { %v8249_v11 = vpop.f32.mrf.mxu0  ;;  %v8025_v41 = vpop.f32.mrf.mxu2 }
 0x632   : > { %v8247_v7 = vadd.f32 %v8246_v5, %v8134_v33  ;;  %v8026_v13 = vadd.f32 %v14997_v61, %v8025_v41 }
 0x634   : > { %v8307_v56 = vmax.f32 %v8247_v7, 0.0 }
 0x636   : > { %8349 = vst.msk [vmem:[%s14564_s26 + $0xe8] sm:$0xff] %vm8319_vm5, %v8307_v56 }
 0x637   : > { %v8136_v25 = vpop.f32.mrf.mxu3 }
 0x638   : > { %v8137_v10 = vadd.f32 %v8136_v25, %v8024_v18 }
 0x639   : > { %v8251_v50 = vpop.f32.mrf.mxu0  ;;  %v8028_v55 = vpop.f32.mrf.mxu2 }
 0x63a   : > { %v8250_v45 = vadd.f32 %v8249_v11, %v8137_v10  ;;  %v8029_v42 = vadd.f32 %v14997_v61, %v8028_v55 }
 0x63c   : > { %v8308_v28 = vmax.f32 %v8250_v45, 0.0 }
 0x63e   : > { %8350 = vst.msk [vmem:[%s14564_s26 + $0xf0] sm:$0xff] %vm8319_vm5, %v8308_v28 }
 0x63f   : > { %v8138_v15 = vpop.f32.mrf.mxu3 }
 0x640   : > { %v8139_v39 = vadd.f32 %v8138_v15, %v8026_v13 }
 0x641   : > { %v8254_v38 = vpop.f32.mrf.mxu0  ;;  %v8030_v43 = vpop.f32.mrf.mxu2 }
 0x642   : > { %v8252_v23 = vadd.f32 %v8251_v50, %v8139_v39  ;;  %v8031_v46 = vadd.f32 %v14997_v61, %v8030_v43 }
 0x644   : > { %v8309_v4 = vmax.f32 %v8252_v23, 0.0 }
 0x646   : > { %8351 = vst.msk [vmem:[%s14564_s26 + $0xf8] sm:$0xff] %vm8319_vm5, %v8309_v4 }
 0x647   : > { %v8141_v59 = vpop.f32.mrf.mxu3 }
 0x648   : > { %v8142_v2 = vadd.f32 %v8141_v59, %v8029_v42 }
 0x649   : > { %v8256_v30 = vpop.f32.mrf.mxu0  ;;  %v8033_v6 = vpop.f32.mrf.mxu2 }
 0x64a   : > { %v8255_v24 = vadd.f32 %v8254_v38, %v8142_v2  ;;  %v8034_v34 = vadd.f32 %v14997_v61, %v8033_v6 }
 0x64c   : > { %v8310_v14 = vmax.f32 %v8255_v24, 0.0 }
 0x64e   : > { %8352 = vst.msk [vmem:[%s14564_s26 + $0x100] sm:$0xff] %vm8319_vm5, %v8310_v14 }
 0x64f   : > { %v8143_v0 = vpop.f32.mrf.mxu3 }
 0x650   : > { %v8144_v1 = vadd.f32 %v8143_v0, %v8031_v46 }
 0x651   : > { %v8259_v44 = vpop.f32.mrf.mxu0  ;;  %v8035_v37 = vpop.f32.mrf.mxu2 }
 0x652   : > { %v8257_v57 = vadd.f32 %v8256_v30, %v8144_v1  ;;  %v8036_v47 = vadd.f32 %v14997_v61, %v8035_v37 }
 0x654   : > { %v8311_v17 = vmax.f32 %v8257_v57, 0.0 }
 0x656   : > { %8353 = vst.msk [vmem:[%s14564_s26 + $0x108] sm:$0xff] %vm8319_vm5, %v8311_v17 }
 0x657   : > { %v8146_v48 = vpop.f32.mrf.mxu3 }
 0x658   : > { %v8147_v53 = vadd.f32 %v8146_v48, %v8034_v34 }
 0x659   : > { %v8261_v62 = vpop.f32.mrf.mxu0  ;;  %v8038_v9 = vpop.f32.mrf.mxu2 }
 0x65a   : > { %v8260_v51 = vadd.f32 %v8259_v44, %v8147_v53  ;;  %v8039_v3 = vadd.f32 %v14997_v61, %v8038_v9 }
 0x65c   : > { %v8312_v36 = vmax.f32 %v8260_v51, 0.0 }
 0x65e   : > { %8354 = vst.msk [vmem:[%s14564_s26 + $0x110] sm:$0xff] %vm8319_vm5, %v8312_v36 }
 0x65f   : > { %v8148_v16 = vpop.f32.mrf.mxu3 }
 0x660   : > { %v8149_v8 = vadd.f32 %v8148_v16, %v8036_v47 }
 0x661   : > { %v8264_v58 = vpop.f32.mrf.mxu0  ;;  %v8040_v52 = vpop.f32.mrf.mxu2 }
 0x662   : > { %v8262_v60 = vadd.f32 %v8261_v62, %v8149_v8  ;;  %v8041_v19 = vadd.f32 %v14997_v61, %v8040_v52 }
 0x664   : > { %v8313_v20 = vmax.f32 %v8262_v60, 0.0 }
 0x666   : > { %8355 = vst.msk [vmem:[%s14564_s26 + $0x118] sm:$0xff] %vm8319_vm5, %v8313_v20 }
 0x667   : > { %v8151_v54 = vpop.f32.mrf.mxu3 }
 0x668   : > { %v8152_v49 = vadd.f32 %v8151_v54, %v8039_v3 }
 0x669   : > { %v8266_v12 = vpop.f32.mrf.mxu0  ;;  %v8043_v27 = vpop.f32.mrf.mxu2 }
 0x66a   : > { %v8265_v26 = vadd.f32 %v8264_v58, %v8152_v49  ;;  %v8044_v32 = vadd.f32 %v14997_v61, %v8043_v27 }
 0x66c   : > { %v8314_v35 = vmax.f32 %v8265_v26, 0.0 }
 0x66e   : > { %8356 = vst.msk [vmem:[%s14564_s26 + $0x120] sm:$0xff] %vm8319_vm5, %v8314_v35 }
 0x66f   : > { %v8153_v31 = vpop.f32.mrf.mxu3 }
 0x670   : > { %v8154_v40 = vadd.f32 %v8153_v31, %v8041_v19 }
 0x671   : > { %v8269_v5 = vpop.f32.mrf.mxu0  ;;  %v8045_v63 = vpop.f32.mrf.mxu2 }
 0x672   : > { %v8267_v22 = vadd.f32 %v8266_v12, %v8154_v40  ;;  %v8046_v18 = vadd.f32 %v14997_v61, %v8045_v63 }
 0x674   : > { %v8315_v21 = vmax.f32 %v8267_v22, 0.0 }
 0x676   : > { %8357 = vst.msk [vmem:[%s14564_s26 + $0x128] sm:$0xff] %vm8319_vm5, %v8315_v21 }
 0x677   : > { %v8156_v29 = vpop.f32.mrf.mxu3 }
 0x678   : > { %v8157_v33 = vadd.f32 %v8156_v29, %v8044_v32 }
 0x679   : > { %v8271_v11 = vpop.f32.mrf.mxu0  ;;  %v8048_v41 = vpop.f32.mrf.mxu2 }
 0x67a   : > { %v8270_v7 = vadd.f32 %v8269_v5, %v8157_v33  ;;  %v8049_v13 = vadd.f32 %v14997_v61, %v8048_v41 }
 0x67c   : > { %v8316_v56 = vmax.f32 %v8270_v7, 0.0 }
 0x67e   : > { %8358 = vst.msk [vmem:[%s14564_s26 + $0x130] sm:$0xff] %vm8319_vm5, %v8316_v56 }
 0x67f   : > { %v8158_v25 = vpop.f32.mrf.mxu3 }
 0x680   : > { %v8159_v10 = vadd.f32 %v8158_v25, %v8046_v18 }
 0x681   : > { %v8274_v50 = vpop.f32.mrf.mxu0  ;;  %v8050_v55 = vpop.f32.mrf.mxu2 }
 0x682   : > { %v8272_v45 = vadd.f32 %v8271_v11, %v8159_v10 }
 0x684   : > { %v8317_v28 = vmax.f32 %v8272_v45, 0.0 }
 0x686   : > { %8359 = vst.msk [vmem:[%s14564_s26 + $0x138] sm:$0xff] %vm8319_vm5, %v8317_v28 }
 0x687   : > { %v8161_v15 = vpop.f32.mrf.mxu3 }
 0x688   : > { %v8162_v39 = vadd.f32 %v8161_v15, %v8049_v13 }
 0x689   : > { %v8276_v38 = vpop.f32.mrf.mxu0 }
 0x68a   : > { %v8275_v23 = vadd.f32 %v8274_v50, %v8162_v39 }
 0x68c   : > { %v8318_v43 = vmax.f32 %v8275_v23, 0.0 }
 0x68e   : > { %8361 = vst.msk [vmem:[%s14564_s26 + $0x140] sm:$0xf] %vm8360_vm1, %v8318_v43 }
 0x68f   : > { %v8163_v4 = vpop.f32.mrf.mxu3 }
 0x690 PF: > { %s18_s27 = sadd.s32 1, %s9865_s27  }
 0x691   : > { %p15_p4 = scmp.ge.s32.totalorder %s18_s27, 4  }
 0x693   :  { %17 = sbr.rel (!%p15_p4) target bundleno = 1 (0x1), region = 88 }

</bundles_post_ra>
